<compile_context>
chip_gen: v5e
topology: v5e:2x2
jax: 0.10.0
libtpu: 0.0.40
codegen_flags: <defaults>
</compile_context>

<pallas_src>
import functools
import math

import jax
import jax.numpy as jnp
from jax import lax
from jax.experimental import pallas as pl
from jax.experimental.pallas import tpu as pltpu

LANES = 128  # TPU lane width; all channel / feature dims are zero-padded to this.


# ----------------------------------------------------------------------------
# Fused forward kernel (processes ONE batch element per grid step)
# ----------------------------------------------------------------------------
def _fused_cnn_kernel(*refs, blocks, hf, wf, n_dense):
    """refs layout:
       [x_ref,
        conv_w_0, conv_b_0, ..., conv_w_{nc-1}, conv_b_{nc-1},
        dense_w_0, dense_b_0, ..., dense_w_{nd-1}, dense_b_{nd-1},
        out_ref,
        pad_0, conv_0, ..., pad_{nc-1}, conv_{nc-1}, pool_ref]
    blocks: tuple of (H, W, Cin, Cout) for each conv block (input spatial size).
    (hf, wf): spatial size after the last pool; n_dense: number of Linear layers.
    """
    n_conv = len(blocks)
    it = iter(refs)
    x_ref = next(it)
    conv_params = [(next(it), next(it)) for _ in range(n_conv)]
    dense_params = [(next(it), next(it)) for _ in range(n_dense)]
    out_ref = next(it)
    pad_refs, conv_refs = [], []
    for _ in range(n_conv):
        pad_refs.append(next(it))
        conv_refs.append(next(it))
    pool_ref = next(it)

    # ---- zero the padded activation scratches (spatial halo + channel padding) ----
    for p in pad_refs:
        p[...] = jnp.zeros_like(p)

    # ---- stage the input image into the centre of the first padded scratch ----
    h0, w0, c0, _ = blocks[0]
    pad_refs[0][:, pl.ds(1, h0), pl.ds(1, w0), pl.ds(0, c0)] = x_ref[...]

    # ---- conv blocks: 3x3 conv (pad=1) + bias + ReLU + 2x2 max-pool ----
    for bi, (h, w, cin, cout) in enumerate(blocks):
        pad_ref = pad_refs[bi]
        conv_ref = conv_refs[bi]
        w_ref, b_ref = conv_params[bi]

        # in-kernel im2col: 9 accumulating MXU matmuls over shifted windows
        m = h * w
        acc = jnp.zeros((m, LANES), jnp.float32)
        for dh in range(3):
            for dw in range(3):
                win = pad_ref[:, pl.ds(dh, h), pl.ds(dw, w), :]        # (1, h, w, 128)
                acc = acc + jnp.dot(win.reshape(m, LANES),
                                    w_ref[dh * 3 + dw],
                                    preferred_element_type=jnp.float32)
        acc = jnp.maximum(acc + b_ref[...], 0.0)                       # bias + ReLU
        conv_ref[...] = acc.reshape(1, h, w, LANES)

        # 2x2 max-pool, written straight into the next block's padded scratch
        if bi + 1 < n_conv:
            dst, off = pad_refs[bi + 1], 1
        else:
            dst, off = pool_ref, 0
        hh = h // 2
        for j in range(w // 2):
            a = conv_ref[0, :, pl.ds(2 * j, 1), :]                     # (h, 1, 128)
            b = conv_ref[0, :, pl.ds(2 * j + 1, 1), :]
            cmax = jnp.maximum(a, b).reshape(hh, 2, 1, LANES)          # trivial reshape
            pooled = jnp.maximum(cmax[:, 0], cmax[:, 1])               # (hh, 1, 128)
            dst[0, pl.ds(off, hh), pl.ds(off + j, 1), :] = pooled

    # ---- dense stack (NCHW flatten folded into the first weight's permutation) ----
    w0_ref, b0_ref = dense_params[0]
    h1 = jnp.zeros((1, LANES), jnp.float32)
    for yy in range(hf):
        for xx in range(wf):
            v = pool_ref[:, yy, xx, :]                                 # (1, 128)
            h1 = h1 + jnp.dot(v, w0_ref[yy * wf + xx],
                              preferred_element_type=jnp.float32)
    h1 = h1 + b0_ref[...]
    if n_dense > 1:
        h1 = jnp.maximum(h1, 0.0)          # ReLU; nn.Dropout(p=0) is the identity
    for k in range(1, n_dense):
        wk_ref, bk_ref = dense_params[k]
        h1 = jnp.dot(h1, wk_ref[...], preferred_element_type=jnp.float32) + bk_ref[...]
        if k != n_dense - 1:
            h1 = jnp.maximum(h1, 0.0)

    out_ref[...] = h1.reshape(1, 1, LANES)


# ----------------------------------------------------------------------------
# Wrapper: builds the single fused pallas_call
# ----------------------------------------------------------------------------
def make_forward(input_shape, n_classes, conv_sizes, dense_sizes, batch):
    chan, height, width = input_shape
    assert len(conv_sizes) >= 1

    blocks = []
    hh, ww, cin = height, width, chan
    for cs in conv_sizes:
        assert hh % 2 == 0 and ww % 2 == 0
        assert ww % 8 == 0, "kernel assumes per-block W is a multiple of 8"
        blocks.append((hh, ww, cin, cs))
        cin = cs
        hh //= 2
        ww //= 2
    hf, wf = hh, ww
    n_dense = len(dense_sizes) + 1
    assert max([chan, n_classes, *conv_sizes, *dense_sizes]) <= LANES

    kernel = functools.partial(_fused_cnn_kernel, blocks=tuple(blocks),
                               hf=hf, wf=wf, n_dense=n_dense)

    in_specs = [pl.BlockSpec((1, height, width, chan), lambda b: (b, 0, 0, 0))]
    for _ in blocks:
        in_specs.append(pl.BlockSpec((9, LANES, LANES), lambda b: (0, 0, 0)))
        in_specs.append(pl.BlockSpec((1, LANES), lambda b: (0, 0)))
    in_specs.append(pl.BlockSpec((hf * wf, LANES, LANES), lambda b: (0, 0, 0)))
    in_specs.append(pl.BlockSpec((1, LANES), lambda b: (0, 0)))
    for _ in range(n_dense - 1):
        in_specs.append(pl.BlockSpec((LANES, LANES), lambda b: (0, 0)))
        in_specs.append(pl.BlockSpec((1, LANES), lambda b: (0, 0)))

    out_specs = pl.BlockSpec((1, 1, LANES), lambda b: (b, 0, 0))

    scratch_shapes = []
    for (bh, bw, _, _) in blocks:
        scratch_shapes.append(pltpu.VMEM((1, bh + 2, bw + 2, LANES), jnp.float32))  # padded act
        scratch_shapes.append(pltpu.VMEM((1, bh, bw, LANES), jnp.float32))          # conv out
    scratch_shapes.append(pltpu.VMEM((1, hf, wf, LANES), jnp.float32))              # final pooled

    call = pl.pallas_call(
        kernel,
        out_shape=jax.ShapeDtypeStruct((batch, 1, LANES), jnp.float32),
        grid=(batch,),
        in_specs=in_specs,
        out_specs=out_specs,
        scratch_shapes=scratch_shapes,
        compiler_params=pltpu.CompilerParams(
            dimension_semantics=("parallel",),          # v7x: shard batch over 2 TCs
            vmem_limit_bytes=32 * 1024 * 1024,
        ),
    )

    def forward(x_nchw, prep):
        x_nhwc = jnp.transpose(x_nchw, (0, 2, 3, 1))    # only XLA glue on the hot path
        args = [x_nhwc]
        for wp, bp in prep["conv"]:
            args.extend((wp, bp))
        for wp, bp in prep["dense"]:
            args.extend((wp, bp))
        out = call(*args)                               # (batch, 1, 128) lane-dense
        return out[:, 0, :n_classes]

    return forward


# ----------------------------------------------------------------------------
# One-time parameter preparation (matmul-ready, zero-padded to 128 lanes)
# ----------------------------------------------------------------------------
def prepare_params(params, input_shape):
    chan, height, width = input_shape
    conv_prep = []
    cin = chan
    hh, ww = height, width
    for (wconv, bconv) in params["conv"]:
        cout = wconv.shape[0]
        # wp[dh*3+dw, ci, co] = wconv[co, ci, dh, dw]
        wt = jnp.transpose(wconv, (2, 3, 1, 0)).reshape(9, cin, cout)
        wp = jnp.zeros((9, LANES, LANES), jnp.float32).at[:, :cin, :cout].set(wt)
        bp = jnp.zeros((1, LANES), jnp.float32).at[0, :cout].set(bconv)
        conv_prep.append((wp, bp))
        cin = cout
        hh //= 2
        ww //= 2
    hf, wf = hh, ww
    s = hf * wf

    dense_prep = []
    w0, b0 = params["dense"][0]
    d0 = w0.shape[0]
    # PyTorch flatten order of (C, hf, wf): feature = c*hf*wf + y*wf + x
    w0r = jnp.transpose(w0.reshape(d0, cin, s), (2, 1, 0))          # (s, cin, d0)
    wd0 = jnp.zeros((s, LANES, LANES), jnp.float32).at[:, :cin, :d0].set(w0r)
    bd0 = jnp.zeros((1, LANES), jnp.float32).at[0, :d0].set(b0)
    dense_prep.append((wd0, bd0))
    prev = d0
    for (wk, bk) in params["dense"][1:]:
        dk = wk.shape[0]
        wkp = jnp.zeros((LANES, LANES), jnp.float32).at[:prev, :dk].set(wk.T)
        bkp = jnp.zeros((1, LANES), jnp.float32).at[0, :dk].set(bk)
        dense_prep.append((wkp, bkp))
        prev = dk
    return {"conv": conv_prep, "dense": dense_prep}


# ----------------------------------------------------------------------------
# Deterministic parameter init (PyTorch-style uniform(-1/sqrt(fan_in), ...))
# ----------------------------------------------------------------------------
def init_params(key, input_shape, n_classes, conv_sizes, dense_sizes):
    c, h, w = input_shape
    conv, dense = [], []
    in_c = c
    for cs in conv_sizes:
        key, k1, k2 = jax.random.split(key, 3)
        bound = 1.0 / math.sqrt(in_c * 9)
        conv.append((
            jax.random.uniform(k1, (cs, in_c, 3, 3), jnp.float32, -bound, bound),
            jax.random.uniform(k2, (cs,), jnp.float32, -bound, bound),
        ))
        in_c = cs
    in_f = (h // 2 ** len(conv_sizes)) * (w // 2 ** len(conv_sizes)) * in_c
    for ds in list(dense_sizes) + [n_classes]:
        key, k1, k2 = jax.random.split(key, 3)
        bound = 1.0 / math.sqrt(in_f)
        dense.append((
            jax.random.uniform(k1, (ds, in_f), jnp.float32, -bound, bound),
            jax.random.uniform(k2, (ds,), jnp.float32, -bound, bound),
        ))
        in_f = ds
    return {"conv": conv, "dense": dense}


# ----------------------------------------------------------------------------
# Pure-JAX reference for verification
# ----------------------------------------------------------------------------
def reference_forward(x_nchw, params):
    x = jnp.transpose(x_nchw, (0, 2, 3, 1))
    for (w, b) in params["conv"]:
        wh = jnp.transpose(w, (2, 3, 1, 0))        # OIHW -> HWIO
        y = lax.conv_general_dilated(
            x, wh, window_strides=(1, 1), padding="SAME",
            dimension_numbers=("NHWC", "HWIO", "NHWC"))
        y = jnp.maximum(y + b, 0.0)
        x = lax.reduce_window(y, -jnp.inf, lax.max,
                              (1, 2, 2, 1), (1, 2, 2, 1), "VALID")
    h = jnp.transpose(x, (0, 3, 1, 2)).reshape(x.shape[0], -1)
    n_dense = len(params["dense"])
    for i, (w, b) in enumerate(params["dense"]):
        h = h @ w.T + b
        if i != n_dense - 1:
            h = jnp.maximum(h, 0.0)
    return h


if __name__ == "__main__":
    # Module config: CNNClassifier(input_shape=(4,16,16), n_classes=10,
    #                              conv_sizes=[8,16], dense_sizes=[32], dropout=0)
    input_shape = (4, 16, 16)      # (C, H, W)
    n_classes = 10
    conv_sizes = [8, 16]
    dense_sizes = [32]
    batch = 2

    key = jax.random.PRNGKey(0)
    key, pkey, xkey = jax.random.split(key, 3)
    params = init_params(pkey, input_shape, n_classes, conv_sizes, dense_sizes)
    x = jax.random.normal(xkey, (batch,) + input_shape, jnp.float32)  # NCHW

    prep = prepare_params(params, input_shape)          # one-time, off the hot path
    forward = jax.jit(make_forward(input_shape, n_classes, conv_sizes,
                                   dense_sizes, batch))

    logits = jax.block_until_ready(forward(x, prep))
    assert logits.shape == (batch, n_classes), logits.shape

    ref = jax.block_until_ready(reference_forward(x, params))
    assert jnp.allclose(logits, ref, rtol=1e-4, atol=1e-4), (
        "mismatch vs reference", float(jnp.max(jnp.abs(logits - ref))))

    print("KERNEL_OK")
</pallas_src>

<mosaic_0001>
module attributes {stable_mosaic.version = 11 : i64} {
  func.func @_fused_cnn_kernel(%arg0: i32, %arg1: memref<1x16x16x4xf32, #tpu.memory_space<vmem>>, %arg2: memref<9x128x128xf32, #tpu.memory_space<vmem>>, %arg3: memref<1x128xf32, #tpu.memory_space<vmem>>, %arg4: memref<9x128x128xf32, #tpu.memory_space<vmem>>, %arg5: memref<1x128xf32, #tpu.memory_space<vmem>>, %arg6: memref<16x128x128xf32, #tpu.memory_space<vmem>>, %arg7: memref<1x128xf32, #tpu.memory_space<vmem>>, %arg8: memref<128x128xf32, #tpu.memory_space<vmem>>, %arg9: memref<1x128xf32, #tpu.memory_space<vmem>>, %arg10: memref<1x1x128xf32, #tpu.memory_space<vmem>>, %arg11: memref<1x18x18x128xf32, #tpu.memory_space<vmem>>, %arg12: memref<1x16x16x128xf32, #tpu.memory_space<vmem>>, %arg13: memref<1x10x10x128xf32, #tpu.memory_space<vmem>>, %arg14: memref<1x8x8x128xf32, #tpu.memory_space<vmem>>, %arg15: memref<1x4x4x128xf32, #tpu.memory_space<vmem>>) attributes {dimension_semantics = [#tpu.dimension_semantics<parallel>], iteration_bounds = array<i64: 2>, scalar_prefetch = 0 : i64, scratch_operands = 5 : i64, tpu.core_type = #tpu.core_type<tc>, window_params = [{transform_indices = @transform_0, window_bounds = array<i64: 1, 16, 16, 4>}, {pipeline_mode = #tpu.pipeline_mode<synchronous>, transform_indices = @transform_1, window_bounds = array<i64: 9, 128, 128>}, {pipeline_mode = #tpu.pipeline_mode<synchronous>, transform_indices = @transform_2, window_bounds = array<i64: 1, 128>}, {pipeline_mode = #tpu.pipeline_mode<synchronous>, transform_indices = @transform_3, window_bounds = array<i64: 9, 128, 128>}, {pipeline_mode = #tpu.pipeline_mode<synchronous>, transform_indices = @transform_4, window_bounds = array<i64: 1, 128>}, {pipeline_mode = #tpu.pipeline_mode<synchronous>, transform_indices = @transform_5, window_bounds = array<i64: 16, 128, 128>}, {pipeline_mode = #tpu.pipeline_mode<synchronous>, transform_indices = @transform_6, window_bounds = array<i64: 1, 128>}, {pipeline_mode = #tpu.pipeline_mode<synchronous>, transform_indices = @transform_7, window_bounds = array<i64: 128, 128>}, {pipeline_mode = #tpu.pipeline_mode<synchronous>, transform_indices = @transform_8, window_bounds = array<i64: 1, 128>}, {transform_indices = @transform_9, window_bounds = array<i64: 1, 1, 128>}]} {
    %cst = arith.constant 0.000000e+00 : f32
    %0 = vector.broadcast %cst : f32 to vector<1x18x18x128xf32>
    %c0 = arith.constant 0 : index
    %c0_0 = arith.constant 0 : index
    %c0_1 = arith.constant 0 : index
    %c0_2 = arith.constant 0 : index
    %1 = vector.load %arg11[%c0, %c0_0, %c0_1, %c0_2] : memref<1x18x18x128xf32, #tpu.memory_space<vmem>>, vector<1x18x18x128xf32>
    tpu.vector_store %arg11[%c0, %c0_0, %c0_1, %c0_2], %0 {strides = array<i32>} : memref<1x18x18x128xf32, #tpu.memory_space<vmem>>, vector<1x18x18x128xf32>,
    %cst_3 = arith.constant 0.000000e+00 : f32
    %2 = vector.broadcast %cst_3 : f32 to vector<1x10x10x128xf32>
    %c0_4 = arith.constant 0 : index
    %c0_5 = arith.constant 0 : index
    %c0_6 = arith.constant 0 : index
    %c0_7 = arith.constant 0 : index
    %3 = vector.load %arg13[%c0_4, %c0_5, %c0_6, %c0_7] : memref<1x10x10x128xf32, #tpu.memory_space<vmem>>, vector<1x10x10x128xf32>
    tpu.vector_store %arg13[%c0_4, %c0_5, %c0_6, %c0_7], %2 {strides = array<i32>} : memref<1x10x10x128xf32, #tpu.memory_space<vmem>>, vector<1x10x10x128xf32>,
    %c0_8 = arith.constant 0 : index
    %c0_9 = arith.constant 0 : index
    %c0_10 = arith.constant 0 : index
    %c0_11 = arith.constant 0 : index
    %4 = vector.load %arg1[%c0_8, %c0_9, %c0_10, %c0_11] : memref<1x16x16x4xf32, #tpu.memory_space<vmem>>, vector<1x16x16x4xf32>
    %c0_12 = arith.constant 0 : index
    %c1 = arith.constant 1 : index
    %c1_13 = arith.constant 1 : index
    %c0_14 = arith.constant 0 : index
    %5 = vector.load %arg11[%c0_12, %c1, %c1_13, %c0_14] : memref<1x18x18x128xf32, #tpu.memory_space<vmem>>, vector<1x16x16x4xf32>
    tpu.vector_store %arg11[%c0_12, %c1, %c1_13, %c0_14], %4 {strides = array<i32>} : memref<1x18x18x128xf32, #tpu.memory_space<vmem>>, vector<1x16x16x4xf32>,
    %cst_15 = arith.constant 0.000000e+00 : f32
    %6 = vector.broadcast %cst_15 : f32 to vector<256x128xf32>
    %c0_16 = arith.constant 0 : index
    %c0_17 = arith.constant 0 : index
    %c0_18 = arith.constant 0 : index
    %c0_19 = arith.constant 0 : index
    %7 = vector.load %arg11[%c0_16, %c0_17, %c0_18, %c0_19] : memref<1x18x18x128xf32, #tpu.memory_space<vmem>>, vector<1x16x16x128xf32>
    %8 = vector.shape_cast %7 : vector<1x16x16x128xf32> to vector<256x128xf32>
    %c0_20 = arith.constant 0 : index
    %c0_21 = arith.constant 0 : index
    %c0_22 = arith.constant 0 : index
    %9 = vector.load %arg2[%c0_20, %c0_21, %c0_22] : memref<9x128x128xf32, #tpu.memory_space<vmem>>, vector<1x128x128xf32>
    %10 = vector.shape_cast %9 : vector<1x128x128xf32> to vector<128x128xf32>
    %cst_23 = arith.constant dense<0.000000e+00> : vector<256x128xf32>
    %11 = tpu.matmul %8, %10, %cst_23 {dimension_numbers = #tpu.dot_dimension_numbers<[1], [0], [0], [1], [0, 0, 1, 1], [], []>} : vector<256x128xf32>, vector<128x128xf32>, vector<256x128xf32> -> vector<256x128xf32>
    %12 = arith.addf %6, %11 : vector<256x128xf32>
    %c0_24 = arith.constant 0 : index
    %c0_25 = arith.constant 0 : index
    %c1_26 = arith.constant 1 : index
    %c0_27 = arith.constant 0 : index
    %13 = vector.load %arg11[%c0_24, %c0_25, %c1_26, %c0_27] : memref<1x18x18x128xf32, #tpu.memory_space<vmem>>, vector<1x16x16x128xf32>
    %14 = vector.shape_cast %13 : vector<1x16x16x128xf32> to vector<256x128xf32>
    %c1_28 = arith.constant 1 : index
    %c0_29 = arith.constant 0 : index
    %c0_30 = arith.constant 0 : index
    %15 = vector.load %arg2[%c1_28, %c0_29, %c0_30] : memref<9x128x128xf32, #tpu.memory_space<vmem>>, vector<1x128x128xf32>
    %16 = vector.shape_cast %15 : vector<1x128x128xf32> to vector<128x128xf32>
    %cst_31 = arith.constant dense<0.000000e+00> : vector<256x128xf32>
    %17 = tpu.matmul %14, %16, %cst_31 {dimension_numbers = #tpu.dot_dimension_numbers<[1], [0], [0], [1], [0, 0, 1, 1], [], []>} : vector<256x128xf32>, vector<128x128xf32>, vector<256x128xf32> -> vector<256x128xf32>
    %18 = arith.addf %12, %17 : vector<256x128xf32>
    %c0_32 = arith.constant 0 : index
    %c0_33 = arith.constant 0 : index
    %c2 = arith.constant 2 : index
    %c0_34 = arith.constant 0 : index
    %19 = vector.load %arg11[%c0_32, %c0_33, %c2, %c0_34] : memref<1x18x18x128xf32, #tpu.memory_space<vmem>>, vector<1x16x16x128xf32>
    %20 = vector.shape_cast %19 : vector<1x16x16x128xf32> to vector<256x128xf32>
    %c2_35 = arith.constant 2 : index
    %c0_36 = arith.constant 0 : index
    %c0_37 = arith.constant 0 : index
    %21 = vector.load %arg2[%c2_35, %c0_36, %c0_37] : memref<9x128x128xf32, #tpu.memory_space<vmem>>, vector<1x128x128xf32>
    %22 = vector.shape_cast %21 : vector<1x128x128xf32> to vector<128x128xf32>
    %cst_38 = arith.constant dense<0.000000e+00> : vector<256x128xf32>
    %23 = tpu.matmul %20, %22, %cst_38 {dimension_numbers = #tpu.dot_dimension_numbers<[1], [0], [0], [1], [0, 0, 1, 1], [], []>} : vector<256x128xf32>, vector<128x128xf32>, vector<256x128xf32> -> vector<256x128xf32>
    %24 = arith.addf %18, %23 : vector<256x128xf32>
    %c0_39 = arith.constant 0 : index
    %c1_40 = arith.constant 1 : index
    %c0_41 = arith.constant 0 : index
    %c0_42 = arith.constant 0 : index
    %25 = vector.load %arg11[%c0_39, %c1_40, %c0_41, %c0_42] : memref<1x18x18x128xf32, #tpu.memory_space<vmem>>, vector<1x16x16x128xf32>
    %26 = vector.shape_cast %25 : vector<1x16x16x128xf32> to vector<256x128xf32>
    %c3 = arith.constant 3 : index
    %c0_43 = arith.constant 0 : index
    %c0_44 = arith.constant 0 : index
    %27 = vector.load %arg2[%c3, %c0_43, %c0_44] : memref<9x128x128xf32, #tpu.memory_space<vmem>>, vector<1x128x128xf32>
    %28 = vector.shape_cast %27 : vector<1x128x128xf32> to vector<128x128xf32>
    %cst_45 = arith.constant dense<0.000000e+00> : vector<256x128xf32>
    %29 = tpu.matmul %26, %28, %cst_45 {dimension_numbers = #tpu.dot_dimension_numbers<[1], [0], [0], [1], [0, 0, 1, 1], [], []>} : vector<256x128xf32>, vector<128x128xf32>, vector<256x128xf32> -> vector<256x128xf32>
    %30 = arith.addf %24, %29 : vector<256x128xf32>
    %c0_46 = arith.constant 0 : index
    %c1_47 = arith.constant 1 : index
    %c1_48 = arith.constant 1 : index
    %c0_49 = arith.constant 0 : index
    %31 = vector.load %arg11[%c0_46, %c1_47, %c1_48, %c0_49] : memref<1x18x18x128xf32, #tpu.memory_space<vmem>>, vector<1x16x16x128xf32>
    %32 = vector.shape_cast %31 : vector<1x16x16x128xf32> to vector<256x128xf32>
    %c4 = arith.constant 4 : index
    %c0_50 = arith.constant 0 : index
    %c0_51 = arith.constant 0 : index
    %33 = vector.load %arg2[%c4, %c0_50, %c0_51] : memref<9x128x128xf32, #tpu.memory_space<vmem>>, vector<1x128x128xf32>
    %34 = vector.shape_cast %33 : vector<1x128x128xf32> to vector<128x128xf32>
    %cst_52 = arith.constant dense<0.000000e+00> : vector<256x128xf32>
    %35 = tpu.matmul %32, %34, %cst_52 {dimension_numbers = #tpu.dot_dimension_numbers<[1], [0], [0], [1], [0, 0, 1, 1], [], []>} : vector<256x128xf32>, vector<128x128xf32>, vector<256x128xf32> -> vector<256x128xf32>
    %36 = arith.addf %30, %35 : vector<256x128xf32>
    %c0_53 = arith.constant 0 : index
    %c1_54 = arith.constant 1 : index
    %c2_55 = arith.constant 2 : index
    %c0_56 = arith.constant 0 : index
    %37 = vector.load %arg11[%c0_53, %c1_54, %c2_55, %c0_56] : memref<1x18x18x128xf32, #tpu.memory_space<vmem>>, vector<1x16x16x128xf32>
    %38 = vector.shape_cast %37 : vector<1x16x16x128xf32> to vector<256x128xf32>
    %c5 = arith.constant 5 : index
    %c0_57 = arith.constant 0 : index
    %c0_58 = arith.constant 0 : index
    %39 = vector.load %arg2[%c5, %c0_57, %c0_58] : memref<9x128x128xf32, #tpu.memory_space<vmem>>, vector<1x128x128xf32>
    %40 = vector.shape_cast %39 : vector<1x128x128xf32> to vector<128x128xf32>
    %cst_59 = arith.constant dense<0.000000e+00> : vector<256x128xf32>
    %41 = tpu.matmul %38, %40, %cst_59 {dimension_numbers = #tpu.dot_dimension_numbers<[1], [0], [0], [1], [0, 0, 1, 1], [], []>} : vector<256x128xf32>, vector<128x128xf32>, vector<256x128xf32> -> vector<256x128xf32>
    %42 = arith.addf %36, %41 : vector<256x128xf32>
    %c0_60 = arith.constant 0 : index
    %c2_61 = arith.constant 2 : index
    %c0_62 = arith.constant 0 : index
    %c0_63 = arith.constant 0 : index
    %43 = vector.load %arg11[%c0_60, %c2_61, %c0_62, %c0_63] : memref<1x18x18x128xf32, #tpu.memory_space<vmem>>, vector<1x16x16x128xf32>
    %44 = vector.shape_cast %43 : vector<1x16x16x128xf32> to vector<256x128xf32>
    %c6 = arith.constant 6 : index
    %c0_64 = arith.constant 0 : index
    %c0_65 = arith.constant 0 : index
    %45 = vector.load %arg2[%c6, %c0_64, %c0_65] : memref<9x128x128xf32, #tpu.memory_space<vmem>>, vector<1x128x128xf32>
    %46 = vector.shape_cast %45 : vector<1x128x128xf32> to vector<128x128xf32>
    %cst_66 = arith.constant dense<0.000000e+00> : vector<256x128xf32>
    %47 = tpu.matmul %44, %46, %cst_66 {dimension_numbers = #tpu.dot_dimension_numbers<[1], [0], [0], [1], [0, 0, 1, 1], [], []>} : vector<256x128xf32>, vector<128x128xf32>, vector<256x128xf32> -> vector<256x128xf32>
    %48 = arith.addf %42, %47 : vector<256x128xf32>
    %c0_67 = arith.constant 0 : index
    %c2_68 = arith.constant 2 : index
    %c1_69 = arith.constant 1 : index
    %c0_70 = arith.constant 0 : index
    %49 = vector.load %arg11[%c0_67, %c2_68, %c1_69, %c0_70] : memref<1x18x18x128xf32, #tpu.memory_space<vmem>>, vector<1x16x16x128xf32>
    %50 = vector.shape_cast %49 : vector<1x16x16x128xf32> to vector<256x128xf32>
    %c7 = arith.constant 7 : index
    %c0_71 = arith.constant 0 : index
    %c0_72 = arith.constant 0 : index
    %51 = vector.load %arg2[%c7, %c0_71, %c0_72] : memref<9x128x128xf32, #tpu.memory_space<vmem>>, vector<1x128x128xf32>
    %52 = vector.shape_cast %51 : vector<1x128x128xf32> to vector<128x128xf32>
    %cst_73 = arith.constant dense<0.000000e+00> : vector<256x128xf32>
    %53 = tpu.matmul %50, %52, %cst_73 {dimension_numbers = #tpu.dot_dimension_numbers<[1], [0], [0], [1], [0, 0, 1, 1], [], []>} : vector<256x128xf32>, vector<128x128xf32>, vector<256x128xf32> -> vector<256x128xf32>
    %54 = arith.addf %48, %53 : vector<256x128xf32>
    %c0_74 = arith.constant 0 : index
    %c2_75 = arith.constant 2 : index
    %c2_76 = arith.constant 2 : index
    %c0_77 = arith.constant 0 : index
    %55 = vector.load %arg11[%c0_74, %c2_75, %c2_76, %c0_77] : memref<1x18x18x128xf32, #tpu.memory_space<vmem>>, vector<1x16x16x128xf32>
    %56 = vector.shape_cast %55 : vector<1x16x16x128xf32> to vector<256x128xf32>
    %c8 = arith.constant 8 : index
    %c0_78 = arith.constant 0 : index
    %c0_79 = arith.constant 0 : index
    %57 = vector.load %arg2[%c8, %c0_78, %c0_79] : memref<9x128x128xf32, #tpu.memory_space<vmem>>, vector<1x128x128xf32>
    %58 = vector.shape_cast %57 : vector<1x128x128xf32> to vector<128x128xf32>
    %cst_80 = arith.constant dense<0.000000e+00> : vector<256x128xf32>
    %59 = tpu.matmul %56, %58, %cst_80 {dimension_numbers = #tpu.dot_dimension_numbers<[1], [0], [0], [1], [0, 0, 1, 1], [], []>} : vector<256x128xf32>, vector<128x128xf32>, vector<256x128xf32> -> vector<256x128xf32>
    %60 = arith.addf %54, %59 : vector<256x128xf32>
    %c0_81 = arith.constant 0 : index
    %c0_82 = arith.constant 0 : index
    %61 = vector.load %arg3[%c0_81, %c0_82] : memref<1x128xf32, #tpu.memory_space<vmem>>, vector<1x128xf32>
    %62 = vector.broadcast %61 : vector<1x128xf32> to vector<256x128xf32>
    %63 = arith.addf %60, %62 : vector<256x128xf32>
    %cst_83 = arith.constant 0.000000e+00 : f32
    %64 = vector.broadcast %cst_83 : f32 to vector<256x128xf32>
    %65 = arith.maximumf %63, %64 : vector<256x128xf32>
    %66 = vector.shape_cast %65 : vector<256x128xf32> to vector<1x16x16x128xf32>
    %c0_84 = arith.constant 0 : index
    %c0_85 = arith.constant 0 : index
    %c0_86 = arith.constant 0 : index
    %c0_87 = arith.constant 0 : index
    %67 = vector.load %arg12[%c0_84, %c0_85, %c0_86, %c0_87] : memref<1x16x16x128xf32, #tpu.memory_space<vmem>>, vector<1x16x16x128xf32>
    tpu.vector_store %arg12[%c0_84, %c0_85, %c0_86, %c0_87], %66 {strides = array<i32>} : memref<1x16x16x128xf32, #tpu.memory_space<vmem>>, vector<1x16x16x128xf32>,
    %c0_88 = arith.constant 0 : index
    %c0_89 = arith.constant 0 : index
    %c0_90 = arith.constant 0 : index
    %c0_91 = arith.constant 0 : index
    %68 = vector.load %arg12[%c0_88, %c0_89, %c0_90, %c0_91] : memref<1x16x16x128xf32, #tpu.memory_space<vmem>>, vector<1x16x1x128xf32>
    %69 = vector.shape_cast %68 : vector<1x16x1x128xf32> to vector<16x1x128xf32>
    %c0_92 = arith.constant 0 : index
    %c0_93 = arith.constant 0 : index
    %c1_94 = arith.constant 1 : index
    %c0_95 = arith.constant 0 : index
    %70 = vector.load %arg12[%c0_92, %c0_93, %c1_94, %c0_95] : memref<1x16x16x128xf32, #tpu.memory_space<vmem>>, vector<1x16x1x128xf32>
    %71 = vector.shape_cast %70 : vector<1x16x1x128xf32> to vector<16x1x128xf32>
    %72 = arith.maximumf %69, %71 : vector<16x1x128xf32>
    %73 = vector.shape_cast %72 : vector<16x1x128xf32> to vector<8x2x1x128xf32>
    %74 = vector.extract_strided_slice %73 {offsets = [0, 0, 0, 0], sizes = [8, 1, 1, 128], strides = [1, 1, 1, 1]} : vector<8x2x1x128xf32> to vector<8x1x1x128xf32>
    %75 = vector.shape_cast %74 : vector<8x1x1x128xf32> to vector<8x1x128xf32>
    %76 = vector.extract_strided_slice %73 {offsets = [0, 1, 0, 0], sizes = [8, 1, 1, 128], strides = [1, 1, 1, 1]} : vector<8x2x1x128xf32> to vector<8x1x1x128xf32>
    %77 = vector.shape_cast %76 : vector<8x1x1x128xf32> to vector<8x1x128xf32>
    %78 = arith.maximumf %75, %77 : vector<8x1x128xf32>
    %c0_96 = arith.constant 0 : index
    %c1_97 = arith.constant 1 : index
    %c1_98 = arith.constant 1 : index
    %c0_99 = arith.constant 0 : index
    %79 = vector.load %arg13[%c0_96, %c1_97, %c1_98, %c0_99] : memref<1x10x10x128xf32, #tpu.memory_space<vmem>>, vector<1x8x1x128xf32>
    %80 = vector.shape_cast %79 : vector<1x8x1x128xf32> to vector<8x1x128xf32>
    %81 = vector.shape_cast %78 : vector<8x1x128xf32> to vector<1x8x1x128xf32>
    tpu.vector_store %arg13[%c0_96, %c1_97, %c1_98, %c0_99], %81 {strides = array<i32>} : memref<1x10x10x128xf32, #tpu.memory_space<vmem>>, vector<1x8x1x128xf32>,
    %c0_100 = arith.constant 0 : index
    %c0_101 = arith.constant 0 : index
    %c2_102 = arith.constant 2 : index
    %c0_103 = arith.constant 0 : index
    %82 = vector.load %arg12[%c0_100, %c0_101, %c2_102, %c0_103] : memref<1x16x16x128xf32, #tpu.memory_space<vmem>>, vector<1x16x1x128xf32>
    %83 = vector.shape_cast %82 : vector<1x16x1x128xf32> to vector<16x1x128xf32>
    %c0_104 = arith.constant 0 : index
    %c0_105 = arith.constant 0 : index
    %c3_106 = arith.constant 3 : index
    %c0_107 = arith.constant 0 : index
    %84 = vector.load %arg12[%c0_104, %c0_105, %c3_106, %c0_107] : memref<1x16x16x128xf32, #tpu.memory_space<vmem>>, vector<1x16x1x128xf32>
    %85 = vector.shape_cast %84 : vector<1x16x1x128xf32> to vector<16x1x128xf32>
    %86 = arith.maximumf %83, %85 : vector<16x1x128xf32>
    %87 = vector.shape_cast %86 : vector<16x1x128xf32> to vector<8x2x1x128xf32>
    %88 = vector.extract_strided_slice %87 {offsets = [0, 0, 0, 0], sizes = [8, 1, 1, 128], strides = [1, 1, 1, 1]} : vector<8x2x1x128xf32> to vector<8x1x1x128xf32>
    %89 = vector.shape_cast %88 : vector<8x1x1x128xf32> to vector<8x1x128xf32>
    %90 = vector.extract_strided_slice %87 {offsets = [0, 1, 0, 0], sizes = [8, 1, 1, 128], strides = [1, 1, 1, 1]} : vector<8x2x1x128xf32> to vector<8x1x1x128xf32>
    %91 = vector.shape_cast %90 : vector<8x1x1x128xf32> to vector<8x1x128xf32>
    %92 = arith.maximumf %89, %91 : vector<8x1x128xf32>
    %c0_108 = arith.constant 0 : index
    %c1_109 = arith.constant 1 : index
    %c2_110 = arith.constant 2 : index
    %c0_111 = arith.constant 0 : index
    %93 = vector.load %arg13[%c0_108, %c1_109, %c2_110, %c0_111] : memref<1x10x10x128xf32, #tpu.memory_space<vmem>>, vector<1x8x1x128xf32>
    %94 = vector.shape_cast %93 : vector<1x8x1x128xf32> to vector<8x1x128xf32>
    %95 = vector.shape_cast %92 : vector<8x1x128xf32> to vector<1x8x1x128xf32>
    tpu.vector_store %arg13[%c0_108, %c1_109, %c2_110, %c0_111], %95 {strides = array<i32>} : memref<1x10x10x128xf32, #tpu.memory_space<vmem>>, vector<1x8x1x128xf32>,
    %c0_112 = arith.constant 0 : index
    %c0_113 = arith.constant 0 : index
    %c4_114 = arith.constant 4 : index
    %c0_115 = arith.constant 0 : index
    %96 = vector.load %arg12[%c0_112, %c0_113, %c4_114, %c0_115] : memref<1x16x16x128xf32, #tpu.memory_space<vmem>>, vector<1x16x1x128xf32>
    %97 = vector.shape_cast %96 : vector<1x16x1x128xf32> to vector<16x1x128xf32>
    %c0_116 = arith.constant 0 : index
    %c0_117 = arith.constant 0 : index
    %c5_118 = arith.constant 5 : index
    %c0_119 = arith.constant 0 : index
    %98 = vector.load %arg12[%c0_116, %c0_117, %c5_118, %c0_119] : memref<1x16x16x128xf32, #tpu.memory_space<vmem>>, vector<1x16x1x128xf32>
    %99 = vector.shape_cast %98 : vector<1x16x1x128xf32> to vector<16x1x128xf32>
    %100 = arith.maximumf %97, %99 : vector<16x1x128xf32>
    %101 = vector.shape_cast %100 : vector<16x1x128xf32> to vector<8x2x1x128xf32>
    %102 = vector.extract_strided_slice %101 {offsets = [0, 0, 0, 0], sizes = [8, 1, 1, 128], strides = [1, 1, 1, 1]} : vector<8x2x1x128xf32> to vector<8x1x1x128xf32>
    %103 = vector.shape_cast %102 : vector<8x1x1x128xf32> to vector<8x1x128xf32>
    %104 = vector.extract_strided_slice %101 {offsets = [0, 1, 0, 0], sizes = [8, 1, 1, 128], strides = [1, 1, 1, 1]} : vector<8x2x1x128xf32> to vector<8x1x1x128xf32>
    %105 = vector.shape_cast %104 : vector<8x1x1x128xf32> to vector<8x1x128xf32>
    %106 = arith.maximumf %103, %105 : vector<8x1x128xf32>
    %c0_120 = arith.constant 0 : index
    %c1_121 = arith.constant 1 : index
    %c3_122 = arith.constant 3 : index
    %c0_123 = arith.constant 0 : index
    %107 = vector.load %arg13[%c0_120, %c1_121, %c3_122, %c0_123] : memref<1x10x10x128xf32, #tpu.memory_space<vmem>>, vector<1x8x1x128xf32>
    %108 = vector.shape_cast %107 : vector<1x8x1x128xf32> to vector<8x1x128xf32>
    %109 = vector.shape_cast %106 : vector<8x1x128xf32> to vector<1x8x1x128xf32>
    tpu.vector_store %arg13[%c0_120, %c1_121, %c3_122, %c0_123], %109 {strides = array<i32>} : memref<1x10x10x128xf32, #tpu.memory_space<vmem>>, vector<1x8x1x128xf32>,
    %c0_124 = arith.constant 0 : index
    %c0_125 = arith.constant 0 : index
    %c6_126 = arith.constant 6 : index
    %c0_127 = arith.constant 0 : index
    %110 = vector.load %arg12[%c0_124, %c0_125, %c6_126, %c0_127] : memref<1x16x16x128xf32, #tpu.memory_space<vmem>>, vector<1x16x1x128xf32>
    %111 = vector.shape_cast %110 : vector<1x16x1x128xf32> to vector<16x1x128xf32>
    %c0_128 = arith.constant 0 : index
    %c0_129 = arith.constant 0 : index
    %c7_130 = arith.constant 7 : index
    %c0_131 = arith.constant 0 : index
    %112 = vector.load %arg12[%c0_128, %c0_129, %c7_130, %c0_131] : memref<1x16x16x128xf32, #tpu.memory_space<vmem>>, vector<1x16x1x128xf32>
    %113 = vector.shape_cast %112 : vector<1x16x1x128xf32> to vector<16x1x128xf32>
    %114 = arith.maximumf %111, %113 : vector<16x1x128xf32>
    %115 = vector.shape_cast %114 : vector<16x1x128xf32> to vector<8x2x1x128xf32>
    %116 = vector.extract_strided_slice %115 {offsets = [0, 0, 0, 0], sizes = [8, 1, 1, 128], strides = [1, 1, 1, 1]} : vector<8x2x1x128xf32> to vector<8x1x1x128xf32>
    %117 = vector.shape_cast %116 : vector<8x1x1x128xf32> to vector<8x1x128xf32>
    %118 = vector.extract_strided_slice %115 {offsets = [0, 1, 0, 0], sizes = [8, 1, 1, 128], strides = [1, 1, 1, 1]} : vector<8x2x1x128xf32> to vector<8x1x1x128xf32>
    %119 = vector.shape_cast %118 : vector<8x1x1x128xf32> to vector<8x1x128xf32>
    %120 = arith.maximumf %117, %119 : vector<8x1x128xf32>
    %c0_132 = arith.constant 0 : index
    %c1_133 = arith.constant 1 : index
    %c4_134 = arith.constant 4 : index
    %c0_135 = arith.constant 0 : index
    %121 = vector.load %arg13[%c0_132, %c1_133, %c4_134, %c0_135] : memref<1x10x10x128xf32, #tpu.memory_space<vmem>>, vector<1x8x1x128xf32>
    %122 = vector.shape_cast %121 : vector<1x8x1x128xf32> to vector<8x1x128xf32>
    %123 = vector.shape_cast %120 : vector<8x1x128xf32> to vector<1x8x1x128xf32>
    tpu.vector_store %arg13[%c0_132, %c1_133, %c4_134, %c0_135], %123 {strides = array<i32>} : memref<1x10x10x128xf32, #tpu.memory_space<vmem>>, vector<1x8x1x128xf32>,
    %c0_136 = arith.constant 0 : index
    %c0_137 = arith.constant 0 : index
    %c8_138 = arith.constant 8 : index
    %c0_139 = arith.constant 0 : index
    %124 = vector.load %arg12[%c0_136, %c0_137, %c8_138, %c0_139] : memref<1x16x16x128xf32, #tpu.memory_space<vmem>>, vector<1x16x1x128xf32>
    %125 = vector.shape_cast %124 : vector<1x16x1x128xf32> to vector<16x1x128xf32>
    %c0_140 = arith.constant 0 : index
    %c0_141 = arith.constant 0 : index
    %c9 = arith.constant 9 : index
    %c0_142 = arith.constant 0 : index
    %126 = vector.load %arg12[%c0_140, %c0_141, %c9, %c0_142] : memref<1x16x16x128xf32, #tpu.memory_space<vmem>>, vector<1x16x1x128xf32>
    %127 = vector.shape_cast %126 : vector<1x16x1x128xf32> to vector<16x1x128xf32>
    %128 = arith.maximumf %125, %127 : vector<16x1x128xf32>
    %129 = vector.shape_cast %128 : vector<16x1x128xf32> to vector<8x2x1x128xf32>
    %130 = vector.extract_strided_slice %129 {offsets = [0, 0, 0, 0], sizes = [8, 1, 1, 128], strides = [1, 1, 1, 1]} : vector<8x2x1x128xf32> to vector<8x1x1x128xf32>
    %131 = vector.shape_cast %130 : vector<8x1x1x128xf32> to vector<8x1x128xf32>
    %132 = vector.extract_strided_slice %129 {offsets = [0, 1, 0, 0], sizes = [8, 1, 1, 128], strides = [1, 1, 1, 1]} : vector<8x2x1x128xf32> to vector<8x1x1x128xf32>
    %133 = vector.shape_cast %132 : vector<8x1x1x128xf32> to vector<8x1x128xf32>
    %134 = arith.maximumf %131, %133 : vector<8x1x128xf32>
    %c0_143 = arith.constant 0 : index
    %c1_144 = arith.constant 1 : index
    %c5_145 = arith.constant 5 : index
    %c0_146 = arith.constant 0 : index
    %135 = vector.load %arg13[%c0_143, %c1_144, %c5_145, %c0_146] : memref<1x10x10x128xf32, #tpu.memory_space<vmem>>, vector<1x8x1x128xf32>
    %136 = vector.shape_cast %135 : vector<1x8x1x128xf32> to vector<8x1x128xf32>
    %137 = vector.shape_cast %134 : vector<8x1x128xf32> to vector<1x8x1x128xf32>
    tpu.vector_store %arg13[%c0_143, %c1_144, %c5_145, %c0_146], %137 {strides = array<i32>} : memref<1x10x10x128xf32, #tpu.memory_space<vmem>>, vector<1x8x1x128xf32>,
    %c0_147 = arith.constant 0 : index
    %c0_148 = arith.constant 0 : index
    %c10 = arith.constant 10 : index
    %c0_149 = arith.constant 0 : index
    %138 = vector.load %arg12[%c0_147, %c0_148, %c10, %c0_149] : memref<1x16x16x128xf32, #tpu.memory_space<vmem>>, vector<1x16x1x128xf32>
    %139 = vector.shape_cast %138 : vector<1x16x1x128xf32> to vector<16x1x128xf32>
    %c0_150 = arith.constant 0 : index
    %c0_151 = arith.constant 0 : index
    %c11 = arith.constant 11 : index
    %c0_152 = arith.constant 0 : index
    %140 = vector.load %arg12[%c0_150, %c0_151, %c11, %c0_152] : memref<1x16x16x128xf32, #tpu.memory_space<vmem>>, vector<1x16x1x128xf32>
    %141 = vector.shape_cast %140 : vector<1x16x1x128xf32> to vector<16x1x128xf32>
    %142 = arith.maximumf %139, %141 : vector<16x1x128xf32>
    %143 = vector.shape_cast %142 : vector<16x1x128xf32> to vector<8x2x1x128xf32>
    %144 = vector.extract_strided_slice %143 {offsets = [0, 0, 0, 0], sizes = [8, 1, 1, 128], strides = [1, 1, 1, 1]} : vector<8x2x1x128xf32> to vector<8x1x1x128xf32>
    %145 = vector.shape_cast %144 : vector<8x1x1x128xf32> to vector<8x1x128xf32>
    %146 = vector.extract_strided_slice %143 {offsets = [0, 1, 0, 0], sizes = [8, 1, 1, 128], strides = [1, 1, 1, 1]} : vector<8x2x1x128xf32> to vector<8x1x1x128xf32>
    %147 = vector.shape_cast %146 : vector<8x1x1x128xf32> to vector<8x1x128xf32>
    %148 = arith.maximumf %145, %147 : vector<8x1x128xf32>
    %c0_153 = arith.constant 0 : index
    %c1_154 = arith.constant 1 : index
    %c6_155 = arith.constant 6 : index
    %c0_156 = arith.constant 0 : index
    %149 = vector.load %arg13[%c0_153, %c1_154, %c6_155, %c0_156] : memref<1x10x10x128xf32, #tpu.memory_space<vmem>>, vector<1x8x1x128xf32>
    %150 = vector.shape_cast %149 : vector<1x8x1x128xf32> to vector<8x1x128xf32>
    %151 = vector.shape_cast %148 : vector<8x1x128xf32> to vector<1x8x1x128xf32>
    tpu.vector_store %arg13[%c0_153, %c1_154, %c6_155, %c0_156], %151 {strides = array<i32>} : memref<1x10x10x128xf32, #tpu.memory_space<vmem>>, vector<1x8x1x128xf32>,
    %c0_157 = arith.constant 0 : index
    %c0_158 = arith.constant 0 : index
    %c12 = arith.constant 12 : index
    %c0_159 = arith.constant 0 : index
    %152 = vector.load %arg12[%c0_157, %c0_158, %c12, %c0_159] : memref<1x16x16x128xf32, #tpu.memory_space<vmem>>, vector<1x16x1x128xf32>
    %153 = vector.shape_cast %152 : vector<1x16x1x128xf32> to vector<16x1x128xf32>
    %c0_160 = arith.constant 0 : index
    %c0_161 = arith.constant 0 : index
    %c13 = arith.constant 13 : index
    %c0_162 = arith.constant 0 : index
    %154 = vector.load %arg12[%c0_160, %c0_161, %c13, %c0_162] : memref<1x16x16x128xf32, #tpu.memory_space<vmem>>, vector<1x16x1x128xf32>
    %155 = vector.shape_cast %154 : vector<1x16x1x128xf32> to vector<16x1x128xf32>
    %156 = arith.maximumf %153, %155 : vector<16x1x128xf32>
    %157 = vector.shape_cast %156 : vector<16x1x128xf32> to vector<8x2x1x128xf32>
    %158 = vector.extract_strided_slice %157 {offsets = [0, 0, 0, 0], sizes = [8, 1, 1, 128], strides = [1, 1, 1, 1]} : vector<8x2x1x128xf32> to vector<8x1x1x128xf32>
    %159 = vector.shape_cast %158 : vector<8x1x1x128xf32> to vector<8x1x128xf32>
    %160 = vector.extract_strided_slice %157 {offsets = [0, 1, 0, 0], sizes = [8, 1, 1, 128], strides = [1, 1, 1, 1]} : vector<8x2x1x128xf32> to vector<8x1x1x128xf32>
    %161 = vector.shape_cast %160 : vector<8x1x1x128xf32> to vector<8x1x128xf32>
    %162 = arith.maximumf %159, %161 : vector<8x1x128xf32>
    %c0_163 = arith.constant 0 : index
    %c1_164 = arith.constant 1 : index
    %c7_165 = arith.constant 7 : index
    %c0_166 = arith.constant 0 : index
    %163 = vector.load %arg13[%c0_163, %c1_164, %c7_165, %c0_166] : memref<1x10x10x128xf32, #tpu.memory_space<vmem>>, vector<1x8x1x128xf32>
    %164 = vector.shape_cast %163 : vector<1x8x1x128xf32> to vector<8x1x128xf32>
    %165 = vector.shape_cast %162 : vector<8x1x128xf32> to vector<1x8x1x128xf32>
    tpu.vector_store %arg13[%c0_163, %c1_164, %c7_165, %c0_166], %165 {strides = array<i32>} : memref<1x10x10x128xf32, #tpu.memory_space<vmem>>, vector<1x8x1x128xf32>,
    %c0_167 = arith.constant 0 : index
    %c0_168 = arith.constant 0 : index
    %c14 = arith.constant 14 : index
    %c0_169 = arith.constant 0 : index
    %166 = vector.load %arg12[%c0_167, %c0_168, %c14, %c0_169] : memref<1x16x16x128xf32, #tpu.memory_space<vmem>>, vector<1x16x1x128xf32>
    %167 = vector.shape_cast %166 : vector<1x16x1x128xf32> to vector<16x1x128xf32>
    %c0_170 = arith.constant 0 : index
    %c0_171 = arith.constant 0 : index
    %c15 = arith.constant 15 : index
    %c0_172 = arith.constant 0 : index
    %168 = vector.load %arg12[%c0_170, %c0_171, %c15, %c0_172] : memref<1x16x16x128xf32, #tpu.memory_space<vmem>>, vector<1x16x1x128xf32>
    %169 = vector.shape_cast %168 : vector<1x16x1x128xf32> to vector<16x1x128xf32>
    %170 = arith.maximumf %167, %169 : vector<16x1x128xf32>
    %171 = vector.shape_cast %170 : vector<16x1x128xf32> to vector<8x2x1x128xf32>
    %172 = vector.extract_strided_slice %171 {offsets = [0, 0, 0, 0], sizes = [8, 1, 1, 128], strides = [1, 1, 1, 1]} : vector<8x2x1x128xf32> to vector<8x1x1x128xf32>
    %173 = vector.shape_cast %172 : vector<8x1x1x128xf32> to vector<8x1x128xf32>
    %174 = vector.extract_strided_slice %171 {offsets = [0, 1, 0, 0], sizes = [8, 1, 1, 128], strides = [1, 1, 1, 1]} : vector<8x2x1x128xf32> to vector<8x1x1x128xf32>
    %175 = vector.shape_cast %174 : vector<8x1x1x128xf32> to vector<8x1x128xf32>
    %176 = arith.maximumf %173, %175 : vector<8x1x128xf32>
    %c0_173 = arith.constant 0 : index
    %c1_174 = arith.constant 1 : index
    %c8_175 = arith.constant 8 : index
    %c0_176 = arith.constant 0 : index
    %177 = vector.load %arg13[%c0_173, %c1_174, %c8_175, %c0_176] : memref<1x10x10x128xf32, #tpu.memory_space<vmem>>, vector<1x8x1x128xf32>
    %178 = vector.shape_cast %177 : vector<1x8x1x128xf32> to vector<8x1x128xf32>
    %179 = vector.shape_cast %176 : vector<8x1x128xf32> to vector<1x8x1x128xf32>
    tpu.vector_store %arg13[%c0_173, %c1_174, %c8_175, %c0_176], %179 {strides = array<i32>} : memref<1x10x10x128xf32, #tpu.memory_space<vmem>>, vector<1x8x1x128xf32>,
    %cst_177 = arith.constant 0.000000e+00 : f32
    %180 = vector.broadcast %cst_177 : f32 to vector<64x128xf32>
    %c0_178 = arith.constant 0 : index
    %c0_179 = arith.constant 0 : index
    %c0_180 = arith.constant 0 : index
    %c0_181 = arith.constant 0 : index
    %181 = vector.load %arg13[%c0_178, %c0_179, %c0_180, %c0_181] : memref<1x10x10x128xf32, #tpu.memory_space<vmem>>, vector<1x8x8x128xf32>
    %182 = vector.shape_cast %181 : vector<1x8x8x128xf32> to vector<64x128xf32>
    %c0_182 = arith.constant 0 : index
    %c0_183 = arith.constant 0 : index
    %c0_184 = arith.constant 0 : index
    %183 = vector.load %arg4[%c0_182, %c0_183, %c0_184] : memref<9x128x128xf32, #tpu.memory_space<vmem>>, vector<1x128x128xf32>
    %184 = vector.shape_cast %183 : vector<1x128x128xf32> to vector<128x128xf32>
    %cst_185 = arith.constant dense<0.000000e+00> : vector<64x128xf32>
    %185 = tpu.matmul %182, %184, %cst_185 {dimension_numbers = #tpu.dot_dimension_numbers<[1], [0], [0], [1], [0, 0, 1, 1], [], []>} : vector<64x128xf32>, vector<128x128xf32>, vector<64x128xf32> -> vector<64x128xf32>
    %186 = arith.addf %180, %185 : vector<64x128xf32>
    %c0_186 = arith.constant 0 : index
    %c0_187 = arith.constant 0 : index
    %c1_188 = arith.constant 1 : index
    %c0_189 = arith.constant 0 : index
    %187 = vector.load %arg13[%c0_186, %c0_187, %c1_188, %c0_189] : memref<1x10x10x128xf32, #tpu.memory_space<vmem>>, vector<1x8x8x128xf32>
    %188 = vector.shape_cast %187 : vector<1x8x8x128xf32> to vector<64x128xf32>
    %c1_190 = arith.constant 1 : index
    %c0_191 = arith.constant 0 : index
    %c0_192 = arith.constant 0 : index
    %189 = vector.load %arg4[%c1_190, %c0_191, %c0_192] : memref<9x128x128xf32, #tpu.memory_space<vmem>>, vector<1x128x128xf32>
    %190 = vector.shape_cast %189 : vector<1x128x128xf32> to vector<128x128xf32>
    %cst_193 = arith.constant dense<0.000000e+00> : vector<64x128xf32>
    %191 = tpu.matmul %188, %190, %cst_193 {dimension_numbers = #tpu.dot_dimension_numbers<[1], [0], [0], [1], [0, 0, 1, 1], [], []>} : vector<64x128xf32>, vector<128x128xf32>, vector<64x128xf32> -> vector<64x128xf32>
    %192 = arith.addf %186, %191 : vector<64x128xf32>
    %c0_194 = arith.constant 0 : index
    %c0_195 = arith.constant 0 : index
    %c2_196 = arith.constant 2 : index
    %c0_197 = arith.constant 0 : index
    %193 = vector.load %arg13[%c0_194, %c0_195, %c2_196, %c0_197] : memref<1x10x10x128xf32, #tpu.memory_space<vmem>>, vector<1x8x8x128xf32>
    %194 = vector.shape_cast %193 : vector<1x8x8x128xf32> to vector<64x128xf32>
    %c2_198 = arith.constant 2 : index
    %c0_199 = arith.constant 0 : index
    %c0_200 = arith.constant 0 : index
    %195 = vector.load %arg4[%c2_198, %c0_199, %c0_200] : memref<9x128x128xf32, #tpu.memory_space<vmem>>, vector<1x128x128xf32>
    %196 = vector.shape_cast %195 : vector<1x128x128xf32> to vector<128x128xf32>
    %cst_201 = arith.constant dense<0.000000e+00> : vector<64x128xf32>
    %197 = tpu.matmul %194, %196, %cst_201 {dimension_numbers = #tpu.dot_dimension_numbers<[1], [0], [0], [1], [0, 0, 1, 1], [], []>} : vector<64x128xf32>, vector<128x128xf32>, vector<64x128xf32> -> vector<64x128xf32>
    %198 = arith.addf %192, %197 : vector<64x128xf32>
    %c0_202 = arith.constant 0 : index
    %c1_203 = arith.constant 1 : index
    %c0_204 = arith.constant 0 : index
    %c0_205 = arith.constant 0 : index
    %199 = vector.load %arg13[%c0_202, %c1_203, %c0_204, %c0_205] : memref<1x10x10x128xf32, #tpu.memory_space<vmem>>, vector<1x8x8x128xf32>
    %200 = vector.shape_cast %199 : vector<1x8x8x128xf32> to vector<64x128xf32>
    %c3_206 = arith.constant 3 : index
    %c0_207 = arith.constant 0 : index
    %c0_208 = arith.constant 0 : index
    %201 = vector.load %arg4[%c3_206, %c0_207, %c0_208] : memref<9x128x128xf32, #tpu.memory_space<vmem>>, vector<1x128x128xf32>
    %202 = vector.shape_cast %201 : vector<1x128x128xf32> to vector<128x128xf32>
    %cst_209 = arith.constant dense<0.000000e+00> : vector<64x128xf32>
    %203 = tpu.matmul %200, %202, %cst_209 {dimension_numbers = #tpu.dot_dimension_numbers<[1], [0], [0], [1], [0, 0, 1, 1], [], []>} : vector<64x128xf32>, vector<128x128xf32>, vector<64x128xf32> -> vector<64x128xf32>
    %204 = arith.addf %198, %203 : vector<64x128xf32>
    %c0_210 = arith.constant 0 : index
    %c1_211 = arith.constant 1 : index
    %c1_212 = arith.constant 1 : index
    %c0_213 = arith.constant 0 : index
    %205 = vector.load %arg13[%c0_210, %c1_211, %c1_212, %c0_213] : memref<1x10x10x128xf32, #tpu.memory_space<vmem>>, vector<1x8x8x128xf32>
    %206 = vector.shape_cast %205 : vector<1x8x8x128xf32> to vector<64x128xf32>
    %c4_214 = arith.constant 4 : index
    %c0_215 = arith.constant 0 : index
    %c0_216 = arith.constant 0 : index
    %207 = vector.load %arg4[%c4_214, %c0_215, %c0_216] : memref<9x128x128xf32, #tpu.memory_space<vmem>>, vector<1x128x128xf32>
    %208 = vector.shape_cast %207 : vector<1x128x128xf32> to vector<128x128xf32>
    %cst_217 = arith.constant dense<0.000000e+00> : vector<64x128xf32>
    %209 = tpu.matmul %206, %208, %cst_217 {dimension_numbers = #tpu.dot_dimension_numbers<[1], [0], [0], [1], [0, 0, 1, 1], [], []>} : vector<64x128xf32>, vector<128x128xf32>, vector<64x128xf32> -> vector<64x128xf32>
    %210 = arith.addf %204, %209 : vector<64x128xf32>
    %c0_218 = arith.constant 0 : index
    %c1_219 = arith.constant 1 : index
    %c2_220 = arith.constant 2 : index
    %c0_221 = arith.constant 0 : index
    %211 = vector.load %arg13[%c0_218, %c1_219, %c2_220, %c0_221] : memref<1x10x10x128xf32, #tpu.memory_space<vmem>>, vector<1x8x8x128xf32>
    %212 = vector.shape_cast %211 : vector<1x8x8x128xf32> to vector<64x128xf32>
    %c5_222 = arith.constant 5 : index
    %c0_223 = arith.constant 0 : index
    %c0_224 = arith.constant 0 : index
    %213 = vector.load %arg4[%c5_222, %c0_223, %c0_224] : memref<9x128x128xf32, #tpu.memory_space<vmem>>, vector<1x128x128xf32>
    %214 = vector.shape_cast %213 : vector<1x128x128xf32> to vector<128x128xf32>
    %cst_225 = arith.constant dense<0.000000e+00> : vector<64x128xf32>
    %215 = tpu.matmul %212, %214, %cst_225 {dimension_numbers = #tpu.dot_dimension_numbers<[1], [0], [0], [1], [0, 0, 1, 1], [], []>} : vector<64x128xf32>, vector<128x128xf32>, vector<64x128xf32> -> vector<64x128xf32>
    %216 = arith.addf %210, %215 : vector<64x128xf32>
    %c0_226 = arith.constant 0 : index
    %c2_227 = arith.constant 2 : index
    %c0_228 = arith.constant 0 : index
    %c0_229 = arith.constant 0 : index
    %217 = vector.load %arg13[%c0_226, %c2_227, %c0_228, %c0_229] : memref<1x10x10x128xf32, #tpu.memory_space<vmem>>, vector<1x8x8x128xf32>
    %218 = vector.shape_cast %217 : vector<1x8x8x128xf32> to vector<64x128xf32>
    %c6_230 = arith.constant 6 : index
    %c0_231 = arith.constant 0 : index
    %c0_232 = arith.constant 0 : index
    %219 = vector.load %arg4[%c6_230, %c0_231, %c0_232] : memref<9x128x128xf32, #tpu.memory_space<vmem>>, vector<1x128x128xf32>
    %220 = vector.shape_cast %219 : vector<1x128x128xf32> to vector<128x128xf32>
    %cst_233 = arith.constant dense<0.000000e+00> : vector<64x128xf32>
    %221 = tpu.matmul %218, %220, %cst_233 {dimension_numbers = #tpu.dot_dimension_numbers<[1], [0], [0], [1], [0, 0, 1, 1], [], []>} : vector<64x128xf32>, vector<128x128xf32>, vector<64x128xf32> -> vector<64x128xf32>
    %222 = arith.addf %216, %221 : vector<64x128xf32>
    %c0_234 = arith.constant 0 : index
    %c2_235 = arith.constant 2 : index
    %c1_236 = arith.constant 1 : index
    %c0_237 = arith.constant 0 : index
    %223 = vector.load %arg13[%c0_234, %c2_235, %c1_236, %c0_237] : memref<1x10x10x128xf32, #tpu.memory_space<vmem>>, vector<1x8x8x128xf32>
    %224 = vector.shape_cast %223 : vector<1x8x8x128xf32> to vector<64x128xf32>
    %c7_238 = arith.constant 7 : index
    %c0_239 = arith.constant 0 : index
    %c0_240 = arith.constant 0 : index
    %225 = vector.load %arg4[%c7_238, %c0_239, %c0_240] : memref<9x128x128xf32, #tpu.memory_space<vmem>>, vector<1x128x128xf32>
    %226 = vector.shape_cast %225 : vector<1x128x128xf32> to vector<128x128xf32>
    %cst_241 = arith.constant dense<0.000000e+00> : vector<64x128xf32>
    %227 = tpu.matmul %224, %226, %cst_241 {dimension_numbers = #tpu.dot_dimension_numbers<[1], [0], [0], [1], [0, 0, 1, 1], [], []>} : vector<64x128xf32>, vector<128x128xf32>, vector<64x128xf32> -> vector<64x128xf32>
    %228 = arith.addf %222, %227 : vector<64x128xf32>
    %c0_242 = arith.constant 0 : index
    %c2_243 = arith.constant 2 : index
    %c2_244 = arith.constant 2 : index
    %c0_245 = arith.constant 0 : index
    %229 = vector.load %arg13[%c0_242, %c2_243, %c2_244, %c0_245] : memref<1x10x10x128xf32, #tpu.memory_space<vmem>>, vector<1x8x8x128xf32>
    %230 = vector.shape_cast %229 : vector<1x8x8x128xf32> to vector<64x128xf32>
    %c8_246 = arith.constant 8 : index
    %c0_247 = arith.constant 0 : index
    %c0_248 = arith.constant 0 : index
    %231 = vector.load %arg4[%c8_246, %c0_247, %c0_248] : memref<9x128x128xf32, #tpu.memory_space<vmem>>, vector<1x128x128xf32>
    %232 = vector.shape_cast %231 : vector<1x128x128xf32> to vector<128x128xf32>
    %cst_249 = arith.constant dense<0.000000e+00> : vector<64x128xf32>
    %233 = tpu.matmul %230, %232, %cst_249 {dimension_numbers = #tpu.dot_dimension_numbers<[1], [0], [0], [1], [0, 0, 1, 1], [], []>} : vector<64x128xf32>, vector<128x128xf32>, vector<64x128xf32> -> vector<64x128xf32>
    %234 = arith.addf %228, %233 : vector<64x128xf32>
    %c0_250 = arith.constant 0 : index
    %c0_251 = arith.constant 0 : index
    %235 = vector.load %arg5[%c0_250, %c0_251] : memref<1x128xf32, #tpu.memory_space<vmem>>, vector<1x128xf32>
    %236 = vector.broadcast %235 : vector<1x128xf32> to vector<64x128xf32>
    %237 = arith.addf %234, %236 : vector<64x128xf32>
    %cst_252 = arith.constant 0.000000e+00 : f32
    %238 = vector.broadcast %cst_252 : f32 to vector<64x128xf32>
    %239 = arith.maximumf %237, %238 : vector<64x128xf32>
    %240 = vector.shape_cast %239 : vector<64x128xf32> to vector<1x8x8x128xf32>
    %c0_253 = arith.constant 0 : index
    %c0_254 = arith.constant 0 : index
    %c0_255 = arith.constant 0 : index
    %c0_256 = arith.constant 0 : index
    %241 = vector.load %arg14[%c0_253, %c0_254, %c0_255, %c0_256] : memref<1x8x8x128xf32, #tpu.memory_space<vmem>>, vector<1x8x8x128xf32>
    tpu.vector_store %arg14[%c0_253, %c0_254, %c0_255, %c0_256], %240 {strides = array<i32>} : memref<1x8x8x128xf32, #tpu.memory_space<vmem>>, vector<1x8x8x128xf32>,
    %c0_257 = arith.constant 0 : index
    %c0_258 = arith.constant 0 : index
    %c0_259 = arith.constant 0 : index
    %c0_260 = arith.constant 0 : index
    %242 = vector.load %arg14[%c0_257, %c0_258, %c0_259, %c0_260] : memref<1x8x8x128xf32, #tpu.memory_space<vmem>>, vector<1x8x1x128xf32>
    %243 = vector.shape_cast %242 : vector<1x8x1x128xf32> to vector<8x1x128xf32>
    %c0_261 = arith.constant 0 : index
    %c0_262 = arith.constant 0 : index
    %c1_263 = arith.constant 1 : index
    %c0_264 = arith.constant 0 : index
    %244 = vector.load %arg14[%c0_261, %c0_262, %c1_263, %c0_264] : memref<1x8x8x128xf32, #tpu.memory_space<vmem>>, vector<1x8x1x128xf32>
    %245 = vector.shape_cast %244 : vector<1x8x1x128xf32> to vector<8x1x128xf32>
    %246 = arith.maximumf %243, %245 : vector<8x1x128xf32>
    %247 = vector.shape_cast %246 : vector<8x1x128xf32> to vector<4x2x1x128xf32>
    %248 = vector.extract_strided_slice %247 {offsets = [0, 0, 0, 0], sizes = [4, 1, 1, 128], strides = [1, 1, 1, 1]} : vector<4x2x1x128xf32> to vector<4x1x1x128xf32>
    %249 = vector.shape_cast %248 : vector<4x1x1x128xf32> to vector<4x1x128xf32>
    %250 = vector.extract_strided_slice %247 {offsets = [0, 1, 0, 0], sizes = [4, 1, 1, 128], strides = [1, 1, 1, 1]} : vector<4x2x1x128xf32> to vector<4x1x1x128xf32>
    %251 = vector.shape_cast %250 : vector<4x1x1x128xf32> to vector<4x1x128xf32>
    %252 = arith.maximumf %249, %251 : vector<4x1x128xf32>
    %c0_265 = arith.constant 0 : index
    %c0_266 = arith.constant 0 : index
    %c0_267 = arith.constant 0 : index
    %c0_268 = arith.constant 0 : index
    %253 = vector.load %arg15[%c0_265, %c0_266, %c0_267, %c0_268] : memref<1x4x4x128xf32, #tpu.memory_space<vmem>>, vector<1x4x1x128xf32>
    %254 = vector.shape_cast %253 : vector<1x4x1x128xf32> to vector<4x1x128xf32>
    %255 = vector.shape_cast %252 : vector<4x1x128xf32> to vector<1x4x1x128xf32>
    tpu.vector_store %arg15[%c0_265, %c0_266, %c0_267, %c0_268], %255 {strides = array<i32>} : memref<1x4x4x128xf32, #tpu.memory_space<vmem>>, vector<1x4x1x128xf32>,
    %c0_269 = arith.constant 0 : index
    %c0_270 = arith.constant 0 : index
    %c2_271 = arith.constant 2 : index
    %c0_272 = arith.constant 0 : index
    %256 = vector.load %arg14[%c0_269, %c0_270, %c2_271, %c0_272] : memref<1x8x8x128xf32, #tpu.memory_space<vmem>>, vector<1x8x1x128xf32>
    %257 = vector.shape_cast %256 : vector<1x8x1x128xf32> to vector<8x1x128xf32>
    %c0_273 = arith.constant 0 : index
    %c0_274 = arith.constant 0 : index
    %c3_275 = arith.constant 3 : index
    %c0_276 = arith.constant 0 : index
    %258 = vector.load %arg14[%c0_273, %c0_274, %c3_275, %c0_276] : memref<1x8x8x128xf32, #tpu.memory_space<vmem>>, vector<1x8x1x128xf32>
    %259 = vector.shape_cast %258 : vector<1x8x1x128xf32> to vector<8x1x128xf32>
    %260 = arith.maximumf %257, %259 : vector<8x1x128xf32>
    %261 = vector.shape_cast %260 : vector<8x1x128xf32> to vector<4x2x1x128xf32>
    %262 = vector.extract_strided_slice %261 {offsets = [0, 0, 0, 0], sizes = [4, 1, 1, 128], strides = [1, 1, 1, 1]} : vector<4x2x1x128xf32> to vector<4x1x1x128xf32>
    %263 = vector.shape_cast %262 : vector<4x1x1x128xf32> to vector<4x1x128xf32>
    %264 = vector.extract_strided_slice %261 {offsets = [0, 1, 0, 0], sizes = [4, 1, 1, 128], strides = [1, 1, 1, 1]} : vector<4x2x1x128xf32> to vector<4x1x1x128xf32>
    %265 = vector.shape_cast %264 : vector<4x1x1x128xf32> to vector<4x1x128xf32>
    %266 = arith.maximumf %263, %265 : vector<4x1x128xf32>
    %c0_277 = arith.constant 0 : index
    %c0_278 = arith.constant 0 : index
    %c1_279 = arith.constant 1 : index
    %c0_280 = arith.constant 0 : index
    %267 = vector.load %arg15[%c0_277, %c0_278, %c1_279, %c0_280] : memref<1x4x4x128xf32, #tpu.memory_space<vmem>>, vector<1x4x1x128xf32>
    %268 = vector.shape_cast %267 : vector<1x4x1x128xf32> to vector<4x1x128xf32>
    %269 = vector.shape_cast %266 : vector<4x1x128xf32> to vector<1x4x1x128xf32>
    tpu.vector_store %arg15[%c0_277, %c0_278, %c1_279, %c0_280], %269 {strides = array<i32>} : memref<1x4x4x128xf32, #tpu.memory_space<vmem>>, vector<1x4x1x128xf32>,
    %c0_281 = arith.constant 0 : index
    %c0_282 = arith.constant 0 : index
    %c4_283 = arith.constant 4 : index
    %c0_284 = arith.constant 0 : index
    %270 = vector.load %arg14[%c0_281, %c0_282, %c4_283, %c0_284] : memref<1x8x8x128xf32, #tpu.memory_space<vmem>>, vector<1x8x1x128xf32>
    %271 = vector.shape_cast %270 : vector<1x8x1x128xf32> to vector<8x1x128xf32>
    %c0_285 = arith.constant 0 : index
    %c0_286 = arith.constant 0 : index
    %c5_287 = arith.constant 5 : index
    %c0_288 = arith.constant 0 : index
    %272 = vector.load %arg14[%c0_285, %c0_286, %c5_287, %c0_288] : memref<1x8x8x128xf32, #tpu.memory_space<vmem>>, vector<1x8x1x128xf32>
    %273 = vector.shape_cast %272 : vector<1x8x1x128xf32> to vector<8x1x128xf32>
    %274 = arith.maximumf %271, %273 : vector<8x1x128xf32>
    %275 = vector.shape_cast %274 : vector<8x1x128xf32> to vector<4x2x1x128xf32>
    %276 = vector.extract_strided_slice %275 {offsets = [0, 0, 0, 0], sizes = [4, 1, 1, 128], strides = [1, 1, 1, 1]} : vector<4x2x1x128xf32> to vector<4x1x1x128xf32>
    %277 = vector.shape_cast %276 : vector<4x1x1x128xf32> to vector<4x1x128xf32>
    %278 = vector.extract_strided_slice %275 {offsets = [0, 1, 0, 0], sizes = [4, 1, 1, 128], strides = [1, 1, 1, 1]} : vector<4x2x1x128xf32> to vector<4x1x1x128xf32>
    %279 = vector.shape_cast %278 : vector<4x1x1x128xf32> to vector<4x1x128xf32>
    %280 = arith.maximumf %277, %279 : vector<4x1x128xf32>
    %c0_289 = arith.constant 0 : index
    %c0_290 = arith.constant 0 : index
    %c2_291 = arith.constant 2 : index
    %c0_292 = arith.constant 0 : index
    %281 = vector.load %arg15[%c0_289, %c0_290, %c2_291, %c0_292] : memref<1x4x4x128xf32, #tpu.memory_space<vmem>>, vector<1x4x1x128xf32>
    %282 = vector.shape_cast %281 : vector<1x4x1x128xf32> to vector<4x1x128xf32>
    %283 = vector.shape_cast %280 : vector<4x1x128xf32> to vector<1x4x1x128xf32>
    tpu.vector_store %arg15[%c0_289, %c0_290, %c2_291, %c0_292], %283 {strides = array<i32>} : memref<1x4x4x128xf32, #tpu.memory_space<vmem>>, vector<1x4x1x128xf32>,
    %c0_293 = arith.constant 0 : index
    %c0_294 = arith.constant 0 : index
    %c6_295 = arith.constant 6 : index
    %c0_296 = arith.constant 0 : index
    %284 = vector.load %arg14[%c0_293, %c0_294, %c6_295, %c0_296] : memref<1x8x8x128xf32, #tpu.memory_space<vmem>>, vector<1x8x1x128xf32>
    %285 = vector.shape_cast %284 : vector<1x8x1x128xf32> to vector<8x1x128xf32>
    %c0_297 = arith.constant 0 : index
    %c0_298 = arith.constant 0 : index
    %c7_299 = arith.constant 7 : index
    %c0_300 = arith.constant 0 : index
    %286 = vector.load %arg14[%c0_297, %c0_298, %c7_299, %c0_300] : memref<1x8x8x128xf32, #tpu.memory_space<vmem>>, vector<1x8x1x128xf32>
    %287 = vector.shape_cast %286 : vector<1x8x1x128xf32> to vector<8x1x128xf32>
    %288 = arith.maximumf %285, %287 : vector<8x1x128xf32>
    %289 = vector.shape_cast %288 : vector<8x1x128xf32> to vector<4x2x1x128xf32>
    %290 = vector.extract_strided_slice %289 {offsets = [0, 0, 0, 0], sizes = [4, 1, 1, 128], strides = [1, 1, 1, 1]} : vector<4x2x1x128xf32> to vector<4x1x1x128xf32>
    %291 = vector.shape_cast %290 : vector<4x1x1x128xf32> to vector<4x1x128xf32>
    %292 = vector.extract_strided_slice %289 {offsets = [0, 1, 0, 0], sizes = [4, 1, 1, 128], strides = [1, 1, 1, 1]} : vector<4x2x1x128xf32> to vector<4x1x1x128xf32>
    %293 = vector.shape_cast %292 : vector<4x1x1x128xf32> to vector<4x1x128xf32>
    %294 = arith.maximumf %291, %293 : vector<4x1x128xf32>
    %c0_301 = arith.constant 0 : index
    %c0_302 = arith.constant 0 : index
    %c3_303 = arith.constant 3 : index
    %c0_304 = arith.constant 0 : index
    %295 = vector.load %arg15[%c0_301, %c0_302, %c3_303, %c0_304] : memref<1x4x4x128xf32, #tpu.memory_space<vmem>>, vector<1x4x1x128xf32>
    %296 = vector.shape_cast %295 : vector<1x4x1x128xf32> to vector<4x1x128xf32>
    %297 = vector.shape_cast %294 : vector<4x1x128xf32> to vector<1x4x1x128xf32>
    tpu.vector_store %arg15[%c0_301, %c0_302, %c3_303, %c0_304], %297 {strides = array<i32>} : memref<1x4x4x128xf32, #tpu.memory_space<vmem>>, vector<1x4x1x128xf32>,
    %cst_305 = arith.constant 0.000000e+00 : f32
    %298 = vector.broadcast %cst_305 : f32 to vector<1x128xf32>
    %c0_306 = arith.constant 0 : index
    %c0_307 = arith.constant 0 : index
    %c0_308 = arith.constant 0 : index
    %c0_309 = arith.constant 0 : index
    %299 = vector.load %arg15[%c0_306, %c0_307, %c0_308, %c0_309] : memref<1x4x4x128xf32, #tpu.memory_space<vmem>>, vector<1x1x1x128xf32>
    %300 = vector.shape_cast %299 : vector<1x1x1x128xf32> to vector<1x128xf32>
    %c0_310 = arith.constant 0 : index
    %c0_311 = arith.constant 0 : index
    %c0_312 = arith.constant 0 : index
    %301 = vector.load %arg6[%c0_310, %c0_311, %c0_312] : memref<16x128x128xf32, #tpu.memory_space<vmem>>, vector<1x128x128xf32>
    %302 = vector.shape_cast %301 : vector<1x128x128xf32> to vector<128x128xf32>
    %cst_313 = arith.constant dense<0.000000e+00> : vector<1x128xf32>
    %303 = tpu.matmul %300, %302, %cst_313 {dimension_numbers = #tpu.dot_dimension_numbers<[1], [0], [0], [1], [0, 0, 1, 1], [], []>} : vector<1x128xf32>, vector<128x128xf32>, vector<1x128xf32> -> vector<1x128xf32>
    %304 = arith.addf %298, %303 : vector<1x128xf32>
    %c0_314 = arith.constant 0 : index
    %c0_315 = arith.constant 0 : index
    %c1_316 = arith.constant 1 : index
    %c0_317 = arith.constant 0 : index
    %305 = vector.load %arg15[%c0_314, %c0_315, %c1_316, %c0_317] : memref<1x4x4x128xf32, #tpu.memory_space<vmem>>, vector<1x1x1x128xf32>
    %306 = vector.shape_cast %305 : vector<1x1x1x128xf32> to vector<1x128xf32>
    %c1_318 = arith.constant 1 : index
    %c0_319 = arith.constant 0 : index
    %c0_320 = arith.constant 0 : index
    %307 = vector.load %arg6[%c1_318, %c0_319, %c0_320] : memref<16x128x128xf32, #tpu.memory_space<vmem>>, vector<1x128x128xf32>
    %308 = vector.shape_cast %307 : vector<1x128x128xf32> to vector<128x128xf32>
    %cst_321 = arith.constant dense<0.000000e+00> : vector<1x128xf32>
    %309 = tpu.matmul %306, %308, %cst_321 {dimension_numbers = #tpu.dot_dimension_numbers<[1], [0], [0], [1], [0, 0, 1, 1], [], []>} : vector<1x128xf32>, vector<128x128xf32>, vector<1x128xf32> -> vector<1x128xf32>
    %310 = arith.addf %304, %309 : vector<1x128xf32>
    %c0_322 = arith.constant 0 : index
    %c0_323 = arith.constant 0 : index
    %c2_324 = arith.constant 2 : index
    %c0_325 = arith.constant 0 : index
    %311 = vector.load %arg15[%c0_322, %c0_323, %c2_324, %c0_325] : memref<1x4x4x128xf32, #tpu.memory_space<vmem>>, vector<1x1x1x128xf32>
    %312 = vector.shape_cast %311 : vector<1x1x1x128xf32> to vector<1x128xf32>
    %c2_326 = arith.constant 2 : index
    %c0_327 = arith.constant 0 : index
    %c0_328 = arith.constant 0 : index
    %313 = vector.load %arg6[%c2_326, %c0_327, %c0_328] : memref<16x128x128xf32, #tpu.memory_space<vmem>>, vector<1x128x128xf32>
    %314 = vector.shape_cast %313 : vector<1x128x128xf32> to vector<128x128xf32>
    %cst_329 = arith.constant dense<0.000000e+00> : vector<1x128xf32>
    %315 = tpu.matmul %312, %314, %cst_329 {dimension_numbers = #tpu.dot_dimension_numbers<[1], [0], [0], [1], [0, 0, 1, 1], [], []>} : vector<1x128xf32>, vector<128x128xf32>, vector<1x128xf32> -> vector<1x128xf32>
    %316 = arith.addf %310, %315 : vector<1x128xf32>
    %c0_330 = arith.constant 0 : index
    %c0_331 = arith.constant 0 : index
    %c3_332 = arith.constant 3 : index
    %c0_333 = arith.constant 0 : index
    %317 = vector.load %arg15[%c0_330, %c0_331, %c3_332, %c0_333] : memref<1x4x4x128xf32, #tpu.memory_space<vmem>>, vector<1x1x1x128xf32>
    %318 = vector.shape_cast %317 : vector<1x1x1x128xf32> to vector<1x128xf32>
    %c3_334 = arith.constant 3 : index
    %c0_335 = arith.constant 0 : index
    %c0_336 = arith.constant 0 : index
    %319 = vector.load %arg6[%c3_334, %c0_335, %c0_336] : memref<16x128x128xf32, #tpu.memory_space<vmem>>, vector<1x128x128xf32>
    %320 = vector.shape_cast %319 : vector<1x128x128xf32> to vector<128x128xf32>
    %cst_337 = arith.constant dense<0.000000e+00> : vector<1x128xf32>
    %321 = tpu.matmul %318, %320, %cst_337 {dimension_numbers = #tpu.dot_dimension_numbers<[1], [0], [0], [1], [0, 0, 1, 1], [], []>} : vector<1x128xf32>, vector<128x128xf32>, vector<1x128xf32> -> vector<1x128xf32>
    %322 = arith.addf %316, %321 : vector<1x128xf32>
    %c0_338 = arith.constant 0 : index
    %c1_339 = arith.constant 1 : index
    %c0_340 = arith.constant 0 : index
    %c0_341 = arith.constant 0 : index
    %323 = vector.load %arg15[%c0_338, %c1_339, %c0_340, %c0_341] : memref<1x4x4x128xf32, #tpu.memory_space<vmem>>, vector<1x1x1x128xf32>
    %324 = vector.shape_cast %323 : vector<1x1x1x128xf32> to vector<1x128xf32>
    %c4_342 = arith.constant 4 : index
    %c0_343 = arith.constant 0 : index
    %c0_344 = arith.constant 0 : index
    %325 = vector.load %arg6[%c4_342, %c0_343, %c0_344] : memref<16x128x128xf32, #tpu.memory_space<vmem>>, vector<1x128x128xf32>
    %326 = vector.shape_cast %325 : vector<1x128x128xf32> to vector<128x128xf32>
    %cst_345 = arith.constant dense<0.000000e+00> : vector<1x128xf32>
    %327 = tpu.matmul %324, %326, %cst_345 {dimension_numbers = #tpu.dot_dimension_numbers<[1], [0], [0], [1], [0, 0, 1, 1], [], []>} : vector<1x128xf32>, vector<128x128xf32>, vector<1x128xf32> -> vector<1x128xf32>
    %328 = arith.addf %322, %327 : vector<1x128xf32>
    %c0_346 = arith.constant 0 : index
    %c1_347 = arith.constant 1 : index
    %c1_348 = arith.constant 1 : index
    %c0_349 = arith.constant 0 : index
    %329 = vector.load %arg15[%c0_346, %c1_347, %c1_348, %c0_349] : memref<1x4x4x128xf32, #tpu.memory_space<vmem>>, vector<1x1x1x128xf32>
    %330 = vector.shape_cast %329 : vector<1x1x1x128xf32> to vector<1x128xf32>
    %c5_350 = arith.constant 5 : index
    %c0_351 = arith.constant 0 : index
    %c0_352 = arith.constant 0 : index
    %331 = vector.load %arg6[%c5_350, %c0_351, %c0_352] : memref<16x128x128xf32, #tpu.memory_space<vmem>>, vector<1x128x128xf32>
    %332 = vector.shape_cast %331 : vector<1x128x128xf32> to vector<128x128xf32>
    %cst_353 = arith.constant dense<0.000000e+00> : vector<1x128xf32>
    %333 = tpu.matmul %330, %332, %cst_353 {dimension_numbers = #tpu.dot_dimension_numbers<[1], [0], [0], [1], [0, 0, 1, 1], [], []>} : vector<1x128xf32>, vector<128x128xf32>, vector<1x128xf32> -> vector<1x128xf32>
    %334 = arith.addf %328, %333 : vector<1x128xf32>
    %c0_354 = arith.constant 0 : index
    %c1_355 = arith.constant 1 : index
    %c2_356 = arith.constant 2 : index
    %c0_357 = arith.constant 0 : index
    %335 = vector.load %arg15[%c0_354, %c1_355, %c2_356, %c0_357] : memref<1x4x4x128xf32, #tpu.memory_space<vmem>>, vector<1x1x1x128xf32>
    %336 = vector.shape_cast %335 : vector<1x1x1x128xf32> to vector<1x128xf32>
    %c6_358 = arith.constant 6 : index
    %c0_359 = arith.constant 0 : index
    %c0_360 = arith.constant 0 : index
    %337 = vector.load %arg6[%c6_358, %c0_359, %c0_360] : memref<16x128x128xf32, #tpu.memory_space<vmem>>, vector<1x128x128xf32>
    %338 = vector.shape_cast %337 : vector<1x128x128xf32> to vector<128x128xf32>
    %cst_361 = arith.constant dense<0.000000e+00> : vector<1x128xf32>
    %339 = tpu.matmul %336, %338, %cst_361 {dimension_numbers = #tpu.dot_dimension_numbers<[1], [0], [0], [1], [0, 0, 1, 1], [], []>} : vector<1x128xf32>, vector<128x128xf32>, vector<1x128xf32> -> vector<1x128xf32>
    %340 = arith.addf %334, %339 : vector<1x128xf32>
    %c0_362 = arith.constant 0 : index
    %c1_363 = arith.constant 1 : index
    %c3_364 = arith.constant 3 : index
    %c0_365 = arith.constant 0 : index
    %341 = vector.load %arg15[%c0_362, %c1_363, %c3_364, %c0_365] : memref<1x4x4x128xf32, #tpu.memory_space<vmem>>, vector<1x1x1x128xf32>
    %342 = vector.shape_cast %341 : vector<1x1x1x128xf32> to vector<1x128xf32>
    %c7_366 = arith.constant 7 : index
    %c0_367 = arith.constant 0 : index
    %c0_368 = arith.constant 0 : index
    %343 = vector.load %arg6[%c7_366, %c0_367, %c0_368] : memref<16x128x128xf32, #tpu.memory_space<vmem>>, vector<1x128x128xf32>
    %344 = vector.shape_cast %343 : vector<1x128x128xf32> to vector<128x128xf32>
    %cst_369 = arith.constant dense<0.000000e+00> : vector<1x128xf32>
    %345 = tpu.matmul %342, %344, %cst_369 {dimension_numbers = #tpu.dot_dimension_numbers<[1], [0], [0], [1], [0, 0, 1, 1], [], []>} : vector<1x128xf32>, vector<128x128xf32>, vector<1x128xf32> -> vector<1x128xf32>
    %346 = arith.addf %340, %345 : vector<1x128xf32>
    %c0_370 = arith.constant 0 : index
    %c2_371 = arith.constant 2 : index
    %c0_372 = arith.constant 0 : index
    %c0_373 = arith.constant 0 : index
    %347 = vector.load %arg15[%c0_370, %c2_371, %c0_372, %c0_373] : memref<1x4x4x128xf32, #tpu.memory_space<vmem>>, vector<1x1x1x128xf32>
    %348 = vector.shape_cast %347 : vector<1x1x1x128xf32> to vector<1x128xf32>
    %c8_374 = arith.constant 8 : index
    %c0_375 = arith.constant 0 : index
    %c0_376 = arith.constant 0 : index
    %349 = vector.load %arg6[%c8_374, %c0_375, %c0_376] : memref<16x128x128xf32, #tpu.memory_space<vmem>>, vector<1x128x128xf32>
    %350 = vector.shape_cast %349 : vector<1x128x128xf32> to vector<128x128xf32>
    %cst_377 = arith.constant dense<0.000000e+00> : vector<1x128xf32>
    %351 = tpu.matmul %348, %350, %cst_377 {dimension_numbers = #tpu.dot_dimension_numbers<[1], [0], [0], [1], [0, 0, 1, 1], [], []>} : vector<1x128xf32>, vector<128x128xf32>, vector<1x128xf32> -> vector<1x128xf32>
    %352 = arith.addf %346, %351 : vector<1x128xf32>
    %c0_378 = arith.constant 0 : index
    %c2_379 = arith.constant 2 : index
    %c1_380 = arith.constant 1 : index
    %c0_381 = arith.constant 0 : index
    %353 = vector.load %arg15[%c0_378, %c2_379, %c1_380, %c0_381] : memref<1x4x4x128xf32, #tpu.memory_space<vmem>>, vector<1x1x1x128xf32>
    %354 = vector.shape_cast %353 : vector<1x1x1x128xf32> to vector<1x128xf32>
    %c9_382 = arith.constant 9 : index
    %c0_383 = arith.constant 0 : index
    %c0_384 = arith.constant 0 : index
    %355 = vector.load %arg6[%c9_382, %c0_383, %c0_384] : memref<16x128x128xf32, #tpu.memory_space<vmem>>, vector<1x128x128xf32>
    %356 = vector.shape_cast %355 : vector<1x128x128xf32> to vector<128x128xf32>
    %cst_385 = arith.constant dense<0.000000e+00> : vector<1x128xf32>
    %357 = tpu.matmul %354, %356, %cst_385 {dimension_numbers = #tpu.dot_dimension_numbers<[1], [0], [0], [1], [0, 0, 1, 1], [], []>} : vector<1x128xf32>, vector<128x128xf32>, vector<1x128xf32> -> vector<1x128xf32>
    %358 = arith.addf %352, %357 : vector<1x128xf32>
    %c0_386 = arith.constant 0 : index
    %c2_387 = arith.constant 2 : index
    %c2_388 = arith.constant 2 : index
    %c0_389 = arith.constant 0 : index
    %359 = vector.load %arg15[%c0_386, %c2_387, %c2_388, %c0_389] : memref<1x4x4x128xf32, #tpu.memory_space<vmem>>, vector<1x1x1x128xf32>
    %360 = vector.shape_cast %359 : vector<1x1x1x128xf32> to vector<1x128xf32>
    %c10_390 = arith.constant 10 : index
    %c0_391 = arith.constant 0 : index
    %c0_392 = arith.constant 0 : index
    %361 = vector.load %arg6[%c10_390, %c0_391, %c0_392] : memref<16x128x128xf32, #tpu.memory_space<vmem>>, vector<1x128x128xf32>
    %362 = vector.shape_cast %361 : vector<1x128x128xf32> to vector<128x128xf32>
    %cst_393 = arith.constant dense<0.000000e+00> : vector<1x128xf32>
    %363 = tpu.matmul %360, %362, %cst_393 {dimension_numbers = #tpu.dot_dimension_numbers<[1], [0], [0], [1], [0, 0, 1, 1], [], []>} : vector<1x128xf32>, vector<128x128xf32>, vector<1x128xf32> -> vector<1x128xf32>
    %364 = arith.addf %358, %363 : vector<1x128xf32>
    %c0_394 = arith.constant 0 : index
    %c2_395 = arith.constant 2 : index
    %c3_396 = arith.constant 3 : index
    %c0_397 = arith.constant 0 : index
    %365 = vector.load %arg15[%c0_394, %c2_395, %c3_396, %c0_397] : memref<1x4x4x128xf32, #tpu.memory_space<vmem>>, vector<1x1x1x128xf32>
    %366 = vector.shape_cast %365 : vector<1x1x1x128xf32> to vector<1x128xf32>
    %c11_398 = arith.constant 11 : index
    %c0_399 = arith.constant 0 : index
    %c0_400 = arith.constant 0 : index
    %367 = vector.load %arg6[%c11_398, %c0_399, %c0_400] : memref<16x128x128xf32, #tpu.memory_space<vmem>>, vector<1x128x128xf32>
    %368 = vector.shape_cast %367 : vector<1x128x128xf32> to vector<128x128xf32>
    %cst_401 = arith.constant dense<0.000000e+00> : vector<1x128xf32>
    %369 = tpu.matmul %366, %368, %cst_401 {dimension_numbers = #tpu.dot_dimension_numbers<[1], [0], [0], [1], [0, 0, 1, 1], [], []>} : vector<1x128xf32>, vector<128x128xf32>, vector<1x128xf32> -> vector<1x128xf32>
    %370 = arith.addf %364, %369 : vector<1x128xf32>
    %c0_402 = arith.constant 0 : index
    %c3_403 = arith.constant 3 : index
    %c0_404 = arith.constant 0 : index
    %c0_405 = arith.constant 0 : index
    %371 = vector.load %arg15[%c0_402, %c3_403, %c0_404, %c0_405] : memref<1x4x4x128xf32, #tpu.memory_space<vmem>>, vector<1x1x1x128xf32>
    %372 = vector.shape_cast %371 : vector<1x1x1x128xf32> to vector<1x128xf32>
    %c12_406 = arith.constant 12 : index
    %c0_407 = arith.constant 0 : index
    %c0_408 = arith.constant 0 : index
    %373 = vector.load %arg6[%c12_406, %c0_407, %c0_408] : memref<16x128x128xf32, #tpu.memory_space<vmem>>, vector<1x128x128xf32>
    %374 = vector.shape_cast %373 : vector<1x128x128xf32> to vector<128x128xf32>
    %cst_409 = arith.constant dense<0.000000e+00> : vector<1x128xf32>
    %375 = tpu.matmul %372, %374, %cst_409 {dimension_numbers = #tpu.dot_dimension_numbers<[1], [0], [0], [1], [0, 0, 1, 1], [], []>} : vector<1x128xf32>, vector<128x128xf32>, vector<1x128xf32> -> vector<1x128xf32>
    %376 = arith.addf %370, %375 : vector<1x128xf32>
    %c0_410 = arith.constant 0 : index
    %c3_411 = arith.constant 3 : index
    %c1_412 = arith.constant 1 : index
    %c0_413 = arith.constant 0 : index
    %377 = vector.load %arg15[%c0_410, %c3_411, %c1_412, %c0_413] : memref<1x4x4x128xf32, #tpu.memory_space<vmem>>, vector<1x1x1x128xf32>
    %378 = vector.shape_cast %377 : vector<1x1x1x128xf32> to vector<1x128xf32>
    %c13_414 = arith.constant 13 : index
    %c0_415 = arith.constant 0 : index
    %c0_416 = arith.constant 0 : index
    %379 = vector.load %arg6[%c13_414, %c0_415, %c0_416] : memref<16x128x128xf32, #tpu.memory_space<vmem>>, vector<1x128x128xf32>
    %380 = vector.shape_cast %379 : vector<1x128x128xf32> to vector<128x128xf32>
    %cst_417 = arith.constant dense<0.000000e+00> : vector<1x128xf32>
    %381 = tpu.matmul %378, %380, %cst_417 {dimension_numbers = #tpu.dot_dimension_numbers<[1], [0], [0], [1], [0, 0, 1, 1], [], []>} : vector<1x128xf32>, vector<128x128xf32>, vector<1x128xf32> -> vector<1x128xf32>
    %382 = arith.addf %376, %381 : vector<1x128xf32>
    %c0_418 = arith.constant 0 : index
    %c3_419 = arith.constant 3 : index
    %c2_420 = arith.constant 2 : index
    %c0_421 = arith.constant 0 : index
    %383 = vector.load %arg15[%c0_418, %c3_419, %c2_420, %c0_421] : memref<1x4x4x128xf32, #tpu.memory_space<vmem>>, vector<1x1x1x128xf32>
    %384 = vector.shape_cast %383 : vector<1x1x1x128xf32> to vector<1x128xf32>
    %c14_422 = arith.constant 14 : index
    %c0_423 = arith.constant 0 : index
    %c0_424 = arith.constant 0 : index
    %385 = vector.load %arg6[%c14_422, %c0_423, %c0_424] : memref<16x128x128xf32, #tpu.memory_space<vmem>>, vector<1x128x128xf32>
    %386 = vector.shape_cast %385 : vector<1x128x128xf32> to vector<128x128xf32>
    %cst_425 = arith.constant dense<0.000000e+00> : vector<1x128xf32>
    %387 = tpu.matmul %384, %386, %cst_425 {dimension_numbers = #tpu.dot_dimension_numbers<[1], [0], [0], [1], [0, 0, 1, 1], [], []>} : vector<1x128xf32>, vector<128x128xf32>, vector<1x128xf32> -> vector<1x128xf32>
    %388 = arith.addf %382, %387 : vector<1x128xf32>
    %c0_426 = arith.constant 0 : index
    %c3_427 = arith.constant 3 : index
    %c3_428 = arith.constant 3 : index
    %c0_429 = arith.constant 0 : index
    %389 = vector.load %arg15[%c0_426, %c3_427, %c3_428, %c0_429] : memref<1x4x4x128xf32, #tpu.memory_space<vmem>>, vector<1x1x1x128xf32>
    %390 = vector.shape_cast %389 : vector<1x1x1x128xf32> to vector<1x128xf32>
    %c15_430 = arith.constant 15 : index
    %c0_431 = arith.constant 0 : index
    %c0_432 = arith.constant 0 : index
    %391 = vector.load %arg6[%c15_430, %c0_431, %c0_432] : memref<16x128x128xf32, #tpu.memory_space<vmem>>, vector<1x128x128xf32>
    %392 = vector.shape_cast %391 : vector<1x128x128xf32> to vector<128x128xf32>
    %cst_433 = arith.constant dense<0.000000e+00> : vector<1x128xf32>
    %393 = tpu.matmul %390, %392, %cst_433 {dimension_numbers = #tpu.dot_dimension_numbers<[1], [0], [0], [1], [0, 0, 1, 1], [], []>} : vector<1x128xf32>, vector<128x128xf32>, vector<1x128xf32> -> vector<1x128xf32>
    %394 = arith.addf %388, %393 : vector<1x128xf32>
    %c0_434 = arith.constant 0 : index
    %c0_435 = arith.constant 0 : index
    %395 = vector.load %arg7[%c0_434, %c0_435] : memref<1x128xf32, #tpu.memory_space<vmem>>, vector<1x128xf32>
    %396 = arith.addf %394, %395 : vector<1x128xf32>
    %cst_436 = arith.constant 0.000000e+00 : f32
    %397 = vector.broadcast %cst_436 : f32 to vector<1x128xf32>
    %398 = arith.maximumf %396, %397 : vector<1x128xf32>
    %c0_437 = arith.constant 0 : index
    %c0_438 = arith.constant 0 : index
    %399 = vector.load %arg8[%c0_437, %c0_438] : memref<128x128xf32, #tpu.memory_space<vmem>>, vector<128x128xf32>
    %cst_439 = arith.constant dense<0.000000e+00> : vector<1x128xf32>
    %400 = tpu.matmul %398, %399, %cst_439 {dimension_numbers = #tpu.dot_dimension_numbers<[1], [0], [0], [1], [0, 0, 1, 1], [], []>} : vector<1x128xf32>, vector<128x128xf32>, vector<1x128xf32> -> vector<1x128xf32>
    %c0_440 = arith.constant 0 : index
    %c0_441 = arith.constant 0 : index
    %401 = vector.load %arg9[%c0_440, %c0_441] : memref<1x128xf32, #tpu.memory_space<vmem>>, vector<1x128xf32>
    %402 = arith.addf %400, %401 : vector<1x128xf32>
    %403 = vector.shape_cast %402 : vector<1x128xf32> to vector<1x1x128xf32>
    %c0_442 = arith.constant 0 : index
    %c0_443 = arith.constant 0 : index
    %c0_444 = arith.constant 0 : index
    %404 = vector.load %arg10[%c0_442, %c0_443, %c0_444] : memref<1x1x128xf32, #tpu.memory_space<vmem>>, vector<1x1x128xf32>
    tpu.vector_store %arg10[%c0_442, %c0_443, %c0_444], %403 {strides = array<i32>} : memref<1x1x128xf32, #tpu.memory_space<vmem>>, vector<1x1x128xf32>,
    return
  }
  func.func @transform_0(%arg0: i32) -> (i32, i32, i32, i32) {
    %c0_i32 = arith.constant 0 : i32
    %c0_i32_0 = arith.constant 0 : i32
    %c0_i32_1 = arith.constant 0 : i32
    %c0_i32_2 = arith.constant 0 : i32
    return %arg0, %c0_i32, %c0_i32_0, %c0_i32_1 : i32, i32, i32, i32
  }
  func.func @transform_1(%arg0: i32) -> (i32, i32, i32) {
    %c0_i32 = arith.constant 0 : i32
    %c0_i32_0 = arith.constant 0 : i32
    %c0_i32_1 = arith.constant 0 : i32
    %c0_i32_2 = arith.constant 0 : i32
    return %c0_i32, %c0_i32_0, %c0_i32_1 : i32, i32, i32
  }
  func.func @transform_2(%arg0: i32) -> (i32, i32) {
    %c0_i32 = arith.constant 0 : i32
    %c0_i32_0 = arith.constant 0 : i32
    %c0_i32_1 = arith.constant 0 : i32
    return %c0_i32, %c0_i32_0 : i32, i32
  }
  func.func @transform_3(%arg0: i32) -> (i32, i32, i32) {
    %c0_i32 = arith.constant 0 : i32
    %c0_i32_0 = arith.constant 0 : i32
    %c0_i32_1 = arith.constant 0 : i32
    %c0_i32_2 = arith.constant 0 : i32
    return %c0_i32, %c0_i32_0, %c0_i32_1 : i32, i32, i32
  }
  func.func @transform_4(%arg0: i32) -> (i32, i32) {
    %c0_i32 = arith.constant 0 : i32
    %c0_i32_0 = arith.constant 0 : i32
    %c0_i32_1 = arith.constant 0 : i32
    return %c0_i32, %c0_i32_0 : i32, i32
  }
  func.func @transform_5(%arg0: i32) -> (i32, i32, i32) {
    %c0_i32 = arith.constant 0 : i32
    %c0_i32_0 = arith.constant 0 : i32
    %c0_i32_1 = arith.constant 0 : i32
    %c0_i32_2 = arith.constant 0 : i32
    return %c0_i32, %c0_i32_0, %c0_i32_1 : i32, i32, i32
  }
  func.func @transform_6(%arg0: i32) -> (i32, i32) {
    %c0_i32 = arith.constant 0 : i32
    %c0_i32_0 = arith.constant 0 : i32
    %c0_i32_1 = arith.constant 0 : i32
    return %c0_i32, %c0_i32_0 : i32, i32
  }
  func.func @transform_7(%arg0: i32) -> (i32, i32) {
    %c0_i32 = arith.constant 0 : i32
    %c0_i32_0 = arith.constant 0 : i32
    %c0_i32_1 = arith.constant 0 : i32
    return %c0_i32, %c0_i32_0 : i32, i32
  }
  func.func @transform_8(%arg0: i32) -> (i32, i32) {
    %c0_i32 = arith.constant 0 : i32
    %c0_i32_0 = arith.constant 0 : i32
    %c0_i32_1 = arith.constant 0 : i32
    return %c0_i32, %c0_i32_0 : i32, i32
  }
  func.func @transform_9(%arg0: i32) -> (i32, i32, i32) {
    %c0_i32 = arith.constant 0 : i32
    %c0_i32_0 = arith.constant 0 : i32
    %c0_i32_1 = arith.constant 0 : i32
    return %arg0, %c0_i32, %c0_i32_0 : i32, i32, i32
  }
}

</mosaic_0001>

<bundles_post_ra>
// kernel: forward.1
= control target key start
LH: loop header
LB: loop body
LE: loop exit
PB: predicated region body
PF: predicated region fallthrough
CT: control target
= control target key end

     0   :  { %s5765_s0 = inlined_call_operand.vmem [shape: f32[2,16,16,4], index: 0, kind: input, shape index: {}]   ;;  %s5766_s1 = inlined_call_operand.hbm [shape: f32[9,128,128], index: 1, kind: input, shape index: {}]   ;;  %s5767_s2 = inlined_call_operand.vmem [shape: f32[1,128], index: 2, kind: input, shape index: {}]   ;;  %s5768_s3 = inlined_call_operand.hbm [shape: f32[9,128,128], index: 3, kind: input, shape index: {}]   ;;  %s5769_s4 = inlined_call_operand.vmem [shape: f32[1,128], index: 4, kind: input, shape index: {}]   ;;  %s5770_s5 = inlined_call_operand.hbm [shape: f32[16,128,128], index: 5, kind: input, shape index: {}]   ;;  %s5771_s6 = inlined_call_operand.vmem [shape: f32[1,128], index: 6, kind: input, shape index: {}]   ;;  %s5772_s7 = inlined_call_operand.vmem [shape: f32[128,128], index: 7, kind: input, shape index: {}]   ;;  %s5773_s8 = inlined_call_operand.vmem [shape: f32[1,128], index: 8, kind: input, shape index: {}]   ;;  %s5774_s9 = inlined_call_operand.hbm [shape: f32[2,1,128], index: 9, kind: output, shape index: {}]  }
   0x1   :  { %5775 = sst [smem:[#allocation47_spill]] %s5766_s1 }
   0x2   :  { %5776 = sst [smem:[#allocation48_spill]] %s5768_s3 }
   0x3   :  { %14 = vsyncpa [#allocation8], 0 }
   0x4   :  { %15 = vsyncpa [#allocation11], 0 }
   0x5   :  { %16 = vsyncpa [#allocation9], 0 }
   0x6   :  { %18 = vsyncpa [#allocation9 + $0x1], 0  ;;  %s4703_s30 = smov 0   ;;  %s4705_s10 = smov 0  }
   0x7   :  { %s4707_s11 = smov 0   ;;  %s4709_s12 = smov 0  }
   0x8 LB: > { %s4724_s13 = sadd.s32 4294967295, %s4645_s12   ;;  %s4385_s14 = sadd.s32 4294967294, %s4645_s12   ;;  %s4645_s12 = sphi %s4709_s12, %s5846_s12   ;;  %s4641_s11 = sphi %s4707_s11, %s5845_s11   ;;  %s4637_s10 = sphi %s4705_s10, %s5844_s10   ;;  %s4633_s30 = sphi %s4703_s30, %s5843_s30  }
   0x9   : > { %s4728_s15 = sadd.s32 1, %s4645_s12   ;;  %s225_s16 = sadd.s32 1, %s4641_s11 }
   0xa   : > { %s222_s17 = ssub.s32 %s4645_s12, %s4728_s15  ;;  %p235_p0 = scmp.ne.s32.totalorder %s4641_s11, %s4637_s10 }
   0xb   : > { %p223_p1 = scmp.eq.s32.totalorder %s222_s17, 0  ;;  %p236_p2 = scmp.eq.s32.totalorder %s4724_s13, 1 }
   0xc   : > { %p241_p3 = scmp.ne.s32.totalorder %s4637_s10, %s4633_s30  ;;  %p242_p4 = scmp.eq.s32.totalorder %s4385_s14, 1 }
   0xd   : > { %s4739_s18 = scalar_select %p223_p1, %s4641_s11, %s225_s16  }
   0xe   : > { %p4741_p5 = por %p236_p2, %p235_p0  ;;  %p4745_p6 = por %p242_p4, %p241_p3 }
   0xf   : > { %5777 = sst [smem:[#allocation17_spill]] %s4739_s18  ;;  %p4386_p7 = scmp.ge.s32.totalorder %s4645_s12, 1 }
  0x10   : > { %p249_p8 = scmp.lt.s32.totalorder %s4645_s12, 3  ;;  %p4428_p9 = scmp.eq.s32.totalorder %s4724_s13, 0 }
  0x11   : > { %s5781_s3 = sld [smem:[#allocation48_spill]]  ;;  %s4647_s29 = smov [#allocation10]  }
  0x12   : > { %p4752_p10 = pnand %p4386_p7, %p249_p8  ;;  %s5782_s1 = sld [smem:[#allocation47_spill]] }
  0x13   : > { %s279_s14 = sshll.u32 %s4647_s29, 4  ;;  %s4648_s16 = smov 128   ;;  %s280_s14 = int_to_ptr.vmem [resolvable:$true] %s279_s14 }
  0x14   : > { %p4414_p11 = pneg %p4752_p10  ;;  %s4649_s17 = smov 8  }
  0x15   : > { %s4650_s22 = smov [#allocation7]  }
  0x16   : > { %p4766_p12 = pnand %p4428_p9, %p4414_p11  ;;  %s262_s23 = sshll.u32 %s4650_s22, 4  ;;  %s263_s23 = int_to_ptr.vmem [resolvable:$true] %s262_s23 }
  0x17   : > { %s277_s24 = sshll.u32 %s5781_s3, 4  ;;  %s4651_s3 = smov [#allocation12]   ;;  %s278_s24 = int_to_ptr.hbm [resolvable:$true] %s277_s24 }
  0x18   : > { %s260_s27 = sshll.u32 %s5782_s1, 4  ;;  %s294_s1 = sshll.u32 %s5770_s5, 4  ;;  %s261_s27 = int_to_ptr.hbm [resolvable:$true] %s260_s27  ;;  %s295_s1 = int_to_ptr.hbm [resolvable:$true] %s294_s1 }
  0x19   : > { %4420 = dma.hbm_to_vmem [thread:$0]  (!%p4766_p12), %s278_s24, 18432, %s280_s14, [#allocation11], %s4648_s16, %s4648_s16, %s4649_s17  }
  0x1a   : > { %4417 = dma.hbm_to_vmem [thread:$0]  (!%p4766_p12), %s261_s27, 18432, %s263_s23, [#allocation8], %s4648_s16, %s4648_s16, %s4649_s17  }
  0x1b   : > { %s296_s18 = sshll.u32 %s4651_s3, 4  ;;  %329 = sbr.rel (%p4752_p10) target bundleno = 1594 (0x63a), region = 56  ;;  %s297_s18 = int_to_ptr.vmem [resolvable:$true] %s296_s18 }
  0x1c   : > { %4423 = dma.hbm_to_vmem [thread:$0]  (!%p4766_p12), %s295_s1, 32768, %s297_s18, [#allocation11], %s4648_s16, %s4648_s16, %s4649_s17  }
  0x20   : > { %4620 = dma.done.wait (%p4428_p9), [#allocation8], 18432  }
  0x21   : > { %4622 = vsyncadd (%p4428_p9), [#allocation8], 4294948864 }
  0x22   : > { %4624 = dma.done.wait (%p4428_p9), [#allocation11], 51200  }
  0x23   : > { %4626 = vsyncadd (%p4428_p9), [#allocation11], 4294916096  ;;  %v4652_v0 = vmov 0.0   ;;  %v616_v1 = vld [vmem:[#allocation7 + $0xf8] sm:$0xff]  ;;  %v615_v4 = vld [vmem:[#allocation7 + $0xf0] sm:$0xff]  ;;  %p375_p13 = scmp.lt.s32.totalorder %s4724_s13, 1  ;;  %s4295_s21 = scalar_lea.hbm %s5774_s9, %s4724_s13 }
  0x24   : > { %380 = vst [vmem:[#allocation2] sm:$0xff] %v4652_v0  ;;  %v567_v2 = vld [vmem:[#allocation7 + $0x78] sm:$0xff]  ;;  %617 = vmatpush.msra.mxu0 %v616_v1  ;;  %v566_v5 = vld [vmem:[#allocation7 + $0x70] sm:$0xff]  ;;  %v614_v8 = vld [vmem:[#allocation7 + $0xe8] sm:$0xff]  ;;  %vm487_vm0 = vcmask 31744   ;;  %s4299_s14 = sshll.u32 %s4295_s21, 4  ;;  %s4300_s14 = int_to_ptr.hbm [resolvable:$true] %s4299_s14 }
  0x25   : > { %381 = vst [vmem:[#allocation2 + $0x8] sm:$0xff] %v4652_v0  ;;  %v891_v3 = vld [vmem:[#allocation7 + $0x178] sm:$0xff]  ;;  %730 = vmatpush.msra.mxu1 %v567_v2  ;;  %v890_v6 = vld [vmem:[#allocation7 + $0x170] sm:$0xff]  ;;  %v565_v9 = vld [vmem:[#allocation7 + $0x68] sm:$0xff]  ;;  %s376_s1 = scalar_select %p375_p13, %s4724_s13, 1 }
  0x26   : > { %382 = vst [vmem:[#allocation2 + $0x10] sm:$0x3] %v4652_v0  ;;  %892 = vmatpush.msra.mxu2 %v891_v3  ;;  %v1085_v7 = vld [vmem:[#allocation7 + $0x1f8] sm:$0xff]  ;;  %618 = vmatpush.msra.mxu0 %v615_v4  ;;  %v889_v10 = vld [vmem:[#allocation7 + $0x168] sm:$0xff]  ;;  %v1084_v11 = vld [vmem:[#allocation7 + $0x1f0] sm:$0xff]  ;;  %s4589_s17 = sshra.s32 %s4300_s14, 4  ;;  %s4590_s17 = int_to_ptr.hbm [resolvable:$true] %s4589_s17 }
  0x27   : > { %383 = vst [vmem:[#allocation2 + $0x18] sm:$0xff] %v4652_v0  ;;  %731 = vmatpush.msra.mxu1 %v566_v5  ;;  %1086 = vmatpush.msra.mxu3 %v1085_v7  ;;  %v613_v12 = vld [vmem:[#allocation7 + $0xe0] sm:$0xff]  ;;  %v1083_v15 = vld [vmem:[#allocation7 + $0x1e8] sm:$0xff]  ;;  %v612_v16 = vld [vmem:[#allocation7 + $0xd8] sm:$0xff]  ;;  %s4399_s3 = sshll.u32 %s376_s1, 8  ;;  %s373_s1 = sand.u32 1, %s4637_s10  }
  0x28   : > { %384 = vst [vmem:[#allocation2 + $0x20] sm:$0xff] %v4652_v0  ;;  %893 = vmatpush.msra.mxu2 %v890_v6  ;;  %v564_v13 = vld [vmem:[#allocation7 + $0x60] sm:$0xff]  ;;  %619 = vmatpush.msra.mxu0 %v614_v8  ;;  %v563_v17 = vld [vmem:[#allocation7 + $0x58] sm:$0xff]  ;;  %v611_v20 = vld [vmem:[#allocation7 + $0xd0] sm:$0xff]  ;;  %s4865_s24 = scalar_lea.vmem %s5765_s0, %s4399_s3  ;;  %s374_s28 = scalar_lea.vmem [#allocation13], %s373_s1 }
  0x29   : > { %385 = vst [vmem:[#allocation2 + $0x28] sm:$0x3] %v4652_v0  ;;  %732 = vmatpush.msra.mxu1 %v565_v9  ;;  %v888_v14 = vld [vmem:[#allocation7 + $0x160] sm:$0xff]  ;;  %1087 = vmatpush.msra.mxu3 %v1084_v11  ;;  %v887_v18 = vld [vmem:[#allocation7 + $0x158] sm:$0xff]  ;;  %v562_v21 = vld [vmem:[#allocation7 + $0x50] sm:$0xff]  ;;  %s4297_s29 = sshll.u32 %s374_s28, 4  ;;  %p4596_p3 = scmp.lt.s32.totalorder %s4590_s17, %s5774_s9  ;;  %s4298_s29 = int_to_ptr.vmem [resolvable:$true] %s4297_s29 }
  0x2a   : > { %386 = vst [vmem:[#allocation2 + $0x30] sm:$0xff] %v4652_v0  ;;  %894 = vmatpush.msra.mxu2 %v889_v10  ;;  %620 = vmatpush.msra.mxu0 %v613_v12  ;;  %v1082_v19 = vld [vmem:[#allocation7 + $0x1e0] sm:$0xff]  ;;  %v886_v22 = vld [vmem:[#allocation7 + $0x150] sm:$0xff]  ;;  %v1081_v23 = vld [vmem:[#allocation7 + $0x1d8] sm:$0xff]  ;;  %s4287_s16 = scalar_lea.sflag [#allocation9], %s373_s1  ;;  %s4591_s22 = scalar_lea.hbm %s4590_s17, 1 }
  0x2b   : > { %387 = vst [vmem:[#allocation2 + $0x38] sm:$0xff] %v4652_v0  ;;  %733 = vmatpush.msra.mxu1 %v564_v13  ;;  %1088 = vmatpush.msra.mxu3 %v1083_v15  ;;  %v610_v24 = vld [vmem:[#allocation7 + $0xc8] sm:$0xff]  ;;  %v1080_v27 = vld [vmem:[#allocation7 + $0x1d0] sm:$0xff]  ;;  %v609_v28 = vld [vmem:[#allocation7 + $0xc0] sm:$0xff]  ;;  %p4592_p0 = scmp.ne.s32.totalorder %s4590_s17, %s4591_s22  ;;  %s4595_s25 = scalar_lea.hbm %s5774_s9, 2 }
  0x2c   : > { %388 = vst [vmem:[#allocation2 + $0x40] sm:$0x3] %v4652_v0  ;;  %895 = vmatpush.msra.mxu2 %v888_v14  ;;  %621 = vmatpush.msra.mxu0 %v612_v16  ;;  %v561_v25 = vld [vmem:[#allocation7 + $0x48] sm:$0xff]  ;;  %v560_v29 = vld [vmem:[#allocation7 + $0x40] sm:$0xff]  ;;  %v608_v32 = vld [vmem:[#allocation7 + $0xb8] sm:$0xff]  ;;  %p4597_p4 = scmp.lt.s32.totalorder %s4595_s25, %s4591_s22 }
  0x2d   : > { %389 = vst [vmem:[#allocation2 + $0x48] sm:$0xff] %v4652_v0  ;;  %734 = vmatpush.msra.mxu1 %v563_v17  ;;  %1089 = vmatpush.msra.mxu3 %v1082_v19  ;;  %v885_v26 = vld [vmem:[#allocation7 + $0x148] sm:$0xff]  ;;  %v884_v30 = vld [vmem:[#allocation7 + $0x140] sm:$0xff]  ;;  %v559_v33 = vld [vmem:[#allocation7 + $0x38] sm:$0xff]  ;;  %p4593_p1 = pnand %p4592_p0, %p4741_p5 }
  0x2e   : > { %390 = vst [vmem:[#allocation2 + $0x50] sm:$0xff] %v4652_v0  ;;  %896 = vmatpush.msra.mxu2 %v887_v18  ;;  %622 = vmatpush.msra.mxu0 %v611_v20  ;;  %v1079_v31 = vld [vmem:[#allocation7 + $0x1c8] sm:$0xff]  ;;  %v883_v34 = vld [vmem:[#allocation7 + $0x138] sm:$0xff]  ;;  %v1078_v35 = vld [vmem:[#allocation7 + $0x1c0] sm:$0xff]  ;;  %p4598_p7 = por %p4597_p4, %p4596_p3 }
  0x2f   : > { %391 = vst [vmem:[#allocation2 + $0x58] sm:$0x3] %v4652_v0  ;;  %735 = vmatpush.msra.mxu1 %v562_v21  ;;  %1090 = vmatpush.msra.mxu3 %v1081_v23  ;;  %v607_v36 = vld [vmem:[#allocation7 + $0xb0] sm:$0xff]  ;;  %v1077_v39 = vld [vmem:[#allocation7 + $0x1b8] sm:$0xff]  ;;  %v606_v40 = vld [vmem:[#allocation7 + $0xa8] sm:$0xff]  ;;  %p4594_p2 = pneg %p4593_p1 }
  0x30   : > { %392 = vst [vmem:[#allocation2 + $0x60] sm:$0xff] %v4652_v0  ;;  %897 = vmatpush.msra.mxu2 %v886_v22  ;;  %623 = vmatpush.msra.mxu0 %v610_v24  ;;  %v558_v37 = vld [vmem:[#allocation7 + $0x30] sm:$0xff]  ;;  %v557_v41 = vld [vmem:[#allocation7 + $0x28] sm:$0xff]  ;;  %v605_v44 = vld [vmem:[#allocation7 + $0xa0] sm:$0xff] }
  0x31   : > { %393 = vst [vmem:[#allocation2 + $0x68] sm:$0xff] %v4652_v0  ;;  %736 = vmatpush.msra.mxu1 %v561_v25  ;;  %1091 = vmatpush.msra.mxu3 %v1080_v27  ;;  %v882_v38 = vld [vmem:[#allocation7 + $0x130] sm:$0xff]  ;;  %v881_v42 = vld [vmem:[#allocation7 + $0x128] sm:$0xff]  ;;  %v556_v45 = vld [vmem:[#allocation7 + $0x20] sm:$0xff]  ;;  %p4599_p8 = pnand %p4598_p7, %p4594_p2 }
  0x32   : > { %394 = vst [vmem:[#allocation2 + $0x70] sm:$0x3] %v4652_v0  ;;  %898 = vmatpush.msra.mxu2 %v885_v26  ;;  %624 = vmatpush.msra.mxu0 %v609_v28  ;;  %v1076_v43 = vld [vmem:[#allocation7 + $0x1b0] sm:$0xff]  ;;  %v880_v46 = vld [vmem:[#allocation7 + $0x120] sm:$0xff]  ;;  %v1075_v47 = vld [vmem:[#allocation7 + $0x1a8] sm:$0xff] }
  0x33   : > { %395 = vst [vmem:[#allocation2 + $0x78] sm:$0xff] %v4652_v0  ;;  %737 = vmatpush.msra.mxu1 %v560_v29  ;;  %1092 = vmatpush.msra.mxu3 %v1079_v31  ;;  %v604_v48 = vld [vmem:[#allocation7 + $0x98] sm:$0xff]  ;;  %v1074_v51 = vld [vmem:[#allocation7 + $0x1a0] sm:$0xff]  ;;  %v603_v52 = vld [vmem:[#allocation7 + $0x90] sm:$0xff] }
  0x34   : > { %396 = vst [vmem:[#allocation2 + $0x80] sm:$0xff] %v4652_v0  ;;  %899 = vmatpush.msra.mxu2 %v884_v30  ;;  %625 = vmatpush.msra.mxu0 %v608_v32  ;;  %v555_v49 = vld [vmem:[#allocation7 + $0x18] sm:$0xff]  ;;  %v554_v53 = vld [vmem:[#allocation7 + $0x10] sm:$0xff]  ;;  %v602_v56 = vld [vmem:[#allocation7 + $0x88] sm:$0xff] }
  0x35   : > { %397 = vst [vmem:[#allocation2 + $0x88] sm:$0x3] %v4652_v0  ;;  %738 = vmatpush.msra.mxu1 %v559_v33  ;;  %1093 = vmatpush.msra.mxu3 %v1078_v35  ;;  %v879_v50 = vld [vmem:[#allocation7 + $0x118] sm:$0xff]  ;;  %v878_v54 = vld [vmem:[#allocation7 + $0x110] sm:$0xff]  ;;  %v553_v57 = vld [vmem:[#allocation7 + $0x8] sm:$0xff] }
  0x36   : > { %398 = vst [vmem:[#allocation2 + $0x90] sm:$0xff] %v4652_v0  ;;  %900 = vmatpush.msra.mxu2 %v883_v34  ;;  %626 = vmatpush.msra.mxu0 %v607_v36  ;;  %v1073_v55 = vld [vmem:[#allocation7 + $0x198] sm:$0xff]  ;;  %v877_v58 = vld [vmem:[#allocation7 + $0x108] sm:$0xff]  ;;  %v1072_v59 = vld [vmem:[#allocation7 + $0x190] sm:$0xff] }
  0x37   : > { %399 = vst [vmem:[#allocation2 + $0x98] sm:$0xff] %v4652_v0  ;;  %739 = vmatpush.msra.mxu1 %v558_v37  ;;  %1094 = vmatpush.msra.mxu3 %v1077_v39  ;;  %v601_v60 = vld [vmem:[#allocation7 + $0x80] sm:$0xff]  ;;  %v1071_v63 = vld [vmem:[#allocation7 + $0x188] sm:$0xff]  ;;  %v456_v8 = vld [vmem:[%s4865_s24 + $0x10] sm:$0xff] }
  0x38   : > { %400 = vst [vmem:[#allocation2 + $0xa0] sm:$0x3] %v4652_v0  ;;  %901 = vmatpush.msra.mxu2 %v882_v38  ;;  %627 = vmatpush.msra.mxu0 %v606_v40  ;;  %v552_v61 = vld [vmem:[#allocation7] sm:$0xff]  ;;  %v569_v4 = vld [vmem:[#allocation2 + $0x9] sm:$0xff]  ;;  %v457_v9 = vld [vmem:[%s4865_s24 + $0x18] sm:$0xff] }
  0x39   : > { %401 = vst [vmem:[#allocation2 + $0xa8] sm:$0xff] %v4652_v0  ;;  %740 = vmatpush.msra.mxu1 %v557_v41  ;;  %1095 = vmatpush.msra.mxu3 %v1076_v43  ;;  %v876_v62 = vld [vmem:[#allocation7 + $0x100] sm:$0xff]  ;;  %v844_v5 = vld [vmem:[#allocation2 + $0xa] sm:$0xff]  ;;  %v1279_v10 = vld [vmem:[#allocation7 + $0x278] sm:$0xff] }
  0x3a   : > { %402 = vst [vmem:[#allocation2 + $0xb0] sm:$0xff] %v4652_v0  ;;  %902 = vmatpush.msra.mxu2 %v881_v42  ;;  %628 = vmatpush.msra.mxu0 %v605_v44  ;;  %v568_v1 = vld [vmem:[#allocation2 + $0x1] sm:$0xff]  ;;  %v460_v18 = vld [vmem:[%s4865_s24 + $0x30] sm:$0xff]  ;;  %v461_v23 = vld [vmem:[%s4865_s24 + $0x38] sm:$0xff] }
  0x3b   : > { %403 = vst [vmem:[#allocation2 + $0xb8] sm:$0x3] %v4652_v0  ;;  %741 = vmatpush.msra.mxu1 %v556_v45  ;;  %1096 = vmatpush.msra.mxu3 %v1075_v47  ;;  %v843_v2 = vld [vmem:[#allocation2 + $0x2] sm:$0xff]  ;;  %v1278_v19 = vld [vmem:[#allocation7 + $0x270] sm:$0xff]  ;;  %v465_v41 = vld [vmem:[%s4865_s24 + $0x58] sm:$0xff] }
  0x3c   : > { %404 = vst [vmem:[#allocation2 + $0xc0] sm:$0xff] %v4652_v0  ;;  %903 = vmatpush.msra.mxu2 %v880_v46  ;;  %629 = vmatpush.msra.mxu0 %v604_v48  ;;  %v1070_v3 = vld [vmem:[#allocation7 + $0x180] sm:$0xff]  ;;  %v455_v7 = vld [vmem:[%s4865_s24 + $0x8] sm:$0xff]  ;;  %v464_v36 = vld [vmem:[%s4865_s24 + $0x50] sm:$0xff] }
  0x3d   : > { %405 = vst [vmem:[#allocation2 + $0xc8] sm:$0xff] %v4652_v0  ;;  %742 = vmatpush.msra.mxu1 %v555_v49  ;;  %1097 = vmatpush.msra.mxu3 %v1074_v51  ;;  %v454_v6 = vld [vmem:[%s4865_s24] sm:$0xff]  ;;  %v459_v14 = vld [vmem:[%s4865_s24 + $0x28] sm:$0xff]  ;;  %v1275_v46 = vld [vmem:[#allocation7 + $0x258] sm:$0xff] }
  0x3e   : > { %406 = vst [vmem:[#allocation2 + $0xd0] sm:$0x3] %v4652_v0  ;;  %904 = vmatpush.msra.mxu2 %v879_v50  ;;  %630 = vmatpush.msra.mxu0 %v603_v52  ;;  %v458_v11 = vld [vmem:[%s4865_s24 + $0x20] sm:$0xff]  ;;  %v1277_v28 = vld [vmem:[#allocation7 + $0x268] sm:$0xff] }
  0x3f   : > { %407 = vst [vmem:[#allocation2 + $0xd8] sm:$0xff] %v4652_v0  ;;  %743 = vmatpush.msra.mxu1 %v554_v53  ;;  %1098 = vmatpush.msra.mxu3 %v1073_v55  ;;  %v462_v27 = vld [vmem:[%s4865_s24 + $0x40] sm:$0xff]  ;;  %v463_v32 = vld [vmem:[%s4865_s24 + $0x48] sm:$0xff]  ;;  %v1274_v55 = vld [vmem:[#allocation7 + $0x250] sm:$0xff] }
  0x40   : > { %408 = vst [vmem:[#allocation2 + $0xe0] sm:$0xff] %v4652_v0  ;;  %905 = vmatpush.msra.mxu2 %v878_v54  ;;  %631 = vmatpush.msra.mxu0 %v602_v56  ;;  %v1276_v37 = vld [vmem:[#allocation7 + $0x260] sm:$0xff]  ;;  %v467_v50 = vld [vmem:[%s4865_s24 + $0x68] sm:$0xff]  ;;  %v468_v54 = vld [vmem:[%s4865_s24 + $0x70] sm:$0xff] }
  0x41   : > { %409 = vst [vmem:[#allocation2 + $0xe8] sm:$0x3] %v4652_v0  ;;  %744 = vmatpush.msra.mxu1 %v553_v57  ;;  %1099 = vmatpush.msra.mxu3 %v1072_v59  ;;  %v466_v45 = vld [vmem:[%s4865_s24 + $0x60] sm:$0xff]  ;;  %v469_v59 = vld [vmem:[%s4865_s24 + $0x78] sm:$0xff] }
  0x42   : > { %410 = vst [vmem:[#allocation2 + $0xf0] sm:$0xff] %v4652_v0  ;;  %906 = vmatpush.msra.mxu2 %v877_v58  ;;  %632 = vmatpush.msra.mxu0 %v601_v60 }
  0x43   : > { %411 = vst [vmem:[#allocation2 + $0xf8] sm:$0xff] %v4652_v0  ;;  %745 = vmatpush.msra.mxu1 %v552_v61  ;;  %1100 = vmatpush.msra.mxu3 %v1071_v63  ;;  %v470_v63 = vld [vmem:[%s4865_s24 + $0x80] sm:$0xff] }
  0x44   : > { %412 = vst [vmem:[#allocation2 + $0x100] sm:$0x3] %v4652_v0  ;;  %907 = vmatpush.msra.mxu2 %v876_v62  ;;  %633 = vmatmul.f32.vlgmr.msra.gmra.mxu0 %v568_v1  ;;  %v1273_v1 = vld [vmem:[#allocation7 + $0x248] sm:$0xff] }
  0x45   : > { %413 = vst [vmem:[#allocation2 + $0x108] sm:$0xff] %v4652_v0  ;;  %746 = vmatmul.f32.vlgmr.msra.gmra.mxu1 %v4652_v0  ;;  %908 = vmatmul.f32.vlgmr.msra.gmra.mxu2 %v843_v2 }
  0x46   : > { %414 = vst [vmem:[#allocation2 + $0x110] sm:$0xff] %v4652_v0  ;;  %1101 = vmatpush.msra.mxu3 %v1070_v3  ;;  %1280 = vmatpush.msrb.mxu0 %v1279_v10 }
  0x47   : > { %415 = vst [vmem:[#allocation2 + $0x118] sm:$0x3] %v4652_v0 }
  0x48   : > { %416 = vst [vmem:[#allocation2 + $0x120] sm:$0xff] %v4652_v0  ;;  %1281 = vmatpush.msrb.mxu0 %v1278_v19 }
  0x49   : > { %417 = vst [vmem:[#allocation2 + $0x128] sm:$0xff] %v4652_v0 }
  0x4a   : > { %418 = vst [vmem:[#allocation2 + $0x130] sm:$0x3] %v4652_v0  ;;  %1282 = vmatpush.msrb.mxu0 %v1277_v28 }
  0x4b   : > { %419 = vst [vmem:[#allocation2 + $0x138] sm:$0xff] %v4652_v0 }
  0x4c   : > { %420 = vst [vmem:[#allocation2 + $0x140] sm:$0xff] %v4652_v0  ;;  %636 = vmatmul.f32.gmra.mxu0 %v569_v4 }
  0x4d   : > { %421 = vst [vmem:[#allocation2 + $0x148] sm:$0x3] %v4652_v0  ;;  %749 = vmatmul.f32.gmra.mxu1 %v4652_v0  ;;  %911 = vmatmul.f32.gmra.mxu2 %v844_v5  ;;  %v471_v5 = vld [vmem:[%s4865_s24 + $0x88] sm:$0xff] }
  0x4e   : > { %422 = vst [vmem:[#allocation2 + $0x150] sm:$0xff] %v4652_v0  ;;  %1283 = vmatpush.msrb.mxu0 %v1276_v37 }
  0x4f   : > { %423 = vst [vmem:[#allocation2 + $0x158] sm:$0xff] %v4652_v0 }
  0x50   : > { %424 = vst [vmem:[#allocation2 + $0x160] sm:$0x3] %v4652_v0  ;;  %1284 = vmatpush.msrb.mxu0 %v1275_v46 }
  0x51   : > { %425 = vst [vmem:[#allocation2 + $0x168] sm:$0xff] %v4652_v0 }
  0x52   : > { %426 = vst [vmem:[#allocation2 + $0x170] sm:$0xff] %v4652_v0  ;;  %1285 = vmatpush.msrb.mxu0 %v1274_v55 }
  0x53   : > { %427 = vst [vmem:[#allocation2 + $0x178] sm:$0x3] %v4652_v0 }
  0x54   : > { %428 = vst [vmem:[#allocation2 + $0x180] sm:$0xff] %v4652_v0  ;;  %1286 = vmatpush.msrb.mxu0 %v1273_v1  ;;  %v1269_v1 = vld [vmem:[#allocation7 + $0x228] sm:$0xff] }
  0x55   : > { %429 = vst [vmem:[#allocation2 + $0x188] sm:$0xff] %v4652_v0 }
  0x56   : > { %430 = vst [vmem:[#allocation2 + $0x190] sm:$0x3] %v4652_v0 }
  0x57   : > { %431 = vst [vmem:[#allocation2 + $0x198] sm:$0xff] %v4652_v0 }
  0x58   : > { %432 = vst [vmem:[#allocation2 + $0x1a0] sm:$0xff] %v4652_v0 }
  0x59   : > { %433 = vst [vmem:[#allocation2 + $0x1a8] sm:$0x3] %v4652_v0 }
  0x5a   : > { %434 = vst [vmem:[#allocation4] sm:$0xff] %v4652_v0 }
  0x5b   : > { %435 = vst [vmem:[#allocation4 + $0x8] sm:$0x3] %v4652_v0 }
  0x5c   : > { %436 = vst [vmem:[#allocation4 + $0x10] sm:$0xff] %v4652_v0 }
  0x5d   : > { %437 = vst [vmem:[#allocation4 + $0x18] sm:$0x3] %v4652_v0 }
  0x5e   : > { %438 = vst [vmem:[#allocation4 + $0x20] sm:$0xff] %v4652_v0 }
  0x5f   : > { %439 = vst [vmem:[#allocation4 + $0x28] sm:$0x3] %v4652_v0 }
  0x60   : > { %440 = vst [vmem:[#allocation4 + $0x30] sm:$0xff] %v4652_v0 }
  0x61   : > { %441 = vst [vmem:[#allocation4 + $0x38] sm:$0x3] %v4652_v0 }
  0x62   : > { %442 = vst [vmem:[#allocation4 + $0x40] sm:$0xff] %v4652_v0 }
  0x63   : > { %443 = vst [vmem:[#allocation4 + $0x48] sm:$0x3] %v4652_v0 }
  0x64   : > { %444 = vst [vmem:[#allocation4 + $0x50] sm:$0xff] %v4652_v0 }
  0x65   : > { %445 = vst [vmem:[#allocation4 + $0x58] sm:$0x3] %v4652_v0 }
  0x66   : > { %446 = vst [vmem:[#allocation4 + $0x60] sm:$0xff] %v4652_v0 }
  0x67   : > { %447 = vst [vmem:[#allocation4 + $0x68] sm:$0x3] %v4652_v0 }
  0x68   : > { %448 = vst [vmem:[#allocation4 + $0x70] sm:$0xff] %v4652_v0 }
  0x69   : > { %449 = vst [vmem:[#allocation4 + $0x78] sm:$0x3] %v4652_v0 }
  0x6a   : > { %450 = vst [vmem:[#allocation4 + $0x80] sm:$0xff] %v4652_v0 }
  0x6b   : > { %451 = vst [vmem:[#allocation4 + $0x88] sm:$0x3] %v4652_v0 }
  0x6c   : > { %452 = vst [vmem:[#allocation4 + $0x90] sm:$0xff] %v4652_v0 }
  0x6d   : > { %453 = vst [vmem:[#allocation4 + $0x98] sm:$0x3] %v4652_v0 }
  0x6e   : > { %488 = vst.msk [vmem:[#allocation2 + $0x19] sm:$0xff] %vm487_vm0, %v454_v6 }
  0x6f   : > { %489 = vst.msk [vmem:[#allocation2 + $0x21] sm:$0xff] %vm487_vm0, %v455_v7 }
  0x70   : > { %490 = vst.msk [vmem:[#allocation2 + $0x31] sm:$0xff] %vm487_vm0, %v456_v8 }
  0x71   : > { %491 = vst.msk [vmem:[#allocation2 + $0x39] sm:$0xff] %vm487_vm0, %v457_v9  ;;  %v472_v9 = vld [vmem:[%s4865_s24 + $0x90] sm:$0xff] }
  0x72   : > { %492 = vst.msk [vmem:[#allocation2 + $0x49] sm:$0xff] %vm487_vm0, %v458_v11 }
  0x73   : > { %493 = vst.msk [vmem:[#allocation2 + $0x51] sm:$0xff] %vm487_vm0, %v459_v14 }
  0x74   : > { %494 = vst.msk [vmem:[#allocation2 + $0x61] sm:$0xff] %vm487_vm0, %v460_v18 }
  0x75   : > { %v1037_v12 = vld [vmem:[#allocation2 + $0x18] sm:$0xff]  ;;  %495 = vst.msk [vmem:[#allocation2 + $0x69] sm:$0xff] %vm487_vm0, %v461_v23 }
  0x76   : > { %v570_v13 = vld [vmem:[#allocation2 + $0x19] sm:$0xff]  ;;  %1102 = vmatmul.f32.vlgmr.msra.gmra.mxu3 %v1037_v12  ;;  %752 = vmatmul.f32.gmra.mxu1 %v1037_v12  ;;  %v571_v16 = vld [vmem:[#allocation2 + $0x21] sm:$0xff]  ;;  %496 = vst.msk [vmem:[#allocation2 + $0x79] sm:$0xff] %vm487_vm0, %v462_v27 }
  0x77   : > { %639 = vmatmul.f32.gmra.mxu0 %v570_v13  ;;  %v845_v0 = vld [vmem:[#allocation2 + $0x1a] sm:$0xff]  ;;  %v846_v17 = vld [vmem:[#allocation2 + $0x22] sm:$0xff]  ;;  %v1039_v20 = vld [vmem:[#allocation2 + $0x30] sm:$0xff]  ;;  %497 = vst.msk [vmem:[#allocation2 + $0x81] sm:$0xff] %vm487_vm0, %v463_v32 }
  0x78   : > { %914 = vmatmul.f32.gmra.mxu2 %v845_v0  ;;  %v1038_v15 = vld [vmem:[#allocation2 + $0x20] sm:$0xff]  ;;  %v572_v21 = vld [vmem:[#allocation2 + $0x31] sm:$0xff]  ;;  %498 = vst.msk [vmem:[#allocation2 + $0x91] sm:$0xff] %vm487_vm0, %v464_v36 }
  0x79   : > { %v847_v22 = vld [vmem:[#allocation2 + $0x32] sm:$0xff]  ;;  %v848_v26 = vld [vmem:[#allocation2 + $0x3a] sm:$0xff]  ;;  %v1041_v29 = vld [vmem:[#allocation2 + $0x48] sm:$0xff]  ;;  %499 = vst.msk [vmem:[#allocation2 + $0x99] sm:$0xff] %vm487_vm0, %v465_v41 }
  0x7a   : > { %v1040_v24 = vld [vmem:[#allocation2 + $0x38] sm:$0xff]  ;;  %v574_v30 = vld [vmem:[#allocation2 + $0x49] sm:$0xff]  ;;  %500 = vst.msk [vmem:[#allocation2 + $0xa9] sm:$0xff] %vm487_vm0, %v466_v45  ;;  %v1272_v12 = vld [vmem:[#allocation7 + $0x240] sm:$0xff] }
  0x7b   : > { %v573_v25 = vld [vmem:[#allocation2 + $0x39] sm:$0xff]  ;;  %v849_v31 = vld [vmem:[#allocation2 + $0x4a] sm:$0xff]  ;;  %v576_v39 = vld [vmem:[#allocation2 + $0x61] sm:$0xff]  ;;  %501 = vst.msk [vmem:[#allocation2 + $0xb1] sm:$0xff] %vm487_vm0, %v467_v50  ;;  %1287 = vmatpush.msrb.mxu0 %v1272_v12 }
  0x7c   : > { %v1042_v33 = vld [vmem:[#allocation2 + $0x50] sm:$0xff]  ;;  %v1043_v38 = vld [vmem:[#allocation2 + $0x60] sm:$0xff]  ;;  %v1044_v42 = vld [vmem:[#allocation2 + $0x68] sm:$0xff]  ;;  %502 = vst.msk [vmem:[#allocation2 + $0xc1] sm:$0xff] %vm487_vm0, %v468_v54 }
  0x7d   : > { %v575_v34 = vld [vmem:[#allocation2 + $0x51] sm:$0xff]  ;;  %v851_v40 = vld [vmem:[#allocation2 + $0x62] sm:$0xff]  ;;  %v578_v48 = vld [vmem:[#allocation2 + $0x79] sm:$0xff]  ;;  %503 = vst.msk [vmem:[#allocation2 + $0xc9] sm:$0xff] %vm487_vm0, %v469_v59 }
  0x7e   : > { %1105 = vmatmul.f32.gmra.mxu3 %v1038_v15  ;;  %755 = vmatmul.f32.gmra.mxu1 %v1038_v15  ;;  %v850_v35 = vld [vmem:[#allocation2 + $0x52] sm:$0xff]  ;;  %v577_v43 = vld [vmem:[#allocation2 + $0x69] sm:$0xff]  ;;  %v853_v49 = vld [vmem:[#allocation2 + $0x7a] sm:$0xff]  ;;  %504 = vst.msk [vmem:[#allocation2 + $0xd9] sm:$0xff] %vm487_vm0, %v470_v63 }
  0x7f   : > { %642 = vmatmul.f32.gmra.mxu0 %v571_v16  ;;  %v852_v44 = vld [vmem:[#allocation2 + $0x6a] sm:$0xff]  ;;  %v1045_v47 = vld [vmem:[#allocation2 + $0x78] sm:$0xff]  ;;  %v1046_v51 = vld [vmem:[#allocation2 + $0x80] sm:$0xff]  ;;  %505 = vst.msk [vmem:[#allocation2 + $0xe1] sm:$0xff] %vm487_vm0, %v471_v5 }
  0x80   : > { %917 = vmatmul.f32.gmra.mxu2 %v846_v17  ;;  %v579_v52 = vld [vmem:[#allocation2 + $0x81] sm:$0xff]  ;;  %v1047_v56 = vld [vmem:[#allocation2 + $0x90] sm:$0xff]  ;;  %v1048_v60 = vld [vmem:[#allocation2 + $0x98] sm:$0xff]  ;;  %506 = vst.msk [vmem:[#allocation2 + $0xf1] sm:$0xff] %vm487_vm0, %v472_v9 }
  0x81   : > { %v854_v53 = vld [vmem:[#allocation2 + $0x82] sm:$0xff]  ;;  %v580_v57 = vld [vmem:[#allocation2 + $0x91] sm:$0xff]  ;;  %v581_v61 = vld [vmem:[#allocation2 + $0x99] sm:$0xff] }
  0x82   : > { %v855_v58 = vld [vmem:[#allocation2 + $0x92] sm:$0xff]  ;;  %v856_v62 = vld [vmem:[#allocation2 + $0x9a] sm:$0xff]  ;;  %v1049_v2 = vld [vmem:[#allocation2 + $0xa8] sm:$0xff] }
  0x83   : > { %v582_v3 = vld [vmem:[#allocation2 + $0xa9] sm:$0xff]  ;;  %v583_v7 = vld [vmem:[#allocation2 + $0xb1] sm:$0xff]  ;;  %v1051_v13 = vld [vmem:[#allocation2 + $0xc0] sm:$0xff] }
  0x84   : > { %v857_v4 = vld [vmem:[#allocation2 + $0xaa] sm:$0xff]  ;;  %v858_v8 = vld [vmem:[#allocation2 + $0xb2] sm:$0xff]  ;;  %v584_v14 = vld [vmem:[#allocation2 + $0xc1] sm:$0xff] }
  0x85   : > { %v1050_v6 = vld [vmem:[#allocation2 + $0xb0] sm:$0xff]  ;;  %v859_v0 = vld [vmem:[#allocation2 + $0xc2] sm:$0xff]  ;;  %v473_v15 = vld [vmem:[%s4865_s24 + $0x98] sm:$0xff] }
  0x86   : > { %1108 = vmatmul.f32.gmra.mxu3 %v1039_v20  ;;  %758 = vmatmul.f32.gmra.mxu1 %v1039_v20  ;;  %507 = vst.msk [vmem:[#allocation2 + $0xf9] sm:$0xff] %vm487_vm0, %v473_v15  ;;  %v1052_v19 = vld [vmem:[#allocation2 + $0xc8] sm:$0xff]  ;;  %v586_v27 = vld [vmem:[#allocation2 + $0xd9] sm:$0xff]  ;;  %v1270_v41 = vld [vmem:[#allocation7 + $0x230] sm:$0xff] }
  0x87   : > { %645 = vmatmul.f32.gmra.mxu0 %v572_v21  ;;  %v585_v20 = vld [vmem:[#allocation2 + $0xc9] sm:$0xff]  ;;  %v478_v59 = vld [vmem:[%s4865_s24 + $0xc0] sm:$0xff] }
  0x88   : > { %920 = vmatmul.f32.gmra.mxu2 %v847_v22  ;;  %v860_v21 = vld [vmem:[#allocation2 + $0xca] sm:$0xff]  ;;  %v474_v22 = vld [vmem:[%s4865_s24 + $0xa0] sm:$0xff]  ;;  %512 = vst.msk [vmem:[#allocation2 + $0x139] sm:$0xff] %vm487_vm0, %v478_v59  ;;  %v1668_v59 = vld [vmem:[#allocation7 + $0x378] sm:$0xff] }
  0x89   : > { %508 = vst.msk [vmem:[#allocation2 + $0x109] sm:$0xff] %vm487_vm0, %v474_v22  ;;  %v862_v37 = vld [vmem:[#allocation2 + $0xe2] sm:$0xff]  ;;  %1669 = vmatpush.msrb.mxu2 %v1668_v59 }
  0x8a   : > { %v1856_v59 = vld [vmem:[#allocation7 + $0x3c8] sm:$0xff] }
  0x8d   : > { %v589_v55 = vld [vmem:[#allocation2 + $0xf9] sm:$0xff] }
  0x8e   : > { %1111 = vmatmul.f32.gmra.mxu3 %v1040_v24  ;;  %761 = vmatmul.f32.gmra.mxu1 %v1040_v24  ;;  %v1271_v24 = vld [vmem:[#allocation7 + $0x238] sm:$0xff] }
  0x8f   : > { %648 = vmatmul.f32.gmra.mxu0 %v573_v25  ;;  %v1053_v25 = vld [vmem:[#allocation2 + $0xd8] sm:$0xff] }
  0x90   : > { %923 = vmatmul.f32.gmra.mxu2 %v848_v26  ;;  %1288 = vmatpush.msrb.mxu0 %v1271_v24  ;;  %v480_v24 = vld [vmem:[%s4865_s24 + $0xd0] sm:$0xff] }
  0x91   : > { %514 = vst.msk [vmem:[#allocation2 + $0x151] sm:$0xff] %vm487_vm0, %v480_v24 }
  0x92   : > { %1289 = vmatpush.msrb.mxu0 %v1270_v41 }
  0x94   : > { %1290 = vmatpush.msrb.mxu0 %v1269_v1  ;;  %v483_v1 = vld [vmem:[%s4865_s24 + $0xe8] sm:$0xff] }
  0x95   : > { %517 = vst.msk [vmem:[#allocation2 + $0x171] sm:$0xff] %vm487_vm0, %v483_v1  ;;  %v1465_v1 = vld [vmem:[#allocation7 + $0x2b8] sm:$0xff] }
  0x96   : > { %1114 = vmatmul.f32.gmra.mxu3 %v1041_v29  ;;  %764 = vmatmul.f32.gmra.mxu1 %v1041_v29  ;;  %v861_v29 = vld [vmem:[#allocation2 + $0xda] sm:$0xff] }
  0x97   : > { %651 = vmatmul.f32.gmra.mxu0 %v574_v30  ;;  %v475_v30 = vld [vmem:[%s4865_s24 + $0xa8] sm:$0xff] }
  0x98   : > { %926 = vmatmul.f32.gmra.mxu2 %v849_v31  ;;  %509 = vst.msk [vmem:[#allocation2 + $0x111] sm:$0xff] %vm487_vm0, %v475_v30 }
  0x9e   : > { %1117 = vmatmul.f32.gmra.mxu3 %v1042_v33  ;;  %767 = vmatmul.f32.gmra.mxu1 %v1042_v33  ;;  %v1054_v33 = vld [vmem:[#allocation2 + $0xe0] sm:$0xff] }
  0x9f   : > { %654 = vmatmul.f32.gmra.mxu0 %v575_v34  ;;  %v866_v22 = vld [vmem:[#allocation2 + $0x112] sm:$0xff] }
  0xa0   : > { %929 = vmatmul.f32.gmra.mxu2 %v850_v35  ;;  %v587_v35 = vld [vmem:[#allocation2 + $0xe1] sm:$0xff] }
  0xa6   : > { %1120 = vmatmul.f32.gmra.mxu3 %v1043_v38  ;;  %770 = vmatmul.f32.gmra.mxu1 %v1043_v38  ;;  %v476_v38 = vld [vmem:[%s4865_s24 + $0xb0] sm:$0xff] }
  0xa7   : > { %657 = vmatmul.f32.gmra.mxu0 %v576_v39  ;;  %510 = vst.msk [vmem:[#allocation2 + $0x121] sm:$0xff] %vm487_vm0, %v476_v38 }
  0xa8   : > { %932 = vmatmul.f32.gmra.mxu2 %v851_v40 }
  0xae   : > { %1123 = vmatmul.f32.gmra.mxu3 %v1044_v42  ;;  %773 = vmatmul.f32.gmra.mxu1 %v1044_v42  ;;  %v1055_v42 = vld [vmem:[#allocation2 + $0xf0] sm:$0xff]  ;;  %v1059_v30 = vld [vmem:[#allocation2 + $0x120] sm:$0xff] }
  0xaf   : > { %660 = vmatmul.f32.gmra.mxu0 %v577_v43 }
  0xb0   : > { %935 = vmatmul.f32.gmra.mxu2 %v852_v44  ;;  %v588_v44 = vld [vmem:[#allocation2 + $0xf1] sm:$0xff] }
  0xb6   : > { %1126 = vmatmul.f32.gmra.mxu3 %v1045_v47  ;;  %776 = vmatmul.f32.gmra.mxu1 %v1045_v47  ;;  %v863_v47 = vld [vmem:[#allocation2 + $0xf2] sm:$0xff] }
  0xb7   : > { %663 = vmatmul.f32.gmra.mxu0 %v578_v48  ;;  %v477_v48 = vld [vmem:[%s4865_s24 + $0xb8] sm:$0xff] }
  0xb8   : > { %938 = vmatmul.f32.gmra.mxu2 %v853_v49  ;;  %511 = vst.msk [vmem:[#allocation2 + $0x129] sm:$0xff] %vm487_vm0, %v477_v48 }
  0xbe   : > { %1129 = vmatmul.f32.gmra.mxu3 %v1046_v51  ;;  %779 = vmatmul.f32.gmra.mxu1 %v1046_v51 }
  0xbf   : > { %666 = vmatmul.f32.gmra.mxu0 %v579_v52  ;;  %v868_v48 = vld [vmem:[#allocation2 + $0x12a] sm:$0xff] }
  0xc0   : > { %941 = vmatmul.f32.gmra.mxu2 %v854_v53  ;;  %v1056_v53 = vld [vmem:[#allocation2 + $0xf8] sm:$0xff] }
  0xc1   : > { %v4910_v10 = vpop.f32.mrf.mxu0 }
  0xc2   : > { %v4912_v11 = vpop.f32.mrf.mxu1 }
  0xc6   : > { %1132 = vmatmul.f32.gmra.mxu3 %v1047_v56  ;;  %782 = vmatmul.f32.gmra.mxu1 %v1047_v56 }
  0xc7   : > { %669 = vmatmul.f32.gmra.mxu0 %v580_v57 }
  0xc8   : > { %944 = vmatmul.f32.gmra.mxu2 %v855_v58  ;;  %v4915_v16 = vpop.f32.mrf.mxu2  ;;  %v864_v58 = vld [vmem:[#allocation2 + $0xfa] sm:$0xff] }
  0xc9   : > { %v4918_v17 = vpop.f32.mrf.mxu0 }
  0xca   : > { %v4920_v18 = vpop.f32.mrf.mxu1 }
  0xce   : > { %1135 = vmatmul.f32.gmra.mxu3 %v1048_v60  ;;  %785 = vmatmul.f32.gmra.mxu1 %v1048_v60 }
  0xcf   : > { %672 = vmatmul.f32.gmra.mxu0 %v581_v61 }
  0xd0   : > { %947 = vmatmul.f32.gmra.mxu2 %v856_v62  ;;  %v4924_v23 = vpop.f32.mrf.mxu2 }
  0xd6   : > { %1138 = vmatmul.f32.gmra.mxu3 %v1049_v2  ;;  %788 = vmatmul.f32.gmra.mxu1 %v1049_v2  ;;  %v1057_v2 = vld [vmem:[#allocation2 + $0x108] sm:$0xff] }
  0xd7   : > { %675 = vmatmul.f32.gmra.mxu0 %v582_v3 }
  0xd8   : > { %950 = vmatmul.f32.gmra.mxu2 %v857_v4  ;;  %v590_v4 = vld [vmem:[#allocation2 + $0x109] sm:$0xff] }
  0xde   : > { %1141 = vmatmul.f32.gmra.mxu3 %v1050_v6  ;;  %791 = vmatmul.f32.gmra.mxu1 %v1050_v6 }
  0xdf   : > { %678 = vmatmul.f32.gmra.mxu0 %v583_v7  ;;  %v865_v7 = vld [vmem:[#allocation2 + $0x10a] sm:$0xff] }
  0xe0   : > { %953 = vmatmul.f32.gmra.mxu2 %v858_v8  ;;  %v479_v8 = vld [vmem:[%s4865_s24 + $0xc8] sm:$0xff] }
  0xe1   : > { %513 = vst.msk [vmem:[#allocation2 + $0x141] sm:$0xff] %vm487_vm0, %v479_v8  ;;  %v1861_v8 = vld [vmem:[#allocation7 + $0x3f0] sm:$0xff] }
  0xe6   : > { %1144 = vmatmul.f32.gmra.mxu3 %v1051_v13  ;;  %794 = vmatmul.f32.gmra.mxu1 %v1051_v13 }
  0xe7   : > { %681 = vmatmul.f32.gmra.mxu0 %v584_v14 }
  0xe8   : > { %956 = vmatmul.f32.gmra.mxu2 %v859_v0  ;;  %v1058_v0 = vld [vmem:[#allocation2 + $0x110] sm:$0xff] }
  0xee   : > { %1147 = vmatmul.f32.gmra.mxu3 %v1052_v19  ;;  %797 = vmatmul.f32.gmra.mxu1 %v1052_v19  ;;  %v591_v19 = vld [vmem:[#allocation2 + $0x111] sm:$0xff] }
  0xef   : > { %684 = vmatmul.f32.gmra.mxu0 %v585_v20 }
  0xf0   : > { %959 = vmatmul.f32.gmra.mxu2 %v860_v21 }
  0xf3   : > { %v753_v28 = vpop.f32.mrf.mxu1 }
  0xf4   : > { %v640_v26 = vpop.f32.mrf.mxu0 }
  0xf5   : > { %v754_v45 = vadd.f32 %v753_v28, %v640_v26 }
  0xf6   : > { %1150 = vmatmul.f32.gmra.mxu3 %v1053_v25  ;;  %800 = vmatmul.f32.gmra.mxu1 %v1053_v25 }
  0xf7   : > { %687 = vmatmul.f32.gmra.mxu0 %v586_v27 }
  0xf8   : > { %962 = vmatmul.f32.gmra.mxu2 %v861_v29  ;;  %v1268_v29 = vld [vmem:[#allocation7 + $0x220] sm:$0xff] }
  0xf9   : > { %v4928_v31 = vpop.f32.mrf.mxu3  ;;  %1291 = vmatpush.msrb.mxu0 %v1268_v29  ;;  %v1664_v29 = vld [vmem:[#allocation7 + $0x358] sm:$0xff] }
  0xfb   : > { %v915_v32 = vpop.f32.mrf.mxu2  ;;  %v756_v36 = vpop.f32.mrf.mxu1 }
  0xfc   : > { %v643_v34 = vpop.f32.mrf.mxu0  ;;  %v1007_v49 = vadd.f32 %v915_v32, %v754_v45  ;;  %v593_v45 = vld [vmem:[#allocation2 + $0x129] sm:$0xff] }
  0xfd   : > { %v757_v56 = vadd.f32 %v756_v36, %v643_v34  ;;  %v867_v36 = vld [vmem:[#allocation2 + $0x122] sm:$0xff] }
  0xfe   : > { %1153 = vmatmul.f32.gmra.mxu3 %v1054_v33  ;;  %803 = vmatmul.f32.gmra.mxu1 %v1054_v33  ;;  %v592_v33 = vld [vmem:[#allocation2 + $0x121] sm:$0xff] }
  0xff   : > { %690 = vmatmul.f32.gmra.mxu0 %v587_v35 }
 0x100   : > { %965 = vmatmul.f32.gmra.mxu2 %v862_v37  ;;  %v481_v37 = vld [vmem:[%s4865_s24 + $0xd8] sm:$0xff] }
 0x101   : > { %v4932_v39 = vpop.f32.mrf.mxu3  ;;  %515 = vst.msk [vmem:[#allocation2 + $0x159] sm:$0xff] %vm487_vm0, %v481_v37 }
 0x103   : > { %v918_v40 = vpop.f32.mrf.mxu2  ;;  %v759_v46 = vpop.f32.mrf.mxu1 }
 0x104   : > { %v646_v43 = vpop.f32.mrf.mxu0  ;;  %v1008_v60 = vadd.f32 %v918_v40, %v757_v56  ;;  %v1061_v56 = vld [vmem:[#allocation2 + $0x138] sm:$0xff] }
 0x105   : > { %v760_v5 = vadd.f32 %v759_v46, %v646_v43  ;;  %v1060_v43 = vld [vmem:[#allocation2 + $0x128] sm:$0xff] }
 0x106   : > { %1156 = vmatmul.f32.gmra.mxu3 %v1055_v42  ;;  %806 = vmatmul.f32.gmra.mxu1 %v1055_v42 }
 0x107   : > { %693 = vmatmul.f32.gmra.mxu0 %v588_v44 }
 0x108   : > { %968 = vmatmul.f32.gmra.mxu2 %v863_v47 }
 0x109   : > { %v1109_v50 = vpop.f32.mrf.mxu3 }
 0x10a   : > { %v4936_v51 = vadd.f32 %v1109_v50, %v1007_v49  ;;  %v482_v49 = vld [vmem:[%s4865_s24 + $0xe0] sm:$0xff] }
 0x10b   : > { %v921_v52 = vpop.f32.mrf.mxu2  ;;  %v762_v57 = vpop.f32.mrf.mxu1  ;;  %516 = vst.msk [vmem:[#allocation2 + $0x169] sm:$0xff] %vm487_vm0, %v482_v49 }
 0x10c   : > { %v649_v54 = vpop.f32.mrf.mxu0  ;;  %v1009_v9 = vadd.f32 %v921_v52, %v760_v5  ;;  %v1862_v5 = vld [vmem:[#allocation7 + $0x3f8] sm:$0xff] }
 0x10d   : > { %v763_v20 = vadd.f32 %v762_v57, %v649_v54  ;;  %1863 = vmatpush.msrb.mxu3 %v1862_v5  ;;  %v1854_v5 = vld [vmem:[#allocation7 + $0x3b8] sm:$0xff] }
 0x10e   : > { %1159 = vmatmul.f32.gmra.mxu3 %v1056_v53  ;;  %809 = vmatmul.f32.gmra.mxu1 %v1056_v53 }
 0x10f   : > { %696 = vmatmul.f32.gmra.mxu0 %v589_v55  ;;  %v1267_v55 = vld [vmem:[#allocation7 + $0x218] sm:$0xff]  ;;  %1864 = vmatpush.msrb.mxu3 %v1861_v8 }
 0x110   : > { %971 = vmatmul.f32.gmra.mxu2 %v864_v58  ;;  %v594_v58 = vld [vmem:[#allocation2 + $0x139] sm:$0xff]  ;;  %1292 = vmatpush.msrb.mxu0 %v1267_v55 }
 0x111   : > { %v1112_v61 = vpop.f32.mrf.mxu3  ;;  %v1661_v55 = vld [vmem:[#allocation7 + $0x340] sm:$0xff] }
 0x112   : > { %v4940_v62 = vadd.f32 %v1112_v61, %v1008_v60  ;;  %v597_v8 = vld [vmem:[#allocation2 + $0x159] sm:$0xff] }
 0x113   : > { %v924_v63 = vpop.f32.mrf.mxu2  ;;  %v765_v6 = vpop.f32.mrf.mxu1 }
 0x114   : > { %v652_v3 = vpop.f32.mrf.mxu0  ;;  %v1010_v25 = vadd.f32 %v924_v63, %v763_v20  ;;  %v869_v63 = vld [vmem:[#allocation2 + $0x13a] sm:$0xff] }
 0x115   : > { %v766_v34 = vadd.f32 %v765_v6, %v652_v3  ;;  %v1473_v3 = vld [vmem:[#allocation7 + $0x2f8] sm:$0xff]  ;;  %v1472_v6 = vld [vmem:[#allocation7 + $0x2f0] sm:$0xff]  ;;  %v1062_v20 = vld [vmem:[#allocation2 + $0x140] sm:$0xff] }
 0x116   : > { %1162 = vmatmul.f32.gmra.mxu3 %v1057_v2  ;;  %812 = vmatmul.f32.gmra.mxu1 %v1057_v2 }
 0x117   : > { %699 = vmatmul.f32.gmra.mxu0 %v590_v4  ;;  %v1667_v4 = vld [vmem:[#allocation7 + $0x370] sm:$0xff]  ;;  %1474 = vmatpush.msrb.mxu1 %v1473_v3 }
 0x118   : > { %974 = vmatmul.f32.gmra.mxu2 %v865_v7  ;;  %v1666_v7 = vld [vmem:[#allocation7 + $0x368] sm:$0xff] }
 0x119   : > { %v1115_v12 = vpop.f32.mrf.mxu3  ;;  %1670 = vmatpush.msrb.mxu2 %v1667_v4  ;;  %1475 = vmatpush.msrb.mxu1 %v1472_v6  ;;  %v1064_v6 = vld [vmem:[#allocation2 + $0x158] sm:$0xff] }
 0x11a   : > { %v4944_v13 = vadd.f32 %v1115_v12, %v1009_v9 }
 0x11b   : > { %v927_v14 = vpop.f32.mrf.mxu2  ;;  %v768_v21 = vpop.f32.mrf.mxu1  ;;  %1671 = vmatpush.msrb.mxu2 %v1666_v7 }
 0x11c   : > { %v655_v15 = vpop.f32.mrf.mxu0  ;;  %v1011_v38 = vadd.f32 %v927_v14, %v766_v34  ;;  %v1469_v34 = vld [vmem:[#allocation7 + $0x2d8] sm:$0xff] }
 0x11d   : > { %v769_v46 = vadd.f32 %v768_v21, %v655_v15  ;;  %v1665_v15 = vld [vmem:[#allocation7 + $0x360] sm:$0xff] }
 0x11e   : > { %1165 = vmatmul.f32.gmra.mxu3 %v1058_v0  ;;  %815 = vmatmul.f32.gmra.mxu1 %v1058_v0  ;;  %v1471_v0 = vld [vmem:[#allocation7 + $0x2e8] sm:$0xff] }
 0x11f   : > { %702 = vmatmul.f32.gmra.mxu0 %v591_v19  ;;  %v1860_v19 = vld [vmem:[#allocation7 + $0x3e8] sm:$0xff]  ;;  %1476 = vmatpush.msrb.mxu1 %v1471_v0  ;;  %v872_v0 = vld [vmem:[#allocation2 + $0x15a] sm:$0xff] }
 0x120   : > { %977 = vmatmul.f32.gmra.mxu2 %v866_v22  ;;  %v595_v22 = vld [vmem:[#allocation2 + $0x141] sm:$0xff]  ;;  %1865 = vmatpush.msrb.mxu3 %v1860_v19 }
 0x121   : > { %v1118_v26 = vpop.f32.mrf.mxu3  ;;  %1672 = vmatpush.msrb.mxu2 %v1665_v15  ;;  %v1464_v15 = vld [vmem:[#allocation7 + $0x2b0] sm:$0xff]  ;;  %v1658_v19 = vld [vmem:[#allocation7 + $0x328] sm:$0xff] }
 0x122   : > { %v4948_v27 = vadd.f32 %v1118_v26, %v1010_v25  ;;  %v870_v26 = vld [vmem:[#allocation2 + $0x142] sm:$0xff] }
 0x123   : > { %v930_v28 = vpop.f32.mrf.mxu2  ;;  %v771_v35 = vpop.f32.mrf.mxu1  ;;  %1673 = vmatpush.msrb.mxu2 %v1664_v29  ;;  %v1462_v29 = vld [vmem:[#allocation7 + $0x2a0] sm:$0xff] }
 0x124   : > { %v658_v32 = vpop.f32.mrf.mxu0  ;;  %v1012_v50 = vadd.f32 %v930_v28, %v769_v46  ;;  %v1470_v28 = vld [vmem:[#allocation7 + $0x2e0] sm:$0xff]  ;;  %v1063_v46 = vld [vmem:[#allocation2 + $0x150] sm:$0xff] }
 0x125   : > { %v772_v60 = vadd.f32 %v771_v35, %v658_v32  ;;  %v1663_v35 = vld [vmem:[#allocation7 + $0x350] sm:$0xff]  ;;  %1477 = vmatpush.msrb.mxu1 %v1470_v28  ;;  %v1852_v28 = vld [vmem:[#allocation7 + $0x3a8] sm:$0xff] }
 0x126   : > { %1168 = vmatmul.f32.gmra.mxu3 %v1059_v30  ;;  %818 = vmatmul.f32.gmra.mxu1 %v1059_v30  ;;  %v484_v30 = vld [vmem:[%s4865_s24 + $0xf0] sm:$0xff] }
 0x127   : > { %705 = vmatmul.f32.gmra.mxu0 %v592_v33  ;;  %v1859_v33 = vld [vmem:[#allocation7 + $0x3e0] sm:$0xff]  ;;  %518 = vst.msk [vmem:[#allocation2 + $0x181] sm:$0xff] %vm487_vm0, %v484_v30  ;;  %1478 = vmatpush.msrb.mxu1 %v1469_v34  ;;  %v1656_v30 = vld [vmem:[#allocation7 + $0x318] sm:$0xff] }
 0x128   : > { %980 = vmatmul.f32.gmra.mxu2 %v867_v36  ;;  %v1858_v36 = vld [vmem:[#allocation7 + $0x3d8] sm:$0xff]  ;;  %1866 = vmatpush.msrb.mxu3 %v1859_v33  ;;  %v1851_v34 = vld [vmem:[#allocation7 + $0x3a0] sm:$0xff] }
 0x129   : > { %v1121_v40 = vpop.f32.mrf.mxu3  ;;  %1674 = vmatpush.msrb.mxu2 %v1663_v35  ;;  %v1264_v35 = vld [vmem:[#allocation7 + $0x200] sm:$0xff] }
 0x12a   : > { %v4952_v41 = vadd.f32 %v1121_v40, %v1011_v38  ;;  %v1468_v38 = vld [vmem:[#allocation7 + $0x2d0] sm:$0xff]  ;;  %v1662_v40 = vld [vmem:[#allocation7 + $0x348] sm:$0xff]  ;;  %1867 = vmatpush.msrb.mxu3 %v1858_v36 }
 0x12b   : > { %v933_v42 = vpop.f32.mrf.mxu2  ;;  %v774_v47 = vpop.f32.mrf.mxu1  ;;  %1479 = vmatpush.msrb.mxu1 %v1468_v38  ;;  %1675 = vmatpush.msrb.mxu2 %v1662_v40  ;;  %v1065_v36 = vld [vmem:[#allocation2 + $0x168] sm:$0xff] }
 0x12c   : > { %v661_v44 = vpop.f32.mrf.mxu0  ;;  %v1013_v2 = vadd.f32 %v933_v42, %v772_v60  ;;  %v1466_v60 = vld [vmem:[#allocation7 + $0x2c0] sm:$0xff]  ;;  %v598_v38 = vld [vmem:[#allocation2 + $0x169] sm:$0xff] }
 0x12d   : > { %v775_v24 = vadd.f32 %v774_v47, %v661_v44  ;;  %v1857_v44 = vld [vmem:[#allocation7 + $0x3d0] sm:$0xff]  ;;  %1676 = vmatpush.msrb.mxu2 %v1661_v55 }
 0x12e   : > { %1171 = vmatmul.f32.gmra.mxu3 %v1060_v43  ;;  %821 = vmatmul.f32.gmra.mxu1 %v1060_v43  ;;  %v1849_v55 = vld [vmem:[#allocation7 + $0x390] sm:$0xff] }
 0x12f   : > { %708 = vmatmul.f32.gmra.mxu0 %v593_v45  ;;  %v1266_v45 = vld [vmem:[#allocation7 + $0x210] sm:$0xff]  ;;  %1868 = vmatpush.msrb.mxu3 %v1857_v44 }
 0x130   : > { %983 = vmatmul.f32.gmra.mxu2 %v868_v48  ;;  %v596_v48 = vld [vmem:[#allocation2 + $0x151] sm:$0xff]  ;;  %1293 = vmatpush.msrb.mxu0 %v1266_v45 }
 0x131   : > { %v1124_v52 = vpop.f32.mrf.mxu3  ;;  %1869 = vmatpush.msrb.mxu3 %v1856_v59  ;;  %v873_v44 = vld [vmem:[#allocation2 + $0x16a] sm:$0xff]  ;;  %v1461_v45 = vld [vmem:[#allocation7 + $0x298] sm:$0xff] }
 0x132   : > { %v4956_v53 = vadd.f32 %v1124_v52, %v1012_v50  ;;  %v871_v52 = vld [vmem:[#allocation2 + $0x152] sm:$0xff] }
 0x133   : > { %v936_v54 = vpop.f32.mrf.mxu2  ;;  %v4960_v61 = vpop.f32.mrf.mxu1 }
 0x134   : > { %v4958_v57 = vpop.f32.mrf.mxu0  ;;  %v1014_v32 = vadd.f32 %v936_v54, %v775_v24  ;;  %v1467_v54 = vld [vmem:[#allocation7 + $0x2c8] sm:$0xff] }
 0x135   : > { %v778_v49 = vadd.f32 %v4960_v61, %v4958_v57  ;;  %1480 = vmatpush.msrb.mxu1 %v1467_v54  ;;  %v1855_v57 = vld [vmem:[#allocation7 + $0x3c0] sm:$0xff]  ;;  %v1463_v24 = vld [vmem:[#allocation7 + $0x2a8] sm:$0xff] }
 0x136   : > { %1174 = vmatmul.f32.gmra.mxu3 %v1061_v56  ;;  %824 = vmatmul.f32.gmra.mxu1 %v1061_v56  ;;  %v485_v56 = vld [vmem:[%s4865_s24 + $0xf8] sm:$0xff]  ;;  %v1654_v54 = vld [vmem:[#allocation7 + $0x308] sm:$0xff] }
 0x137   : > { %711 = vmatmul.f32.gmra.mxu0 %v594_v58  ;;  %519 = vst.msk [vmem:[#allocation2 + $0x189] sm:$0xff] %vm487_vm0, %v485_v56  ;;  %1481 = vmatpush.msrb.mxu1 %v1466_v60  ;;  %v1848_v60 = vld [vmem:[#allocation7 + $0x388] sm:$0xff] }
 0x138   : > { %986 = vmatmul.f32.gmra.mxu2 %v869_v63  ;;  %v1660_v63 = vld [vmem:[#allocation7 + $0x338] sm:$0xff]  ;;  %1870 = vmatpush.msrb.mxu3 %v1855_v57 }
 0x139   : > { %v1127_v9 = vpop.f32.mrf.mxu3  ;;  %1677 = vmatpush.msrb.mxu2 %v1660_v63  ;;  %1482 = vmatpush.msrb.mxu1 %v1465_v1  ;;  %v1066_v63 = vld [vmem:[#allocation2 + $0x170] sm:$0xff] }
 0x13a   : > { %v4964_v12 = vadd.f32 %v1127_v9, %v1013_v2  ;;  %v1659_v2 = vld [vmem:[#allocation7 + $0x330] sm:$0xff]  ;;  %1871 = vmatpush.msrb.mxu3 %v1854_v5  ;;  %v1458_v5 = vld [vmem:[#allocation7 + $0x280] sm:$0xff] }
 0x13b   : > { %v939_v14 = vpop.f32.mrf.mxu2  ;;  %v4968_v25 = vpop.f32.mrf.mxu1  ;;  %1678 = vmatpush.msrb.mxu2 %v1659_v2  ;;  %1483 = vmatpush.msrb.mxu1 %v1464_v15 }
 0x13c   : > { %v4966_v21 = vpop.f32.mrf.mxu0  ;;  %v1015_v58 = vadd.f32 %v939_v14, %v778_v49  ;;  %v1850_v49 = vld [vmem:[#allocation7 + $0x398] sm:$0xff] }
 0x13d   : > { %v781_v9 = vadd.f32 %v4968_v25, %v4966_v21  ;;  %1679 = vmatpush.msrb.mxu2 %v1658_v19  ;;  %v1265_v21 = vld [vmem:[#allocation7 + $0x208] sm:$0xff]  ;;  %1484 = vmatpush.msrb.mxu1 %v1463_v24  ;;  %v1231_v19 = vld [vmem:[#allocation2 + $0x19] sm:$0xff]  ;;  %v1620_v24 = vld [vmem:[#allocation2 + $0x30] sm:$0xff] }
 0x13e   : > { %1177 = vmatmul.f32.gmra.mxu3 %v1062_v20  ;;  %827 = vmatmul.f32.gmra.mxu1 %v1062_v20 }
 0x13f   : > { %714 = vmatmul.f32.gmra.mxu0 %v595_v22  ;;  %v1853_v22 = vld [vmem:[#allocation7 + $0x3b0] sm:$0xff]  ;;  %1485 = vmatpush.msrb.mxu1 %v1462_v29 }
 0x140   : > { %989 = vmatmul.f32.gmra.mxu2 %v870_v26  ;;  %v1657_v26 = vld [vmem:[#allocation7 + $0x320] sm:$0xff]  ;;  %1872 = vmatpush.msrb.mxu3 %v1853_v22 }
 0x141   : > { %v1130_v37 = vpop.f32.mrf.mxu3  ;;  %1294 = vmatpush.msrb.mxu0 %v1265_v21  ;;  %1680 = vmatpush.msrb.mxu2 %v1657_v26  ;;  %v1425_v26 = vld [vmem:[#allocation2 + $0x1a] sm:$0xff] }
 0x142   : > { %v4972_v42 = vadd.f32 %v1130_v37, %v1014_v32  ;;  %1873 = vmatpush.msrb.mxu3 %v1852_v28  ;;  %1486 = vmatpush.msrb.mxu1 %v1461_v45 }
 0x143   : > { %v942_v43 = vpop.f32.mrf.mxu2  ;;  %v4978_v50 = vpop.f32.mrf.mxu1  ;;  %1295 = vmatpush.msrb.mxu0 %v1264_v35  ;;  %1681 = vmatpush.msrb.mxu2 %v1656_v30  ;;  %v5005_v30 = vld [vmem:[#allocation2 + $0x188] sm:$0xff] }
 0x144   : > { %v4974_v47 = vpop.f32.mrf.mxu0  ;;  %v1016_v20 = vadd.f32 %v942_v43, %v781_v9  ;;  %1874 = vmatpush.msrb.mxu3 %v1851_v34  ;;  %v1232_v34 = vld [vmem:[#allocation2 + $0x21] sm:$0xff] }
 0x145   : > { %v784_v40 = vadd.f32 %v4978_v50, %v4974_v47  ;;  %v1459_v47 = vld [vmem:[#allocation7 + $0x288] sm:$0xff]  ;;  %v1653_v50 = vld [vmem:[#allocation7 + $0x300] sm:$0xff] }
 0x146   : > { %1180 = vmatmul.f32.gmra.mxu3 %v1063_v46  ;;  %830 = vmatmul.f32.gmra.mxu1 %v1063_v46  ;;  %v1655_v46 = vld [vmem:[#allocation7 + $0x310] sm:$0xff] }
 0x147   : > { %717 = vmatmul.f32.gmra.mxu0 %v596_v48  ;;  %1682 = vmatpush.msrb.mxu2 %v1655_v46  ;;  %v2056_v46 = vld [vmem:[#allocation7 + $0x478] sm:$0xff] }
 0x148   : > { %992 = vmatmul.f32.gmra.mxu2 %v871_v52  ;;  %v1460_v52 = vld [vmem:[#allocation7 + $0x290] sm:$0xff]  ;;  %1875 = vmatpush.msrb.mxu3 %v1850_v49 }
 0x149   : > { %v1133_v61 = vpop.f32.mrf.mxu3  ;;  %1487 = vmatpush.msrb.mxu1 %v1460_v52  ;;  %1683 = vmatpush.msrb.mxu2 %v1654_v54 }
 0x14a   : > { %v4982_v3 = vadd.f32 %v1133_v61, %v1015_v58  ;;  %v4996_v61 = vld [vmem:[#allocation2 + $0x171] sm:$0xff]  ;;  %1876 = vmatpush.msrb.mxu3 %v1849_v55  ;;  %2057 = vmatpush.msra.mxu0 %v2056_v46  ;;  %v1622_v55 = vld [vmem:[#allocation2 + $0x48] sm:$0xff] }
 0x14b   : > { %v945_v4 = vpop.f32.mrf.mxu2  ;;  %v4988_v14 = vpop.f32.mrf.mxu1  ;;  %1488 = vmatpush.msrb.mxu1 %v1459_v47  ;;  %1684 = vmatpush.msrb.mxu2 %v1653_v50 }
 0x14c   : > { %v4984_v7 = vpop.f32.mrf.mxu0  ;;  %v1017_v48 = vadd.f32 %v945_v4, %v784_v40  ;;  %v874_v4 = vld [vmem:[#allocation2 + $0x172] sm:$0xff]  ;;  %1877 = vmatpush.msrb.mxu3 %v1848_v60 }
 0x14d   : > { %v787_v1 = vadd.f32 %v4988_v14, %v4984_v7  ;;  %1489 = vmatpush.msrb.mxu1 %v1458_v5  ;;  %v1067_v7 = vld [vmem:[#allocation2 + $0x180] sm:$0xff] }
 0x14e   : > { %1183 = vmatmul.f32.gmra.mxu3 %v1064_v6  ;;  %833 = vmatmul.f32.gmra.mxu1 %v1064_v6  ;;  %v1847_v6 = vld [vmem:[#allocation7 + $0x380] sm:$0xff] }
 0x14f   : > { %720 = vmatmul.f32.gmra.mxu0 %v597_v8  ;;  %1878 = vmatpush.msrb.mxu3 %v1847_v6  ;;  %v5015_v5 = vld [vmem:[#allocation2 + $0x3a] sm:$0xff] }
 0x150   : > { %995 = vmatmul.f32.gmra.mxu2 %v872_v0 }
 0x151   : > { %v1136_v25 = vpop.f32.mrf.mxu3 }
 0x152   : > { %v4990_v32 = vadd.f32 %v1136_v25, %v1016_v20 }
 0x153   : > { %v948_v33 = vpop.f32.mrf.mxu2  ;;  %v789_v43 = vpop.f32.mrf.mxu1 }
 0x154   : > { %v676_v37 = vpop.f32.mrf.mxu0  ;;  %v1018_v8 = vadd.f32 %v948_v33, %v787_v1 }
 0x155   : > { %v790_v20 = vadd.f32 %v789_v43, %v676_v37  ;;  %v1426_v37 = vld [vmem:[#allocation2 + $0x22] sm:$0xff] }
 0x156   : > { %1186 = vmatmul.f32.gmra.mxu3 %v1065_v36  ;;  %836 = vmatmul.f32.gmra.mxu1 %v1065_v36 }
 0x157   : > { %723 = vmatmul.f32.gmra.mxu0 %v598_v38  ;;  %v1621_v38 = vld [vmem:[#allocation2 + $0x38] sm:$0xff] }
 0x158   : > { %998 = vmatmul.f32.gmra.mxu2 %v873_v44 }
 0x159   : > { %v1139_v56 = vpop.f32.mrf.mxu3 }
 0x15a   : > { %v4994_v58 = vadd.f32 %v1139_v56, %v1017_v48  ;;  %v1814_v48 = vld [vmem:[#allocation2 + $0x31] sm:$0xff] }
 0x15b   : > { %v951_v59 = vpop.f32.mrf.mxu2  ;;  %v792_v2 = vpop.f32.mrf.mxu1  ;;  %v5010_v56 = vld [vmem:[#allocation2 + $0x32] sm:$0xff] }
 0x15c   : > { %v679_v57 = vpop.f32.mrf.mxu0  ;;  %v1019_v28 = vadd.f32 %v951_v59, %v790_v20 }
 0x15d   : > { %v793_v35 = vadd.f32 %v792_v2, %v679_v57 }
 0x15e   : > { %1189 = vmatmul.f32.gmra.mxu3 %v1066_v63  ;;  %839 = vmatmul.f32.gmra.mxu1 %v1066_v63  ;;  %v1815_v63 = vld [vmem:[#allocation2 + $0x39] sm:$0xff] }
 0x15f   : > { %726 = vmatmul.f32.gmra.mxu0 %v4996_v61 }
 0x160   : > { %1001 = vmatmul.f32.gmra.mxu2 %v874_v4  ;;  %v1623_v4 = vld [vmem:[#allocation2 + $0x50] sm:$0xff] }
 0x161   : > { %v1142_v9 = vpop.f32.mrf.mxu3 }
 0x162   : > { %v5001_v0 = vadd.f32 %v1142_v9, %v1018_v8 }
 0x163   : > { %v954_v15 = vpop.f32.mrf.mxu2  ;;  %v795_v22 = vpop.f32.mrf.mxu1 }
 0x164   : > { %v682_v14 = vpop.f32.mrf.mxu0  ;;  %v1020_v40 = vadd.f32 %v954_v15, %v793_v35 }
 0x165   : > { %v796_v52 = vadd.f32 %v795_v22, %v682_v14  ;;  %v1816_v14 = vld [vmem:[#allocation2 + $0x49] sm:$0xff] }
 0x166   : > { %1192 = vmatmul.f32.gmra.mxu3 %v1067_v7  ;;  %1490 = vmatmul.f32.vlgmr.msrb.gmra.mxu1 %v1425_v26  ;;  %v2055_v7 = vld [vmem:[#allocation7 + $0x470] sm:$0xff] }
 0x167   : > { %1296 = vmatmul.f32.vlgmr.msrb.gmra.mxu0 %v1231_v19  ;;  %v5020_v26 = vld [vmem:[#allocation2 + $0x4a] sm:$0xff] }
 0x168   : > { %1685 = vmatmul.f32.vlgmr.msrb.gmra.mxu2 %v1620_v24  ;;  %2058 = vmatpush.msra.mxu0 %v2055_v7  ;;  %v1624_v24 = vld [vmem:[#allocation2 + $0x60] sm:$0xff] }
 0x169   : > { %v1145_v21 = vpop.f32.mrf.mxu3  ;;  %v1627_v7 = vld [vmem:[#allocation2 + $0x80] sm:$0xff] }
 0x16a   : > { %v5003_v25 = vadd.f32 %v1145_v21, %v1019_v28 }
 0x16b   : > { %v957_v29 = vpop.f32.mrf.mxu2  ;;  %v798_v36 = vpop.f32.mrf.mxu1 }
 0x16c   : > { %v685_v33 = vpop.f32.mrf.mxu0  ;;  %v1021_v47 = vadd.f32 %v957_v29, %v796_v52  ;;  %v1818_v52 = vld [vmem:[#allocation2 + $0x61] sm:$0xff] }
 0x16d   : > { %v799_v1 = vadd.f32 %v798_v36, %v685_v33 }
 0x16e   : > { %1195 = vmatmul.f32.gmra.mxu3 %v5005_v30  ;;  %1493 = vmatmul.f32.gmra.mxu1 %v1426_v37  ;;  %v1625_v37 = vld [vmem:[#allocation2 + $0x68] sm:$0xff] }
 0x16f   : > { %1299 = vmatmul.f32.gmra.mxu0 %v1232_v34  ;;  %v1817_v34 = vld [vmem:[#allocation2 + $0x51] sm:$0xff] }
 0x170   : > { %1688 = vmatmul.f32.gmra.mxu2 %v1621_v38 }
 0x171   : > { %v1148_v43 = vpop.f32.mrf.mxu3 }
 0x172   : > { %v5008_v44 = vadd.f32 %v1148_v43, %v1020_v40  ;;  %v5025_v40 = vld [vmem:[#allocation2 + $0x52] sm:$0xff] }
 0x173   : > { %v960_v45 = vpop.f32.mrf.mxu2  ;;  %v801_v54 = vpop.f32.mrf.mxu1 }
 0x174   : > { %v688_v49 = vpop.f32.mrf.mxu0  ;;  %v1022_v6 = vadd.f32 %v960_v45, %v799_v1 }
 0x175   : > { %v802_v20 = vadd.f32 %v801_v54, %v688_v49  ;;  %v2054_v49 = vld [vmem:[#allocation7 + $0x468] sm:$0xff] }
 0x176   : > { %1879 = vmatmul.f32.vlgmr.msrb.gmra.mxu3 %v1814_v48  ;;  %1496 = vmatmul.f32.gmra.mxu1 %v5010_v56 }
 0x177   : > { %1302 = vmatmul.f32.gmra.mxu0 %v1814_v48 }
 0x178   : > { %1691 = vmatmul.f32.gmra.mxu2 %v1622_v55  ;;  %2059 = vmatpush.msra.mxu0 %v2054_v49  ;;  %v1821_v49 = vld [vmem:[#allocation2 + $0x81] sm:$0xff] }
 0x179   : > { %v1151_v50 = vpop.f32.mrf.mxu3 }
 0x17a   : > { %v5013_v59 = vadd.f32 %v1151_v50, %v1021_v47  ;;  %v1626_v50 = vld [vmem:[#allocation2 + $0x78] sm:$0xff] }
 0x17b   : > { %v963_v60 = vpop.f32.mrf.mxu2  ;;  %v804_v2 = vpop.f32.mrf.mxu1 }
 0x17c   : > { %v691_v57 = vpop.f32.mrf.mxu0  ;;  %v1023_v28 = vadd.f32 %v963_v60, %v802_v20  ;;  %v5030_v60 = vld [vmem:[#allocation2 + $0x62] sm:$0xff] }
 0x17d   : > { %v805_v36 = vadd.f32 %v804_v2, %v691_v57 }
 0x17e   : > { %1882 = vmatmul.f32.gmra.mxu3 %v1815_v63  ;;  %1499 = vmatmul.f32.gmra.mxu1 %v5015_v5 }
 0x17f   : > { %1305 = vmatmul.f32.gmra.mxu0 %v1815_v63 }
 0x180   : > { %1694 = vmatmul.f32.gmra.mxu2 %v1623_v4  ;;  %v1819_v4 = vld [vmem:[#allocation2 + $0x69] sm:$0xff] }
 0x181   : > { %v1154_v8 = vpop.f32.mrf.mxu3 }
 0x182   : > { %v5018_v9 = vadd.f32 %v1154_v8, %v1022_v6 }
 0x183   : > { %v966_v15 = vpop.f32.mrf.mxu2  ;;  %v807_v22 = vpop.f32.mrf.mxu1 }
 0x184   : > { %v694_v19 = vpop.f32.mrf.mxu0  ;;  %v1024_v43 = vadd.f32 %v966_v15, %v805_v36  ;;  %v1628_v36 = vld [vmem:[#allocation2 + $0x90] sm:$0xff] }
 0x185   : > { %v808_v55 = vadd.f32 %v807_v22, %v694_v19 }
 0x186   : > { %1885 = vmatmul.f32.gmra.mxu3 %v1816_v14  ;;  %1502 = vmatmul.f32.gmra.mxu1 %v5020_v26 }
 0x187   : > { %1308 = vmatmul.f32.gmra.mxu0 %v1816_v14  ;;  %v5035_v14 = vld [vmem:[#allocation2 + $0x6a] sm:$0xff] }
 0x188   : > { %1697 = vmatmul.f32.gmra.mxu2 %v1624_v24 }
 0x189   : > { %v1157_v21 = vpop.f32.mrf.mxu3 }
 0x18a   : > { %v5023_v29 = vadd.f32 %v1157_v21, %v1023_v28  ;;  %v2053_v28 = vld [vmem:[#allocation7 + $0x460] sm:$0xff] }
 0x18b   : > { %v969_v33 = vpop.f32.mrf.mxu2  ;;  %v810_v38 = vpop.f32.mrf.mxu1  ;;  %v1820_v21 = vld [vmem:[#allocation2 + $0x79] sm:$0xff]  ;;  %2060 = vmatpush.msra.mxu0 %v2053_v28 }
 0x18c   : > { %5784 = vst [vmem:[#allocation18_spill] sm:$0xff] %v5023_v29  ;;  %v697_v35 = vpop.f32.mrf.mxu0  ;;  %v1025_v63 = vadd.f32 %v969_v33, %v808_v55  ;;  %v5050_v28 = vld [vmem:[#allocation2 + $0x92] sm:$0xff] }
 0x18d   : > { %v811_v8 = vadd.f32 %v810_v38, %v697_v35  ;;  %v5040_v38 = vld [vmem:[#allocation2 + $0x7a] sm:$0xff] }
 0x18e   : > { %1888 = vmatmul.f32.gmra.mxu3 %v1817_v34  ;;  %1505 = vmatmul.f32.gmra.mxu1 %v5025_v40 }
 0x18f   : > { %1311 = vmatmul.f32.gmra.mxu0 %v1817_v34 }
 0x190   : > { %1700 = vmatmul.f32.gmra.mxu2 %v1625_v37 }
 0x191   : > { %v1160_v45 = vpop.f32.mrf.mxu3 }
 0x192   : > { %v5028_v46 = vadd.f32 %v1160_v45, %v1024_v43 }
 0x193   : > { %v972_v48 = vpop.f32.mrf.mxu2  ;;  %v813_v47 = vpop.f32.mrf.mxu1 }
 0x194   : > { %5785 = vst [vmem:[#allocation19_spill] sm:$0xff] %v5028_v46  ;;  %v700_v54 = vpop.f32.mrf.mxu0  ;;  %v1026_v19 = vadd.f32 %v972_v48, %v811_v8  ;;  %v2052_v8 = vld [vmem:[#allocation7 + $0x458] sm:$0xff] }
 0x195   : > { %v814_v34 = vadd.f32 %v813_v47, %v700_v54  ;;  %v5045_v54 = vld [vmem:[#allocation2 + $0x82] sm:$0xff]  ;;  %2061 = vmatpush.msra.mxu0 %v2052_v8  ;;  %v2051_v8 = vld [vmem:[#allocation7 + $0x450] sm:$0xff] }
 0x196   : > { %1891 = vmatmul.f32.gmra.mxu3 %v1818_v52  ;;  %1508 = vmatmul.f32.gmra.mxu1 %v5030_v60 }
 0x197   : > { %1314 = vmatmul.f32.gmra.mxu0 %v1818_v52 }
 0x198   : > { %1703 = vmatmul.f32.gmra.mxu2 %v1626_v50  ;;  %2062 = vmatpush.msra.mxu0 %v2051_v8  ;;  %v1633_v8 = vld [vmem:[#allocation2 + $0xc8] sm:$0xff] }
 0x199   : > { %v1163_v57 = vpop.f32.mrf.mxu3 }
 0x19a   : > { %v5033_v1 = vadd.f32 %v1163_v57, %v1025_v63  ;;  %v1629_v63 = vld [vmem:[#allocation2 + $0x98] sm:$0xff] }
 0x19b   : > { %v975_v2 = vpop.f32.mrf.mxu2  ;;  %v816_v15 = vpop.f32.mrf.mxu1 }
 0x19c   : > { %5786 = vst [vmem:[#allocation20_spill] sm:$0xff] %v5033_v1  ;;  %v703_v6 = vpop.f32.mrf.mxu0  ;;  %v1027_v37 = vadd.f32 %v975_v2, %v814_v34 }
 0x19d   : > { %v817_v55 = vadd.f32 %v816_v15, %v703_v6  ;;  %v1630_v15 = vld [vmem:[#allocation2 + $0xa8] sm:$0xff] }
 0x19e   : > { %1894 = vmatmul.f32.gmra.mxu3 %v1819_v4  ;;  %1511 = vmatmul.f32.gmra.mxu1 %v5035_v14 }
 0x19f   : > { %1317 = vmatmul.f32.gmra.mxu0 %v1819_v4 }
 0x1a0   : > { %1706 = vmatmul.f32.gmra.mxu2 %v1627_v7  ;;  %v1822_v7 = vld [vmem:[#allocation2 + $0x91] sm:$0xff] }
 0x1a1   : > { %v1166_v20 = vpop.f32.mrf.mxu3 }
 0x1a2   : > { %v5038_v22 = vadd.f32 %v1166_v20, %v1026_v19 }
 0x1a3   : > { %v978_v24 = vpop.f32.mrf.mxu2  ;;  %v819_v35 = vpop.f32.mrf.mxu1 }
 0x1a4   : > { %5787 = vst [vmem:[#allocation21_spill] sm:$0xff] %v5038_v22  ;;  %v706_v33 = vpop.f32.mrf.mxu0  ;;  %v1028_v47 = vadd.f32 %v978_v24, %v817_v55 }
 0x1a5   : > { %v820_v20 = vadd.f32 %v819_v35, %v706_v33  ;;  %v5055_v33 = vld [vmem:[#allocation2 + $0x9a] sm:$0xff] }
 0x1a6   : > { %1897 = vmatmul.f32.gmra.mxu3 %v1820_v21  ;;  %1514 = vmatmul.f32.gmra.mxu1 %v5040_v38 }
 0x1a7   : > { %1320 = vmatmul.f32.gmra.mxu0 %v1820_v21 }
 0x1a8   : > { %1709 = vmatmul.f32.gmra.mxu2 %v1628_v36 }
 0x1a9   : > { %v1169_v43 = vpop.f32.mrf.mxu3 }
 0x1aa   : > { %v5043_v45 = vadd.f32 %v1169_v43, %v1027_v37  ;;  %v1823_v37 = vld [vmem:[#allocation2 + $0x99] sm:$0xff] }
 0x1ab   : > { %v981_v48 = vpop.f32.mrf.mxu2  ;;  %v822_v50 = vpop.f32.mrf.mxu1 }
 0x1ac   : > { %5788 = vst [vmem:[#allocation22_spill] sm:$0xff] %v5043_v45  ;;  %v709_v52 = vpop.f32.mrf.mxu0  ;;  %v1029_v21 = vadd.f32 %v981_v48, %v820_v20 }
 0x1ae   : > { %1900 = vmatmul.f32.gmra.mxu3 %v1821_v49  ;;  %1517 = vmatmul.f32.gmra.mxu1 %v5045_v54 }
 0x1af   : > { %1323 = vmatmul.f32.gmra.mxu0 %v1821_v49  ;;  %v823_v49 = vadd.f32 %v822_v50, %v709_v52  ;;  %v1632_v50 = vld [vmem:[#allocation2 + $0xc0] sm:$0xff] }
 0x1b0   : > { %1712 = vmatmul.f32.gmra.mxu2 %v1629_v63  ;;  %v1631_v63 = vld [vmem:[#allocation2 + $0xb0] sm:$0xff] }
 0x1b1   : > { %v1172_v57 = vpop.f32.mrf.mxu3 }
 0x1b2   : > { %v5048_v2 = vadd.f32 %v1172_v57, %v1028_v47 }
 0x1b3   : > { %v984_v4 = vpop.f32.mrf.mxu2  ;;  %v825_v6 = vpop.f32.mrf.mxu1 }
 0x1b4   : > { %5789 = vst [vmem:[#allocation23_spill] sm:$0xff] %v5048_v2  ;;  %v712_v19 = vpop.f32.mrf.mxu0  ;;  %v1030_v35 = vadd.f32 %v984_v4, %v823_v49 }
 0x1b6   : > { %1903 = vmatmul.f32.gmra.mxu3 %v1822_v7  ;;  %1520 = vmatmul.f32.gmra.mxu1 %v5050_v28 }
 0x1b7   : > { %1326 = vmatmul.f32.gmra.mxu0 %v1822_v7  ;;  %v1824_v7 = vld [vmem:[#allocation2 + $0xa9] sm:$0xff] }
 0x1b8   : > { %1715 = vmatmul.f32.gmra.mxu2 %v1630_v15  ;;  %v826_v15 = vadd.f32 %v825_v6, %v712_v19  ;;  %v5065_v19 = vld [vmem:[#allocation2 + $0xb2] sm:$0xff] }
 0x1b9   : > { %v1175_v24 = vpop.f32.mrf.mxu3 }
 0x1ba   : > { %v5053_v34 = vadd.f32 %v1175_v24, %v1029_v21  ;;  %v5060_v21 = vld [vmem:[#allocation2 + $0xaa] sm:$0xff] }
 0x1bb   : > { %v987_v36 = vpop.f32.mrf.mxu2  ;;  %v828_v55 = vpop.f32.mrf.mxu1 }
 0x1bc   : > { %5790 = vst [vmem:[#allocation24_spill] sm:$0xff] %v5053_v34  ;;  %v715_v43 = vpop.f32.mrf.mxu0  ;;  %v1031_v24 = vadd.f32 %v987_v36, %v826_v15  ;;  %v5070_v34 = vld [vmem:[#allocation2 + $0xc2] sm:$0xff] }
 0x1be   : > { %1906 = vmatmul.f32.gmra.mxu3 %v1823_v37  ;;  %1523 = vmatmul.f32.gmra.mxu1 %v5055_v33 }
 0x1bf   : > { %1329 = vmatmul.f32.gmra.mxu0 %v1823_v37 }
 0x1c0   : > { %1718 = vmatmul.f32.gmra.mxu2 %v1631_v63  ;;  %v1825_v63 = vld [vmem:[#allocation2 + $0xb1] sm:$0xff] }
 0x1c1   : > { %v1178_v48 = vpop.f32.mrf.mxu3 }
 0x1c2   : > { %v5058_v47 = vadd.f32 %v1178_v48, %v1030_v35  ;;  %v829_v48 = vadd.f32 %v828_v55, %v715_v43  ;;  %v1634_v55 = vld [vmem:[#allocation2 + $0xd8] sm:$0xff] }
 0x1c3   : > { %v990_v57 = vpop.f32.mrf.mxu2  ;;  %v831_v52 = vpop.f32.mrf.mxu1 }
 0x1c4   : > { %5791 = vst [vmem:[#allocation25_spill] sm:$0xff] %v5058_v47  ;;  %v718_v20 = vpop.f32.mrf.mxu0  ;;  %v1032_v6 = vadd.f32 %v990_v57, %v829_v48 }
 0x1c6   : > { %1909 = vmatmul.f32.gmra.mxu3 %v1824_v7  ;;  %1526 = vmatmul.f32.gmra.mxu1 %v5060_v21 }
 0x1c7   : > { %1332 = vmatmul.f32.gmra.mxu0 %v1824_v7 }
 0x1c8   : > { %1721 = vmatmul.f32.gmra.mxu2 %v1632_v50  ;;  %v2050_v50 = vld [vmem:[#allocation7 + $0x448] sm:$0xff] }
 0x1c9   : > { %v1181_v4 = vpop.f32.mrf.mxu3  ;;  %2063 = vmatpush.msra.mxu0 %v2050_v50  ;;  %v1635_v50 = vld [vmem:[#allocation2 + $0xe0] sm:$0xff] }
 0x1ca   : > { %v5063_v37 = vadd.f32 %v1181_v4, %v1031_v24  ;;  %v1826_v24 = vld [vmem:[#allocation2 + $0xc1] sm:$0xff] }
 0x1cb   : > { %v993_v49 = vpop.f32.mrf.mxu2  ;;  %v834_v47 = vpop.f32.mrf.mxu1 }
 0x1cc   : > { %5792 = vst [vmem:[#allocation26_spill] sm:$0xff] %v5063_v37  ;;  %v721_v35 = vpop.f32.mrf.mxu0  ;;  %v832_v37 = vadd.f32 %v831_v52, %v718_v20  ;;  %v5075_v20 = vld [vmem:[#allocation2 + $0xca] sm:$0xff]  ;;  %v748_v52 = vadd.f32 %v4912_v11, %v4910_v10 }
 0x1cd   : > { %v1636_v11 = vld [vmem:[#allocation2 + $0xf0] sm:$0xff] }
 0x1ce   : > { %1912 = vmatmul.f32.gmra.mxu3 %v1825_v63  ;;  %1529 = vmatmul.f32.gmra.mxu1 %v5065_v19  ;;  %v1033_v2 = vadd.f32 %v993_v49, %v832_v37  ;;  %v1005_v49 = vadd.f32 %v4915_v16, %v748_v52  ;;  %v751_v16 = vadd.f32 %v4920_v18, %v4918_v17 }
 0x1cf   : > { %1335 = vmatmul.f32.gmra.mxu0 %v1825_v63 }
 0x1d0   : > { %1724 = vmatmul.f32.gmra.mxu2 %v1633_v8  ;;  %v1827_v8 = vld [vmem:[#allocation2 + $0xc9] sm:$0xff] }
 0x1d1   : > { %v1184_v36 = vpop.f32.mrf.mxu3 }
 0x1d2   : > { %v5068_v7 = vadd.f32 %v1184_v36, %v1032_v6  ;;  %v835_v36 = vadd.f32 %v834_v47, %v721_v35  ;;  %v2049_v47 = vld [vmem:[#allocation7 + $0x440] sm:$0xff]  ;;  %v1199_v35 = vadd.f32 %v4928_v31, %v1005_v49 }
 0x1d3   : > { %v996_v15 = vpop.f32.mrf.mxu2  ;;  %v837_v43 = vpop.f32.mrf.mxu1  ;;  %2064 = vmatpush.msra.mxu0 %v2049_v47  ;;  %v1829_v49 = vld [vmem:[#allocation2 + $0xe1] sm:$0xff] }
 0x1d4   : > { %5793 = vst [vmem:[#allocation27_spill] sm:$0xff] %v5068_v7  ;;  %v724_v4 = vpop.f32.mrf.mxu0  ;;  %v1034_v37 = vadd.f32 %v996_v15, %v835_v36  ;;  %v5084_v15 = vld [vmem:[#allocation2 + $0xda] sm:$0xff] }
 0x1d5   : > { %v838_v45 = vadd.f32 %v837_v43, %v724_v4 }
 0x1d6   : > { %1915 = vmatmul.f32.gmra.mxu3 %v1826_v24  ;;  %1532 = vmatmul.f32.gmra.mxu1 %v5070_v34 }
 0x1d7   : > { %1338 = vmatmul.f32.gmra.mxu0 %v1826_v24 }
 0x1d8   : > { %1727 = vmatmul.f32.gmra.mxu2 %v1634_v55 }
 0x1d9   : > { %v1187_v57 = vpop.f32.mrf.mxu3 }
 0x1da   : > { %v5073_v63 = vadd.f32 %v1187_v57, %v1033_v2  ;;  %v1828_v57 = vld [vmem:[#allocation2 + $0xd9] sm:$0xff] }
 0x1db   : > { %v999_v48 = vpop.f32.mrf.mxu2  ;;  %v840_v7 = vpop.f32.mrf.mxu1 }
 0x1dc   : > { %5794 = vst [vmem:[#allocation28_spill] sm:$0xff] %v5073_v63  ;;  %v727_v6 = vpop.f32.mrf.mxu0  ;;  %v1035_v36 = vadd.f32 %v999_v48, %v838_v45  ;;  %v5093_v45 = vld [vmem:[#allocation2 + $0xe2] sm:$0xff] }
 0x1dd   : > { %v841_v17 = vadd.f32 %v840_v7, %v727_v6 }
 0x1de   : > { %1918 = vmatmul.f32.gmra.mxu3 %v1827_v8  ;;  %1535 = vmatmul.f32.gmra.mxu1 %v5075_v20 }
 0x1df   : > { %1341 = vmatmul.f32.gmra.mxu0 %v1827_v8 }
 0x1e0   : > { %1730 = vmatmul.f32.gmra.mxu2 %v1635_v50  ;;  %v1006_v50 = vadd.f32 %v4924_v23, %v751_v16  ;;  %v1830_v16 = vld [vmem:[#allocation2 + $0xf1] sm:$0xff] }
 0x1e1   : > { %v1190_v2 = vpop.f32.mrf.mxu3 }
 0x1e2   : > { %v5081_v24 = vadd.f32 %v1190_v2, %v1034_v37  ;;  %v1200_v43 = vadd.f32 %v4932_v39, %v1006_v50  ;;  %v5098_v50 = vld [vmem:[#allocation2 + $0xf2] sm:$0xff] }
 0x1e3   : > { %v1002_v55 = vpop.f32.mrf.mxu2  ;;  %v1491_v10 = vpop.f32.mrf.mxu1 }
 0x1e4   : > { %5795 = vst [vmem:[#allocation29_spill] sm:$0xff] %v5081_v24  ;;  %v1297_v63 = vpop.f32.mrf.mxu0  ;;  %v1036_v23 = vadd.f32 %v1002_v55, %v841_v17 }
 0x1e5   : > { %v1393_v8 = vadd.f32 %v1297_v63, %v1199_v35  ;;  %v1637_v63 = vld [vmem:[#allocation2 + $0xf8] sm:$0xff] }
 0x1e6   : > { %1921 = vmatmul.f32.gmra.mxu3 %v1828_v57  ;;  %1538 = vmatmul.f32.gmra.mxu1 %v5084_v15 }
 0x1e7   : > { %1344 = vmatmul.f32.gmra.mxu0 %v1828_v57  ;;  %v1587_v52 = vadd.f32 %v1491_v10, %v1393_v8 }
 0x1e8   : > { %1733 = vmatmul.f32.gmra.mxu2 %v1636_v11  ;;  %v2048_v11 = vld [vmem:[#allocation7 + $0x438] sm:$0xff] }
 0x1e9   : > { %v1193_v31 = vpop.f32.mrf.mxu3  ;;  %2065 = vmatpush.msra.mxu0 %v2048_v11  ;;  %v1832_v11 = vld [vmem:[#allocation2 + $0x109] sm:$0xff] }
 0x1ea   : > { %v5090_v37 = vadd.f32 %v1193_v31, %v1035_v36  ;;  %v1638_v36 = vld [vmem:[#allocation2 + $0x108] sm:$0xff] }
 0x1eb   : > { %v1686_v4 = vpop.f32.mrf.mxu2  ;;  %v1494_v18 = vpop.f32.mrf.mxu1 }
 0x1ec   : > { %5796 = vst [vmem:[#allocation30_spill] sm:$0xff] %v5090_v37  ;;  %v1782_v2 = vadd.f32 %v1686_v4, %v1587_v52  ;;  %v1300_v47 = vpop.f32.mrf.mxu0  ;;  %v2832_v37 = vld [vmem:[#allocation10 + $0x48] sm:$0xff] }
 0x1ed   : > { %v1394_v48 = vadd.f32 %v1300_v47, %v1200_v43 }
 0x1ee   : > { %1924 = vmatmul.f32.gmra.mxu3 %v1829_v49  ;;  %1541 = vmatmul.f32.gmra.mxu1 %v5093_v45 }
 0x1ef   : > { %1347 = vmatmul.f32.gmra.mxu0 %v1829_v49  ;;  %v1588_v57 = vadd.f32 %v1494_v18, %v1394_v48  ;;  %v1831_v49 = vld [vmem:[#allocation2 + $0xf9] sm:$0xff] }
 0x1f0   : > { %1736 = vmatmul.f32.gmra.mxu2 %v1637_v63  ;;  %v1639_v63 = vld [vmem:[#allocation2 + $0x110] sm:$0xff]  ;;  %v5104_v48 = vld [vmem:[#allocation2 + $0xfa] sm:$0xff] }
 0x1f1   : > { %v1196_v35 = vpop.f32.mrf.mxu3 }
 0x1f2   : > { %v5096_v10 = vadd.f32 %v1196_v35, %v1036_v23 }
 0x1f3   : > { %v1689_v39 = vpop.f32.mrf.mxu2  ;;  %v1497_v6 = vpop.f32.mrf.mxu1 }
 0x1f4   : > { %5797 = vst [vmem:[#allocation31_spill] sm:$0xff] %v5096_v10  ;;  %v1783_v8 = vadd.f32 %v1689_v39, %v1588_v57  ;;  %v1303_v7 = vpop.f32.mrf.mxu0  ;;  %v2047_v39 = vld [vmem:[#allocation7 + $0x430] sm:$0xff] }
 0x1f5   : > { %v1395_v55 = vadd.f32 %v1303_v7, %v4936_v51  ;;  %2066 = vmatpush.msra.mxu0 %v2047_v39 }
 0x1f6   : > { %1927 = vmatmul.f32.gmra.mxu3 %v1830_v16  ;;  %1544 = vmatmul.f32.gmra.mxu1 %v5098_v50 }
 0x1f7   : > { %1350 = vmatmul.f32.gmra.mxu0 %v1830_v16  ;;  %v1589_v52 = vadd.f32 %v1497_v6, %v1395_v55  ;;  %v5110_v55 = vld [vmem:[#allocation2 + $0x10a] sm:$0xff] }
 0x1f8   : > { %1739 = vmatmul.f32.gmra.mxu2 %v1638_v36  ;;  %v1640_v36 = vld [vmem:[#allocation2 + $0x120] sm:$0xff] }
 0x1f9   : > { %v1880_v31 = vpop.f32.mrf.mxu3 }
 0x1fa   : > { %v5102_v4 = vadd.f32 %v1880_v31, %v1782_v2 }
 0x1fb   : > { %v1692_v43 = vpop.f32.mrf.mxu2  ;;  %v1500_v18 = vpop.f32.mrf.mxu1 }
 0x1fc   : > { %v1784_v47 = vadd.f32 %v1692_v43, %v1589_v52  ;;  %v1306_v17 = vpop.f32.mrf.mxu0 }
 0x1fd   : > { %v1396_v23 = vadd.f32 %v1306_v17, %v4940_v62 }
 0x1fe   : > { %1930 = vmatmul.f32.gmra.mxu3 %v1831_v49  ;;  %1547 = vmatmul.f32.gmra.mxu1 %v5104_v48 }
 0x1ff   : > { %1353 = vmatmul.f32.gmra.mxu0 %v1831_v49  ;;  %v1590_v35 = vadd.f32 %v1500_v18, %v1396_v23  ;;  %v1833_v49 = vld [vmem:[#allocation2 + $0x111] sm:$0xff]  ;;  %v1641_v23 = vld [vmem:[#allocation2 + $0x128] sm:$0xff] }
 0x200   : > { %1742 = vmatmul.f32.gmra.mxu2 %v1639_v63 }
 0x201   : > { %v1883_v51 = vpop.f32.mrf.mxu3 }
 0x202   : > { %v5108_v57 = vadd.f32 %v1883_v51, %v1783_v8  ;;  %v5116_v51 = vld [vmem:[#allocation2 + $0x112] sm:$0xff] }
 0x203   : > { %v1695_v2 = vpop.f32.mrf.mxu2  ;;  %v1503_v6 = vpop.f32.mrf.mxu1 }
 0x204   : > { %v1785_v16 = vadd.f32 %v1695_v2, %v1590_v35  ;;  %v1309_v7 = vpop.f32.mrf.mxu0 }
 0x205   : > { %v1397_v62 = vadd.f32 %v1309_v7, %v4944_v13  ;;  %v1834_v7 = vld [vmem:[#allocation2 + $0x121] sm:$0xff] }
 0x206   : > { %1933 = vmatmul.f32.gmra.mxu3 %v1832_v11  ;;  %1550 = vmatmul.f32.gmra.mxu1 %v5110_v55 }
 0x207   : > { %1356 = vmatmul.f32.gmra.mxu0 %v1832_v11  ;;  %v1591_v8 = vadd.f32 %v1503_v6, %v1397_v62  ;;  %v2046_v11 = vld [vmem:[#allocation7 + $0x428] sm:$0xff] }
 0x208   : > { %1745 = vmatmul.f32.gmra.mxu2 %v1640_v36  ;;  %2067 = vmatpush.msra.mxu0 %v2046_v11 }
 0x209   : > { %v1886_v31 = vpop.f32.mrf.mxu3 }
 0x20a   : > { %v5114_v52 = vadd.f32 %v1886_v31, %v1784_v47  ;;  %v1642_v31 = vld [vmem:[#allocation2 + $0x138] sm:$0xff] }
 0x20b   : > { %v1698_v43 = vpop.f32.mrf.mxu2  ;;  %v1506_v63 = vpop.f32.mrf.mxu1 }
 0x20c   : > { %v1786_v17 = vadd.f32 %v1698_v43, %v1591_v8  ;;  %v1312_v18 = vpop.f32.mrf.mxu0  ;;  %v5122_v8 = vld [vmem:[#allocation2 + $0x122] sm:$0xff] }
 0x20d   : > { %v1398_v35 = vadd.f32 %v1312_v18, %v4948_v27 }
 0x20e   : > { %1936 = vmatmul.f32.gmra.mxu3 %v1833_v49  ;;  %1553 = vmatmul.f32.gmra.mxu1 %v5116_v51 }
 0x20f   : > { %1359 = vmatmul.f32.gmra.mxu0 %v1833_v49  ;;  %v1592_v2 = vadd.f32 %v1506_v63, %v1398_v35  ;;  %v1835_v63 = vld [vmem:[#allocation2 + $0x129] sm:$0xff] }
 0x210   : > { %1748 = vmatmul.f32.gmra.mxu2 %v1641_v23 }
 0x211   : > { %v1889_v13 = vpop.f32.mrf.mxu3 }
 0x212   : > { %v5120_v39 = vadd.f32 %v1889_v13, %v1785_v16  ;;  %v1643_v13 = vld [vmem:[#allocation2 + $0x140] sm:$0xff] }
 0x213   : > { %v1701_v47 = vpop.f32.mrf.mxu2  ;;  %v1509_v62 = vpop.f32.mrf.mxu1 }
 0x214   : > { %v1787_v6 = vadd.f32 %v1701_v47, %v1592_v2  ;;  %v1315_v36 = vpop.f32.mrf.mxu0  ;;  %v1448_v2 = vld [vmem:[#allocation2 + $0x12a] sm:$0xff] }
 0x215   : > { %v1399_v27 = vadd.f32 %v1315_v36, %v4952_v41 }
 0x216   : > { %1939 = vmatmul.f32.gmra.mxu3 %v1834_v7  ;;  %1556 = vmatmul.f32.gmra.mxu1 %v5122_v8 }
 0x217   : > { %1362 = vmatmul.f32.gmra.mxu0 %v1834_v7  ;;  %v1593_v16 = vadd.f32 %v1509_v62, %v1399_v27 }
 0x218   : > { %1751 = vmatmul.f32.gmra.mxu2 %v1642_v31  ;;  %v1836_v31 = vld [vmem:[#allocation2 + $0x139] sm:$0xff] }
 0x219   : > { %v1892_v43 = vpop.f32.mrf.mxu3 }
 0x21a   : > { %v5126_v49 = vadd.f32 %v1892_v43, %v1786_v17  ;;  %v2045_v17 = vld [vmem:[#allocation7 + $0x420] sm:$0xff] }
 0x21b   : > { %v1704_v18 = vpop.f32.mrf.mxu2  ;;  %v1512_v11 = vpop.f32.mrf.mxu1  ;;  %2068 = vmatpush.msra.mxu0 %v2045_v17  ;;  %v1646_v17 = vld [vmem:[#allocation2 + $0x168] sm:$0xff] }
 0x21c   : > { %v1788_v23 = vadd.f32 %v1704_v18, %v1593_v16  ;;  %v1318_v35 = vpop.f32.mrf.mxu0  ;;  %v1644_v16 = vld [vmem:[#allocation2 + $0x150] sm:$0xff]  ;;  %v1449_v18 = vld [vmem:[#allocation2 + $0x13a] sm:$0xff] }
 0x21d   : > { %v1400_v47 = vadd.f32 %v1318_v35, %v4956_v53  ;;  %v1837_v35 = vld [vmem:[#allocation2 + $0x141] sm:$0xff] }
 0x21e   : > { %1942 = vmatmul.f32.gmra.mxu3 %v1835_v63  ;;  %1559 = vmatmul.f32.gmra.mxu1 %v1448_v2  ;;  %v1450_v2 = vld [vmem:[#allocation2 + $0x142] sm:$0xff] }
 0x21f   : > { %1365 = vmatmul.f32.gmra.mxu0 %v1835_v63  ;;  %v1594_v7 = vadd.f32 %v1512_v11, %v1400_v47 }
 0x220   : > { %1754 = vmatmul.f32.gmra.mxu2 %v1643_v13 }
 0x221   : > { %v1895_v41 = vpop.f32.mrf.mxu3 }
 0x222   : > { %v5129_v36 = vadd.f32 %v1895_v41, %v1787_v6  ;;  %v1645_v6 = vld [vmem:[#allocation2 + $0x158] sm:$0xff] }
 0x223   : > { %v1707_v62 = vpop.f32.mrf.mxu2  ;;  %v2044_v41 = vld [vmem:[#allocation7 + $0x418] sm:$0xff] }
 0x224   : > { %v1789_v27 = vadd.f32 %v1707_v62, %v1594_v7  ;;  %v5131_v43 = vpop.f32.mrf.mxu0  ;;  %v1838_v7 = vld [vmem:[#allocation2 + $0x151] sm:$0xff]  ;;  %2069 = vmatpush.msra.mxu0 %v2044_v41 }
 0x226   : > { %1945 = vmatmul.f32.gmra.mxu3 %v1836_v31  ;;  %1562 = vmatmul.f32.gmra.mxu1 %v1449_v18  ;;  %v1647_v18 = vld [vmem:[#allocation2 + $0x170] sm:$0xff] }
 0x227   : > { %1368 = vmatmul.f32.gmra.mxu0 %v1836_v31  ;;  %v1839_v31 = vld [vmem:[#allocation2 + $0x159] sm:$0xff] }
 0x228   : > { %1757 = vmatmul.f32.gmra.mxu2 %v1644_v16 }
 0x229   : > { %v1898_v53 = vpop.f32.mrf.mxu3 }
 0x22a   : > { %v5133_v63 = vadd.f32 %v1898_v53, %v1788_v23  ;;  %v1451_v23 = vld [vmem:[#allocation2 + $0x152] sm:$0xff]  ;;  %v1452_v53 = vld [vmem:[#allocation2 + $0x15a] sm:$0xff] }
 0x22c   : > { %v5135_v13 = vpop.f32.mrf.mxu0 }
 0x22e   : > { %1948 = vmatmul.f32.gmra.mxu3 %v1837_v35  ;;  %1565 = vmatmul.f32.gmra.mxu1 %v1450_v2  ;;  %v1648_v2 = vld [vmem:[#allocation2 + $0x180] sm:$0xff] }
 0x22f   : > { %1371 = vmatmul.f32.gmra.mxu0 %v1837_v35  ;;  %v1840_v35 = vld [vmem:[#allocation2 + $0x169] sm:$0xff] }
 0x230   : > { %1760 = vmatmul.f32.gmra.mxu2 %v1645_v6 }
 0x231   : > { %v1901_v47 = vpop.f32.mrf.mxu3 }
 0x232   : > { %v5137_v11 = vadd.f32 %v1901_v47, %v1789_v27  ;;  %v2043_v27 = vld [vmem:[#allocation7 + $0x410] sm:$0xff] }
 0x233   : > { %2070 = vmatpush.msra.mxu0 %v2043_v27  ;;  %v1453_v47 = vld [vmem:[#allocation2 + $0x16a] sm:$0xff]  ;;  %v1455_v27 = vld [vmem:[#allocation2 + $0x182] sm:$0xff] }
 0x234   : > { %v5139_v62 = vpop.f32.mrf.mxu0 }
 0x236   : > { %1951 = vmatmul.f32.gmra.mxu3 %v1838_v7  ;;  %1568 = vmatmul.f32.gmra.mxu1 %v1451_v23  ;;  %v2042_v23 = vld [vmem:[#allocation7 + $0x408] sm:$0xff] }
 0x237   : > { %1374 = vmatmul.f32.gmra.mxu0 %v1838_v7  ;;  %v1260_v7 = vld [vmem:[#allocation2 + $0x171] sm:$0xff] }
 0x238   : > { %1763 = vmatmul.f32.gmra.mxu2 %v1646_v17  ;;  %v1454_v17 = vld [vmem:[#allocation2 + $0x172] sm:$0xff]  ;;  %2071 = vmatpush.msra.mxu0 %v2042_v23 }
 0x23c   : > { %v5141_v16 = vpop.f32.mrf.mxu0 }
 0x23e   : > { %1954 = vmatmul.f32.gmra.mxu3 %v1839_v31  ;;  %1571 = vmatmul.f32.gmra.mxu1 %v1452_v53 }
 0x23f   : > { %1377 = vmatmul.f32.gmra.mxu0 %v1839_v31  ;;  %v2041_v31 = vld [vmem:[#allocation7 + $0x400] sm:$0xff] }
 0x240   : > { %1766 = vmatmul.f32.gmra.mxu2 %v1647_v18  ;;  %v1842_v18 = vld [vmem:[#allocation2 + $0x181] sm:$0xff]  ;;  %2072 = vmatpush.msra.mxu0 %v2041_v31 }
 0x244   : > { %v5143_v6 = vpop.f32.mrf.mxu0 }
 0x246   : > { %1957 = vmatmul.f32.gmra.mxu3 %v1840_v35  ;;  %1574 = vmatmul.f32.gmra.mxu1 %v1453_v47  ;;  %v1844_v47 = vld [vmem:[#allocation2 + $0x199] sm:$0xff] }
 0x247   : > { %1380 = vmatmul.f32.gmra.mxu0 %v1840_v35  ;;  %v5151_v35 = vld [vmem:[#allocation2] sm:$0xff] }
 0x248   : > { %1769 = vmatmul.f32.gmra.mxu2 %v1648_v2 }
 0x24c   : > { %v5145_v41 = vpop.f32.mrf.mxu0 }
 0x24e   : > { %1960 = vmatmul.f32.gmra.mxu3 %v4996_v61  ;;  %1577 = vmatmul.f32.gmra.mxu1 %v1454_v17  ;;  %v1843_v61 = vld [vmem:[#allocation2 + $0x189] sm:$0xff]  ;;  %v1845_v17 = vld [vmem:[#allocation2 + $0x1a1] sm:$0xff] }
 0x24f   : > { %1383 = vmatmul.f32.gmra.mxu0 %v1260_v7 }
 0x250   : > { %1772 = vmatmul.f32.gmra.mxu2 %v5005_v30  ;;  %v1456_v30 = vld [vmem:[#allocation2 + $0x18a] sm:$0xff] }
 0x254   : > { %v5149_v53 = vpop.f32.mrf.mxu0 }
 0x256   : > { %1963 = vmatmul.f32.gmra.mxu3 %v1842_v18  ;;  %1580 = vmatmul.f32.gmra.mxu1 %v1455_v27 }
 0x257   : > { %1386 = vmatmul.f32.gmra.mxu0 %v1842_v18 }
 0x258   : > { %1775 = vmatmul.f32.gmra.mxu2 %v5151_v35 }
 0x25c   : > { %v5154_v2 = vpop.f32.mrf.mxu0 }
 0x25e   : > { %1966 = vmatmul.f32.gmra.mxu3 %v1843_v61  ;;  %1583 = vmatmul.f32.gmra.mxu1 %v1456_v30  ;;  %v2970_v30 = vld [vmem:[#allocation10 + $0x178] sm:$0xff] }
 0x25f   : > { %1389 = vmatmul.f32.gmra.mxu0 %v1843_v61  ;;  %2971 = vmatpush.msra.mxu3 %v2970_v30  ;;  %v2861_v30 = vld [vmem:[#allocation10 + $0xe8] sm:$0xff] }
 0x260   : > { %1778 = vmatmul.f32.gmra.mxu2 %v5151_v35 }
 0x264   : > { %v5157_v7 = vpop.f32.mrf.mxu0 }
 0x266   : > { %1969 = vmatmul.f32.gmra.mxu3 %v1844_v47  ;;  %v2863_v47 = vld [vmem:[#allocation10 + $0xf8] sm:$0xff] }
 0x267   : > { %2073 = vmatmul.f32.vlgmr.msra.gmra.mxu0 %v5010_v56  ;;  %2864 = vmatpush.msra.mxu1 %v2863_v47 }
 0x26c   : > { %v5160_v23 = vpop.f32.mrf.mxu0 }
 0x26d   : > { %5798 = vst [vmem:[#allocation32_spill] sm:$0xff] %v5160_v23 }
 0x26e   : > { %1972 = vmatmul.f32.gmra.mxu3 %v1845_v17  ;;  %v2862_v17 = vld [vmem:[#allocation10 + $0xf0] sm:$0xff] }
 0x26f   : > { %2076 = vmatmul.f32.gmra.mxu0 %v5015_v5  ;;  %2865 = vmatpush.msra.mxu1 %v2862_v17  ;;  %v2860_v17 = vld [vmem:[#allocation10 + $0xe0] sm:$0xff] }
 0x271   : > { %2866 = vmatpush.msra.mxu1 %v2861_v30  ;;  %v2966_v30 = vld [vmem:[#allocation10 + $0x158] sm:$0xff] }
 0x273   : > { %2867 = vmatpush.msra.mxu1 %v2860_v17 }
 0x274   : > { %v5163_v31 = vpop.f32.mrf.mxu0 }
 0x275   : > { %5799 = vst [vmem:[#allocation33_spill] sm:$0xff] %v5163_v31 }
 0x277   : > { %2079 = vmatmul.f32.gmra.mxu0 %v5020_v26 }
 0x27c   : > { %v5166_v18 = vpop.f32.mrf.mxu0 }
 0x27d   : > { %5800 = vst [vmem:[#allocation34_spill] sm:$0xff] %v5166_v18 }
 0x27f   : > { %2082 = vmatmul.f32.gmra.mxu0 %v5025_v40  ;;  %v2838_v40 = vld [vmem:[#allocation10 + $0x78] sm:$0xff] }
 0x280   : > { %2905 = vmatpush.msra.mxu2 %v2838_v40  ;;  %v2836_v40 = vld [vmem:[#allocation10 + $0x68] sm:$0xff] }
 0x284   : > { %v5169_v27 = vpop.f32.mrf.mxu0 }
 0x285   : > { %5801 = vst [vmem:[#allocation35_spill] sm:$0xff] %v5169_v27 }
 0x287   : > { %2085 = vmatmul.f32.gmra.mxu0 %v5030_v60 }
 0x28c   : > { %v5172_v61 = vpop.f32.mrf.mxu0 }
 0x28d   : > { %5802 = vst [vmem:[#allocation36_spill] sm:$0xff] %v5172_v61 }
 0x28f   : > { %2088 = vmatmul.f32.gmra.mxu0 %v5035_v14 }
 0x294   : > { %v5175_v56 = vpop.f32.mrf.mxu0 }
 0x295   : > { %5803 = vst [vmem:[#allocation37_spill] sm:$0xff] %v5175_v56 }
 0x297   : > { %2091 = vmatmul.f32.gmra.mxu0 %v5040_v38  ;;  %v2837_v38 = vld [vmem:[#allocation10 + $0x70] sm:$0xff] }
 0x298   : > { %2906 = vmatpush.msra.mxu2 %v2837_v38 }
 0x29a   : > { %2907 = vmatpush.msra.mxu2 %v2836_v40 }
 0x29c   : > { %v5178_v5 = vpop.f32.mrf.mxu0 }
 0x29d   : > { %5804 = vst [vmem:[#allocation38_spill] sm:$0xff] %v5178_v5 }
 0x29f   : > { %2094 = vmatmul.f32.gmra.mxu0 %v5045_v54  ;;  %v2969_v54 = vld [vmem:[#allocation10 + $0x170] sm:$0xff] }
 0x2a0   : > { %2972 = vmatpush.msra.mxu3 %v2969_v54  ;;  %v2967_v54 = vld [vmem:[#allocation10 + $0x160] sm:$0xff] }
 0x2a4   : > { %v5181_v26 = vpop.f32.mrf.mxu0 }
 0x2a5   : > { %5805 = vst [vmem:[#allocation39_spill] sm:$0xff] %v5181_v26 }
 0x2a7   : > { %2097 = vmatmul.f32.gmra.mxu0 %v5050_v28 }
 0x2ac   : > { %v5184_v60 = vpop.f32.mrf.mxu0 }
 0x2ad   : > { %5806 = vst [vmem:[#allocation40_spill] sm:$0xff] %v5184_v60 }
 0x2af   : > { %2100 = vmatmul.f32.gmra.mxu0 %v5055_v33  ;;  %v2968_v33 = vld [vmem:[#allocation10 + $0x168] sm:$0xff] }
 0x2b0   : > { %2973 = vmatpush.msra.mxu3 %v2968_v33  ;;  %v2859_v33 = vld [vmem:[#allocation10 + $0xd8] sm:$0xff] }
 0x2b1   : > { %2868 = vmatpush.msra.mxu1 %v2859_v33  ;;  %v2831_v33 = vld [vmem:[#allocation10 + $0x40] sm:$0xff] }
 0x2b2   : > { %2974 = vmatpush.msra.mxu3 %v2967_v54  ;;  %v2965_v54 = vld [vmem:[#allocation10 + $0x150] sm:$0xff] }
 0x2b4   : > { %v5187_v14 = vpop.f32.mrf.mxu0  ;;  %2975 = vmatpush.msra.mxu3 %v2966_v30 }
 0x2b5   : > { %5807 = vst [vmem:[#allocation41_spill] sm:$0xff] %v5187_v14 }
 0x2b6   : > { %2976 = vmatpush.msra.mxu3 %v2965_v54  ;;  %v2961_v54 = vld [vmem:[#allocation10 + $0x130] sm:$0xff] }
 0x2b7   : > { %2103 = vmatmul.f32.gmra.mxu0 %v5060_v21 }
 0x2bc   : > { %v5190_v10 = vpop.f32.mrf.mxu0 }
 0x2bd   : > { %5808 = vst [vmem:[#allocation42_spill] sm:$0xff] %v5190_v10 }
 0x2bf   : > { %2106 = vmatmul.f32.gmra.mxu0 %v5065_v19  ;;  %v2835_v19 = vld [vmem:[#allocation10 + $0x60] sm:$0xff] }
 0x2c0   : > { %2908 = vmatpush.msra.mxu2 %v2835_v19  ;;  %v2833_v19 = vld [vmem:[#allocation10 + $0x50] sm:$0xff] }
 0x2c4   : > { %v5193_v28 = vpop.f32.mrf.mxu0 }
 0x2c5   : > { %5809 = vst [vmem:[#allocation43_spill] sm:$0xff] %v5193_v28 }
 0x2c7   : > { %2109 = vmatmul.f32.gmra.mxu0 %v5070_v34  ;;  %v5208_v34 = vld [vmem:[%s5767_s2] ss:$0 sm:$0xff] }
 0x2cc   : > { %v5196_v47 = vpop.f32.mrf.mxu0 }
 0x2cd   : > { %5810 = vst [vmem:[#allocation44_spill] sm:$0xff] %v5196_v47 }
 0x2cf   : > { %2112 = vmatmul.f32.gmra.mxu0 %v5075_v20 }
 0x2d4   : > { %v5199_v21 = vpop.f32.mrf.mxu0 }
 0x2d5   : > { %5811 = vst [vmem:[#allocation45_spill] sm:$0xff] %v5199_v21  ;;  %v2857_v21 = vld [vmem:[#allocation10 + $0xc8] sm:$0xff] }
 0x2d7   : > { %2115 = vmatmul.f32.gmra.mxu0 %v5084_v15  ;;  %v2834_v15 = vld [vmem:[#allocation10 + $0x58] sm:$0xff] }
 0x2d8   : > { %2909 = vmatpush.msra.mxu2 %v2834_v15 }
 0x2da   : > { %2910 = vmatpush.msra.mxu2 %v2833_v19  ;;  %v2962_v19 = vld [vmem:[#allocation10 + $0x138] sm:$0xff] }
 0x2dc   : > { %v5202_v38 = vpop.f32.mrf.mxu0  ;;  %2911 = vmatpush.msra.mxu2 %v2832_v37  ;;  %v2829_v37 = vld [vmem:[#allocation10 + $0x30] sm:$0xff] }
 0x2dd   : > { %5812 = vst [vmem:[#allocation46_spill] sm:$0xff] %v5202_v38 }
 0x2de   : > { %2912 = vmatpush.msra.mxu2 %v2831_v33  ;;  %v2828_v33 = vld [vmem:[#allocation10 + $0x28] sm:$0xff] }
 0x2df   : > { %2118 = vmatmul.f32.gmra.mxu0 %v5093_v45  ;;  %v2858_v45 = vld [vmem:[#allocation10 + $0xd0] sm:$0xff] }
 0x2e0   : > { %2869 = vmatpush.msra.mxu1 %v2858_v45  ;;  %v2830_v45 = vld [vmem:[#allocation10 + $0x38] sm:$0xff] }
 0x2e1   : > { %2913 = vmatpush.msra.mxu2 %v2830_v45  ;;  %v2852_v45 = vld [vmem:[#allocation10 + $0xa0] sm:$0xff] }
 0x2e2   : > { %2870 = vmatpush.msra.mxu1 %v2857_v21  ;;  %v2854_v21 = vld [vmem:[#allocation10 + $0xb0] sm:$0xff] }
 0x2e3   : > { %2914 = vmatpush.msra.mxu2 %v2829_v37  ;;  %v2826_v37 = vld [vmem:[#allocation10 + $0x18] sm:$0xff] }
 0x2e4   : > { %v2074_v20 = vpop.f32.mrf.mxu0 }
 0x2e5   : > { %v2170_v40 = vadd.f32 %v2074_v20, %v5102_v4  ;;  %v2964_v4 = vld [vmem:[#allocation10 + $0x148] sm:$0xff]  ;;  %v2856_v20 = vld [vmem:[#allocation10 + $0xc0] sm:$0xff]  ;;  %2915 = vmatpush.msra.mxu2 %v2828_v33  ;;  %v2957_v33 = vld [vmem:[#allocation10 + $0x110] sm:$0xff] }
 0x2e6   : > { %2977 = vmatpush.msra.mxu3 %v2964_v4  ;;  %2871 = vmatpush.msra.mxu1 %v2856_v20 }
 0x2e7   : > { %v2206_v38 = vadd.f32 %v5208_v34, %v2170_v40  ;;  %2121 = vmatmul.f32.gmra.mxu0 %v5098_v50  ;;  %v2963_v40 = vld [vmem:[#allocation10 + $0x140] sm:$0xff]  ;;  %v5213_v50 = vpop.f32.mrf.mxu1 }
 0x2e8   : > { %2978 = vmatpush.msra.mxu3 %v2963_v40  ;;  %v2960_v40 = vld [vmem:[#allocation10 + $0x128] sm:$0xff] }
 0x2e9   : > { %v2238_v17 = vmax.f32 %v2206_v38, 0.0  ;;  %v2855_v38 = vld [vmem:[#allocation10 + $0xb8] sm:$0xff] }
 0x2ea   : > { %2872 = vmatpush.msra.mxu1 %v2855_v38  ;;  %2979 = vmatpush.msra.mxu3 %v2962_v19  ;;  %v2959_v19 = vld [vmem:[#allocation10 + $0x120] sm:$0xff] }
 0x2eb   : > { %2270 = vst [vmem:[#allocation3] sm:$0xff] %v2238_v17  ;;  %v5216_v17 = vpop.f32.mrf.mxu2 }
 0x2ec   : > { %v2077_v15 = vpop.f32.mrf.mxu0  ;;  %2873 = vmatpush.msra.mxu1 %v2854_v21  ;;  %2980 = vmatpush.msra.mxu3 %v2961_v54  ;;  %v2851_v21 = vld [vmem:[#allocation10 + $0x98] sm:$0xff] }
 0x2ed   : > { %v2171_v30 = vadd.f32 %v2077_v15, %v5108_v57  ;;  %v2853_v57 = vld [vmem:[#allocation10 + $0xa8] sm:$0xff]  ;;  %v5220_v15 = vpop.f32.mrf.mxu3  ;;  %v2958_v54 = vld [vmem:[#allocation10 + $0x118] sm:$0xff] }
 0x2ee   : > { %2874 = vmatpush.msra.mxu1 %v2853_v57  ;;  %2981 = vmatpush.msra.mxu3 %v2960_v40 }
 0x2ef   : > { %v2207_v4 = vadd.f32 %v5208_v34, %v2171_v30  ;;  %2124 = vmatmul.f32.gmra.mxu0 %v5104_v48  ;;  %v2827_v48 = vld [vmem:[#allocation10 + $0x20] sm:$0xff]  ;;  %v5223_v47 = vpop.f32.mrf.mxu1 }
 0x2f0   : > { %2875 = vmatpush.msra.mxu1 %v2852_v45  ;;  %2916 = vmatpush.msra.mxu2 %v2827_v48  ;;  %v2824_v45 = vld [vmem:[#allocation10 + $0x8] sm:$0xff] }
 0x2f1   : > { %v2239_v20 = vmax.f32 %v2207_v4, 0.0  ;;  %2982 = vmatpush.msra.mxu3 %v2959_v19  ;;  %v2850_v4 = vld [vmem:[#allocation10 + $0x90] sm:$0xff]  ;;  %v2956_v48 = vld [vmem:[#allocation10 + $0x108] sm:$0xff] }
 0x2f2   : > { %2876 = vmatpush.msra.mxu1 %v2851_v21  ;;  %2917 = vmatpush.msra.mxu2 %v2826_v37  ;;  %v2848_v21 = vld [vmem:[#allocation10 + $0x80] sm:$0xff] }
 0x2f3   : > { %2271 = vst [vmem:[#allocation3 + $0x8] sm:$0xff] %v2239_v20  ;;  %v2825_v20 = vld [vmem:[#allocation10 + $0x10] sm:$0xff]  ;;  %2983 = vmatpush.msra.mxu3 %v2958_v54  ;;  %v2823_v37 = vld [vmem:[#allocation10] sm:$0xff] }
 0x2f4   : > { %v2080_v38 = vpop.f32.mrf.mxu0  ;;  %2877 = vmatpush.msra.mxu1 %v2850_v4  ;;  %2918 = vmatpush.msra.mxu2 %v2825_v20  ;;  %v2955_v54 = vld [vmem:[#allocation10 + $0x100] sm:$0xff]  ;;  %v2946_v20 = vld [vmem:[#allocation4 + $0x2] sm:$0xff] }
 0x2f5   : > { %v2172_v30 = vadd.f32 %v2080_v38, %v5114_v52  ;;  %v5227_v52 = vpop.f32.mrf.mxu2  ;;  %v2849_v38 = vld [vmem:[#allocation10 + $0x88] sm:$0xff]  ;;  %2984 = vmatpush.msra.mxu3 %v2957_v33 }
 0x2f6   : > { %2878 = vmatpush.msra.mxu1 %v2849_v38  ;;  %2919 = vmatpush.msra.mxu2 %v2824_v45  ;;  %v2302_v38 = vld [vmem:[#allocation3] sm:$0x1] }
 0x2f7   : > { %v2208_v57 = vadd.f32 %v5208_v34, %v2172_v30  ;;  %2127 = vmatmul.f32.gmra.mxu0 %v5110_v55  ;;  %2985 = vmatpush.msra.mxu3 %v2956_v48  ;;  %v5229_v30 = vpop.f32.mrf.mxu3  ;;  %v5234_v33 = vpop.f32.mrf.mxu1  ;;  %v2383_v48 = vld [vmem:[#allocation3 + $0x3] sm:$0x1] }
 0x2f8   : > { %2879 = vmatpush.msra.mxu1 %v2848_v21  ;;  %2920 = vmatpush.msra.mxu2 %v2823_v37  ;;  %v2447_v21 = vld [vmem:[#allocation3 + $0x5] sm:$0x1] }
 0x2f9   : > { %v2240_v40 = vmax.f32 %v2208_v57, 0.0  ;;  %v2839_v57 = vld [vmem:[#allocation4 + $0x1] sm:$0xff]  ;;  %2986 = vmatpush.msra.mxu3 %v2955_v54  ;;  %2921 = vmatmul.f32.vlgmr.msra.gmra.mxu2 %v5151_v35 }
 0x2fa   : > { %2880 = vmatmul.f32.vlgmr.msra.gmra.mxu1 %v2839_v57  ;;  %2987 = vmatmul.f32.vlgmr.msra.gmra.mxu3 %v2946_v20  ;;  %v2511_v20 = vld [vmem:[#allocation3 + $0x7] sm:$0x1]  ;;  %v2559_v27 = vld [vmem:[#allocation3 + $0x8] sm:$0x1]  ;;  %v2575_v1 = vld [vmem:[#allocation3 + $0x9] sm:$0x1] }
 0x2fb   : > { %2272 = vst [vmem:[#allocation3 + $0x10] sm:$0xff] %v2240_v40  ;;  %v2367_v40 = vld [vmem:[#allocation3 + $0x2] sm:$0x1] }
 0x2fc   : > { %v2083_v19 = vpop.f32.mrf.mxu0 }
 0x2fd   : > { %v2173_v55 = vadd.f32 %v2083_v19, %v5120_v39  ;;  %v2318_v39 = vld [vmem:[#allocation3 + $0x1] sm:$0x1]  ;;  %v5237_v19 = vpop.f32.mrf.mxu2 }
 0x2fe   : > { %v2334_v28 = vmax.f32 %v2302_v38, %v2318_v39  ;;  %v2623_v39 = vld [vmem:[#allocation3 + $0xa] sm:$0x1] }
 0x2ff   : > { %v2209_v4 = vadd.f32 %v5208_v34, %v2173_v55  ;;  %2130 = vmatmul.f32.gmra.mxu0 %v5116_v51  ;;  %v2431_v55 = vld [vmem:[#allocation3 + $0x4] sm:$0x1]  ;;  %v2495_v51 = vld [vmem:[#allocation3 + $0x6] sm:$0x1]  ;;  %v5240_v22 = vpop.f32.mrf.mxu3  ;;  %v5244_v29 = vpop.f32.mrf.mxu1 }
 0x300   : > { %v2463_v38 = vmax.f32 %v2431_v55, %v2447_v21 }
 0x301   : > { %v2241_v45 = vmax.f32 %v2209_v4, 0.0 }
 0x302   : > { %v2303_v37 = vld [vmem:[#allocation3 + $0x10] sm:$0x1]  ;;  %v2319_v24 = vld [vmem:[#allocation3 + $0x11] sm:$0x1]  ;;  %v2368_v54 = vld [vmem:[#allocation3 + $0x12] sm:$0x1] }
 0x303   : > { %2273 = vst [vmem:[#allocation3 + $0x18] sm:$0xff] %v2241_v45  ;;  %v2335_v10 = vmax.f32 %v2303_v37, %v2319_v24  ;;  %v2384_v14 = vld [vmem:[#allocation3 + $0x13] sm:$0x1]  ;;  %v2432_v4 = vld [vmem:[#allocation3 + $0x14] sm:$0x1]  ;;  %v2399_v45 = vmax.f32 %v2367_v40, %v2383_v48 }
 0x304   : > { %v2086_v57 = vpop.f32.mrf.mxu0  ;;  %v2448_v60 = vld [vmem:[#allocation3 + $0x15] sm:$0x1]  ;;  %v2400_v26 = vmax.f32 %v2368_v54, %v2384_v14  ;;  %v2496_v56 = vld [vmem:[#allocation3 + $0x16] sm:$0x1]  ;;  %v2512_v61 = vld [vmem:[#allocation3 + $0x17] sm:$0x1] }
 0x305   : > { %v2174_v35 = vadd.f32 %v2086_v57, %v5126_v49  ;;  %v2464_v5 = vmax.f32 %v2432_v4, %v2448_v60  ;;  %v2528_v18 = vmax.f32 %v2496_v56, %v2512_v61  ;;  %v2350_v24 = vmax.f32 %v2334_v28, %v2335_v10  ;;  %v2639_v37 = vld [vmem:[#allocation3 + $0xb] sm:$0x1]  ;;  %v2687_v49 = vld [vmem:[#allocation3 + $0xc] sm:$0x1]  ;;  %v2703_v14 = vld [vmem:[#allocation3 + $0xd] sm:$0x1] }
 0x306   : > { %v2527_v57 = vmax.f32 %v2495_v51, %v2511_v20  ;;  %v2415_v54 = vmax.f32 %v2399_v45, %v2400_v26  ;;  %v2591_v61 = vmax.f32 %v2559_v27, %v2575_v1  ;;  %v2655_v55 = vmax.f32 %v2623_v39, %v2639_v37  ;;  %v2029_v45 = vld [vmem:[#allocation2 + $0x12a] sm:$0xff] }
 0x307   : > { %v2210_v46 = vadd.f32 %v5208_v34, %v2174_v35  ;;  %2133 = vmatmul.f32.gmra.mxu0 %v5122_v8  ;;  %2359 = vst [vmem:[#allocation4 + $0x11] sm:$0x1] %v2350_v24  ;;  %v2479_v48 = vmax.f32 %v2463_v38, %v2464_v5  ;;  %v2719_v21 = vmax.f32 %v2687_v49, %v2703_v14  ;;  %v5246_v24 = vpop.f32.mrf.mxu2  ;;  %v2751_v5 = vld [vmem:[#allocation3 + $0xe] sm:$0x1]  ;;  %v2767_v38 = vld [vmem:[#allocation3 + $0xf] sm:$0x1] }
 0x308   : > { %v2543_v28 = vmax.f32 %v2527_v57, %v2528_v18  ;;  %2423 = vst [vmem:[#allocation4 + $0x12] sm:$0x1] %v2415_v54  ;;  %v2783_v49 = vmax.f32 %v2751_v5, %v2767_v38  ;;  %v5250_v57 = vpop.f32.mrf.mxu3  ;;  %v5252_v54 = vpop.f32.mrf.mxu1 }
 0x309   : > { %v2242_v60 = vmax.f32 %v2210_v46, 0.0  ;;  %2487 = vst [vmem:[#allocation4 + $0x13] sm:$0x1] %v2479_v48 }
 0x30a   : > { %v2560_v4 = vld [vmem:[#allocation3 + $0x18] sm:$0x1]  ;;  %v2576_v31 = vld [vmem:[#allocation3 + $0x19] sm:$0x1]  ;;  %v2624_v40 = vld [vmem:[#allocation3 + $0x1a] sm:$0x1] }
 0x30b   : > { %v2592_v56 = vmax.f32 %v2560_v4, %v2576_v31  ;;  %v2640_v35 = vld [vmem:[#allocation3 + $0x1b] sm:$0x1]  ;;  %v2688_v8 = vld [vmem:[#allocation3 + $0x1c] sm:$0x1]  ;;  %v2704_v10 = vld [vmem:[#allocation3 + $0x1d] sm:$0x1] }
 0x30c   : > { %v2656_v23 = vmax.f32 %v2624_v40, %v2640_v35  ;;  %v2720_v51 = vmax.f32 %v2688_v8, %v2704_v10  ;;  %v2752_v20 = vld [vmem:[#allocation3 + $0x1e] sm:$0x1]  ;;  %v2768_v46 = vld [vmem:[#allocation3 + $0x1f] sm:$0x1]  ;;  %2274 = vst [vmem:[#allocation3 + $0x20] sm:$0xff] %v2242_v60  ;;  %v2089_v26 = vpop.f32.mrf.mxu0 }
 0x30d   : > { %v2175_v1 = vadd.f32 %v2089_v26, %v5129_v36  ;;  %v2607_v31 = vmax.f32 %v2591_v61, %v2592_v56  ;;  %v2784_v27 = vmax.f32 %v2752_v20, %v2768_v46  ;;  %2551 = vst [vmem:[#allocation4 + $0x14] sm:$0x1] %v2543_v28  ;;  %v2030_v36 = vld [vmem:[#allocation2 + $0x13a] sm:$0xff]  ;;  %v1401_v61 = vadd.f32 %v5131_v43, %v4964_v12  ;;  %v2031_v28 = vld [vmem:[#allocation2 + $0x142] sm:$0xff] }
 0x30e   : > { %v2671_v18 = vmax.f32 %v2655_v55, %v2656_v23  ;;  %v2735_v39 = vmax.f32 %v2719_v21, %v2720_v51  ;;  %v1402_v46 = vadd.f32 %v5135_v13, %v4972_v42 }
 0x30f   : > { %v2211_v37 = vadd.f32 %v5208_v34, %v2175_v1  ;;  %2136 = vmatmul.f32.gmra.mxu0 %v2029_v45  ;;  %2615 = vst [vmem:[#allocation4 + $0x15] sm:$0x1] %v2607_v31  ;;  %v2799_v60 = vmax.f32 %v2783_v49, %v2784_v27  ;;  %v5255_v40 = vpop.f32.mrf.mxu2  ;;  %v1595_v55 = vadd.f32 %v5213_v50, %v1401_v61 }
 0x310   : > { %2679 = vst [vmem:[#allocation4 + $0x16] sm:$0x1] %v2671_v18  ;;  %v5260_v8 = vpop.f32.mrf.mxu3  ;;  %v5267_v12 = vpop.f32.mrf.mxu1 }
 0x311   : > { %v2243_v14 = vmax.f32 %v2211_v37, 0.0  ;;  %2743 = vst [vmem:[#allocation4 + $0x17] sm:$0x1] %v2735_v39  ;;  %v1790_v20 = vadd.f32 %v5216_v17, %v1595_v55  ;;  %v1596_v37 = vadd.f32 %v5223_v47, %v1402_v46  ;;  %v2032_v55 = vld [vmem:[#allocation2 + $0x152] sm:$0xff] }
 0x312   : > { %2807 = vst [vmem:[#allocation4 + $0x18] sm:$0x1] %v2799_v60 }
 0x313   : > { %2275 = vst [vmem:[#allocation3 + $0x28] sm:$0xff] %v2243_v14  ;;  %v2304_v21 = vld [vmem:[#allocation3 + $0x20] sm:$0x1]  ;;  %v2320_v43 = vld [vmem:[#allocation3 + $0x21] sm:$0x1]  ;;  %v1984_v39 = vadd.f32 %v5220_v15, %v1790_v20 }
 0x314   : > { %v2092_v4 = vpop.f32.mrf.mxu0  ;;  %v2369_v26 = vld [vmem:[#allocation3 + $0x22] sm:$0x1]  ;;  %v2385_v38 = vld [vmem:[#allocation3 + $0x23] sm:$0x1]  ;;  %v2433_v50 = vld [vmem:[#allocation3 + $0x24] sm:$0x1]  ;;  %v2336_v49 = vmax.f32 %v2304_v21, %v2320_v43  ;;  %v1791_v43 = vadd.f32 %v5227_v52, %v1596_v37 }
 0x315   : > { %v2176_v23 = vadd.f32 %v2092_v4, %v5133_v63  ;;  %v2449_v1 = vld [vmem:[#allocation3 + $0x25] sm:$0x1]  ;;  %v2497_v31 = vld [vmem:[#allocation3 + $0x26] sm:$0x1]  ;;  %v2513_v17 = vld [vmem:[#allocation3 + $0x27] sm:$0x1] }
 0x316   : > { %v2033_v52 = vld [vmem:[#allocation2 + $0x15a] sm:$0xff] }
 0x317   : > { %v2212_v48 = vadd.f32 %v5208_v34, %v2176_v23  ;;  %2139 = vmatmul.f32.gmra.mxu0 %v2030_v36  ;;  %v2401_v23 = vmax.f32 %v2369_v26, %v2385_v38 }
 0x318   : > { %v2816_v35 = vld [vmem:[#allocation4 + $0x10] sm:$0xff] }
 0x319   : > { %v2244_v56 = vmax.f32 %v2212_v48, 0.0  ;;  %2924 = vmatmul.f32.gmra.mxu2 %v2816_v35  ;;  %v2840_v51 = vld [vmem:[#allocation4 + $0x11] sm:$0xff]  ;;  %v2465_v48 = vmax.f32 %v2433_v50, %v2449_v1  ;;  %v1403_v50 = vadd.f32 %v5139_v62, %v4982_v3 }
 0x31a   : > { %2883 = vmatmul.f32.gmra.mxu1 %v2840_v51  ;;  %v2947_v45 = vld [vmem:[#allocation4 + $0x12] sm:$0xff]  ;;  %v2529_v51 = vmax.f32 %v2497_v31, %v2513_v17  ;;  %v2577_v26 = vld [vmem:[#allocation3 + $0x29] sm:$0x1]  ;;  %v2625_v1 = vld [vmem:[#allocation3 + $0x2a] sm:$0x1]  ;;  %v5280_v31 = vpop.f32.mrf.mxu1 }
 0x31b   : > { %2276 = vst [vmem:[#allocation3 + $0x30] sm:$0xff] %v2244_v56  ;;  %2990 = vmatmul.f32.gmra.mxu3 %v2947_v45  ;;  %v2561_v45 = vld [vmem:[#allocation3 + $0x28] sm:$0x1]  ;;  %v2689_v17 = vld [vmem:[#allocation3 + $0x2c] sm:$0x1]  ;;  %v1597_v62 = vadd.f32 %v5234_v33, %v1403_v50 }
 0x31c   : > { %v2095_v10 = vpop.f32.mrf.mxu0  ;;  %v2753_v37 = vld [vmem:[#allocation3 + $0x2e] sm:$0x1] }
 0x31d   : > { %v2177_v63 = vadd.f32 %v2095_v10, %v5137_v11  ;;  %v5270_v11 = vpop.f32.mrf.mxu2 }
 0x31f   : > { %v2213_v5 = vadd.f32 %v5208_v34, %v2177_v63  ;;  %2142 = vmatmul.f32.gmra.mxu0 %v2031_v28  ;;  %v5274_v63 = vpop.f32.mrf.mxu3 }
 0x321   : > { %v2245_v27 = vmax.f32 %v2213_v5, 0.0 }
 0x322   : > { %v2305_v18 = vld [vmem:[#allocation3 + $0x30] sm:$0x1]  ;;  %v2321_v42 = vld [vmem:[#allocation3 + $0x31] sm:$0x1]  ;;  %v2370_v13 = vld [vmem:[#allocation3 + $0x32] sm:$0x1] }
 0x323   : > { %v2337_v14 = vmax.f32 %v2305_v18, %v2321_v42  ;;  %v2386_v60 = vld [vmem:[#allocation3 + $0x33] sm:$0x1]  ;;  %v2434_v4 = vld [vmem:[#allocation3 + $0x34] sm:$0x1]  ;;  %v2450_v36 = vld [vmem:[#allocation3 + $0x35] sm:$0x1] }
 0x324   : > { %v2402_v61 = vmax.f32 %v2370_v13, %v2386_v60  ;;  %v2466_v56 = vmax.f32 %v2434_v4, %v2450_v36  ;;  %v2498_v35 = vld [vmem:[#allocation3 + $0x36] sm:$0x1]  ;;  %v2514_v10 = vld [vmem:[#allocation3 + $0x37] sm:$0x1]  ;;  %2277 = vst [vmem:[#allocation3 + $0x38] sm:$0xff] %v2245_v27  ;;  %v2098_v28 = vpop.f32.mrf.mxu0  ;;  %v1985_v13 = vadd.f32 %v5229_v30, %v1791_v43  ;;  %v2593_v4 = vmax.f32 %v2561_v45, %v2577_v26 }
 0x325   : > { %v2530_v15 = vmax.f32 %v2498_v35, %v2514_v10  ;;  %v2178_v20 = vadd.f32 %v2098_v28, %v1984_v39  ;;  %v2351_v47 = vmax.f32 %v2336_v49, %v2337_v14  ;;  %v2641_v27 = vld [vmem:[#allocation3 + $0x2b] sm:$0x1]  ;;  %v2705_v42 = vld [vmem:[#allocation3 + $0x2d] sm:$0x1]  ;;  %v5283_v39 = vpop.f32.mrf.mxu2  ;;  %v2769_v49 = vld [vmem:[#allocation3 + $0x2f] sm:$0x1] }
 0x326   : > { %v2416_v21 = vmax.f32 %v2401_v23, %v2402_v61  ;;  %v2480_v46 = vmax.f32 %v2465_v48, %v2466_v56  ;;  %v2657_v36 = vmax.f32 %v2625_v1, %v2641_v27  ;;  %v2721_v10 = vmax.f32 %v2689_v17, %v2705_v42  ;;  %v5293_v27 = vpop.f32.mrf.mxu1  ;;  %v2034_v17 = vld [vmem:[#allocation2 + $0x16a] sm:$0xff] }
 0x327   : > { %v2214_v5 = vadd.f32 %v5208_v34, %v2178_v20  ;;  %2145 = vmatmul.f32.gmra.mxu0 %v2032_v55  ;;  %2360 = vst [vmem:[#allocation4 + $0x21] sm:$0x1] %v2351_v47  ;;  %v2544_v38 = vmax.f32 %v2529_v51, %v2530_v15  ;;  %v2785_v26 = vmax.f32 %v2753_v37, %v2769_v49 }
 0x328   : > { %2424 = vst [vmem:[#allocation4 + $0x22] sm:$0x1] %v2416_v21  ;;  %v1792_v21 = vadd.f32 %v5237_v19, %v1597_v62 }
 0x329   : > { %v2246_v18 = vmax.f32 %v2214_v5, 0.0  ;;  %2488 = vst [vmem:[#allocation4 + $0x23] sm:$0x1] %v2480_v46  ;;  %v5287_v46 = vpop.f32.mrf.mxu3  ;;  %v1404_v5 = vadd.f32 %v5141_v16, %v4990_v32  ;;  %v1405_v16 = vadd.f32 %v5143_v6, %v4994_v58 }
 0x32a   : > { %2552 = vst [vmem:[#allocation4 + $0x24] sm:$0x1] %v2544_v38  ;;  %v1986_v1 = vadd.f32 %v5240_v22, %v1792_v21 }
 0x32b   : > { %v2562_v14 = vld [vmem:[#allocation3 + $0x38] sm:$0x1]  ;;  %v2578_v60 = vld [vmem:[#allocation3 + $0x39] sm:$0x1]  ;;  %v2626_v3 = vld [vmem:[#allocation3 + $0x3a] sm:$0x1] }
 0x32c   : > { %v2594_v23 = vmax.f32 %v2562_v14, %v2578_v60  ;;  %v2642_v48 = vld [vmem:[#allocation3 + $0x3b] sm:$0x1]  ;;  %v2690_v61 = vld [vmem:[#allocation3 + $0x3c] sm:$0x1]  ;;  %v2706_v56 = vld [vmem:[#allocation3 + $0x3d] sm:$0x1]  ;;  %v2101_v35 = vpop.f32.mrf.mxu0 }
 0x32d   : > { %v2658_v28 = vmax.f32 %v2626_v3, %v2642_v48  ;;  %v2722_v55 = vmax.f32 %v2690_v61, %v2706_v56  ;;  %v2754_v30 = vld [vmem:[#allocation3 + $0x3e] sm:$0x1]  ;;  %v2770_v51 = vld [vmem:[#allocation3 + $0x3f] sm:$0x1]  ;;  %2278 = vst [vmem:[#allocation3 + $0x40] sm:$0xff] %v2246_v18  ;;  %v2179_v15 = vadd.f32 %v2101_v35, %v1985_v13  ;;  %v1598_v18 = vadd.f32 %v5244_v29, %v1404_v5  ;;  %v5296_v42 = vpop.f32.mrf.mxu2  ;;  %v2035_v60 = vld [vmem:[#allocation2 + $0x172] sm:$0xff] }
 0x32e   : > { %v2786_v20 = vmax.f32 %v2754_v30, %v2770_v51  ;;  %v2608_v47 = vmax.f32 %v2593_v4, %v2594_v23  ;;  %v1599_v3 = vadd.f32 %v5252_v54, %v1405_v16  ;;  %v5306_v62 = vpop.f32.mrf.mxu1 }
 0x32f   : > { %v2215_v33 = vadd.f32 %v5208_v34, %v2179_v15  ;;  %2148 = vmatmul.f32.gmra.mxu0 %v2033_v52  ;;  %v2672_v43 = vmax.f32 %v2657_v36, %v2658_v28  ;;  %v2736_v45 = vmax.f32 %v2721_v10, %v2722_v55  ;;  %v1793_v13 = vadd.f32 %v5246_v24, %v1598_v18  ;;  %v2036_v55 = vld [vmem:[#allocation2 + $0x182] sm:$0xff] }
 0x330   : > { %2616 = vst [vmem:[#allocation4 + $0x25] sm:$0x1] %v2608_v47  ;;  %v2800_v50 = vmax.f32 %v2785_v26, %v2786_v20  ;;  %v1794_v58 = vadd.f32 %v5255_v40, %v1599_v3 }
 0x331   : > { %v2247_v38 = vmax.f32 %v2215_v33, 0.0  ;;  %2680 = vst [vmem:[#allocation4 + $0x26] sm:$0x1] %v2672_v43  ;;  %v5302_v22 = vpop.f32.mrf.mxu3  ;;  %v1987_v14 = vadd.f32 %v5250_v57, %v1793_v13  ;;  %v1406_v57 = vadd.f32 %v5145_v41, %v5001_v0 }
 0x332   : > { %2744 = vst [vmem:[#allocation4 + $0x27] sm:$0x1] %v2736_v45  ;;  %v1988_v30 = vadd.f32 %v5260_v8, %v1794_v58 }
 0x333   : > { %2279 = vst [vmem:[#allocation3 + $0x48] sm:$0xff] %v2247_v38  ;;  %v1600_v33 = vadd.f32 %v5267_v12, %v1406_v57 }
 0x334   : > { %v2104_v19 = vpop.f32.mrf.mxu0  ;;  %2808 = vst [vmem:[#allocation4 + $0x28] sm:$0x1] %v2800_v50  ;;  %v2306_v48 = vld [vmem:[#allocation3 + $0x40] sm:$0x1]  ;;  %v2322_v61 = vld [vmem:[#allocation3 + $0x41] sm:$0x1] }
 0x335   : > { %v2180_v52 = vadd.f32 %v2104_v19, %v1986_v1  ;;  %v5309_v6 = vpop.f32.mrf.mxu2  ;;  %v2371_v54 = vld [vmem:[#allocation3 + $0x42] sm:$0x1]  ;;  %v2387_v56 = vld [vmem:[#allocation3 + $0x43] sm:$0x1]  ;;  %v2435_v10 = vld [vmem:[#allocation3 + $0x44] sm:$0x1]  ;;  %v2338_v0 = vmax.f32 %v2306_v48, %v2322_v61 }
 0x336   : > { %v2451_v28 = vld [vmem:[#allocation3 + $0x45] sm:$0x1]  ;;  %v2499_v40 = vld [vmem:[#allocation3 + $0x46] sm:$0x1]  ;;  %v2515_v15 = vld [vmem:[#allocation3 + $0x47] sm:$0x1]  ;;  %v2403_v41 = vmax.f32 %v2371_v54, %v2387_v56  ;;  %v5319_v16 = vpop.f32.mrf.mxu1 }
 0x337   : > { %v2216_v32 = vadd.f32 %v5208_v34, %v2180_v52  ;;  %2151 = vmatmul.f32.gmra.mxu0 %v2034_v17  ;;  %v2467_v50 = vmax.f32 %v2435_v10, %v2451_v28  ;;  %v2037_v61 = vld [vmem:[#allocation2 + $0x18a] sm:$0xff] }
 0x339   : > { %v2248_v37 = vmax.f32 %v2216_v32, 0.0  ;;  %v2817_v49 = vld [vmem:[#allocation4 + $0x20] sm:$0xff]  ;;  %v5315_v51 = vpop.f32.mrf.mxu3  ;;  %v1795_v32 = vadd.f32 %v5270_v11, %v1600_v33 }
 0x33a   : > { %2927 = vmatmul.f32.gmra.mxu2 %v2817_v49  ;;  %v2643_v11 = vld [vmem:[#allocation3 + $0x4b] sm:$0x1]  ;;  %v2691_v57 = vld [vmem:[#allocation3 + $0x4c] sm:$0x1]  ;;  %v2707_v48 = vld [vmem:[#allocation3 + $0x4d] sm:$0x1] }
 0x33b   : > { %2280 = vst [vmem:[#allocation3 + $0x50] sm:$0xff] %v2248_v37  ;;  %v2841_v24 = vld [vmem:[#allocation4 + $0x21] sm:$0xff]  ;;  %v2771_v54 = vld [vmem:[#allocation3 + $0x4f] sm:$0x1] }
 0x33c   : > { %v2107_v29 = vpop.f32.mrf.mxu0  ;;  %v2948_v4 = vld [vmem:[#allocation4 + $0x22] sm:$0xff]  ;;  %2886 = vmatmul.f32.gmra.mxu1 %v2841_v24 }
 0x33d   : > { %v2181_v36 = vadd.f32 %v2107_v29, %v1987_v14  ;;  %2993 = vmatmul.f32.gmra.mxu3 %v2948_v4  ;;  %v1407_v14 = vadd.f32 %v5149_v53, %v5003_v25  ;;  %v2531_v29 = vmax.f32 %v2499_v40, %v2515_v15  ;;  %v5324_v3 = vpop.f32.mrf.mxu2  ;;  %v2579_v24 = vld [vmem:[#allocation3 + $0x49] sm:$0x1]  ;;  %v2755_v53 = vld [vmem:[#allocation3 + $0x4e] sm:$0x1] }
 0x33f   : > { %v2217_v23 = vadd.f32 %v5208_v34, %v2181_v36  ;;  %2154 = vmatmul.f32.gmra.mxu0 %v2035_v60  ;;  %v2563_v60 = vld [vmem:[#allocation3 + $0x48] sm:$0x1]  ;;  %v2627_v36 = vld [vmem:[#allocation3 + $0x4a] sm:$0x1]  ;;  %v1601_v25 = vadd.f32 %v5280_v31, %v1407_v14 }
 0x341   : > { %v2249_v35 = vmax.f32 %v2217_v23, 0.0  ;;  %v1989_v23 = vadd.f32 %v5274_v63, %v1795_v32 }
 0x342   : > { %v2307_v20 = vld [vmem:[#allocation3 + $0x50] sm:$0x1]  ;;  %v2323_v47 = vld [vmem:[#allocation3 + $0x51] sm:$0x1]  ;;  %v2372_v21 = vld [vmem:[#allocation3 + $0x52] sm:$0x1] }
 0x343   : > { %v2339_v43 = vmax.f32 %v2307_v20, %v2323_v47  ;;  %v2388_v45 = vld [vmem:[#allocation3 + $0x53] sm:$0x1]  ;;  %v2436_v26 = vld [vmem:[#allocation3 + $0x54] sm:$0x1]  ;;  %v2452_v5 = vld [vmem:[#allocation3 + $0x55] sm:$0x1] }
 0x344   : > { %v2110_v38 = vpop.f32.mrf.mxu0  ;;  %v2404_v1 = vmax.f32 %v2372_v21, %v2388_v45  ;;  %v2468_v19 = vmax.f32 %v2436_v26, %v2452_v5  ;;  %v2500_v8 = vld [vmem:[#allocation3 + $0x56] sm:$0x1]  ;;  %v2516_v17 = vld [vmem:[#allocation3 + $0x57] sm:$0x1]  ;;  %2281 = vst [vmem:[#allocation3 + $0x58] sm:$0xff] %v2249_v35  ;;  %v1796_v21 = vadd.f32 %v5283_v39, %v1601_v25 }
 0x345   : > { %v2182_v18 = vadd.f32 %v2110_v38, %v1988_v30  ;;  %v2532_v52 = vmax.f32 %v2500_v8, %v2516_v17  ;;  %v2352_v13 = vmax.f32 %v2338_v0, %v2339_v43  ;;  %v2595_v30 = vmax.f32 %v2563_v60, %v2579_v24 }
 0x346   : > { %v2417_v37 = vmax.f32 %v2403_v41, %v2404_v1  ;;  %v2481_v49 = vmax.f32 %v2467_v50, %v2468_v19  ;;  %v2659_v43 = vmax.f32 %v2627_v36, %v2643_v11  ;;  %v2723_v38 = vmax.f32 %v2691_v57, %v2707_v48  ;;  %v5334_v1 = vpop.f32.mrf.mxu1 }
 0x347   : > { %v2218_v12 = vadd.f32 %v5208_v34, %v2182_v18  ;;  %2157 = vmatmul.f32.gmra.mxu0 %v2036_v55  ;;  %2361 = vst [vmem:[#allocation4 + $0x31] sm:$0x1] %v2352_v13  ;;  %v2545_v58 = vmax.f32 %v2531_v29, %v2532_v52  ;;  %v5328_v55 = vpop.f32.mrf.mxu3  ;;  %v1408_v50 = vadd.f32 %v5154_v2, %v5008_v44  ;;  %v5337_v52 = vpop.f32.mrf.mxu2 }
 0x348   : > { %2425 = vst [vmem:[#allocation4 + $0x32] sm:$0x1] %v2417_v37  ;;  %v2787_v19 = vmax.f32 %v2755_v53, %v2771_v54  ;;  %v1990_v18 = vadd.f32 %v5287_v46, %v1796_v21  ;;  %v1409_v46 = vadd.f32 %v5157_v7, %v5013_v59  ;;  %v5813_v7 = vld [vmem:[#allocation32_spill] sm:$0xff] }
 0x349   : > { %v2250_v4 = vmax.f32 %v2218_v12, 0.0  ;;  %2489 = vst [vmem:[#allocation4 + $0x33] sm:$0x1] %v2481_v49  ;;  %v2038_v12 = vld [vmem:[#allocation2 + $0x19a] sm:$0xff]  ;;  %v1602_v37 = vadd.f32 %v5293_v27, %v1408_v50 }
 0x34a   : > { %2553 = vst [vmem:[#allocation4 + $0x34] sm:$0x1] %v2545_v58  ;;  %v2039_v58 = vld [vmem:[#allocation2 + $0x1a2] sm:$0xff] }
 0x34b   : > { %2282 = vst [vmem:[#allocation3 + $0x60] sm:$0xff] %v2250_v4  ;;  %v2564_v56 = vld [vmem:[#allocation3 + $0x58] sm:$0x1]  ;;  %v2580_v35 = vld [vmem:[#allocation3 + $0x59] sm:$0x1]  ;;  %v1797_v44 = vadd.f32 %v5296_v42, %v1602_v37  ;;  %v1603_v4 = vadd.f32 %v5306_v62, %v1409_v46 }
 0x34c   : > { %v2628_v10 = vld [vmem:[#allocation3 + $0x5a] sm:$0x1]  ;;  %v2113_v28 = vpop.f32.mrf.mxu0  ;;  %v2596_v40 = vmax.f32 %v2564_v56, %v2580_v35  ;;  %v2644_v15 = vld [vmem:[#allocation3 + $0x5b] sm:$0x1]  ;;  %v2692_v20 = vld [vmem:[#allocation3 + $0x5c] sm:$0x1] }
 0x34d   : > { %v2708_v47 = vld [vmem:[#allocation3 + $0x5d] sm:$0x1]  ;;  %v2183_v63 = vadd.f32 %v2113_v28, %v1989_v23  ;;  %v2660_v33 = vmax.f32 %v2628_v10, %v2644_v15  ;;  %v2756_v41 = vld [vmem:[#allocation3 + $0x5e] sm:$0x1]  ;;  %v2772_v31 = vld [vmem:[#allocation3 + $0x5f] sm:$0x1]  ;;  %v1991_v60 = vadd.f32 %v5302_v22, %v1797_v44  ;;  %v1798_v48 = vadd.f32 %v5309_v6, %v1603_v4 }
 0x34e   : > { %v2724_v0 = vmax.f32 %v2692_v20, %v2708_v47  ;;  %v2788_v45 = vmax.f32 %v2756_v41, %v2772_v31  ;;  %v2609_v5 = vmax.f32 %v2595_v30, %v2596_v40  ;;  %v5347_v24 = vpop.f32.mrf.mxu1  ;;  %v1410_v22 = vadd.f32 %v5813_v7, %v5018_v9 }
 0x34f   : > { %v2219_v26 = vadd.f32 %v5208_v34, %v2183_v63  ;;  %2160 = vmatmul.f32.gmra.mxu0 %v2037_v61  ;;  %v2673_v39 = vmax.f32 %v2659_v43, %v2660_v33  ;;  %v5341_v2 = vpop.f32.mrf.mxu3  ;;  %v5350_v36 = vpop.f32.mrf.mxu2  ;;  %v1992_v35 = vadd.f32 %v5315_v51, %v1798_v48 }
 0x350   : > { %2617 = vst [vmem:[#allocation4 + $0x35] sm:$0x1] %v2609_v5  ;;  %v2737_v17 = vmax.f32 %v2723_v38, %v2724_v0  ;;  %v2801_v13 = vmax.f32 %v2787_v19, %v2788_v45  ;;  %v1604_v6 = vadd.f32 %v5319_v16, %v1410_v22 }
 0x351   : > { %v2251_v8 = vmax.f32 %v2219_v26, 0.0  ;;  %2681 = vst [vmem:[#allocation4 + $0x36] sm:$0x1] %v2673_v39 }
 0x352   : > { %2745 = vst [vmem:[#allocation4 + $0x37] sm:$0x1] %v2737_v17  ;;  %v2308_v61 = vld [vmem:[#allocation3 + $0x60] sm:$0x1]  ;;  %v2324_v53 = vld [vmem:[#allocation3 + $0x61] sm:$0x1]  ;;  %v1799_v51 = vadd.f32 %v5324_v3, %v1604_v6 }
 0x353   : > { %2283 = vst [vmem:[#allocation3 + $0x68] sm:$0xff] %v2251_v8  ;;  %v2373_v54 = vld [vmem:[#allocation3 + $0x62] sm:$0x1]  ;;  %v2389_v56 = vld [vmem:[#allocation3 + $0x63] sm:$0x1]  ;;  %v2340_v63 = vmax.f32 %v2308_v61, %v2324_v53  ;;  %v5815_v3 = vld [vmem:[#allocation33_spill] sm:$0xff] }
 0x354   : > { %v2116_v32 = vpop.f32.mrf.mxu0  ;;  %2809 = vst [vmem:[#allocation4 + $0x38] sm:$0x1] %v2801_v13  ;;  %v2437_v10 = vld [vmem:[#allocation3 + $0x64] sm:$0x1]  ;;  %v2453_v28 = vld [vmem:[#allocation3 + $0x65] sm:$0x1]  ;;  %v2405_v50 = vmax.f32 %v2373_v54, %v2389_v56 }
 0x355   : > { %v2184_v49 = vadd.f32 %v2116_v32, %v1990_v18  ;;  %v2501_v30 = vld [vmem:[#allocation3 + $0x66] sm:$0x1]  ;;  %v2517_v43 = vld [vmem:[#allocation3 + $0x67] sm:$0x1]  ;;  %v2469_v13 = vmax.f32 %v2437_v10, %v2453_v28 }
 0x356   : > { %v5360_v47 = vpop.f32.mrf.mxu1 }
 0x357   : > { %v2220_v14 = vadd.f32 %v5208_v34, %v2184_v49  ;;  %2163 = vmatmul.f32.gmra.mxu0 %v2038_v12  ;;  %v5356_v62 = vpop.f32.mrf.mxu3  ;;  %v5363_v38 = vpop.f32.mrf.mxu2  ;;  %v5814_v49 = vld [vmem:[#allocation18_spill] sm:$0xff] }
 0x358   : > { %v1411_v44 = vadd.f32 %v5815_v3, %v5814_v49 }
 0x359   : > { %v2252_v29 = vmax.f32 %v2220_v14, 0.0  ;;  %v2818_v42 = vld [vmem:[#allocation4 + $0x30] sm:$0xff]  ;;  %v2533_v14 = vmax.f32 %v2501_v30, %v2517_v43 }
 0x35a   : > { %2930 = vmatmul.f32.gmra.mxu2 %v2818_v42  ;;  %v2565_v19 = vld [vmem:[#allocation3 + $0x68] sm:$0x1]  ;;  %v2581_v8 = vld [vmem:[#allocation3 + $0x69] sm:$0x1]  ;;  %v2629_v32 = vld [vmem:[#allocation3 + $0x6a] sm:$0x1]  ;;  %v1605_v28 = vadd.f32 %v5334_v1, %v1411_v44 }
 0x35b   : > { %2284 = vst [vmem:[#allocation3 + $0x70] sm:$0xff] %v2252_v29  ;;  %v2842_v23 = vld [vmem:[#allocation4 + $0x31] sm:$0xff]  ;;  %v2645_v12 = vld [vmem:[#allocation3 + $0x6b] sm:$0x1]  ;;  %v2693_v37 = vld [vmem:[#allocation3 + $0x6c] sm:$0x1] }
 0x35c   : > { %v2119_v27 = vpop.f32.mrf.mxu0  ;;  %v2949_v57 = vld [vmem:[#allocation4 + $0x32] sm:$0xff]  ;;  %2889 = vmatmul.f32.gmra.mxu1 %v2842_v23  ;;  %v2709_v46 = vld [vmem:[#allocation3 + $0x6d] sm:$0x1]  ;;  %v2597_v23 = vmax.f32 %v2565_v19, %v2581_v8  ;;  %v2661_v61 = vmax.f32 %v2629_v32, %v2645_v12  ;;  %v2757_v6 = vld [vmem:[#allocation3 + $0x6e] sm:$0x1] }
 0x35d   : > { %v2185_v11 = vadd.f32 %v2119_v27, %v1991_v60  ;;  %2996 = vmatmul.f32.gmra.mxu3 %v2949_v57 }
 0x35f   : > { %v2221_v59 = vadd.f32 %v5208_v34, %v2185_v11  ;;  %2166 = vmatmul.f32.gmra.mxu0 %v2039_v58  ;;  %v1993_v58 = vadd.f32 %v5328_v55, %v1799_v51  ;;  %v2773_v55 = vld [vmem:[#allocation3 + $0x6f] sm:$0x1]  ;;  %v5381_v43 = vpop.f32.mrf.mxu2 }
 0x360   : > { %v2789_v1 = vmax.f32 %v2757_v6, %v2773_v55 }
 0x361   : > { %v2253_v25 = vmax.f32 %v2221_v59, 0.0 }
 0x362   : > { %v2309_v40 = vld [vmem:[#allocation3 + $0x70] sm:$0x1]  ;;  %v2325_v15 = vld [vmem:[#allocation3 + $0x71] sm:$0x1]  ;;  %v2374_v20 = vld [vmem:[#allocation3 + $0x72] sm:$0x1] }
 0x363   : > { %2285 = vst [vmem:[#allocation3 + $0x78] sm:$0xff] %v2253_v25  ;;  %v2341_v21 = vmax.f32 %v2309_v40, %v2325_v15  ;;  %v2390_v33 = vld [vmem:[#allocation3 + $0x73] sm:$0x1]  ;;  %v2438_v0 = vld [vmem:[#allocation3 + $0x74] sm:$0x1]  ;;  %v2725_v25 = vmax.f32 %v2693_v37, %v2709_v46 }
 0x364   : > { %v2122_v9 = vpop.f32.mrf.mxu0  ;;  %v2454_v41 = vld [vmem:[#allocation3 + $0x75] sm:$0x1]  ;;  %v2406_v45 = vmax.f32 %v2374_v20, %v2390_v33  ;;  %v2502_v5 = vld [vmem:[#allocation3 + $0x76] sm:$0x1]  ;;  %v2518_v16 = vld [vmem:[#allocation3 + $0x77] sm:$0x1] }
 0x365   : > { %v2186_v31 = vadd.f32 %v2122_v9, %v1992_v35  ;;  %v2470_v26 = vmax.f32 %v2438_v0, %v2454_v41  ;;  %v2534_v39 = vmax.f32 %v2502_v5, %v2518_v16  ;;  %v2353_v18 = vmax.f32 %v2340_v63, %v2341_v21  ;;  %v1554_v21 = vpop.f32.mrf.mxu1  ;;  %v5376_v33 = vld [vmem:[%s5767_s2] ss:$0 sm:$0xff]  ;;  %v5816_v41 = vld [vmem:[#allocation19_spill] sm:$0xff] }
 0x366   : > { %v2418_v60 = vmax.f32 %v2405_v50, %v2406_v45  ;;  %v1800_v63 = vadd.f32 %v5337_v52, %v1605_v28 }
 0x367   : > { %v2222_v17 = vadd.f32 %v5208_v34, %v2186_v31  ;;  %2362 = vst [vmem:[#allocation4 + $0x41] sm:$0x1] %v2353_v18  ;;  %v2482_v11 = vmax.f32 %v2469_v13, %v2470_v26  ;;  %v5369_v34 = vpop.f32.mrf.mxu3  ;;  %v2546_v22 = vmax.f32 %v2533_v14, %v2534_v39  ;;  %v5817_v31 = vld [vmem:[#allocation34_spill] sm:$0xff]  ;;  %v5819_v18 = vld [vmem:[#allocation35_spill] sm:$0xff] }
 0x368   : > { %2426 = vst [vmem:[#allocation4 + $0x42] sm:$0x1] %v2418_v60  ;;  %v1412_v51 = vadd.f32 %v5817_v31, %v5816_v41  ;;  %v1994_v26 = vadd.f32 %v5341_v2, %v1800_v63  ;;  %v5821_v60 = vld [vmem:[#allocation36_spill] sm:$0xff] }
 0x369   : > { %v2254_v29 = vmax.f32 %v2222_v17, 0.0  ;;  %2490 = vst [vmem:[#allocation4 + $0x43] sm:$0x1] %v2482_v11  ;;  %v5818_v17 = vld [vmem:[#allocation20_spill] sm:$0xff] }
 0x36a   : > { %v2566_v27 = vld [vmem:[#allocation3 + $0x78] sm:$0x1]  ;;  %v2582_v4 = vld [vmem:[#allocation3 + $0x79] sm:$0x1]  ;;  %v2630_v42 = vld [vmem:[#allocation3 + $0x7a] sm:$0x1]  ;;  %v1606_v16 = vadd.f32 %v5347_v24, %v1412_v51  ;;  %v1413_v13 = vadd.f32 %v5819_v18, %v5818_v17  ;;  %v5394_v24 = vpop.f32.mrf.mxu2 }
 0x36b   : > { %v2598_v57 = vmax.f32 %v2566_v27, %v2582_v4  ;;  %v2646_v48 = vld [vmem:[#allocation3 + $0x7b] sm:$0x1]  ;;  %v2694_v59 = vld [vmem:[#allocation3 + $0x7c] sm:$0x1]  ;;  %v2710_v7 = vld [vmem:[#allocation3 + $0x7d] sm:$0x1] }
 0x36c   : > { %v2662_v53 = vmax.f32 %v2630_v42, %v2646_v48  ;;  %v2726_v54 = vmax.f32 %v2694_v59, %v2710_v7  ;;  %v2758_v56 = vld [vmem:[#allocation3 + $0x7e] sm:$0x1]  ;;  %v2774_v35 = vld [vmem:[#allocation3 + $0x7f] sm:$0x1]  ;;  %2286 = vst [vmem:[#allocation3 + $0x80] sm:$0xff] %v2254_v29  ;;  %v2125_v10 = vpop.f32.mrf.mxu0  ;;  %v1801_v8 = vadd.f32 %v5350_v36, %v1606_v16  ;;  %v1607_v3 = vadd.f32 %v5360_v47, %v1413_v13  ;;  %v5820_v29 = vld [vmem:[#allocation21_spill] sm:$0xff] }
 0x36d   : > { %v2187_v30 = vadd.f32 %v2125_v10, %v1993_v58  ;;  %v2610_v40 = vmax.f32 %v2597_v23, %v2598_v57  ;;  %v2790_v15 = vmax.f32 %v2758_v56, %v2774_v35  ;;  %2554 = vst [vmem:[#allocation4 + $0x44] sm:$0x1] %v2546_v22  ;;  %v5391_v32 = vpop.f32.mrf.mxu1  ;;  %v1414_v27 = vadd.f32 %v5821_v60, %v5820_v29  ;;  %v5822_v16 = vld [vmem:[#allocation22_spill] sm:$0xff] }
 0x36e   : > { %v2674_v20 = vmax.f32 %v2661_v61, %v2662_v53  ;;  %v2738_v9 = vmax.f32 %v2725_v25, %v2726_v54  ;;  %v1995_v2 = vadd.f32 %v5356_v62, %v1801_v8  ;;  %v1802_v46 = vadd.f32 %v5363_v38, %v1607_v3 }
 0x36f   : > { %v2223_v0 = vadd.f32 %v5376_v33, %v2187_v30  ;;  %2618 = vst [vmem:[#allocation4 + $0x45] sm:$0x1] %v2610_v40  ;;  %v2802_v52 = vmax.f32 %v2789_v1, %v2790_v15  ;;  %v5385_v50 = vpop.f32.mrf.mxu3  ;;  %v1608_v53 = vadd.f32 %v1554_v21, %v1414_v27 }
 0x370   : > { %2682 = vst [vmem:[#allocation4 + $0x46] sm:$0x1] %v2674_v20  ;;  %v1996_v25 = vadd.f32 %v5369_v34, %v1802_v46 }
 0x371   : > { %v2255_v45 = vmax.f32 %v2223_v0, 0.0  ;;  %2746 = vst [vmem:[#allocation4 + $0x47] sm:$0x1] %v2738_v9 }
 0x372   : > { %2810 = vst [vmem:[#allocation4 + $0x48] sm:$0x1] %v2802_v52  ;;  %v5406_v0 = vpop.f32.mrf.mxu2 }
 0x373   : > { %2287 = vst [vmem:[#allocation3 + $0x88] sm:$0xff] %v2255_v45  ;;  %v2310_v36 = vld [vmem:[#allocation3 + $0x80] sm:$0x1]  ;;  %v2326_v42 = vld [vmem:[#allocation3 + $0x81] sm:$0x1]  ;;  %v1803_v45 = vadd.f32 %v5381_v43, %v1608_v53 }
 0x374   : > { %v2128_v5 = vpop.f32.mrf.mxu0  ;;  %v2375_v11 = vld [vmem:[#allocation3 + $0x82] sm:$0x1]  ;;  %v2391_v23 = vld [vmem:[#allocation3 + $0x83] sm:$0x1]  ;;  %v2439_v57 = vld [vmem:[#allocation3 + $0x84] sm:$0x1]  ;;  %v2342_v56 = vmax.f32 %v2310_v36, %v2326_v42 }
 0x375   : > { %v2188_v19 = vadd.f32 %v2128_v5, %v1994_v26  ;;  %v2455_v48 = vld [vmem:[#allocation3 + $0x85] sm:$0x1]  ;;  %v2503_v47 = vld [vmem:[#allocation3 + $0x86] sm:$0x1]  ;;  %v2519_v59 = vld [vmem:[#allocation3 + $0x87] sm:$0x1]  ;;  %v5404_v54 = vpop.f32.mrf.mxu1  ;;  %v2407_v55 = vmax.f32 %v2375_v11, %v2391_v23  ;;  %v1997_v43 = vadd.f32 %v5385_v50, %v1803_v45 }
 0x376   : > { %v2471_v30 = vmax.f32 %v2439_v57, %v2455_v48  ;;  %v2535_v1 = vmax.f32 %v2503_v47, %v2519_v59 }
 0x377   : > { %v2224_v39 = vadd.f32 %v5376_v33, %v2188_v19  ;;  %v5400_v4 = vpop.f32.mrf.mxu3  ;;  %v5823_v19 = vld [vmem:[#allocation37_spill] sm:$0xff] }
 0x378   : > { %v2819_v37 = vld [vmem:[#allocation4 + $0x40] sm:$0xff]  ;;  %v1415_v8 = vadd.f32 %v5823_v19, %v5822_v16 }
 0x379   : > { %v2256_v12 = vmax.f32 %v2224_v39, 0.0  ;;  %2933 = vmatmul.f32.gmra.mxu2 %v2819_v37  ;;  %v2843_v14 = vld [vmem:[#allocation4 + $0x41] sm:$0xff] }
 0x37a   : > { %2892 = vmatmul.f32.gmra.mxu1 %v2843_v14  ;;  %v2950_v62 = vld [vmem:[#allocation4 + $0x42] sm:$0xff]  ;;  %v2631_v17 = vld [vmem:[#allocation3 + $0x8a] sm:$0x1]  ;;  %v2647_v13 = vld [vmem:[#allocation3 + $0x8b] sm:$0x1]  ;;  %v1609_v46 = vadd.f32 %v5391_v32, %v1415_v8  ;;  %v1758_v32 = vpop.f32.mrf.mxu2 }
 0x37b   : > { %2288 = vst [vmem:[#allocation3 + $0x90] sm:$0xff] %v2256_v12  ;;  %2999 = vmatmul.f32.gmra.mxu3 %v2950_v62  ;;  %v2567_v52 = vld [vmem:[#allocation3 + $0x88] sm:$0x1]  ;;  %v2583_v39 = vld [vmem:[#allocation3 + $0x89] sm:$0x1]  ;;  %v2663_v60 = vmax.f32 %v2631_v17, %v2647_v13  ;;  %v5828_v17 = vld [vmem:[#allocation25_spill] sm:$0xff] }
 0x37c   : > { %v2131_v49 = vpop.f32.mrf.mxu0  ;;  %v2695_v37 = vld [vmem:[#allocation3 + $0x8c] sm:$0x1]  ;;  %v2775_v3 = vld [vmem:[#allocation3 + $0x8f] sm:$0x1]  ;;  %v2599_v29 = vmax.f32 %v2567_v52, %v2583_v39  ;;  %v5829_v13 = vld [vmem:[#allocation40_spill] sm:$0xff] }
 0x37d   : > { %v2189_v44 = vadd.f32 %v2131_v49, %v1995_v2  ;;  %v2711_v2 = vld [vmem:[#allocation3 + $0x8d] sm:$0x1]  ;;  %v2759_v49 = vld [vmem:[#allocation3 + $0x8e] sm:$0x1]  ;;  %v1563_v23 = vpop.f32.mrf.mxu1 }
 0x37e   : > { %v2727_v57 = vmax.f32 %v2695_v37, %v2711_v2 }
 0x37f   : > { %v2225_v58 = vadd.f32 %v5376_v33, %v2189_v44  ;;  %v1949_v18 = vpop.f32.mrf.mxu3 }
 0x381   : > { %v2257_v7 = vmax.f32 %v2225_v58, 0.0 }
 0x382   : > { %v2311_v22 = vld [vmem:[#allocation3 + $0x90] sm:$0x1]  ;;  %v2327_v38 = vld [vmem:[#allocation3 + $0x91] sm:$0x1]  ;;  %v2376_v61 = vld [vmem:[#allocation3 + $0x92] sm:$0x1] }
 0x383   : > { %v2343_v35 = vmax.f32 %v2311_v22, %v2327_v38  ;;  %v2392_v10 = vld [vmem:[#allocation3 + $0x93] sm:$0x1]  ;;  %v2440_v28 = vld [vmem:[#allocation3 + $0x94] sm:$0x1]  ;;  %v2456_v6 = vld [vmem:[#allocation3 + $0x95] sm:$0x1] }
 0x384   : > { %v2408_v40 = vmax.f32 %v2376_v61, %v2392_v10  ;;  %v2472_v15 = vmax.f32 %v2440_v28, %v2456_v6  ;;  %v2504_v20 = vld [vmem:[#allocation3 + $0x96] sm:$0x1]  ;;  %v2520_v9 = vld [vmem:[#allocation3 + $0x97] sm:$0x1]  ;;  %2289 = vst [vmem:[#allocation3 + $0x98] sm:$0xff] %v2257_v7  ;;  %v2134_v63 = vpop.f32.mrf.mxu0  ;;  %v1804_v61 = vadd.f32 %v5394_v24, %v1609_v46  ;;  %v5824_v10 = vld [vmem:[#allocation23_spill] sm:$0xff] }
 0x385   : > { %v2536_v34 = vmax.f32 %v2504_v20, %v2520_v9  ;;  %v2190_v21 = vadd.f32 %v2134_v63, %v1996_v25  ;;  %v2354_v41 = vmax.f32 %v2342_v56, %v2343_v35  ;;  %v2791_v35 = vmax.f32 %v2759_v49, %v2775_v3  ;;  %v5825_v28 = vld [vmem:[#allocation38_spill] sm:$0xff] }
 0x386   : > { %v2419_v31 = vmax.f32 %v2407_v55, %v2408_v40  ;;  %v2483_v51 = vmax.f32 %v2471_v30, %v2472_v15  ;;  %v1416_v6 = vadd.f32 %v5825_v28, %v5824_v10  ;;  %v1998_v40 = vadd.f32 %v5400_v4, %v1804_v61 }
 0x387   : > { %v2226_v26 = vadd.f32 %v5376_v33, %v2190_v21  ;;  %2363 = vst [vmem:[#allocation4 + $0x51] sm:$0x1] %v2354_v41  ;;  %v2547_v5 = vmax.f32 %v2535_v1, %v2536_v34  ;;  %v1952_v15 = vpop.f32.mrf.mxu3  ;;  %v1566_v1 = vpop.f32.mrf.mxu1  ;;  %v5826_v21 = vld [vmem:[#allocation24_spill] sm:$0xff]  ;;  %v5827_v41 = vld [vmem:[#allocation39_spill] sm:$0xff] }
 0x388   : > { %2427 = vst [vmem:[#allocation4 + $0x52] sm:$0x1] %v2419_v31  ;;  %v1610_v24 = vadd.f32 %v5404_v54, %v1416_v6  ;;  %v1417_v31 = vadd.f32 %v5827_v41, %v5826_v21 }
 0x389   : > { %v2258_v12 = vmax.f32 %v2226_v26, 0.0  ;;  %2491 = vst [vmem:[#allocation4 + $0x53] sm:$0x1] %v2483_v51  ;;  %v1761_v51 = vpop.f32.mrf.mxu2 }
 0x38a   : > { %2555 = vst [vmem:[#allocation4 + $0x54] sm:$0x1] %v2547_v5  ;;  %v1805_v63 = vadd.f32 %v5406_v0, %v1610_v24  ;;  %v1611_v5 = vadd.f32 %v1563_v23, %v1417_v31 }
 0x38b   : > { %v2568_v44 = vld [vmem:[#allocation3 + $0x98] sm:$0x1]  ;;  %v2584_v36 = vld [vmem:[#allocation3 + $0x99] sm:$0x1]  ;;  %v2632_v14 = vld [vmem:[#allocation3 + $0x9a] sm:$0x1] }
 0x38c   : > { %v2600_v27 = vmax.f32 %v2568_v44, %v2584_v36  ;;  %v2648_v42 = vld [vmem:[#allocation3 + $0x9b] sm:$0x1]  ;;  %v2696_v11 = vld [vmem:[#allocation3 + $0x9c] sm:$0x1]  ;;  %v2712_v62 = vld [vmem:[#allocation3 + $0x9d] sm:$0x1]  ;;  %v2137_v58 = vpop.f32.mrf.mxu0  ;;  %v1999_v4 = vadd.f32 %v1949_v18, %v1805_v63  ;;  %v1806_v0 = vadd.f32 %v1758_v32, %v1611_v5 }
 0x38d   : > { %v2664_v48 = vmax.f32 %v2632_v14, %v2648_v42  ;;  %v2728_v47 = vmax.f32 %v2696_v11, %v2712_v62  ;;  %v2760_v59 = vld [vmem:[#allocation3 + $0x9e] sm:$0x1]  ;;  %v2776_v50 = vld [vmem:[#allocation3 + $0x9f] sm:$0x1]  ;;  %2290 = vst [vmem:[#allocation3 + $0xa0] sm:$0xff] %v2258_v12  ;;  %v2191_v7 = vadd.f32 %v2137_v58, %v1997_v43  ;;  %v1418_v12 = vadd.f32 %v5829_v13, %v5828_v17 }
 0x38e   : > { %v2792_v22 = vmax.f32 %v2760_v59, %v2776_v50  ;;  %v2611_v38 = vmax.f32 %v2599_v29, %v2600_v27  ;;  %v2000_v14 = vadd.f32 %v1952_v15, %v1806_v0 }
 0x38f   : > { %v2227_v25 = vadd.f32 %v5376_v33, %v2191_v7  ;;  %v2675_v53 = vmax.f32 %v2663_v60, %v2664_v48  ;;  %v2739_v56 = vmax.f32 %v2727_v57, %v2728_v47  ;;  %v1955_v16 = vpop.f32.mrf.mxu3  ;;  %v1569_v18 = vpop.f32.mrf.mxu1  ;;  %v1612_v62 = vadd.f32 %v1566_v1, %v1418_v12 }
 0x390   : > { %2619 = vst [vmem:[#allocation4 + $0x55] sm:$0x1] %v2611_v38  ;;  %v2803_v30 = vmax.f32 %v2791_v35, %v2792_v22 }
 0x391   : > { %v2259_v55 = vmax.f32 %v2227_v25, 0.0  ;;  %2683 = vst [vmem:[#allocation4 + $0x56] sm:$0x1] %v2675_v53  ;;  %v1764_v46 = vpop.f32.mrf.mxu2  ;;  %v1807_v35 = vadd.f32 %v1761_v51, %v1612_v62 }
 0x392   : > { %2747 = vst [vmem:[#allocation4 + $0x57] sm:$0x1] %v2739_v56 }
 0x393   : > { %2291 = vst [vmem:[#allocation3 + $0xa8] sm:$0xff] %v2259_v55  ;;  %v2001_v41 = vadd.f32 %v1955_v16, %v1807_v35 }
 0x394   : > { %v2140_v20 = vpop.f32.mrf.mxu0  ;;  %2811 = vst [vmem:[#allocation4 + $0x58] sm:$0x1] %v2803_v30  ;;  %v2312_v37 = vld [vmem:[#allocation3 + $0xa0] sm:$0x1]  ;;  %v2328_v2 = vld [vmem:[#allocation3 + $0xa1] sm:$0x1] }
 0x395   : > { %v2192_v9 = vadd.f32 %v2140_v20, %v1998_v40  ;;  %v2377_v43 = vld [vmem:[#allocation3 + $0xa2] sm:$0x1]  ;;  %v2393_v49 = vld [vmem:[#allocation3 + $0xa3] sm:$0x1]  ;;  %v2441_v44 = vld [vmem:[#allocation3 + $0xa4] sm:$0x1]  ;;  %v2344_v58 = vmax.f32 %v2312_v37, %v2328_v2 }
 0x396   : > { %v2457_v36 = vld [vmem:[#allocation3 + $0xa5] sm:$0x1]  ;;  %v2505_v29 = vld [vmem:[#allocation3 + $0xa6] sm:$0x1]  ;;  %v2521_v60 = vld [vmem:[#allocation3 + $0xa7] sm:$0x1]  ;;  %v2409_v23 = vmax.f32 %v2377_v43, %v2393_v49 }
 0x397   : > { %v2228_v34 = vadd.f32 %v5376_v33, %v2192_v9  ;;  %v2473_v7 = vmax.f32 %v2441_v44, %v2457_v36  ;;  %v5430_v10 = vpop.f32.mrf.mxu3  ;;  %v5830_v30 = vld [vmem:[#allocation26_spill] sm:$0xff]  ;;  %v5831_v40 = vld [vmem:[#allocation41_spill] sm:$0xff]  ;;  %v2537_v20 = vmax.f32 %v2505_v29, %v2521_v60  ;;  %v1572_v31 = vpop.f32.mrf.mxu1 }
 0x398   : > { %v1419_v15 = vadd.f32 %v5831_v40, %v5830_v30  ;;  %v3115_v40 = vld [vmem:[#allocation10 + $0x260] sm:$0xff] }
 0x399   : > { %v2260_v45 = vmax.f32 %v2228_v34, 0.0  ;;  %v2820_v52 = vld [vmem:[#allocation4 + $0x50] sm:$0xff] }
 0x39a   : > { %2936 = vmatmul.f32.gmra.mxu2 %v2820_v52  ;;  %v2569_v24 = vld [vmem:[#allocation3 + $0xa8] sm:$0x1]  ;;  %v2585_v9 = vld [vmem:[#allocation3 + $0xa9] sm:$0x1]  ;;  %v2633_v1 = vld [vmem:[#allocation3 + $0xaa] sm:$0x1]  ;;  %v1613_v52 = vadd.f32 %v1569_v18, %v1419_v15 }
 0x39b   : > { %2292 = vst [vmem:[#allocation3 + $0xb0] sm:$0xff] %v2260_v45  ;;  %v5424_v54 = vld [vmem:[#allocation4 + $0x51] sm:$0xff]  ;;  %v2649_v34 = vld [vmem:[#allocation3 + $0xab] sm:$0x1]  ;;  %v2697_v51 = vld [vmem:[#allocation3 + $0xac] sm:$0x1]  ;;  %v2601_v17 = vmax.f32 %v2569_v24, %v2585_v9 }
 0x39c   : > { %v2143_v26 = vpop.f32.mrf.mxu0  ;;  %v2951_v19 = vld [vmem:[#allocation4 + $0x52] sm:$0xff]  ;;  %2895 = vmatmul.f32.gmra.mxu1 %v5424_v54  ;;  %v2713_v45 = vld [vmem:[#allocation3 + $0xad] sm:$0x1]  ;;  %v1808_v49 = vadd.f32 %v1764_v46, %v1613_v52  ;;  %v2665_v18 = vmax.f32 %v2633_v1, %v2649_v34  ;;  %v5832_v46 = vld [vmem:[#allocation27_spill] sm:$0xff] }
 0x39d   : > { %v2193_v8 = vadd.f32 %v2143_v26, %v1999_v4  ;;  %3002 = vmatmul.f32.gmra.mxu3 %v2951_v19  ;;  %v2761_v4 = vld [vmem:[#allocation3 + $0xae] sm:$0x1]  ;;  %v2777_v26 = vld [vmem:[#allocation3 + $0xaf] sm:$0x1]  ;;  %v2729_v62 = vmax.f32 %v2697_v51, %v2713_v45  ;;  %v3189_v15 = vld [vmem:[#allocation10 + $0x2e0] sm:$0xff] }
 0x39e   : > { %v3114_v24 = vld [vmem:[#allocation10 + $0x258] sm:$0xff]  ;;  %v3113_v34 = vld [vmem:[#allocation10 + $0x250] sm:$0xff] }
 0x39f   : > { %v2229_v39 = vadd.f32 %v5376_v33, %v2193_v8  ;;  %v5835_v51 = vld [vmem:[#allocation43_spill] sm:$0xff] }
 0x3a1   : > { %v2261_v3 = vmax.f32 %v2229_v39, 0.0  ;;  %v1767_v39 = vpop.f32.mrf.mxu2 }
 0x3a2   : > { %v2313_v27 = vld [vmem:[#allocation3 + $0xb0] sm:$0x1]  ;;  %v2329_v42 = vld [vmem:[#allocation3 + $0xb1] sm:$0x1]  ;;  %v2378_v11 = vld [vmem:[#allocation3 + $0xb2] sm:$0x1] }
 0x3a3   : > { %v2345_v57 = vmax.f32 %v2313_v27, %v2329_v42  ;;  %v2394_v48 = vld [vmem:[#allocation3 + $0xb3] sm:$0x1]  ;;  %v2442_v47 = vld [vmem:[#allocation3 + $0xb4] sm:$0x1]  ;;  %v2458_v59 = vld [vmem:[#allocation3 + $0xb5] sm:$0x1] }
 0x3a4   : > { %v2146_v50 = vpop.f32.mrf.mxu0  ;;  %v2410_v22 = vmax.f32 %v2378_v11, %v2394_v48  ;;  %v2474_v38 = vmax.f32 %v2442_v47, %v2458_v59  ;;  %v2506_v61 = vld [vmem:[#allocation3 + $0xb6] sm:$0x1]  ;;  %v2522_v32 = vld [vmem:[#allocation3 + $0xb7] sm:$0x1]  ;;  %2293 = vst [vmem:[#allocation3 + $0xb8] sm:$0xff] %v2261_v3  ;;  %v3118_v27 = vld [vmem:[#allocation10 + $0x278] sm:$0xff]  ;;  %v1961_v59 = vpop.f32.mrf.mxu3 }
 0x3a5   : > { %v2194_v25 = vadd.f32 %v2146_v50, %v2000_v14  ;;  %v2538_v53 = vmax.f32 %v2506_v61, %v2522_v32  ;;  %v2355_v56 = vmax.f32 %v2344_v58, %v2345_v57  ;;  %v3192_v42 = vld [vmem:[#allocation10 + $0x2f8] sm:$0xff]  ;;  %3119 = vmatpush.msrb.mxu2 %v3118_v27  ;;  %v3117_v58 = vld [vmem:[#allocation10 + $0x270] sm:$0xff]  ;;  %v5833_v48 = vld [vmem:[#allocation42_spill] sm:$0xff]  ;;  %v2793_v50 = vmax.f32 %v2761_v4, %v2777_v26 }
 0x3a6   : > { %v2420_v6 = vmax.f32 %v2409_v23, %v2410_v22  ;;  %v2484_v55 = vmax.f32 %v2473_v7, %v2474_v38  ;;  %v3044_v11 = vld [vmem:[#allocation10 + $0x1f8] sm:$0xff]  ;;  %3193 = vmatpush.msrb.mxu3 %v3192_v42  ;;  %v3043_v23 = vld [vmem:[#allocation10 + $0x1f0] sm:$0xff]  ;;  %v1420_v47 = vadd.f32 %v5833_v48, %v5832_v46  ;;  %v3116_v38 = vld [vmem:[#allocation10 + $0x268] sm:$0xff] }
 0x3a7   : > { %v2230_v28 = vadd.f32 %v5376_v33, %v2194_v25  ;;  %2364 = vst [vmem:[#allocation4 + $0x61] sm:$0x1] %v2355_v56  ;;  %v2548_v21 = vmax.f32 %v2537_v20, %v2538_v53  ;;  %v3191_v57 = vld [vmem:[#allocation10 + $0x2f0] sm:$0xff]  ;;  %3045 = vmatpush.msrb.mxu1 %v3044_v11  ;;  %v3190_v61 = vld [vmem:[#allocation10 + $0x2e8] sm:$0xff]  ;;  %3120 = vmatpush.msrb.mxu2 %v3117_v58  ;;  %v3040_v20 = vld [vmem:[#allocation10 + $0x1d8] sm:$0xff] }
 0x3a8   : > { %2428 = vst [vmem:[#allocation4 + $0x62] sm:$0x1] %v2420_v6  ;;  %3194 = vmatpush.msrb.mxu3 %v3191_v57  ;;  %v3042_v25 = vld [vmem:[#allocation10 + $0x1e8] sm:$0xff]  ;;  %v2002_v53 = vadd.f32 %v5430_v10, %v1808_v49  ;;  %v1614_v6 = vadd.f32 %v1572_v31, %v1420_v47  ;;  %v3188_v10 = vld [vmem:[#allocation10 + $0x2d8] sm:$0xff]  ;;  %v3109_v57 = vld [vmem:[#allocation10 + $0x230] sm:$0xff] }
 0x3a9   : > { %v2262_v63 = vmax.f32 %v2230_v28, 0.0  ;;  %2492 = vst [vmem:[#allocation4 + $0x63] sm:$0x1] %v2484_v55  ;;  %3046 = vmatpush.msrb.mxu1 %v3043_v23  ;;  %3121 = vmatpush.msrb.mxu2 %v3116_v38  ;;  %v3041_v28 = vld [vmem:[#allocation10 + $0x1e0] sm:$0xff]  ;;  %v1575_v55 = vpop.f32.mrf.mxu1  ;;  %v5834_v31 = vld [vmem:[#allocation28_spill] sm:$0xff]  ;;  %v3112_v4 = vld [vmem:[#allocation10 + $0x248] sm:$0xff] }
 0x3aa   : > { %2556 = vst [vmem:[#allocation4 + $0x64] sm:$0x1] %v2548_v21  ;;  %3195 = vmatpush.msrb.mxu3 %v3190_v61  ;;  %v1809_v9 = vadd.f32 %v1767_v39, %v1614_v6  ;;  %v3187_v21 = vld [vmem:[#allocation10 + $0x2d0] sm:$0xff]  ;;  %v1421_v45 = vadd.f32 %v5835_v51, %v5834_v31  ;;  %v3186_v26 = vld [vmem:[#allocation10 + $0x2c8] sm:$0xff]  ;;  %v3110_v27 = vld [vmem:[#allocation10 + $0x238] sm:$0xff] }
 0x3ab   : > { %2294 = vst [vmem:[#allocation3 + $0xc0] sm:$0xff] %v2262_v63  ;;  %v2570_v5 = vld [vmem:[#allocation3 + $0xb8] sm:$0x1]  ;;  %v2586_v19 = vld [vmem:[#allocation3 + $0xb9] sm:$0x1]  ;;  %3047 = vmatpush.msrb.mxu1 %v3042_v25  ;;  %3122 = vmatpush.msrb.mxu2 %v3115_v40  ;;  %v1770_v63 = vpop.f32.mrf.mxu2  ;;  %v3184_v42 = vld [vmem:[#allocation10 + $0x2b8] sm:$0xff] }
 0x3ac   : > { %v2634_v8 = vld [vmem:[#allocation3 + $0xba] sm:$0x1]  ;;  %v2149_v0 = vpop.f32.mrf.mxu0  ;;  %v2602_v13 = vmax.f32 %v2570_v5, %v2586_v19  ;;  %v2650_v12 = vld [vmem:[#allocation3 + $0xbb] sm:$0x1]  ;;  %v2698_v37 = vld [vmem:[#allocation3 + $0xbc] sm:$0x1]  ;;  %3196 = vmatpush.msrb.mxu3 %v3189_v15  ;;  %v2003_v19 = vadd.f32 %v1961_v59, %v1809_v9  ;;  %v1615_v39 = vadd.f32 %v1575_v55, %v1421_v45 }
 0x3ad   : > { %v2714_v2 = vld [vmem:[#allocation3 + $0xbd] sm:$0x1]  ;;  %v2195_v43 = vadd.f32 %v2149_v0, %v2001_v41  ;;  %v2666_v16 = vmax.f32 %v2634_v8, %v2650_v12  ;;  %v2762_v44 = vld [vmem:[#allocation3 + $0xbe] sm:$0x1]  ;;  %v2778_v36 = vld [vmem:[#allocation3 + $0xbf] sm:$0x1]  ;;  %3048 = vmatpush.msrb.mxu1 %v3041_v28  ;;  %3123 = vmatpush.msrb.mxu2 %v3114_v24  ;;  %v1964_v8 = vpop.f32.mrf.mxu3 }
 0x3ae   : > { %v2730_v3 = vmax.f32 %v2698_v37, %v2714_v2  ;;  %v2794_v14 = vmax.f32 %v2762_v44, %v2778_v36  ;;  %v2612_v60 = vmax.f32 %v2601_v17, %v2602_v13  ;;  %3197 = vmatpush.msrb.mxu3 %v3188_v10  ;;  %v3039_v41 = vld [vmem:[#allocation10 + $0x1d0] sm:$0xff]  ;;  %v3038_v5 = vld [vmem:[#allocation10 + $0x1c8] sm:$0xff]  ;;  %v3037_v2 = vld [vmem:[#allocation10 + $0x1c0] sm:$0xff] }
 0x3af   : > { %v2231_v29 = vadd.f32 %v5376_v33, %v2195_v43  ;;  %v2676_v22 = vmax.f32 %v2665_v18, %v2666_v16  ;;  %3049 = vmatpush.msrb.mxu1 %v3040_v20  ;;  %3124 = vmatpush.msrb.mxu2 %v3113_v34  ;;  %v1810_v43 = vadd.f32 %v1770_v63, %v1615_v39  ;;  %v3185_v44 = vld [vmem:[#allocation10 + $0x2c0] sm:$0xff]  ;;  %v3036_v36 = vld [vmem:[#allocation10 + $0x1b8] sm:$0xff]  ;;  %v3035_v23 = vld [vmem:[#allocation10 + $0x1b0] sm:$0xff] }
 0x3b0   : > { %2620 = vst [vmem:[#allocation4 + $0x65] sm:$0x1] %v2612_v60  ;;  %v2740_v32 = vmax.f32 %v2729_v62, %v2730_v3  ;;  %v2804_v56 = vmax.f32 %v2793_v50, %v2794_v14  ;;  %3198 = vmatpush.msrb.mxu3 %v3187_v21  ;;  %v3111_v3 = vld [vmem:[#allocation10 + $0x240] sm:$0xff]  ;;  %v5837_v14 = vld [vmem:[#allocation44_spill] sm:$0xff]  ;;  %v3034_v59 = vld [vmem:[#allocation10 + $0x1a8] sm:$0xff] }
 0x3b1   : > { %v2263_v7 = vmax.f32 %v2231_v29, 0.0  ;;  %2684 = vst [vmem:[#allocation4 + $0x66] sm:$0x1] %v2676_v22  ;;  %3050 = vmatpush.msrb.mxu1 %v3039_v41  ;;  %3125 = vmatpush.msrb.mxu2 %v3112_v4  ;;  %v1578_v49 = vpop.f32.mrf.mxu1  ;;  %v5836_v18 = vld [vmem:[#allocation29_spill] sm:$0xff]  ;;  %v3183_v47 = vld [vmem:[#allocation10 + $0x2b0] sm:$0xff]  ;;  %v3108_v50 = vld [vmem:[#allocation10 + $0x228] sm:$0xff] }
 0x3b2   : > { %2748 = vst [vmem:[#allocation4 + $0x67] sm:$0x1] %v2740_v32  ;;  %3199 = vmatpush.msrb.mxu3 %v3186_v26  ;;  %v1422_v29 = vadd.f32 %v5837_v14, %v5836_v18  ;;  %v2314_v60 = vld [vmem:[#allocation3 + $0xc0] sm:$0x1]  ;;  %v2330_v62 = vld [vmem:[#allocation3 + $0xc1] sm:$0x1] }
 0x3b3   : > { %2295 = vst [vmem:[#allocation3 + $0xc8] sm:$0xff] %v2263_v7  ;;  %3051 = vmatpush.msrb.mxu1 %v3038_v5  ;;  %3126 = vmatpush.msrb.mxu2 %v3111_v3  ;;  %v1773_v11 = vpop.f32.mrf.mxu2  ;;  %v5454_v46 = vld [vmem:[#allocation3 + $0xc2] sm:$0x1]  ;;  %v5456_v48 = vld [vmem:[#allocation3 + $0xc3] sm:$0x1]  ;;  %v2004_v7 = vadd.f32 %v1964_v8, %v1810_v43  ;;  %v3182_v61 = vld [vmem:[#allocation10 + $0x2a8] sm:$0xff]  ;;  %v2346_v15 = vmax.f32 %v2314_v60, %v2330_v62 }
 0x3b4   : > { %v2152_v35 = vpop.f32.mrf.mxu0  ;;  %2812 = vst [vmem:[#allocation4 + $0x68] sm:$0x1] %v2804_v56  ;;  %3200 = vmatpush.msrb.mxu3 %v3185_v44  ;;  %v5458_v22 = vld [vmem:[#allocation3 + $0xc4] sm:$0x1]  ;;  %v5460_v38 = vld [vmem:[#allocation3 + $0xc5] sm:$0x1]  ;;  %v2411_v5 = vmax.f32 %v5454_v46, %v5456_v48 }
 0x3b5   : > { %v2196_v30 = vadd.f32 %v2152_v35, %v2002_v53  ;;  %3052 = vmatpush.msrb.mxu1 %v3037_v2  ;;  %3127 = vmatpush.msrb.mxu2 %v3110_v27  ;;  %v3033_v32 = vld [vmem:[#allocation10 + $0x1a0] sm:$0xff]  ;;  %v1616_v53 = vadd.f32 %v1578_v49, %v1422_v29  ;;  %v5462_v56 = vld [vmem:[#allocation3 + $0xc6] sm:$0x1]  ;;  %v5464_v35 = vld [vmem:[#allocation3 + $0xc7] sm:$0x1]  ;;  %v1967_v40 = vpop.f32.mrf.mxu3  ;;  %v2475_v49 = vmax.f32 %v5458_v22, %v5460_v38 }
 0x3b6   : > { %3201 = vmatpush.msrb.mxu3 %v3184_v42  ;;  %v3107_v25 = vld [vmem:[#allocation10 + $0x220] sm:$0xff]  ;;  %v3032_v2 = vld [vmem:[#allocation10 + $0x198] sm:$0xff]  ;;  %v3031_v3 = vld [vmem:[#allocation10 + $0x190] sm:$0xff]  ;;  %v2539_v60 = vmax.f32 %v5462_v56, %v5464_v35 }
 0x3b7   : > { %v2232_v1 = vadd.f32 %v5376_v33, %v2196_v30  ;;  %3053 = vmatpush.msrb.mxu1 %v3036_v36  ;;  %3128 = vmatpush.msrb.mxu2 %v3109_v57  ;;  %v3181_v26 = vld [vmem:[#allocation10 + $0x2a0] sm:$0xff]  ;;  %v3106_v43 = vld [vmem:[#allocation10 + $0x218] sm:$0xff]  ;;  %v3105_v44 = vld [vmem:[#allocation10 + $0x210] sm:$0xff] }
 0x3b8   : > { %3202 = vmatpush.msrb.mxu3 %v3183_v47  ;;  %v5838_v36 = vld [vmem:[#allocation30_spill] sm:$0xff]  ;;  %v5839_v18 = vld [vmem:[#allocation45_spill] sm:$0xff] }
 0x3b9   : > { %v2264_v52 = vmax.f32 %v2232_v1, 0.0  ;;  %v5442_v17 = vld [vmem:[#allocation4 + $0x60] sm:$0xff]  ;;  %3054 = vmatpush.msrb.mxu1 %v3035_v23  ;;  %v1811_v1 = vadd.f32 %v1773_v11, %v1616_v53  ;;  %3129 = vmatpush.msrb.mxu2 %v3108_v50  ;;  %v1423_v14 = vadd.f32 %v5839_v18, %v5838_v36  ;;  %v1581_v29 = vpop.f32.mrf.mxu1  ;;  %v3030_v62 = vld [vmem:[#allocation10 + $0x188] sm:$0xff] }
 0x3ba   : > { %2939 = vmatmul.f32.gmra.mxu2 %v5442_v17  ;;  %v5466_v34 = vld [vmem:[#allocation3 + $0xc8] sm:$0x1]  ;;  %v5468_v21 = vld [vmem:[#allocation3 + $0xc9] sm:$0x1]  ;;  %v5470_v41 = vld [vmem:[#allocation3 + $0xca] sm:$0x1]  ;;  %3203 = vmatpush.msrb.mxu3 %v3182_v61 }
 0x3bb   : > { %2296 = vst [vmem:[#allocation3 + $0xd0] sm:$0xff] %v2264_v52  ;;  %v5444_v12 = vld [vmem:[#allocation4 + $0x61] sm:$0xff]  ;;  %v5472_v31 = vld [vmem:[#allocation3 + $0xcb] sm:$0x1]  ;;  %3055 = vmatpush.msrb.mxu1 %v3034_v59  ;;  %v2715_v8 = vld [vmem:[#allocation3 + $0xcd] sm:$0x1]  ;;  %3130 = vmatpush.msrb.mxu2 %v3107_v25  ;;  %v2005_v23 = vadd.f32 %v1967_v40, %v1811_v1  ;;  %v1776_v59 = vpop.f32.mrf.mxu2  ;;  %v2603_v50 = vmax.f32 %v5466_v34, %v5468_v21 }
 0x3bc   : > { %v2155_v0 = vpop.f32.mrf.mxu0  ;;  %v5447_v37 = vld [vmem:[#allocation4 + $0x62] sm:$0xff]  ;;  %2898 = vmatmul.f32.gmra.mxu1 %v5444_v12  ;;  %3204 = vmatpush.msrb.mxu3 %v3181_v26  ;;  %v2763_v22 = vld [vmem:[#allocation3 + $0xce] sm:$0x1]  ;;  %v3178_v40 = vld [vmem:[#allocation10 + $0x288] sm:$0xff] }
 0x3bd   : > { %v2197_v13 = vadd.f32 %v2155_v0, %v2003_v19  ;;  %3005 = vmatmul.f32.gmra.mxu3 %v5447_v37  ;;  %v5476_v19 = vld [vmem:[#allocation3 + $0xcc] sm:$0x1]  ;;  %3056 = vmatpush.msrb.mxu1 %v3033_v32  ;;  %v3179_v11 = vld [vmem:[#allocation10 + $0x290] sm:$0xff] }
 0x3be   : > { %3131 = vmatpush.msrb.mxu2 %v3106_v43  ;;  %v2731_v56 = vmax.f32 %v5476_v19, %v2715_v8  ;;  %v5840_v26 = vld [vmem:[#allocation31_spill] sm:$0xff] }
 0x3bf   : > { %v2233_v16 = vadd.f32 %v5376_v33, %v2197_v13  ;;  %3057 = vmatpush.msrb.mxu1 %v3032_v2 }
 0x3c0   : > { %3132 = vmatpush.msrb.mxu2 %v3105_v44 }
 0x3c1   : > { %v2265_v58 = vmax.f32 %v2233_v16, 0.0  ;;  %v3180_v16 = vld [vmem:[#allocation10 + $0x298] sm:$0xff]  ;;  %3058 = vmatpush.msrb.mxu1 %v3031_v3 }
 0x3c2   : > { %v2315_v28 = vld [vmem:[#allocation3 + $0xd0] sm:$0x1]  ;;  %v2331_v6 = vld [vmem:[#allocation3 + $0xd1] sm:$0x1]  ;;  %v2380_v55 = vld [vmem:[#allocation3 + $0xd2] sm:$0x1]  ;;  %3205 = vmatpush.msrb.mxu3 %v3180_v16 }
 0x3c3   : > { %2297 = vst [vmem:[#allocation3 + $0xd8] sm:$0xff] %v2265_v58  ;;  %v2347_v20 = vmax.f32 %v2315_v28, %v2331_v6  ;;  %v2396_v24 = vld [vmem:[#allocation3 + $0xd3] sm:$0x1]  ;;  %v2444_v10 = vld [vmem:[#allocation3 + $0xd4] sm:$0x1]  ;;  %v3104_v58 = vld [vmem:[#allocation10 + $0x208] sm:$0xff]  ;;  %3059 = vmatpush.msrb.mxu1 %v3030_v62  ;;  %v1779_v2 = vpop.f32.mrf.mxu2 }
 0x3c4   : > { %v2158_v30 = vpop.f32.mrf.mxu0  ;;  %v2460_v9 = vld [vmem:[#allocation3 + $0xd5] sm:$0x1]  ;;  %v2412_v51 = vmax.f32 %v2380_v55, %v2396_v24  ;;  %v2508_v52 = vld [vmem:[#allocation3 + $0xd6] sm:$0x1]  ;;  %v2524_v4 = vld [vmem:[#allocation3 + $0xd7] sm:$0x1]  ;;  %3206 = vmatpush.msrb.mxu3 %v3179_v11  ;;  %3133 = vmatpush.msrb.mxu2 %v3104_v58 }
 0x3c5   : > { %v2198_v63 = vadd.f32 %v2158_v30, %v2004_v7  ;;  %v2476_v45 = vmax.f32 %v2444_v10, %v2460_v9  ;;  %v2540_v0 = vmax.f32 %v2508_v52, %v2524_v4  ;;  %v2356_v13 = vmax.f32 %v2346_v15, %v2347_v20  ;;  %v2779_v20 = vld [vmem:[#allocation3 + $0xcf] sm:$0x1]  ;;  %v3029_v9 = vld [vmem:[#allocation10 + $0x180] sm:$0xff] }
 0x3c6   : > { %v2421_v42 = vmax.f32 %v2411_v5, %v2412_v51  ;;  %v2667_v7 = vmax.f32 %v5470_v41, %v5472_v31  ;;  %v1617_v15 = vadd.f32 %v1581_v29, %v1423_v14  ;;  %v3177_v41 = vld [vmem:[#allocation10 + $0x280] sm:$0xff]  ;;  %v1970_v51 = vpop.f32.mrf.mxu3  ;;  %3207 = vmatpush.msrb.mxu3 %v3178_v40  ;;  %v2795_v52 = vmax.f32 %v2763_v22, %v2779_v20 }
 0x3c7   : > { %v2234_v39 = vadd.f32 %v5376_v33, %v2198_v63  ;;  %2365 = vst [vmem:[#allocation4 + $0x71] sm:$0x1] %v2356_v13  ;;  %v2485_v47 = vmax.f32 %v2475_v49, %v2476_v45  ;;  %v2549_v53 = vmax.f32 %v2539_v60, %v2540_v0  ;;  %v3103_v63 = vld [vmem:[#allocation10 + $0x200] sm:$0xff]  ;;  %3060 = vmatpush.msrb.mxu1 %v3029_v9 }
 0x3c8   : > { %2429 = vst [vmem:[#allocation4 + $0x72] sm:$0x1] %v2421_v42  ;;  %v1812_v31 = vadd.f32 %v1776_v59, %v1617_v15  ;;  %3134 = vmatpush.msrb.mxu2 %v3103_v63  ;;  %3208 = vmatpush.msrb.mxu3 %v3177_v41  ;;  %v5841_v5 = vld [vmem:[#allocation46_spill] sm:$0xff] }
 0x3c9   : > { %v2266_v27 = vmax.f32 %v2234_v39, 0.0  ;;  %2493 = vst [vmem:[#allocation4 + $0x73] sm:$0x1] %v2485_v47  ;;  %v1424_v19 = vadd.f32 %v5841_v5, %v5840_v26  ;;  %v1584_v39 = vpop.f32.mrf.mxu1  ;;  %v3094_v58 = vld [vmem:[#allocation4 + $0x11] sm:$0xff] }
 0x3ca   : > { %v2572_v57 = vld [vmem:[#allocation3 + $0xd8] sm:$0x1]  ;;  %v2588_v46 = vld [vmem:[#allocation3 + $0xd9] sm:$0x1]  ;;  %v2636_v48 = vld [vmem:[#allocation3 + $0xda] sm:$0x1]  ;;  %v2006_v0 = vadd.f32 %v1970_v51, %v1812_v31 }
 0x3cb   : > { %v2604_v38 = vmax.f32 %v2572_v57, %v2588_v46  ;;  %v2652_v61 = vld [vmem:[#allocation3 + $0xdb] sm:$0x1]  ;;  %v2700_v32 = vld [vmem:[#allocation3 + $0xdc] sm:$0x1]  ;;  %v2716_v25 = vld [vmem:[#allocation3 + $0xdd] sm:$0x1]  ;;  %v1618_v49 = vadd.f32 %v1584_v39, %v1424_v19 }
 0x3cc   : > { %v2668_v35 = vmax.f32 %v2636_v48, %v2652_v61  ;;  %v2732_v28 = vmax.f32 %v2700_v32, %v2716_v25  ;;  %v2764_v6 = vld [vmem:[#allocation3 + $0xde] sm:$0x1]  ;;  %v2780_v55 = vld [vmem:[#allocation3 + $0xdf] sm:$0x1]  ;;  %2298 = vst [vmem:[#allocation3 + $0xe0] sm:$0xff] %v2266_v27  ;;  %v2161_v30 = vpop.f32.mrf.mxu0  ;;  %v3020_v9 = vld [vmem:[#allocation4 + $0x10] sm:$0xff] }
 0x3cd   : > { %v2199_v24 = vadd.f32 %v2161_v30, %v2005_v23  ;;  %v2613_v10 = vmax.f32 %v2603_v50, %v2604_v38  ;;  %v2796_v1 = vmax.f32 %v2764_v6, %v2780_v55  ;;  %2557 = vst [vmem:[#allocation4 + $0x74] sm:$0x1] %v2549_v53  ;;  %v1813_v3 = vadd.f32 %v1779_v2, %v1618_v49  ;;  %v3415_v31 = vld [vmem:[#allocation10 + $0x478] sm:$0xff]  ;;  %v3266_v19 = vld [vmem:[#allocation10 + $0x370] sm:$0xff]  ;;  %v3265_v2 = vld [vmem:[#allocation10 + $0x368] sm:$0xff] }
 0x3ce   : > { %v2677_v34 = vmax.f32 %v2667_v7, %v2668_v35  ;;  %v2741_v21 = vmax.f32 %v2731_v56, %v2732_v28  ;;  %v1973_v44 = vpop.f32.mrf.mxu3  ;;  %v3267_v51 = vld [vmem:[#allocation10 + $0x378] sm:$0xff]  ;;  %3416 = vmatpush.msra.mxu3 %v3415_v31  ;;  %v3408_v31 = vld [vmem:[#allocation10 + $0x440] sm:$0xff] }
 0x3cf   : > { %v2235_v45 = vadd.f32 %v5376_v33, %v2199_v24  ;;  %2621 = vst [vmem:[#allocation4 + $0x75] sm:$0x1] %v2613_v10  ;;  %v2805_v8 = vmax.f32 %v2795_v52, %v2796_v1  ;;  %v2007_v14 = vadd.f32 %v1973_v44, %v1813_v3  ;;  %3268 = vmatpush.msra.mxu1 %v3267_v51  ;;  %v3413_v3 = vld [vmem:[#allocation10 + $0x468] sm:$0xff]  ;;  %v5507_v44 = vld [vmem:[#allocation4 + $0x20] sm:$0xff] }
 0x3d0   : > { %2685 = vst [vmem:[#allocation4 + $0x76] sm:$0x1] %v2677_v34  ;;  %v3168_v34 = vld [vmem:[#allocation4 + $0x12] sm:$0xff] }
 0x3d1   : > { %v2267_v4 = vmax.f32 %v2235_v45, 0.0  ;;  %2749 = vst [vmem:[#allocation4 + $0x77] sm:$0x1] %v2741_v21  ;;  %v5504_v21 = vld [vmem:[#allocation4 + $0x21] sm:$0xff]  ;;  %3269 = vmatpush.msra.mxu1 %v3266_v19 }
 0x3d2   : > { %2813 = vst [vmem:[#allocation4 + $0x78] sm:$0x1] %v2805_v8  ;;  %v3340_v45 = vld [vmem:[#allocation10 + $0x3f0] sm:$0xff] }
 0x3d3   : > { %2299 = vst [vmem:[#allocation3 + $0xe8] sm:$0xff] %v2267_v4  ;;  %v2316_v42 = vld [vmem:[#allocation3 + $0xe0] sm:$0x1]  ;;  %v2332_v11 = vld [vmem:[#allocation3 + $0xe1] sm:$0x1]  ;;  %3270 = vmatpush.msra.mxu1 %v3265_v2  ;;  %v3257_v2 = vld [vmem:[#allocation10 + $0x328] sm:$0xff] }
 0x3d4   : > { %v2164_v13 = vpop.f32.mrf.mxu0  ;;  %v2381_v23 = vld [vmem:[#allocation3 + $0xe2] sm:$0x1]  ;;  %v2397_v57 = vld [vmem:[#allocation3 + $0xe3] sm:$0x1]  ;;  %v2445_v46 = vld [vmem:[#allocation3 + $0xe4] sm:$0x1]  ;;  %v2348_v61 = vmax.f32 %v2316_v42, %v2332_v11 }
 0x3d5   : > { %v2200_v43 = vadd.f32 %v2164_v13, %v2006_v0  ;;  %v2461_v47 = vld [vmem:[#allocation3 + $0xe5] sm:$0x1]  ;;  %v2509_v59 = vld [vmem:[#allocation3 + $0xe6] sm:$0x1]  ;;  %v2525_v50 = vld [vmem:[#allocation3 + $0xe7] sm:$0x1]  ;;  %v2413_v32 = vmax.f32 %v2381_v23, %v2397_v57 }
 0x3d6   : > { %v2477_v28 = vmax.f32 %v2445_v46, %v2461_v47  ;;  %v2541_v20 = vmax.f32 %v2509_v59, %v2525_v50  ;;  %v3414_v8 = vld [vmem:[#allocation10 + $0x470] sm:$0xff]  ;;  %v3870_v0 = vld [vmem:[#allocation12 + $0x378] sm:$0xff]  ;;  %v5520_v51 = vpop.f32.mrf.mxu3 }
 0x3d7   : > { %v2236_v16 = vadd.f32 %v5376_v33, %v2200_v43  ;;  %3871 = vmatpush.msrb.mxu0 %v3870_v0  ;;  %v3339_v43 = vld [vmem:[#allocation10 + $0x3e8] sm:$0xff]  ;;  %3417 = vmatpush.msra.mxu3 %v3414_v8  ;;  %v3258_v19 = vld [vmem:[#allocation10 + $0x330] sm:$0xff] }
 0x3d8   : > { %v5494_v18 = vld [vmem:[#allocation4 + $0x70] sm:$0xff]  ;;  %v4478_v8 = vld [vmem:[#allocation4 + $0x41] sm:$0xff] }
 0x3d9   : > { %v2268_v36 = vmax.f32 %v2236_v16, 0.0  ;;  %2942 = vmatmul.f32.gmra.mxu2 %v5494_v18  ;;  %v5497_v60 = vld [vmem:[#allocation4 + $0x71] sm:$0xff]  ;;  %3418 = vmatpush.msra.mxu3 %v3413_v3  ;;  %v3332_v0 = vld [vmem:[#allocation10 + $0x3b0] sm:$0xff] }
 0x3da   : > { %2901 = vmatmul.f32.gmra.mxu1 %v5497_v60  ;;  %v5500_v62 = vld [vmem:[#allocation4 + $0x72] sm:$0xff]  ;;  %v2573_v52 = vld [vmem:[#allocation3 + $0xe8] sm:$0x1]  ;;  %v2589_v4 = vld [vmem:[#allocation3 + $0xe9] sm:$0x1] }
 0x3db   : > { %2300 = vst [vmem:[#allocation3 + $0xf0] sm:$0xff] %v2268_v36  ;;  %3008 = vmatmul.f32.gmra.mxu3 %v5500_v62  ;;  %v2637_v26 = vld [vmem:[#allocation3 + $0xea] sm:$0x1]  ;;  %v2653_v5 = vld [vmem:[#allocation3 + $0xeb] sm:$0x1]  ;;  %v3264_v36 = vld [vmem:[#allocation10 + $0x360] sm:$0xff] }
 0x3dc   : > { %v2167_v29 = vpop.f32.mrf.mxu0  ;;  %v2701_v39 = vld [vmem:[#allocation3 + $0xec] sm:$0x1]  ;;  %v2717_v13 = vld [vmem:[#allocation3 + $0xed] sm:$0x1]  ;;  %v2765_v49 = vld [vmem:[#allocation3 + $0xee] sm:$0x1]  ;;  %v2669_v23 = vmax.f32 %v2637_v26, %v2653_v5  ;;  %3271 = vmatpush.msra.mxu1 %v3264_v36 }
 0x3dd   : > { %v2201_v27 = vadd.f32 %v2167_v29, %v2007_v14  ;;  %v2781_v16 = vld [vmem:[#allocation3 + $0xef] sm:$0x1]  ;;  %v3338_v14 = vld [vmem:[#allocation10 + $0x3e0] sm:$0xff]  ;;  %v2733_v59 = vmax.f32 %v2701_v39, %v2717_v13  ;;  %v3406_v39 = vld [vmem:[#allocation10 + $0x430] sm:$0xff] }
 0x3de   : > { %v3412_v29 = vld [vmem:[#allocation10 + $0x460] sm:$0xff]  ;;  %v3333_v26 = vld [vmem:[#allocation10 + $0x3b8] sm:$0xff]  ;;  %v3869_v13 = vld [vmem:[#allocation12 + $0x370] sm:$0xff] }
 0x3df   : > { %v2237_v48 = vadd.f32 %v5376_v33, %v2201_v27  ;;  %v3341_v33 = vld [vmem:[#allocation10 + $0x3f8] sm:$0xff]  ;;  %3419 = vmatpush.msra.mxu3 %v3412_v29  ;;  %3872 = vmatpush.msrb.mxu0 %v3869_v13  ;;  %v3256_v3 = vld [vmem:[#allocation10 + $0x320] sm:$0xff]  ;;  %v3405_v36 = vld [vmem:[#allocation10 + $0x428] sm:$0xff] }
 0x3e0   : > { %3342 = vmatpush.msra.mxu2 %v3341_v33  ;;  %v3410_v33 = vld [vmem:[#allocation10 + $0x450] sm:$0xff]  ;;  %v3407_v5 = vld [vmem:[#allocation10 + $0x438] sm:$0xff] }
 0x3e1   : > { %3135 = vmatmul.f32.vlgmr.msrb.gmra.mxu2 %v3094_v58  ;;  %v2269_v15 = vmax.f32 %v2237_v48, 0.0  ;;  %v2605_v58 = vmax.f32 %v2573_v52, %v2589_v4  ;;  %v5522_v52 = vld [vmem:[#allocation4 + $0x32] sm:$0xff]  ;;  %v3259_v4 = vld [vmem:[#allocation10 + $0x338] sm:$0xff]  ;;  %v4479_v29 = vld [vmem:[#allocation4 + $0x40] sm:$0xff] }
 0x3e2   : > { %v2317_v7 = vld [vmem:[#allocation3 + $0xf0] sm:$0x1]  ;;  %v2333_v22 = vld [vmem:[#allocation3 + $0xf1] sm:$0x1]  ;;  %v2382_v38 = vld [vmem:[#allocation3 + $0xf2] sm:$0x1]  ;;  %3061 = vmatmul.f32.vlgmr.msrb.gmra.mxu1 %v3020_v9  ;;  %3343 = vmatpush.msra.mxu2 %v3340_v45  ;;  %v5518_v9 = vpop.f32.mrf.mxu2 }
 0x3e3   : > { %v2349_v25 = vmax.f32 %v2317_v7, %v2333_v22  ;;  %v2398_v53 = vld [vmem:[#allocation3 + $0xf3] sm:$0x1]  ;;  %v2446_v56 = vld [vmem:[#allocation3 + $0xf4] sm:$0x1]  ;;  %v2462_v35 = vld [vmem:[#allocation3 + $0xf5] sm:$0x1]  ;;  %3209 = vmatmul.f32.vlgmr.msrb.gmra.mxu3 %v3168_v34 }
 0x3e4   : > { %v2414_v6 = vmax.f32 %v2382_v38, %v2398_v53  ;;  %v2478_v55 = vmax.f32 %v2446_v56, %v2462_v35  ;;  %v2510_v30 = vld [vmem:[#allocation3 + $0xf6] sm:$0x1]  ;;  %v2526_v40 = vld [vmem:[#allocation3 + $0xf7] sm:$0x1]  ;;  %2301 = vst [vmem:[#allocation3 + $0xf8] sm:$0xff] %v2269_v15  ;;  %3344 = vmatpush.msra.mxu2 %v3339_v43  ;;  %v3263_v53 = vld [vmem:[#allocation10 + $0x358] sm:$0xff] }
 0x3e5   : > { %v2542_v24 = vmax.f32 %v2510_v30, %v2526_v40  ;;  %v2357_v10 = vmax.f32 %v2348_v61, %v2349_v25  ;;  %v5510_v61 = vld [vmem:[#allocation4 + $0x22] sm:$0xff]  ;;  %3272 = vmatpush.msra.mxu1 %v3263_v53  ;;  %v3260_v34 = vld [vmem:[#allocation10 + $0x340] sm:$0xff]  ;;  %v3331_v43 = vld [vmem:[#allocation10 + $0x3a8] sm:$0xff] }
 0x3e6   : > { %v2422_v63 = vmax.f32 %v2413_v32, %v2414_v6  ;;  %v2486_v1 = vmax.f32 %v2477_v28, %v2478_v55  ;;  %3345 = vmatpush.msra.mxu2 %v3338_v14  ;;  %v2797_v32 = vmax.f32 %v2765_v49, %v2781_v16  ;;  %v3337_v56 = vld [vmem:[#allocation10 + $0x3d8] sm:$0xff]  ;;  %v5513_v6 = vld [vmem:[#allocation4 + $0x31] sm:$0xff]  ;;  %v3262_v55 = vld [vmem:[#allocation10 + $0x350] sm:$0xff] }
 0x3e7   : > { %2366 = vst [vmem:[#allocation4 + $0x81] sm:$0x1] %v2357_v10  ;;  %v2550_v41 = vmax.f32 %v2541_v20, %v2542_v24  ;;  %v3411_v35 = vld [vmem:[#allocation10 + $0x458] sm:$0xff]  ;;  %v3336_v30 = vld [vmem:[#allocation10 + $0x3d0] sm:$0xff]  ;;  %v3335_v20 = vld [vmem:[#allocation10 + $0x3c8] sm:$0xff]  ;;  %v5516_v10 = vpop.f32.mrf.mxu1  ;;  %3273 = vmatpush.msra.mxu1 %v3262_v55 }
 0x3e8   : > { %2430 = vst [vmem:[#allocation4 + $0x82] sm:$0x1] %v2422_v63  ;;  %3346 = vmatpush.msra.mxu2 %v3337_v56  ;;  %3420 = vmatpush.msra.mxu3 %v3411_v35  ;;  %v3261_v63 = vld [vmem:[#allocation10 + $0x348] sm:$0xff]  ;;  %v4477_v45 = vld [vmem:[#allocation4 + $0x30] sm:$0xff]  ;;  %v3865_v13 = vld [vmem:[#allocation12 + $0x350] sm:$0xff] }
 0x3e9   : > { %2494 = vst [vmem:[#allocation4 + $0x83] sm:$0x1] %v2486_v1  ;;  %3138 = vmatmul.f32.gmra.mxu2 %v5504_v21  ;;  %v3409_v1 = vld [vmem:[#allocation10 + $0x448] sm:$0xff]  ;;  %3274 = vmatpush.msra.mxu1 %v3261_v63  ;;  %v3330_v14 = vld [vmem:[#allocation10 + $0x3a0] sm:$0xff] }
 0x3ea   : > { %2558 = vst [vmem:[#allocation4 + $0x84] sm:$0x1] %v2550_v41  ;;  %3064 = vmatmul.f32.gmra.mxu1 %v5507_v44  ;;  %3347 = vmatpush.msra.mxu2 %v3336_v30  ;;  %v3334_v41 = vld [vmem:[#allocation10 + $0x3c0] sm:$0xff]  ;;  %v5527_v16 = vpop.f32.mrf.mxu2  ;;  %v3868_v35 = vld [vmem:[#allocation12 + $0x368] sm:$0xff] }
 0x3eb   : > { %v2574_v27 = vld [vmem:[#allocation3 + $0xf8] sm:$0x1]  ;;  %v2590_v42 = vld [vmem:[#allocation3 + $0xf9] sm:$0x1]  ;;  %v2638_v11 = vld [vmem:[#allocation3 + $0xfa] sm:$0x1]  ;;  %3212 = vmatmul.f32.gmra.mxu3 %v5510_v61  ;;  %3275 = vmatpush.msra.mxu1 %v3260_v34 }
 0x3ec   : > { %v2606_v57 = vmax.f32 %v2574_v27, %v2590_v42  ;;  %v2654_v46 = vld [vmem:[#allocation3 + $0xfb] sm:$0x1]  ;;  %v2702_v48 = vld [vmem:[#allocation3 + $0xfc] sm:$0x1]  ;;  %v2718_v47 = vld [vmem:[#allocation3 + $0xfd] sm:$0x1]  ;;  %3421 = vmatpush.msra.mxu3 %v3410_v33  ;;  %3348 = vmatpush.msra.mxu2 %v3335_v20 }
 0x3ed   : > { %v2670_v50 = vmax.f32 %v2638_v11, %v2654_v46  ;;  %v2734_v7 = vmax.f32 %v2702_v48, %v2718_v47  ;;  %v2766_v22 = vld [vmem:[#allocation3 + $0xfe] sm:$0x1]  ;;  %v2782_v38 = vld [vmem:[#allocation3 + $0xff] sm:$0x1]  ;;  %3276 = vmatpush.msra.mxu1 %v3259_v4  ;;  %v4480_v27 = vld [vmem:[#allocation4 + $0x42] sm:$0xff]  ;;  %3873 = vmatpush.msrb.mxu0 %v3868_v35 }
 0x3ee   : > { %v2798_v25 = vmax.f32 %v2766_v22, %v2782_v38  ;;  %v2614_v28 = vmax.f32 %v2605_v58, %v2606_v57  ;;  %3422 = vmatpush.msra.mxu3 %v3409_v1  ;;  %3349 = vmatpush.msra.mxu2 %v3334_v41  ;;  %v3404_v42 = vld [vmem:[#allocation10 + $0x420] sm:$0xff]  ;;  %v3255_v11 = vld [vmem:[#allocation10 + $0x318] sm:$0xff]  ;;  %v3254_v46 = vld [vmem:[#allocation10 + $0x310] sm:$0xff] }
 0x3ef   : > { %v2678_v40 = vmax.f32 %v2669_v23, %v2670_v50  ;;  %v2742_v15 = vmax.f32 %v2733_v59, %v2734_v7  ;;  %3277 = vmatpush.msra.mxu1 %v3258_v19  ;;  %v5525_v49 = vpop.f32.mrf.mxu1  ;;  %v3329_v58 = vld [vmem:[#allocation10 + $0x398] sm:$0xff]  ;;  %v5529_v23 = vpop.f32.mrf.mxu3  ;;  %v3328_v48 = vld [vmem:[#allocation10 + $0x390] sm:$0xff]  ;;  %v3253_v47 = vld [vmem:[#allocation10 + $0x308] sm:$0xff] }
 0x3f0   : > { %2622 = vst [vmem:[#allocation4 + $0x85] sm:$0x1] %v2614_v28  ;;  %v2806_v24 = vmax.f32 %v2797_v32, %v2798_v25  ;;  %3423 = vmatpush.msra.mxu3 %v3408_v31  ;;  %3350 = vmatpush.msra.mxu2 %v3333_v26  ;;  %v3403_v57 = vld [vmem:[#allocation10 + $0x418] sm:$0xff]  ;;  %v3402_v59 = vld [vmem:[#allocation10 + $0x410] sm:$0xff]  ;;  %v3327_v22 = vld [vmem:[#allocation10 + $0x388] sm:$0xff] }
 0x3f1   : > { %3141 = vmatmul.f32.gmra.mxu2 %v5513_v6  ;;  %2686 = vst [vmem:[#allocation4 + $0x86] sm:$0x1] %v2678_v40  ;;  %3278 = vmatpush.msra.mxu1 %v3257_v2  ;;  %v3401_v38 = vld [vmem:[#allocation10 + $0x408] sm:$0xff]  ;;  %v3252_v32 = vld [vmem:[#allocation10 + $0x300] sm:$0xff] }
 0x3f2   : > { %2750 = vst [vmem:[#allocation4 + $0x87] sm:$0x1] %v2742_v15  ;;  %3067 = vmatmul.f32.gmra.mxu1 %v4477_v45  ;;  %3424 = vmatpush.msra.mxu3 %v3407_v5  ;;  %v5534_v7 = vpop.f32.mrf.mxu2  ;;  %v4482_v25 = vld [vmem:[#allocation4 + $0x52] sm:$0xff]  ;;  %v3866_v5 = vld [vmem:[#allocation12 + $0x358] sm:$0xff] }
 0x3f3   : > { %2814 = vst [vmem:[#allocation4 + $0x88] sm:$0x1] %v2806_v24  ;;  %3215 = vmatmul.f32.gmra.mxu3 %v5522_v52  ;;  %3351 = vmatpush.msra.mxu2 %v3332_v0  ;;  %v3326_v53 = vld [vmem:[#allocation10 + $0x380] sm:$0xff]  ;;  %v3245_v0 = vld [vmem:[#allocation4 + $0x40] sm:$0xff]  ;;  %v3711_v35 = vld [vmem:[#allocation12 + $0x168] sm:$0xff] }
 0x3f4   : > { %3425 = vmatpush.msra.mxu3 %v3406_v39  ;;  %3279 = vmatpush.msra.mxu1 %v3256_v3  ;;  %v3400_v56 = vld [vmem:[#allocation10 + $0x400] sm:$0xff]  ;;  %v3393_v39 = vld [vmem:[#allocation4 + $0x42] sm:$0xff] }
 0x3f5   : > { %3352 = vmatpush.msra.mxu2 %v3331_v43  ;;  %v3867_v20 = vld [vmem:[#allocation12 + $0x360] sm:$0xff] }
 0x3f6   : > { %3426 = vmatpush.msra.mxu3 %v3405_v36  ;;  %3280 = vmatpush.msra.mxu1 %v3255_v11  ;;  %v3244_v19 = vld [vmem:[#allocation4 + $0x30] sm:$0xff] }
 0x3f7   : > { %3353 = vmatpush.msra.mxu2 %v3330_v14  ;;  %v5532_v50 = vpop.f32.mrf.mxu1  ;;  %v5536_v28 = vpop.f32.mrf.mxu3  ;;  %3874 = vmatpush.msrb.mxu0 %v3867_v20  ;;  %v3324_v3 = vld [vmem:[#allocation4 + $0x91] sm:$0xff] }
 0x3f8   : > { %3427 = vmatpush.msra.mxu3 %v3404_v42  ;;  %3281 = vmatpush.msra.mxu1 %v3254_v46  ;;  %v3863_v36 = vld [vmem:[#allocation12 + $0x340] sm:$0xff]  ;;  %v3655_v46 = vld [vmem:[#allocation12 + $0xf8] sm:$0xff] }
 0x3f9   : > { %3144 = vmatmul.f32.gmra.mxu2 %v4478_v8  ;;  %v3027_v41 = vld [vmem:[#allocation4 + $0x80] sm:$0xff]  ;;  %3875 = vmatpush.msrb.mxu0 %v3866_v5  ;;  %v3398_v14 = vld [vmem:[#allocation4 + $0x92] sm:$0xff] }
 0x3fa   : > { %3070 = vmatmul.f32.gmra.mxu1 %v4479_v29  ;;  %3354 = vmatpush.msra.mxu2 %v3329_v58  ;;  %v5541_v30 = vpop.f32.mrf.mxu2  ;;  %v3101_v63 = vld [vmem:[#allocation4 + $0x81] sm:$0xff]  ;;  %v3652_v20 = vld [vmem:[#allocation12 + $0xe0] sm:$0xff] }
 0x3fb   : > { %3218 = vmatmul.f32.gmra.mxu3 %v4480_v27  ;;  %3282 = vmatpush.msra.mxu1 %v3253_v47  ;;  %v3175_v45 = vld [vmem:[#allocation4 + $0x82] sm:$0xff] }
 0x3fc   : > { %3428 = vmatpush.msra.mxu3 %v3403_v57  ;;  %3355 = vmatpush.msra.mxu2 %v3328_v48  ;;  %v3319_v8 = vld [vmem:[#allocation4 + $0x41] sm:$0xff] }
 0x3fd   : > { %3283 = vmatpush.msra.mxu1 %v3252_v32  ;;  %3876 = vmatpush.msrb.mxu0 %v3865_v13  ;;  %v3862_v58 = vld [vmem:[#allocation12 + $0x338] sm:$0xff]  ;;  %v3636_v32 = vld [vmem:[#allocation12 + $0x70] sm:$0xff]  ;;  %v3649_v13 = vld [vmem:[#allocation12 + $0xc8] sm:$0xff] }
 0x3fe   : > { %3429 = vmatpush.msra.mxu3 %v3402_v59  ;;  %3356 = vmatpush.msra.mxu2 %v3327_v22  ;;  %v3637_v48 = vld [vmem:[#allocation12 + $0x78] sm:$0xff]  ;;  %v3650_v5 = vld [vmem:[#allocation12 + $0xd0] sm:$0xff] }
 0x3ff   : > { %v5539_v55 = vpop.f32.mrf.mxu1  ;;  %v5545_v40 = vpop.f32.mrf.mxu3  ;;  %v3713_v47 = vld [vmem:[#allocation12 + $0x178] sm:$0xff]  ;;  %3656 = vmatpush.msrb.mxu1 %v3655_v46  ;;  %v3627_v46 = vld [vmem:[#allocation12 + $0x28] sm:$0xff] }
 0x400   : > { %3430 = vmatpush.msra.mxu3 %v3401_v38  ;;  %3357 = vmatpush.msra.mxu2 %v3326_v53  ;;  %v3654_v38 = vld [vmem:[#allocation12 + $0xf0] sm:$0xff]  ;;  %v3653_v53 = vld [vmem:[#allocation12 + $0xe8] sm:$0xff] }
 0x401   : > { %3147 = vmatmul.f32.gmra.mxu2 %v5424_v54  ;;  %v4481_v54 = vld [vmem:[#allocation4 + $0x50] sm:$0xff]  ;;  %3657 = vmatpush.msrb.mxu1 %v3654_v38 }
 0x402   : > { %3073 = vmatmul.f32.gmra.mxu1 %v4481_v54  ;;  %3431 = vmatpush.msra.mxu3 %v3400_v56  ;;  %v5550_v33 = vpop.f32.mrf.mxu2  ;;  %v3635_v56 = vld [vmem:[#allocation12 + $0x68] sm:$0xff]  ;;  %v3626_v38 = vld [vmem:[#allocation12 + $0x20] sm:$0xff] }
 0x403   : > { %3221 = vmatmul.f32.gmra.mxu3 %v4482_v25  ;;  %3676 = vmatpush.msrb.mxu2 %v3637_v48  ;;  %v3703_v48 = vld [vmem:[#allocation12 + $0x128] sm:$0xff] }
 0x404   : > { %3714 = vmatpush.msrb.mxu3 %v3713_v47  ;;  %3658 = vmatpush.msrb.mxu1 %v3653_v53  ;;  %v3644_v47 = vld [vmem:[#allocation12 + $0xa0] sm:$0xff]  ;;  %v3625_v53 = vld [vmem:[#allocation12 + $0x18] sm:$0xff] }
 0x405   : > { %3677 = vmatpush.msrb.mxu2 %v3636_v32  ;;  %v3702_v32 = vld [vmem:[#allocation12 + $0x120] sm:$0xff] }
 0x406   : > { %3659 = vmatpush.msrb.mxu1 %v3652_v20 }
 0x407   : > { %v5548_v15 = vpop.f32.mrf.mxu1  ;;  %v5554_v24 = vpop.f32.mrf.mxu3  ;;  %3678 = vmatpush.msrb.mxu2 %v3635_v56  ;;  %v3701_v56 = vld [vmem:[#allocation12 + $0x118] sm:$0xff] }
 0x409   : > { %3150 = vmatmul.f32.gmra.mxu2 %v5444_v12 }
 0x40a   : > { %3076 = vmatmul.f32.gmra.mxu1 %v5442_v17 }
 0x40b   : > { %3224 = vmatmul.f32.gmra.mxu3 %v5447_v37 }
 0x411   : > { %3153 = vmatmul.f32.gmra.mxu2 %v5497_v60 }
 0x412   : > { %3079 = vmatmul.f32.gmra.mxu1 %v5494_v18 }
 0x413   : > { %3227 = vmatmul.f32.gmra.mxu3 %v5500_v62 }
 0x419   : > { %3156 = vmatmul.f32.gmra.mxu2 %v3101_v63  ;;  %v2896_v1 = vpop.f32.mrf.mxu1 }
 0x41a   : > { %3082 = vmatmul.f32.gmra.mxu1 %v3027_v41 }
 0x41b   : > { %3230 = vmatmul.f32.gmra.mxu3 %v3175_v45 }
 0x41d   : > { %v2937_v34 = vpop.f32.mrf.mxu2 }
 0x41e   : > { %v2938_v31 = vadd.f32 %v2937_v34, %v2896_v1  ;;  %v3710_v1 = vld [vmem:[#allocation12 + $0x160] sm:$0xff]  ;;  %v3651_v34 = vld [vmem:[#allocation12 + $0xd8] sm:$0xff] }
 0x41f   : > { %3660 = vmatpush.msrb.mxu1 %v3651_v34  ;;  %v3624_v34 = vld [vmem:[#allocation12 + $0x10] sm:$0xff] }
 0x420   : > { %v3003_v4 = vpop.f32.mrf.mxu3 }
 0x421   : > { %v5556_v26 = vadd.f32 %v3003_v4, %v2938_v31  ;;  %3358 = vmatmul.f32.vlgmr.msra.gmra.mxu2 %v5504_v21  ;;  %v4483_v21 = vld [vmem:[#allocation4 + $0x51] sm:$0xff]  ;;  %v3709_v31 = vld [vmem:[#allocation12 + $0x158] sm:$0xff]  ;;  %3661 = vmatpush.msrb.mxu1 %v3650_v5 }
 0x422   : > { %3284 = vmatmul.f32.vlgmr.msra.gmra.mxu1 %v5507_v44  ;;  %v3623_v5 = vld [vmem:[#allocation12 + $0x8] sm:$0xff] }
 0x423   : > { %3432 = vmatmul.f32.vlgmr.msra.gmra.mxu3 %v5510_v61  ;;  %3662 = vmatpush.msrb.mxu1 %v3649_v13  ;;  %v3640_v13 = vld [vmem:[#allocation12 + $0x80] sm:$0xff] }
 0x429   : > { %3361 = vmatmul.f32.gmra.mxu2 %v5513_v6 }
 0x42a   : > { %3287 = vmatmul.f32.gmra.mxu1 %v3244_v19  ;;  %v3632_v19 = vld [vmem:[#allocation12 + $0x50] sm:$0xff] }
 0x42b   : > { %3435 = vmatmul.f32.gmra.mxu3 %v5522_v52  ;;  %v3864_v52 = vld [vmem:[#allocation12 + $0x348] sm:$0xff] }
 0x42c   : > { %3877 = vmatpush.msrb.mxu0 %v3864_v52  ;;  %v3647_v52 = vld [vmem:[#allocation12 + $0xb8] sm:$0xff] }
 0x42e   : > { %3878 = vmatpush.msrb.mxu0 %v3863_v36 }
 0x430   : > { %3879 = vmatpush.msrb.mxu0 %v3862_v58  ;;  %v3645_v58 = vld [vmem:[#allocation12 + $0xa8] sm:$0xff] }
 0x431   : > { %3364 = vmatmul.f32.gmra.mxu2 %v3319_v8  ;;  %v3708_v8 = vld [vmem:[#allocation12 + $0x150] sm:$0xff] }
 0x432   : > { %3290 = vmatmul.f32.gmra.mxu1 %v3245_v0 }
 0x433   : > { %3438 = vmatmul.f32.gmra.mxu3 %v3393_v39  ;;  %v3861_v39 = vld [vmem:[#allocation12 + $0x330] sm:$0xff] }
 0x434   : > { %3880 = vmatpush.msrb.mxu0 %v3861_v39 }
 0x439   : > { %3367 = vmatmul.f32.gmra.mxu2 %v4483_v21  ;;  %v2899_v44 = vpop.f32.mrf.mxu1  ;;  %v3631_v21 = vld [vmem:[#allocation12 + $0x48] sm:$0xff] }
 0x43a   : > { %3293 = vmatmul.f32.gmra.mxu1 %v4481_v54  ;;  %v3712_v54 = vld [vmem:[#allocation12 + $0x170] sm:$0xff] }
 0x43b   : > { %3441 = vmatmul.f32.gmra.mxu3 %v4482_v25 }
 0x43c   : > { %3715 = vmatpush.msrb.mxu3 %v3712_v54  ;;  %v3643_v54 = vld [vmem:[#allocation12 + $0x98] sm:$0xff] }
 0x43d   : > { %v2940_v61 = vpop.f32.mrf.mxu2 }
 0x43e   : > { %v2941_v2 = vadd.f32 %v2940_v61, %v2899_v44  ;;  %3716 = vmatpush.msrb.mxu3 %v3711_v35  ;;  %v3707_v44 = vld [vmem:[#allocation12 + $0x148] sm:$0xff]  ;;  %v3648_v61 = vld [vmem:[#allocation12 + $0xc0] sm:$0xff] }
 0x43f   : > { %3663 = vmatpush.msrb.mxu1 %v3648_v61 }
 0x440   : > { %v3006_v6 = vpop.f32.mrf.mxu3  ;;  %3717 = vmatpush.msrb.mxu3 %v3710_v1  ;;  %v3642_v1 = vld [vmem:[#allocation12 + $0x90] sm:$0xff] }
 0x441   : > { %3370 = vmatmul.f32.gmra.mxu2 %v5444_v12  ;;  %v5564_v43 = vadd.f32 %v3006_v6, %v2941_v2  ;;  %v3630_v2 = vld [vmem:[#allocation12 + $0x40] sm:$0xff]  ;;  %3664 = vmatpush.msrb.mxu1 %v3647_v52  ;;  %v3831_v52 = vld [vmem:[#allocation12 + $0x2f8] sm:$0xff] }
 0x442   : > { %3296 = vmatmul.f32.gmra.mxu1 %v5442_v17  ;;  %3718 = vmatpush.msrb.mxu3 %v3709_v31  ;;  %v3706_v6 = vld [vmem:[#allocation12 + $0x140] sm:$0xff]  ;;  %v3641_v31 = vld [vmem:[#allocation12 + $0x88] sm:$0xff] }
 0x443   : > { %3444 = vmatmul.f32.gmra.mxu3 %v5447_v37  ;;  %v4484_v37 = vld [vmem:[#allocation2] sm:$0xff] }
 0x444   : > { %3719 = vmatpush.msrb.mxu3 %v3708_v8 }
 0x446   : > { %3720 = vmatpush.msrb.mxu3 %v3707_v44  ;;  %v3698_v44 = vld [vmem:[#allocation12 + $0x100] sm:$0xff] }
 0x448   : > { %3721 = vmatpush.msrb.mxu3 %v3706_v6  ;;  %v3792_v6 = vld [vmem:[#allocation12 + $0x278] sm:$0xff] }
 0x449   : > { %3373 = vmatmul.f32.gmra.mxu2 %v5497_v60 }
 0x44a   : > { %3299 = vmatmul.f32.gmra.mxu1 %v5494_v18 }
 0x44b   : > { %3447 = vmatmul.f32.gmra.mxu3 %v5500_v62 }
 0x451   : > { %3376 = vmatmul.f32.gmra.mxu2 %v3101_v63  ;;  %v3634_v63 = vld [vmem:[#allocation12 + $0x60] sm:$0xff] }
 0x452   : > { %3302 = vmatmul.f32.gmra.mxu1 %v3027_v41  ;;  %v3633_v41 = vld [vmem:[#allocation12 + $0x58] sm:$0xff]  ;;  %3679 = vmatpush.msrb.mxu2 %v3634_v63 }
 0x453   : > { %3450 = vmatmul.f32.gmra.mxu3 %v3175_v45 }
 0x454   : > { %3680 = vmatpush.msrb.mxu2 %v3633_v41  ;;  %v3700_v41 = vld [vmem:[#allocation12 + $0x110] sm:$0xff] }
 0x456   : > { %3681 = vmatpush.msrb.mxu2 %v3632_v19  ;;  %v3699_v19 = vld [vmem:[#allocation12 + $0x108] sm:$0xff] }
 0x457   : > { %v2902_v12 = vpop.f32.mrf.mxu1 }
 0x458   : > { %3682 = vmatpush.msrb.mxu2 %v3631_v21  ;;  %v3622_v21 = vld [vmem:[#allocation12] sm:$0xff] }
 0x459   : > { %3379 = vmatmul.f32.gmra.mxu2 %v3324_v3  ;;  %v3629_v3 = vld [vmem:[#allocation12 + $0x38] sm:$0xff] }
 0x45a   : > { %3305 = vmatmul.f32.gmra.mxu1 %v4484_v37  ;;  %3683 = vmatpush.msrb.mxu2 %v3630_v2  ;;  %v3704_v37 = vld [vmem:[#allocation12 + $0x130] sm:$0xff]  ;;  %v3752_v2 = vld [vmem:[#allocation12 + $0x1f8] sm:$0xff] }
 0x45b   : > { %3453 = vmatmul.f32.gmra.mxu3 %v3398_v14 }
 0x45c   : > { %v2943_v29 = vpop.f32.mrf.mxu2  ;;  %3684 = vmatpush.msrb.mxu2 %v3629_v3  ;;  %v3751_v3 = vld [vmem:[#allocation12 + $0x1f0] sm:$0xff] }
 0x45d   : > { %v2944_v17 = vadd.f32 %v2943_v29, %v2902_v12  ;;  %v3705_v12 = vld [vmem:[#allocation12 + $0x138] sm:$0xff]  ;;  %v3646_v29 = vld [vmem:[#allocation12 + $0xb0] sm:$0xff] }
 0x45e   : > { %v3009_v60 = vpop.f32.mrf.mxu3  ;;  %3722 = vmatpush.msrb.mxu3 %v3705_v12  ;;  %3665 = vmatpush.msrb.mxu1 %v3646_v29  ;;  %v3791_v12 = vld [vmem:[#allocation12 + $0x270] sm:$0xff] }
 0x45f   : > { %v5571_v27 = vadd.f32 %v3009_v60, %v2944_v17  ;;  %v5573_v18 = vpop.f32.mrf.mxu1  ;;  %v3628_v17 = vld [vmem:[#allocation12 + $0x30] sm:$0xff] }
 0x460   : > { %3685 = vmatpush.msrb.mxu2 %v3628_v17  ;;  %3723 = vmatpush.msrb.mxu3 %v3704_v37  ;;  %v3830_v29 = vld [vmem:[#allocation12 + $0x2f0] sm:$0xff]  ;;  %v2923_v17 = vadd.f32 %v5518_v9, %v5516_v10  ;;  %v3750_v37 = vld [vmem:[#allocation12 + $0x1e8] sm:$0xff]  ;;  %v3828_v10 = vld [vmem:[#allocation12 + $0x2e0] sm:$0xff] }
 0x461   : > { %3666 = vmatpush.msrb.mxu1 %v3645_v58  ;;  %v3790_v58 = vld [vmem:[#allocation12 + $0x268] sm:$0xff] }
 0x462   : > { %3686 = vmatpush.msrb.mxu2 %v3627_v46  ;;  %3724 = vmatpush.msrb.mxu3 %v3703_v48  ;;  %v3829_v46 = vld [vmem:[#allocation12 + $0x2e8] sm:$0xff] }
 0x463   : > { %3667 = vmatpush.msrb.mxu1 %v3644_v47  ;;  %v3860_v47 = vld [vmem:[#allocation12 + $0x328] sm:$0xff] }
 0x464   : > { %v5575_v62 = vpop.f32.mrf.mxu2  ;;  %3687 = vmatpush.msrb.mxu2 %v3626_v38  ;;  %3725 = vmatpush.msrb.mxu3 %v3702_v32  ;;  %v3749_v38 = vld [vmem:[#allocation12 + $0x1e0] sm:$0xff] }
 0x465   : > { %3668 = vmatpush.msrb.mxu1 %v3643_v54  ;;  %v3789_v32 = vld [vmem:[#allocation12 + $0x260] sm:$0xff]  ;;  %v3012_v54 = vadd.f32 %v5520_v51, %v2923_v17  ;;  %3881 = vmatpush.msrb.mxu0 %v3860_v47  ;;  %v3787_v51 = vld [vmem:[#allocation12 + $0x250] sm:$0xff]  ;;  %v3784_v47 = vld [vmem:[#allocation12 + $0x238] sm:$0xff] }
 0x466   : > { %v5577_v42 = vpop.f32.mrf.mxu3  ;;  %3688 = vmatpush.msrb.mxu2 %v3625_v53  ;;  %3726 = vmatpush.msrb.mxu3 %v3701_v56  ;;  %v3748_v56 = vld [vmem:[#allocation12 + $0x1d8] sm:$0xff] }
 0x467   : > { %v5579_v11 = vpop.f32.mrf.mxu1  ;;  %3669 = vmatpush.msrb.mxu1 %v3642_v1  ;;  %v3788_v1 = vld [vmem:[#allocation12 + $0x258] sm:$0xff] }
 0x468   : > { %3689 = vmatpush.msrb.mxu2 %v3624_v34  ;;  %3727 = vmatpush.msrb.mxu3 %v3700_v41  ;;  %v3827_v34 = vld [vmem:[#allocation12 + $0x2d8] sm:$0xff]  ;;  %v3086_v41 = vadd.f32 %v5573_v18, %v3012_v54  ;;  %v3825_v18 = vld [vmem:[#allocation12 + $0x2c8] sm:$0xff] }
 0x469   : > { %3670 = vmatpush.msrb.mxu1 %v3641_v31  ;;  %v3859_v31 = vld [vmem:[#allocation12 + $0x320] sm:$0xff] }
 0x46a   : > { %3690 = vmatpush.msrb.mxu2 %v3623_v5  ;;  %3728 = vmatpush.msrb.mxu3 %v3699_v19  ;;  %v3747_v5 = vld [vmem:[#allocation12 + $0x1d0] sm:$0xff] }
 0x46b   : > { %3671 = vmatpush.msrb.mxu1 %v3640_v13  ;;  %v3826_v19 = vld [vmem:[#allocation12 + $0x2d0] sm:$0xff]  ;;  %v2926_v13 = vadd.f32 %v5527_v16, %v5525_v49  ;;  %3882 = vmatpush.msrb.mxu0 %v3859_v31  ;;  %v3824_v49 = vld [vmem:[#allocation12 + $0x2c0] sm:$0xff] }
 0x46c   : > { %v5581_v57 = vpop.f32.mrf.mxu2  ;;  %3691 = vmatpush.msrb.mxu2 %v3622_v21  ;;  %3729 = vmatpush.msrb.mxu3 %v3698_v44  ;;  %v3160_v21 = vadd.f32 %v5575_v62, %v3086_v41  ;;  %v3858_v44 = vld [vmem:[#allocation12 + $0x318] sm:$0xff] }
 0x46d   : > { %3753 = vmatpush.msra.mxu1 %v3752_v2  ;;  %v3746_v2 = vld [vmem:[#allocation12 + $0x1c8] sm:$0xff]  ;;  %3883 = vmatpush.msrb.mxu0 %v3858_v44  ;;  %v3013_v16 = vadd.f32 %v5529_v23, %v2926_v13  ;;  %v3743_v23 = vld [vmem:[#allocation12 + $0x1b0] sm:$0xff]  ;;  %v5637_v13 = vld [vmem:[%s5769_s4] ss:$0 sm:$0xff] }
 0x46e   : > { %v5583_v59 = vpop.f32.mrf.mxu3  ;;  %3793 = vmatpush.msra.mxu2 %v3792_v6  ;;  %3832 = vmatpush.msra.mxu3 %v3831_v52  ;;  %v3786_v6 = vld [vmem:[#allocation12 + $0x248] sm:$0xff]  ;;  %v3857_v52 = vld [vmem:[#allocation12 + $0x310] sm:$0xff]  ;;  %v3234_v62 = vadd.f32 %v5577_v42, %v3160_v21  ;;  %v3820_v44 = vld [vmem:[#allocation12 + $0x2a0] sm:$0xff] }
 0x46f   : > { %v5585_v22 = vpop.f32.mrf.mxu1  ;;  %3754 = vmatpush.msra.mxu1 %v3751_v3  ;;  %3884 = vmatpush.msrb.mxu0 %v3857_v52  ;;  %v3783_v42 = vld [vmem:[#allocation12 + $0x230] sm:$0xff]  ;;  %v4025_v21 = vld [vmem:[#allocation12 + $0x568] sm:$0xff] }
 0x470   : > { %3794 = vmatpush.msra.mxu2 %v3791_v12  ;;  %3833 = vmatpush.msra.mxu3 %v3830_v29  ;;  %v3745_v12 = vld [vmem:[#allocation12 + $0x1c0] sm:$0xff] }
 0x471   : > { %3755 = vmatpush.msra.mxu1 %v3750_v37  ;;  %v3785_v29 = vld [vmem:[#allocation12 + $0x240] sm:$0xff]  ;;  %v3856_v37 = vld [vmem:[#allocation12 + $0x308] sm:$0xff] }
 0x472   : > { %3795 = vmatpush.msra.mxu2 %v3790_v58  ;;  %3834 = vmatpush.msra.mxu3 %v3829_v46  ;;  %v3744_v46 = vld [vmem:[#allocation12 + $0x1b8] sm:$0xff] }
 0x473   : > { %3756 = vmatpush.msra.mxu1 %v3749_v38  ;;  %v3823_v38 = vld [vmem:[#allocation12 + $0x2b8] sm:$0xff]  ;;  %3885 = vmatpush.msrb.mxu0 %v3856_v37 }
 0x474   : > { %v5587_v25 = vpop.f32.mrf.mxu2  ;;  %3796 = vmatpush.msra.mxu2 %v3789_v32  ;;  %3835 = vmatpush.msra.mxu3 %v3828_v10  ;;  %v3087_v32 = vadd.f32 %v5579_v11, %v3013_v16  ;;  %v3855_v10 = vld [vmem:[#allocation12 + $0x300] sm:$0xff]  ;;  %v3742_v11 = vld [vmem:[#allocation12 + $0x1a8] sm:$0xff]  ;;  %v3780_v16 = vld [vmem:[#allocation12 + $0x218] sm:$0xff] }
 0x475   : > { %3757 = vmatpush.msra.mxu1 %v3748_v56  ;;  %v4027_v56 = vld [vmem:[#allocation12 + $0x578] sm:$0xff]  ;;  %3886 = vmatpush.msrb.mxu0 %v3855_v10 }
 0x476   : > { %v5589_v45 = vpop.f32.mrf.mxu3  ;;  %3797 = vmatpush.msra.mxu2 %v3788_v1  ;;  %3836 = vmatpush.msra.mxu3 %v3827_v34  ;;  %v3822_v1 = vld [vmem:[#allocation12 + $0x2b0] sm:$0xff]  ;;  %v2929_v34 = vadd.f32 %v5534_v7, %v5532_v50  ;;  %v3161_v41 = vadd.f32 %v5581_v57, %v3087_v32  ;;  %v3741_v7 = vld [vmem:[#allocation12 + $0x1a0] sm:$0xff] }
 0x477   : > { %v5591_v4 = vpop.f32.mrf.mxu1  ;;  %3758 = vmatpush.msra.mxu1 %v3747_v5  ;;  %v4026_v5 = vld [vmem:[#allocation12 + $0x570] sm:$0xff]  ;;  %4028 = vmatpush.msra.mxu0 %v4027_v56  ;;  %v3781_v57 = vld [vmem:[#allocation12 + $0x220] sm:$0xff]  ;;  %v3738_v56 = vld [vmem:[#allocation12 + $0x188] sm:$0xff] }
 0x478   : > { %3798 = vmatpush.msra.mxu2 %v3787_v51  ;;  %3837 = vmatpush.msra.mxu3 %v3826_v19  ;;  %v3782_v51 = vld [vmem:[#allocation12 + $0x228] sm:$0xff] }
 0x479   : > { %3759 = vmatpush.msra.mxu1 %v3746_v2  ;;  %v3821_v19 = vld [vmem:[#allocation12 + $0x2a8] sm:$0xff]  ;;  %4029 = vmatpush.msra.mxu0 %v4026_v5  ;;  %v3014_v2 = vadd.f32 %v5536_v28, %v2929_v34  ;;  %v4023_v28 = vld [vmem:[#allocation12 + $0x558] sm:$0xff] }
 0x47a   : > { %3799 = vmatpush.msra.mxu2 %v3786_v6  ;;  %3838 = vmatpush.msra.mxu3 %v3825_v18  ;;  %v3235_v6 = vadd.f32 %v5583_v59, %v3161_v41  ;;  %v3739_v59 = vld [vmem:[#allocation12 + $0x190] sm:$0xff] }
 0x47b   : > { %3760 = vmatpush.msra.mxu1 %v3745_v12  ;;  %v4024_v12 = vld [vmem:[#allocation12 + $0x560] sm:$0xff]  ;;  %4030 = vmatpush.msra.mxu0 %v4025_v21  ;;  %v2935_v21 = vadd.f32 %v5550_v33, %v5548_v15 }
 0x47c   : > { %v5593_v0 = vpop.f32.mrf.mxu2  ;;  %3800 = vmatpush.msra.mxu2 %v3785_v29  ;;  %3839 = vmatpush.msra.mxu3 %v3824_v49  ;;  %v3740_v49 = vld [vmem:[#allocation12 + $0x198] sm:$0xff] }
 0x47d   : > { %3761 = vmatpush.msra.mxu1 %v3744_v46  ;;  %4031 = vmatpush.msra.mxu0 %v4024_v12  ;;  %v3779_v46 = vld [vmem:[#allocation12 + $0x210] sm:$0xff] }
 0x47e   : > { %v5595_v36 = vpop.f32.mrf.mxu3  ;;  %3801 = vmatpush.msra.mxu2 %v3784_v47  ;;  %3840 = vmatpush.msra.mxu3 %v3823_v38  ;;  %v3818_v47 = vld [vmem:[#allocation12 + $0x290] sm:$0xff]  ;;  %v2932_v38 = vadd.f32 %v5541_v30, %v5539_v55  ;;  %v3737_v55 = vld [vmem:[#allocation12 + $0x180] sm:$0xff] }
 0x47f   : > { %v5597_v14 = vpop.f32.mrf.mxu1  ;;  %3762 = vmatpush.msra.mxu1 %v3743_v23  ;;  %4032 = vmatpush.msra.mxu0 %v4023_v28  ;;  %v3778_v23 = vld [vmem:[#allocation12 + $0x208] sm:$0xff]  ;;  %v3777_v30 = vld [vmem:[#allocation12 + $0x200] sm:$0xff] }
 0x480   : > { %3802 = vmatpush.msra.mxu2 %v3783_v42  ;;  %3841 = vmatpush.msra.mxu3 %v3822_v1  ;;  %v3817_v42 = vld [vmem:[#allocation12 + $0x288] sm:$0xff]  ;;  %v3015_v41 = vadd.f32 %v5545_v40, %v2932_v38  ;;  %v4019_v40 = vld [vmem:[#allocation12 + $0x538] sm:$0xff]  ;;  %v4014_v38 = vld [vmem:[#allocation12 + $0x510] sm:$0xff] }
 0x481   : > { %3763 = vmatpush.msra.mxu1 %v3742_v11  ;;  %v4021_v1 = vld [vmem:[#allocation12 + $0x548] sm:$0xff] }
 0x482   : > { %3803 = vmatpush.msra.mxu2 %v3782_v51  ;;  %3842 = vmatpush.msra.mxu3 %v3821_v19  ;;  %v4020_v19 = vld [vmem:[#allocation12 + $0x540] sm:$0xff] }
 0x483   : > { %3764 = vmatpush.msra.mxu1 %v3741_v7 }
 0x484   : > { %v5599_v60 = vpop.f32.mrf.mxu2  ;;  %3804 = vmatpush.msra.mxu2 %v3781_v57  ;;  %3843 = vmatpush.msra.mxu3 %v3820_v44 }
 0x485   : > { %3765 = vmatpush.msra.mxu1 %v3740_v49  ;;  %v4017_v49 = vld [vmem:[#allocation12 + $0x528] sm:$0xff] }
 0x486   : > { %v5601_v35 = vpop.f32.mrf.mxu3  ;;  %3805 = vmatpush.msra.mxu2 %v3780_v16 }
 0x487   : > { %v5603_v20 = vpop.f32.mrf.mxu1  ;;  %3766 = vmatpush.msra.mxu1 %v3739_v59  ;;  %v4015_v59 = vld [vmem:[#allocation12 + $0x518] sm:$0xff] }
 0x488   : > { %3806 = vmatpush.msra.mxu2 %v3779_v46 }
 0x489   : > { %3767 = vmatpush.msra.mxu1 %v3738_v56 }
 0x48a   : > { %3807 = vmatpush.msra.mxu2 %v3778_v23 }
 0x48b   : > { %3768 = vmatpush.msra.mxu1 %v3737_v55 }
 0x48c   : > { %v5605_v63 = vpop.f32.mrf.mxu2  ;;  %3808 = vmatpush.msra.mxu2 %v3777_v30 }
 0x48e   : > { %v5607_v8 = vpop.f32.mrf.mxu3 }
 0x48f   : > { %v5609_v39 = vpop.f32.mrf.mxu1 }
 0x494   : > { %v5611_v61 = vpop.f32.mrf.mxu2 }
 0x496   : > { %v5615_v48 = vpop.f32.mrf.mxu3 }
 0x497   : > { %v5618_v53 = vpop.f32.mrf.mxu1 }
 0x49c   : > { %v5620_v9 = vpop.f32.mrf.mxu2 }
 0x49e   : > { %v5626_v3 = vpop.f32.mrf.mxu3 }
 0x49f   : > { %v3285_v17 = vpop.f32.mrf.mxu1 }
 0x4a0   : > { %v3309_v54 = vadd.f32 %v3285_v17, %v3234_v62  ;;  %v3819_v62 = vld [vmem:[#allocation12 + $0x298] sm:$0xff]  ;;  %v3088_v17 = vadd.f32 %v5585_v22, %v3014_v2  ;;  %v4022_v22 = vld [vmem:[#allocation12 + $0x550] sm:$0xff] }
 0x4a1   : > { %3844 = vmatpush.msra.mxu3 %v3819_v62  ;;  %4033 = vmatpush.msra.mxu0 %v4022_v22 }
 0x4a2   : > { %v3162_v32 = vadd.f32 %v5587_v25, %v3088_v17  ;;  %v3816_v25 = vld [vmem:[#allocation12 + $0x280] sm:$0xff] }
 0x4a3   : > { %3845 = vmatpush.msra.mxu3 %v3818_v47  ;;  %4034 = vmatpush.msra.mxu0 %v4021_v1 }
 0x4a4   : > { %v3359_v58 = vpop.f32.mrf.mxu2 }
 0x4a5   : > { %v3383_v31 = vadd.f32 %v3359_v58, %v3309_v54  ;;  %3846 = vmatpush.msra.mxu3 %v3817_v42  ;;  %4035 = vmatpush.msra.mxu0 %v4020_v19 }
 0x4a6   : > { %v3433_v50 = vpop.f32.mrf.mxu3 }
 0x4a7   : > { %v3457_v18 = vadd.f32 %v3433_v50, %v3383_v31  ;;  %v3288_v52 = vpop.f32.mrf.mxu1  ;;  %v3236_v31 = vadd.f32 %v5589_v45, %v3162_v32  ;;  %v3089_v50 = vadd.f32 %v5591_v4, %v3015_v41  ;;  %3847 = vmatpush.msra.mxu3 %v3816_v25  ;;  %4036 = vmatpush.msra.mxu0 %v4019_v40  ;;  %v4013_v40 = vld [vmem:[#allocation12 + $0x508] sm:$0xff] }
 0x4a8   : > { %v3310_v58 = vadd.f32 %v3288_v52, %v3235_v6  ;;  %v3016_v6 = vadd.f32 %v5554_v24, %v2935_v21  ;;  %v4018_v52 = vld [vmem:[#allocation12 + $0x530] sm:$0xff]  ;;  %v4016_v24 = vld [vmem:[#allocation12 + $0x520] sm:$0xff]  ;;  %v3091_v21 = vadd.f32 %v5603_v20, %v5556_v26  ;;  %v3092_v20 = vadd.f32 %v5609_v39, %v5564_v43 }
 0x4a9   : > { %v3469_v37 = vadd.f32 %v5637_v13, %v3457_v18  ;;  %v3163_v45 = vadd.f32 %v5593_v0, %v3089_v50  ;;  %4037 = vmatpush.msra.mxu0 %v4018_v52  ;;  %v4012_v52 = vld [vmem:[#allocation12 + $0x500] sm:$0xff] }
 0x4aa   : > { %v3090_v33 = vadd.f32 %v5597_v14, %v3016_v6 }
 0x4ab   : > { %v3477_v54 = vmax.f32 %v3469_v37, 0.0  ;;  %v3237_v15 = vadd.f32 %v5595_v36, %v3163_v45  ;;  %4038 = vmatpush.msra.mxu0 %v4017_v49 }
 0x4ac   : > { %v3362_v29 = vpop.f32.mrf.mxu2  ;;  %v3164_v16 = vadd.f32 %v5599_v60, %v3090_v33 }
 0x4ad   : > { %v3384_v10 = vadd.f32 %v3362_v29, %v3310_v58  ;;  %3485 = vst [vmem:[#allocation5] sm:$0xff] %v3477_v54  ;;  %4039 = vmatpush.msra.mxu0 %v4016_v24 }
 0x4ae   : > { %v3436_v34 = vpop.f32.mrf.mxu3  ;;  %v3238_v32 = vadd.f32 %v5601_v35, %v3164_v16 }
 0x4af   : > { %v3458_v5 = vadd.f32 %v3436_v34, %v3384_v10  ;;  %v3291_v11 = vpop.f32.mrf.mxu1  ;;  %4040 = vmatpush.msra.mxu0 %v4015_v59 }
 0x4b0   : > { %v3311_v57 = vadd.f32 %v3291_v11, %v3236_v31 }
 0x4b1   : > { %v3470_v7 = vadd.f32 %v5637_v13, %v3458_v5  ;;  %4041 = vmatpush.msra.mxu0 %v4014_v38 }
 0x4b3   : > { %v3478_v44 = vmax.f32 %v3470_v7, 0.0  ;;  %4042 = vmatpush.msra.mxu0 %v4013_v40  ;;  %v3946_v40 = vld [vmem:[#allocation12 + $0x460] sm:$0xff] }
 0x4b4   : > { %v3365_v51 = vpop.f32.mrf.mxu2  ;;  %v3493_v0 = vld [vmem:[#allocation5] sm:$0x1]  ;;  %v3501_v62 = vld [vmem:[#allocation5 + $0x1] sm:$0x1]  ;;  %v3525_v58 = vld [vmem:[#allocation5 + $0x2] sm:$0x1] }
 0x4b5   : > { %v3385_v2 = vadd.f32 %v3365_v51, %v3311_v57  ;;  %3486 = vst [vmem:[#allocation5 + $0x8] sm:$0xff] %v3478_v44  ;;  %v3533_v28 = vld [vmem:[#allocation5 + $0x3] sm:$0x1]  ;;  %v3557_v36 = vld [vmem:[#allocation5 + $0x4] sm:$0x1]  ;;  %v3509_v23 = vmax.f32 %v3493_v0, %v3501_v62  ;;  %4043 = vmatpush.msra.mxu0 %v4012_v52  ;;  %v3909_v62 = vld [vmem:[#allocation12 + $0x3f8] sm:$0xff]  ;;  %v3093_v52 = vadd.f32 %v5618_v53, %v5571_v27 }
 0x4b6   : > { %v3439_v18 = vpop.f32.mrf.mxu3  ;;  %v3565_v46 = vld [vmem:[#allocation5 + $0x5] sm:$0x1]  ;;  %v3589_v54 = vld [vmem:[#allocation5 + $0x6] sm:$0x1]  ;;  %v3597_v60 = vld [vmem:[#allocation5 + $0x7] sm:$0x1]  ;;  %v3541_v42 = vmax.f32 %v3525_v58, %v3533_v28 }
 0x4b7   : > { %v3459_v4 = vadd.f32 %v3439_v18, %v3385_v2  ;;  %v3294_v12 = vpop.f32.mrf.mxu1  ;;  %v3573_v1 = vmax.f32 %v3557_v36, %v3565_v46  ;;  %v3605_v18 = vmax.f32 %v3589_v54, %v3597_v60  ;;  %v3988_v58 = vld [vmem:[#allocation12 + $0x4f8] sm:$0xff]  ;;  %v3948_v28 = vld [vmem:[#allocation12 + $0x470] sm:$0xff]  ;;  %v3167_v27 = vadd.f32 %v5620_v9, %v3093_v52 }
 0x4b8   : > { %v3312_v37 = vadd.f32 %v3294_v12, %v3237_v15  ;;  %v3165_v15 = vadd.f32 %v5605_v63, %v3091_v21  ;;  %v3166_v63 = vadd.f32 %v5611_v61, %v3092_v20  ;;  %v3987_v54 = vld [vmem:[#allocation12 + $0x4f0] sm:$0xff] }
 0x4b9   : > { %v3471_v17 = vadd.f32 %v5637_v13, %v3459_v4  ;;  %v3241_v9 = vadd.f32 %v5626_v3, %v3167_v27  ;;  %v4184_v3 = vld [vmem:[#allocation12 + $0x778] sm:$0xff] }
 0x4bb   : > { %v3479_v14 = vmax.f32 %v3471_v17, 0.0  ;;  %v3949_v17 = vld [vmem:[#allocation12 + $0x478] sm:$0xff] }
 0x4bc   : > { %v3368_v29 = vpop.f32.mrf.mxu2  ;;  %v3494_v10 = vld [vmem:[#allocation5 + $0x8] sm:$0x1]  ;;  %v3502_v22 = vld [vmem:[#allocation5 + $0x9] sm:$0x1]  ;;  %v3526_v56 = vld [vmem:[#allocation5 + $0xa] sm:$0x1] }
 0x4bd   : > { %v3386_v47 = vadd.f32 %v3368_v29, %v3312_v37  ;;  %v3510_v34 = vmax.f32 %v3494_v10, %v3502_v22  ;;  %v3534_v55 = vld [vmem:[#allocation5 + $0xb] sm:$0x1]  ;;  %v3558_v30 = vld [vmem:[#allocation5 + $0xc] sm:$0x1]  ;;  %v3566_v25 = vld [vmem:[#allocation5 + $0xd] sm:$0x1]  ;;  %v3239_v29 = vadd.f32 %v5607_v8, %v3165_v15 }
 0x4be   : > { %v3442_v41 = vpop.f32.mrf.mxu3  ;;  %v3542_v31 = vmax.f32 %v3526_v56, %v3534_v55  ;;  %v3574_v5 = vmax.f32 %v3558_v30, %v3566_v25  ;;  %v3590_v11 = vld [vmem:[#allocation5 + $0xe] sm:$0x1]  ;;  %v3598_v51 = vld [vmem:[#allocation5 + $0xf] sm:$0x1]  ;;  %3487 = vst [vmem:[#allocation5 + $0x10] sm:$0xff] %v3479_v14  ;;  %v3908_v14 = vld [vmem:[#allocation12 + $0x3f0] sm:$0xff] }
 0x4bf   : > { %v3460_v35 = vadd.f32 %v3442_v41, %v3386_v47  ;;  %v3297_v19 = vpop.f32.mrf.mxu1  ;;  %v3606_v50 = vmax.f32 %v3590_v11, %v3598_v51  ;;  %v3517_v57 = vmax.f32 %v3509_v23, %v3510_v34  ;;  %v3907_v56 = vld [vmem:[#allocation12 + $0x3e8] sm:$0xff]  ;;  %v3985_v15 = vld [vmem:[#allocation12 + $0x4e0] sm:$0xff] }
 0x4c0   : > { %v3313_v44 = vadd.f32 %v3297_v19, %v3238_v32  ;;  %v3549_v2 = vmax.f32 %v3541_v42, %v3542_v31  ;;  %v3581_v6 = vmax.f32 %v3573_v1, %v3574_v5  ;;  %v3947_v23 = vld [vmem:[#allocation12 + $0x468] sm:$0xff]  ;;  %v3240_v42 = vadd.f32 %v5615_v48, %v3166_v63  ;;  %v3944_v63 = vld [vmem:[#allocation12 + $0x450] sm:$0xff] }
 0x4c1   : > { %v3472_v45 = vadd.f32 %v5637_v13, %v3460_v35  ;;  %3521 = vst [vmem:[#allocation6] sm:$0x1] %v3517_v57  ;;  %v3613_v26 = vmax.f32 %v3605_v18, %v3606_v50  ;;  %v3986_v25 = vld [vmem:[#allocation12 + $0x4e8] sm:$0xff] }
 0x4c2   : > { %3553 = vst [vmem:[#allocation6 + $0x1] sm:$0x1] %v3549_v2 }
 0x4c3   : > { %v3480_v33 = vmax.f32 %v3472_v45, 0.0  ;;  %3585 = vst [vmem:[#allocation6 + $0x2] sm:$0x1] %v3581_v6  ;;  %v3906_v6 = vld [vmem:[#allocation12 + $0x3e0] sm:$0xff] }
 0x4c4   : > { %v3371_v7 = vpop.f32.mrf.mxu2  ;;  %3617 = vst [vmem:[#allocation6 + $0x3] sm:$0x1] %v3613_v26 }
 0x4c5   : > { %v3387_v4 = vadd.f32 %v3371_v7, %v3313_v44  ;;  %3488 = vst [vmem:[#allocation5 + $0x18] sm:$0xff] %v3480_v33  ;;  %v5666_v49 = vld [vmem:[#allocation5 + $0x10] sm:$0x1]  ;;  %v3503_v37 = vld [vmem:[#allocation5 + $0x11] sm:$0x1] }
 0x4c6   : > { %v3445_v12 = vpop.f32.mrf.mxu3  ;;  %v3527_v24 = vld [vmem:[#allocation5 + $0x12] sm:$0x1]  ;;  %v3535_v36 = vld [vmem:[#allocation5 + $0x13] sm:$0x1]  ;;  %v3559_v46 = vld [vmem:[#allocation5 + $0x14] sm:$0x1]  ;;  %v3511_v1 = vmax.f32 %v5666_v49, %v3503_v37 }
 0x4c7   : > { %v3461_v16 = vadd.f32 %v3445_v12, %v3387_v4  ;;  %v3300_v0 = vpop.f32.mrf.mxu1  ;;  %v3567_v47 = vld [vmem:[#allocation5 + $0x15] sm:$0x1]  ;;  %v3591_v38 = vld [vmem:[#allocation5 + $0x16] sm:$0x1]  ;;  %v3599_v60 = vld [vmem:[#allocation5 + $0x17] sm:$0x1]  ;;  %v3543_v41 = vmax.f32 %v3527_v24, %v3535_v36 }
 0x4c8   : > { %v3314_v39 = vadd.f32 %v3300_v0, %v3239_v29  ;;  %v3621_v8 = vld [vmem:[#allocation6] sm:$0x1]  ;;  %v3575_v31 = vmax.f32 %v3559_v46, %v3567_v47  ;;  %v3607_v19 = vmax.f32 %v3591_v38, %v3599_v60  ;;  %v3905_v29 = vld [vmem:[#allocation12 + $0x3d8] sm:$0xff]  ;;  %v3982_v36 = vld [vmem:[#allocation12 + $0x4c8] sm:$0xff] }
 0x4c9   : > { %v3473_v43 = vadd.f32 %v5637_v13, %v3461_v16  ;;  %v3638_v32 = vld [vmem:[#allocation6 + $0x1] sm:$0x1]  ;;  %3692 = vmatmul.f32.vlgmr.msrb.gmra.mxu2 %v3621_v8  ;;  %v3945_v49 = vld [vmem:[#allocation12 + $0x458] sm:$0xff]  ;;  %v3902_v46 = vld [vmem:[#allocation12 + $0x3c0] sm:$0xff] }
 0x4ca   : > { %3672 = vmatmul.f32.vlgmr.msrb.gmra.mxu1 %v3638_v32  ;;  %v3696_v10 = vld [vmem:[#allocation6 + $0x2] sm:$0x1]  ;;  %3950 = vmatpush.msrb.mxu2 %v3949_v17  ;;  %v3942_v8 = vld [vmem:[#allocation12 + $0x440] sm:$0xff]  ;;  %v3901_v47 = vld [vmem:[#allocation12 + $0x3b8] sm:$0xff] }
 0x4cb   : > { %v3481_v61 = vmax.f32 %v3473_v43, 0.0  ;;  %3730 = vmatmul.f32.vlgmr.msrb.gmra.mxu3 %v3696_v10  ;;  %3910 = vmatpush.msrb.mxu1 %v3909_v62  ;;  %v3735_v0 = vld [vmem:[#allocation6 + $0x3] sm:$0x1]  ;;  %v3984_v62 = vld [vmem:[#allocation12 + $0x4d8] sm:$0xff] }
 0x4cc   : > { %v3374_v59 = vpop.f32.mrf.mxu2  ;;  %v3496_v34 = vld [vmem:[#allocation5 + $0x18] sm:$0x1]  ;;  %v3504_v55 = vld [vmem:[#allocation5 + $0x19] sm:$0x1]  ;;  %v3528_v30 = vld [vmem:[#allocation5 + $0x1a] sm:$0x1]  ;;  %3989 = vmatpush.msrb.mxu3 %v3988_v58  ;;  %3951 = vmatpush.msrb.mxu2 %v3948_v28 }
 0x4cd   : > { %v3388_v22 = vadd.f32 %v3374_v59, %v3314_v39  ;;  %v3512_v5 = vmax.f32 %v3496_v34, %v3504_v55  ;;  %v3536_v11 = vld [vmem:[#allocation5 + $0x1b] sm:$0x1]  ;;  %v3560_v51 = vld [vmem:[#allocation5 + $0x1c] sm:$0x1]  ;;  %v3568_v35 = vld [vmem:[#allocation5 + $0x1d] sm:$0x1]  ;;  %3911 = vmatpush.msrb.mxu1 %v3908_v14 }
 0x4ce   : > { %v3544_v21 = vmax.f32 %v3528_v30, %v3536_v11  ;;  %v3576_v50 = vmax.f32 %v3560_v51, %v3568_v35  ;;  %v3592_v48 = vld [vmem:[#allocation5 + $0x1e] sm:$0x1]  ;;  %v3600_v7 = vld [vmem:[#allocation5 + $0x1f] sm:$0x1]  ;;  %3489 = vst [vmem:[#allocation5 + $0x20] sm:$0xff] %v3481_v61  ;;  %v3448_v57 = vpop.f32.mrf.mxu3  ;;  %3990 = vmatpush.msrb.mxu3 %v3987_v54  ;;  %3952 = vmatpush.msrb.mxu2 %v3947_v23  ;;  %v3904_v17 = vld [vmem:[#allocation12 + $0x3d0] sm:$0xff] }
 0x4cf   : > { %v3608_v45 = vmax.f32 %v3592_v48, %v3600_v7  ;;  %v3462_v44 = vadd.f32 %v3448_v57, %v3388_v22  ;;  %v3303_v2 = vpop.f32.mrf.mxu1  ;;  %v3518_v18 = vmax.f32 %v3511_v1, %v3512_v5  ;;  %3912 = vmatpush.msrb.mxu1 %v3907_v56  ;;  %v3983_v24 = vld [vmem:[#allocation12 + $0x4d0] sm:$0xff]  ;;  %v3903_v58 = vld [vmem:[#allocation12 + $0x3c8] sm:$0xff]  ;;  %v3981_v14 = vld [vmem:[#allocation12 + $0x4c0] sm:$0xff] }
 0x4d0   : > { %v3550_v4 = vmax.f32 %v3543_v41, %v3544_v21  ;;  %v3582_v26 = vmax.f32 %v3575_v31, %v3576_v50  ;;  %3991 = vmatpush.msrb.mxu3 %v3986_v25  ;;  %v3315_v12 = vadd.f32 %v3303_v2, %v3240_v42  ;;  %3953 = vmatpush.msrb.mxu2 %v3946_v40  ;;  %v3943_v28 = vld [vmem:[#allocation12 + $0x448] sm:$0xff]  ;;  %v3941_v32 = vld [vmem:[#allocation12 + $0x438] sm:$0xff]  ;;  %v3900_v56 = vld [vmem:[#allocation12 + $0x3b0] sm:$0xff] }
 0x4d1   : > { %v3474_v20 = vadd.f32 %v5637_v13, %v3462_v44  ;;  %3522 = vst [vmem:[#allocation6 + $0x4] sm:$0x1] %v3518_v18  ;;  %v3614_v16 = vmax.f32 %v3607_v19, %v3608_v45  ;;  %3913 = vmatpush.msrb.mxu1 %v3906_v6  ;;  %v3980_v54 = vld [vmem:[#allocation12 + $0x4b8] sm:$0xff]  ;;  %v3940_v42 = vld [vmem:[#allocation12 + $0x430] sm:$0xff]  ;;  %v3899_v41 = vld [vmem:[#allocation12 + $0x3a8] sm:$0xff] }
 0x4d2   : > { %3554 = vst [vmem:[#allocation6 + $0x5] sm:$0x1] %v3550_v4  ;;  %3992 = vmatpush.msrb.mxu3 %v3985_v15  ;;  %3769 = vmatmul.f32.vlgmr.msra.gmra.mxu1 %v3735_v0  ;;  %v3979_v1 = vld [vmem:[#allocation12 + $0x4b0] sm:$0xff]  ;;  %v3939_v51 = vld [vmem:[#allocation12 + $0x428] sm:$0xff]  ;;  %v3898_v48 = vld [vmem:[#allocation12 + $0x3a0] sm:$0xff] }
 0x4d3   : > { %v3482_v53 = vmax.f32 %v3474_v20, 0.0  ;;  %3586 = vst [vmem:[#allocation6 + $0x6] sm:$0x1] %v3582_v26  ;;  %3914 = vmatpush.msrb.mxu1 %v3905_v29  ;;  %3954 = vmatpush.msrb.mxu2 %v3945_v49  ;;  %v4183_v25 = vld [vmem:[#allocation12 + $0x770] sm:$0xff]  ;;  %v3978_v35 = vld [vmem:[#allocation12 + $0x4a8] sm:$0xff]  ;;  %v3938_v2 = vld [vmem:[#allocation12 + $0x420] sm:$0xff] }
 0x4d4   : > { %v3377_v33 = vpop.f32.mrf.mxu2  ;;  %3618 = vst [vmem:[#allocation6 + $0x7] sm:$0x1] %v3614_v16  ;;  %3993 = vmatpush.msrb.mxu3 %v3984_v62  ;;  %v4182_v50 = vld [vmem:[#allocation12 + $0x768] sm:$0xff]  ;;  %v3977_v6 = vld [vmem:[#allocation12 + $0x4a0] sm:$0xff] }
 0x4d5   : > { %v3389_v37 = vadd.f32 %v3377_v33, %v3315_v12  ;;  %3915 = vmatpush.msrb.mxu1 %v3904_v17  ;;  %3955 = vmatpush.msrb.mxu2 %v3944_v63  ;;  %3490 = vst [vmem:[#allocation5 + $0x28] sm:$0xff] %v3482_v53  ;;  %v3497_v34 = vld [vmem:[#allocation5 + $0x20] sm:$0x1]  ;;  %v3505_v31 = vld [vmem:[#allocation5 + $0x21] sm:$0x1]  ;;  %v4181_v53 = vld [vmem:[#allocation12 + $0x760] sm:$0xff] }
 0x4d6   : > { %v3451_v59 = vpop.f32.mrf.mxu3  ;;  %3994 = vmatpush.msrb.mxu3 %v3983_v24  ;;  %v3529_v5 = vld [vmem:[#allocation5 + $0x22] sm:$0x1]  ;;  %v3537_v11 = vld [vmem:[#allocation5 + $0x23] sm:$0x1]  ;;  %v3561_v19 = vld [vmem:[#allocation5 + $0x24] sm:$0x1]  ;;  %v3513_v18 = vmax.f32 %v3497_v34, %v3505_v31 }
 0x4d7   : > { %v3463_v43 = vadd.f32 %v3451_v59, %v3389_v37  ;;  %v3306_v39 = vpop.f32.mrf.mxu1  ;;  %3916 = vmatpush.msrb.mxu1 %v3903_v58  ;;  %3956 = vmatpush.msrb.mxu2 %v3943_v28  ;;  %v3569_v21 = vld [vmem:[#allocation5 + $0x25] sm:$0x1]  ;;  %v3593_v7 = vld [vmem:[#allocation5 + $0x26] sm:$0x1]  ;;  %v3545_v20 = vmax.f32 %v3529_v5, %v3537_v11  ;;  %v3601_v12 = vld [vmem:[#allocation5 + $0x27] sm:$0x1] }
 0x4d8   : > { %v3775_v38 = vld [vmem:[#allocation6 + $0x4] sm:$0x1]  ;;  %3995 = vmatpush.msrb.mxu3 %v3982_v36  ;;  %v3316_v10 = vadd.f32 %v3306_v39, %v3241_v9  ;;  %v3897_v17 = vld [vmem:[#allocation12 + $0x398] sm:$0xff]  ;;  %v3577_v37 = vmax.f32 %v3561_v19, %v3569_v21  ;;  %v3609_v28 = vmax.f32 %v3593_v7, %v3601_v12 }
 0x4d9   : > { %v3475_v61 = vadd.f32 %v5637_v13, %v3463_v43  ;;  %3809 = vmatmul.f32.vlgmr.msra.gmra.mxu2 %v3775_v38  ;;  %v3814_v22 = vld [vmem:[#allocation6 + $0x5] sm:$0x1]  ;;  %3917 = vmatpush.msrb.mxu1 %v3902_v46  ;;  %v3937_v24 = vld [vmem:[#allocation12 + $0x418] sm:$0xff]  ;;  %v3935_v38 = vld [vmem:[#allocation12 + $0x408] sm:$0xff] }
 0x4da   : > { %3957 = vmatpush.msrb.mxu2 %v3942_v8  ;;  %v3853_v23 = vld [vmem:[#allocation6 + $0x6] sm:$0x1]  ;;  %3996 = vmatpush.msrb.mxu3 %v3981_v14  ;;  %v3976_v58 = vld [vmem:[#allocation12 + $0x498] sm:$0xff]  ;;  %v3895_v14 = vld [vmem:[#allocation12 + $0x388] sm:$0xff] }
 0x4db   : > { %v3483_v55 = vmax.f32 %v3475_v61, 0.0  ;;  %3887 = vmatmul.f32.vlgmr.msrb.gmra.mxu0 %v3853_v23  ;;  %3848 = vmatmul.f32.vlgmr.msra.gmra.mxu3 %v3814_v22  ;;  %v4180_v36 = vld [vmem:[#allocation12 + $0x758] sm:$0xff]  ;;  %v3896_v46 = vld [vmem:[#allocation12 + $0x390] sm:$0xff]  ;;  %v3934_v61 = vld [vmem:[#allocation12 + $0x400] sm:$0xff] }
 0x4dc   : > { %v3380_v60 = vpop.f32.mrf.mxu2  ;;  %3918 = vmatpush.msrb.mxu1 %v3901_v47  ;;  %3958 = vmatpush.msrb.mxu2 %v3941_v32  ;;  %v3498_v57 = vld [vmem:[#allocation5 + $0x28] sm:$0x1]  ;;  %v3506_v40 = vld [vmem:[#allocation5 + $0x29] sm:$0x1]  ;;  %v3530_v45 = vld [vmem:[#allocation5 + $0x2a] sm:$0x1] }
 0x4dd   : > { %v3390_v30 = vadd.f32 %v3380_v60, %v3316_v10  ;;  %3491 = vst [vmem:[#allocation5 + $0x30] sm:$0xff] %v3483_v55  ;;  %3997 = vmatpush.msrb.mxu3 %v3980_v54  ;;  %4185 = vmatpush.msrb.mxu0 %v4184_v3  ;;  %v3514_v52 = vmax.f32 %v3498_v57, %v3506_v40  ;;  %v3538_v15 = vld [vmem:[#allocation5 + $0x2b] sm:$0x1]  ;;  %v3562_v33 = vld [vmem:[#allocation5 + $0x2c] sm:$0x1]  ;;  %v3936_v43 = vld [vmem:[#allocation12 + $0x410] sm:$0xff] }
 0x4de   : > { %3919 = vmatpush.msrb.mxu1 %v3900_v56  ;;  %v3454_v44 = vpop.f32.mrf.mxu3  ;;  %v3570_v4 = vld [vmem:[#allocation5 + $0x2d] sm:$0x1]  ;;  %3959 = vmatpush.msrb.mxu2 %v3940_v42  ;;  %v3546_v29 = vmax.f32 %v3530_v45, %v3538_v15  ;;  %v3594_v16 = vld [vmem:[#allocation5 + $0x2e] sm:$0x1]  ;;  %v3602_v0 = vld [vmem:[#allocation5 + $0x2f] sm:$0x1] }
 0x4df   : > { %3998 = vmatpush.msrb.mxu3 %v3979_v1  ;;  %v3464_v26 = vadd.f32 %v3454_v44, %v3390_v30  ;;  %v3578_v49 = vmax.f32 %v3562_v33, %v3570_v4  ;;  %4186 = vmatpush.msrb.mxu0 %v4183_v25  ;;  %v3610_v62 = vmax.f32 %v3594_v16, %v3602_v0  ;;  %v4179_v8 = vld [vmem:[#allocation12 + $0x750] sm:$0xff]  ;;  %v3974_v32 = vld [vmem:[#allocation12 + $0x488] sm:$0xff]  ;;  %v3894_v60 = vld [vmem:[#allocation12 + $0x380] sm:$0xff] }
 0x4e0   : > { %3920 = vmatpush.msrb.mxu1 %v3899_v41  ;;  %3960 = vmatpush.msrb.mxu2 %v3939_v51  ;;  %v3519_v63 = vmax.f32 %v3513_v18, %v3514_v52  ;;  %v3551_v9 = vmax.f32 %v3545_v20, %v3546_v29  ;;  %v4178_v54 = vld [vmem:[#allocation12 + $0x748] sm:$0xff]  ;;  %v3973_v10 = vld [vmem:[#allocation12 + $0x480] sm:$0xff]  ;;  %v4066_v22 = vld [vmem:[#allocation12 + $0x5f8] sm:$0xff] }
 0x4e1   : > { %3999 = vmatpush.msrb.mxu3 %v3978_v35  ;;  %v3476_v27 = vadd.f32 %v5637_v13, %v3464_v26  ;;  %4187 = vmatpush.msrb.mxu0 %v4182_v50  ;;  %v3975_v13 = vld [vmem:[#allocation12 + $0x490] sm:$0xff]  ;;  %v3583_v39 = vmax.f32 %v3577_v37, %v3578_v49  ;;  %v3615_v47 = vmax.f32 %v3609_v28, %v3610_v62  ;;  %v4106_v3 = vld [vmem:[#allocation12 + $0x678] sm:$0xff]  ;;  %v4177_v42 = vld [vmem:[#allocation12 + $0x740] sm:$0xff] }
 0x4e2   : > { %3921 = vmatpush.msrb.mxu1 %v3898_v48  ;;  %3961 = vmatpush.msrb.mxu2 %v3938_v2  ;;  %3523 = vst [vmem:[#allocation6 + $0x8] sm:$0x1] %v3519_v63  ;;  %v3892_v56 = vld [vmem:[#allocation6 + $0x7] sm:$0x1]  ;;  %v4145_v23 = vld [vmem:[#allocation12 + $0x6f8] sm:$0xff]  ;;  %v4064_v57 = vld [vmem:[#allocation12 + $0x5e8] sm:$0xff] }
 0x4e3   : > { %v3484_v59 = vmax.f32 %v3476_v27, 0.0  ;;  %4000 = vmatpush.msrb.mxu3 %v3977_v6  ;;  %4188 = vmatpush.msrb.mxu0 %v4181_v53  ;;  %3555 = vst [vmem:[#allocation6 + $0x9] sm:$0x1] %v3551_v9  ;;  %v4065_v30 = vld [vmem:[#allocation12 + $0x5f0] sm:$0xff]  ;;  %v4176_v11 = vld [vmem:[#allocation12 + $0x738] sm:$0xff]  ;;  %v4104_v40 = vld [vmem:[#allocation12 + $0x668] sm:$0xff] }
 0x4e4   : > { %3922 = vmatpush.msrb.mxu1 %v3897_v17  ;;  %3962 = vmatpush.msrb.mxu2 %v3937_v24  ;;  %3587 = vst [vmem:[#allocation6 + $0xa] sm:$0x1] %v3583_v39  ;;  %v3499_v1 = vld [vmem:[#allocation5 + $0x30] sm:$0x1]  ;;  %v3507_v34 = vld [vmem:[#allocation5 + $0x31] sm:$0x1] }
 0x4e5   : > { %4001 = vmatpush.msrb.mxu3 %v3976_v58  ;;  %3492 = vst [vmem:[#allocation5 + $0x38] sm:$0xff] %v3484_v59  ;;  %4189 = vmatpush.msrb.mxu0 %v4180_v36  ;;  %v3531_v55 = vld [vmem:[#allocation5 + $0x32] sm:$0x1]  ;;  %v4105_v25 = vld [vmem:[#allocation12 + $0x670] sm:$0xff]  ;;  %v3539_v41 = vld [vmem:[#allocation5 + $0x33] sm:$0x1]  ;;  %v3515_v45 = vmax.f32 %v3499_v1, %v3507_v34 }
 0x4e6   : > { %3923 = vmatpush.msrb.mxu1 %v3896_v46  ;;  %3963 = vmatpush.msrb.mxu2 %v3936_v43  ;;  %3619 = vst [vmem:[#allocation6 + $0xb] sm:$0x1] %v3615_v47  ;;  %v3563_v31 = vld [vmem:[#allocation5 + $0x34] sm:$0x1]  ;;  %v3571_v51 = vld [vmem:[#allocation5 + $0x35] sm:$0x1]  ;;  %v3547_v44 = vmax.f32 %v3531_v55, %v3539_v41 }
 0x4e7   : > { %4002 = vmatpush.msrb.mxu3 %v3975_v13  ;;  %4190 = vmatpush.msrb.mxu0 %v4179_v8  ;;  %v3595_v35 = vld [vmem:[#allocation5 + $0x36] sm:$0x1]  ;;  %v3603_v19 = vld [vmem:[#allocation5 + $0x37] sm:$0x1]  ;;  %v4144_v21 = vld [vmem:[#allocation12 + $0x6f0] sm:$0xff]  ;;  %v3579_v15 = vmax.f32 %v3563_v31, %v3571_v51 }
 0x4e8   : > { %3924 = vmatpush.msrb.mxu1 %v3895_v14  ;;  %3964 = vmatpush.msrb.mxu2 %v3935_v38  ;;  %v3611_v29 = vmax.f32 %v3595_v35, %v3603_v19  ;;  %v4143_v0 = vld [vmem:[#allocation12 + $0x6e8] sm:$0xff]  ;;  %v4175_v62 = vld [vmem:[#allocation12 + $0x730] sm:$0xff]  ;;  %v4063_v53 = vld [vmem:[#allocation12 + $0x5e0] sm:$0xff] }
 0x4e9   : > { %4003 = vmatpush.msrb.mxu3 %v3974_v32  ;;  %4191 = vmatpush.msrb.mxu0 %v4178_v54  ;;  %v3932_v5 = vld [vmem:[#allocation6 + $0x8] sm:$0x1]  ;;  %v4103_v17 = vld [vmem:[#allocation12 + $0x660] sm:$0xff]  ;;  %v4174_v58 = vld [vmem:[#allocation12 + $0x728] sm:$0xff] }
 0x4ea   : > { %3925 = vmatpush.msrb.mxu1 %v3894_v60  ;;  %3965 = vmatpush.msrb.mxu2 %v3934_v61  ;;  %v3971_v12 = vld [vmem:[#allocation6 + $0x9] sm:$0x1]  ;;  %v4142_v24 = vld [vmem:[#allocation12 + $0x6e0] sm:$0xff]  ;;  %v4061_v43 = vld [vmem:[#allocation12 + $0x5d0] sm:$0xff] }
 0x4eb   : > { %4004 = vmatpush.msrb.mxu3 %v3973_v10  ;;  %3926 = vmatmul.f32.vlgmr.msrb.gmra.mxu1 %v3892_v56  ;;  %v4010_v16 = vld [vmem:[#allocation6 + $0xa] sm:$0x1]  ;;  %v4173_v9 = vld [vmem:[#allocation12 + $0x720] sm:$0xff]  ;;  %v4101_v13 = vld [vmem:[#allocation12 + $0x650] sm:$0xff] }
 0x4ec   : > { %4107 = vmatpush.msra.mxu2 %v4106_v3  ;;  %v3500_v50 = vld [vmem:[#allocation5 + $0x38] sm:$0x1]  ;;  %v3508_v48 = vld [vmem:[#allocation5 + $0x39] sm:$0x1]  ;;  %v3532_v7 = vld [vmem:[#allocation5 + $0x3a] sm:$0x1]  ;;  %4067 = vmatpush.msra.mxu1 %v4066_v22 }
 0x4ed   : > { %4146 = vmatpush.msra.mxu3 %v4145_v23  ;;  %v3516_v2 = vmax.f32 %v3500_v50, %v3508_v48  ;;  %v3540_v6 = vld [vmem:[#allocation5 + $0x3b] sm:$0x1]  ;;  %v3564_v18 = vld [vmem:[#allocation5 + $0x3c] sm:$0x1]  ;;  %v3572_v52 = vld [vmem:[#allocation5 + $0x3d] sm:$0x1]  ;;  %4192 = vmatpush.msrb.mxu0 %v4177_v42 }
 0x4ee   : > { %3966 = vmatmul.f32.vlgmr.msrb.gmra.mxu2 %v3932_v5  ;;  %v3548_v33 = vmax.f32 %v3532_v7, %v3540_v6  ;;  %v3580_v4 = vmax.f32 %v3564_v18, %v3572_v52  ;;  %v3596_v26 = vld [vmem:[#allocation5 + $0x3e] sm:$0x1]  ;;  %v3604_v20 = vld [vmem:[#allocation5 + $0x3f] sm:$0x1]  ;;  %4068 = vmatpush.msra.mxu1 %v4065_v30  ;;  %v4062_v59 = vld [vmem:[#allocation12 + $0x5d8] sm:$0xff] }
 0x4ef   : > { %4108 = vmatpush.msra.mxu2 %v4105_v25  ;;  %v3612_v49 = vmax.f32 %v3596_v26, %v3604_v20  ;;  %4005 = vmatmul.f32.vlgmr.msrb.gmra.mxu3 %v3971_v12  ;;  %v3520_v27 = vmax.f32 %v3515_v45, %v3516_v2  ;;  %v4102_v36 = vld [vmem:[#allocation12 + $0x658] sm:$0xff]  ;;  %v4140_v39 = vld [vmem:[#allocation12 + $0x6d0] sm:$0xff]  ;;  %v4060_v14 = vld [vmem:[#allocation12 + $0x5c8] sm:$0xff] }
 0x4f0   : > { %4193 = vmatpush.msrb.mxu0 %v4176_v11  ;;  %4147 = vmatpush.msra.mxu3 %v4144_v21  ;;  %v3584_v63 = vmax.f32 %v3579_v15, %v3580_v4  ;;  %v3552_v37 = vmax.f32 %v3547_v44, %v3548_v33  ;;  %v4141_v46 = vld [vmem:[#allocation12 + $0x6d8] sm:$0xff]  ;;  %v4100_v47 = vld [vmem:[#allocation12 + $0x648] sm:$0xff]  ;;  %v4171_v32 = vld [vmem:[#allocation12 + $0x710] sm:$0xff] }
 0x4f1   : > { %4044 = vmatmul.f32.vlgmr.msra.gmra.mxu0 %v4010_v16  ;;  %4069 = vmatpush.msra.mxu1 %v4064_v57  ;;  %3524 = vst [vmem:[#allocation6 + $0xc] sm:$0x1] %v3520_v27  ;;  %v3616_v28 = vmax.f32 %v3611_v29, %v3612_v49  ;;  %v4172_v8 = vld [vmem:[#allocation12 + $0x718] sm:$0xff]  ;;  %v4139_v38 = vld [vmem:[#allocation12 + $0x6c8] sm:$0xff]  ;;  %v4059_v54 = vld [vmem:[#allocation12 + $0x5c0] sm:$0xff] }
 0x4f2   : > { %4109 = vmatpush.msra.mxu2 %v4104_v40  ;;  %4148 = vmatpush.msra.mxu3 %v4143_v0  ;;  %3588 = vst [vmem:[#allocation6 + $0xe] sm:$0x1] %v3584_v63  ;;  %v4099_v60 = vld [vmem:[#allocation12 + $0x640] sm:$0xff]  ;;  %v4170_v10 = vld [vmem:[#allocation12 + $0x708] sm:$0xff]  ;;  %v4058_v22 = vld [vmem:[#allocation12 + $0x5b8] sm:$0xff] }
 0x4f3   : > { %4194 = vmatpush.msrb.mxu0 %v4175_v62  ;;  %4070 = vmatpush.msra.mxu1 %v4063_v53  ;;  %3556 = vst [vmem:[#allocation6 + $0xd] sm:$0x1] %v3552_v37  ;;  %v4138_v61 = vld [vmem:[#allocation12 + $0x6c0] sm:$0xff]  ;;  %v4098_v3 = vld [vmem:[#allocation12 + $0x638] sm:$0xff]  ;;  %v4057_v1 = vld [vmem:[#allocation12 + $0x5b0] sm:$0xff] }
 0x4f4   : > { %4110 = vmatpush.msra.mxu2 %v4103_v17  ;;  %4149 = vmatpush.msra.mxu3 %v4142_v24  ;;  %3620 = vst [vmem:[#allocation6 + $0xf] sm:$0x1] %v3616_v28  ;;  %v4137_v56 = vld [vmem:[#allocation12 + $0x6b8] sm:$0xff]  ;;  %v4169_v23 = vld [vmem:[#allocation12 + $0x700] sm:$0xff]  ;;  %v4097_v34 = vld [vmem:[#allocation12 + $0x630] sm:$0xff] }
 0x4f5   : > { %4195 = vmatpush.msrb.mxu0 %v4174_v58  ;;  %4071 = vmatpush.msra.mxu1 %v4062_v59  ;;  %v4136_v55 = vld [vmem:[#allocation12 + $0x6b0] sm:$0xff]  ;;  %v4056_v30 = vld [vmem:[#allocation12 + $0x5a8] sm:$0xff]  ;;  %v4055_v31 = vld [vmem:[#allocation12 + $0x5a0] sm:$0xff] }
 0x4f6   : > { %4111 = vmatpush.msra.mxu2 %v4102_v36  ;;  %4150 = vmatpush.msra.mxu3 %v4141_v46  ;;  %v4096_v25 = vld [vmem:[#allocation12 + $0x628] sm:$0xff]  ;;  %v4095_v5 = vld [vmem:[#allocation12 + $0x620] sm:$0xff]  ;;  %v4054_v51 = vld [vmem:[#allocation12 + $0x598] sm:$0xff] }
 0x4f7   : > { %4196 = vmatpush.msrb.mxu0 %v4173_v9  ;;  %4072 = vmatpush.msra.mxu1 %v4061_v43  ;;  %v4135_v41 = vld [vmem:[#allocation12 + $0x6a8] sm:$0xff]  ;;  %v4134_v11 = vld [vmem:[#allocation12 + $0x6a0] sm:$0xff]  ;;  %v4094_v35 = vld [vmem:[#allocation12 + $0x618] sm:$0xff] }
 0x4f8   : > { %4112 = vmatpush.msra.mxu2 %v4101_v13  ;;  %4151 = vmatpush.msra.mxu3 %v4140_v39  ;;  %v4133_v19 = vld [vmem:[#allocation12 + $0x698] sm:$0xff]  ;;  %v4053_v21 = vld [vmem:[#allocation12 + $0x590] sm:$0xff]  ;;  %v4052_v7 = vld [vmem:[#allocation12 + $0x588] sm:$0xff] }
 0x4f9   : > { %4197 = vmatpush.msrb.mxu0 %v4172_v8  ;;  %4073 = vmatpush.msra.mxu1 %v4060_v14  ;;  %v4167_v42 = vld [vmem:[#allocation6 + $0xe] sm:$0x1]  ;;  %v4093_v50 = vld [vmem:[#allocation12 + $0x610] sm:$0xff]  ;;  %v4092_v57 = vld [vmem:[#allocation12 + $0x608] sm:$0xff] }
 0x4fa   : > { %4113 = vmatpush.msra.mxu2 %v4100_v47  ;;  %4152 = vmatpush.msra.mxu3 %v4139_v38  ;;  %v4132_v48 = vld [vmem:[#allocation12 + $0x690] sm:$0xff]  ;;  %v4131_v40 = vld [vmem:[#allocation12 + $0x688] sm:$0xff]  ;;  %v4051_v45 = vld [vmem:[#allocation12 + $0x580] sm:$0xff] }
 0x4fb   : > { %4198 = vmatpush.msrb.mxu0 %v4171_v32  ;;  %4074 = vmatpush.msra.mxu1 %v4059_v54  ;;  %v4091_v44 = vld [vmem:[#allocation12 + $0x600] sm:$0xff]  ;;  %v4223_v6 = vld [vmem:[#allocation12 + $0x7f8] sm:$0xff]  ;;  %v4222_v33 = vld [vmem:[#allocation12 + $0x7f0] sm:$0xff] }
 0x4fc   : > { %4114 = vmatpush.msra.mxu2 %v4099_v60  ;;  %4153 = vmatpush.msra.mxu3 %v4138_v61  ;;  %v4130_v2 = vld [vmem:[#allocation12 + $0x680] sm:$0xff]  ;;  %v4049_v18 = vld [vmem:[#allocation6 + $0xb] sm:$0x1]  ;;  %v4089_v52 = vld [vmem:[#allocation6 + $0xc] sm:$0x1] }
 0x4fd   : > { %4199 = vmatpush.msrb.mxu0 %v4170_v10  ;;  %4075 = vmatpush.msra.mxu1 %v4058_v22  ;;  %v4128_v15 = vld [vmem:[#allocation6 + $0xd] sm:$0x1]  ;;  %v4221_v4 = vld [vmem:[#allocation12 + $0x7e8] sm:$0xff]  ;;  %v4220_v26 = vld [vmem:[#allocation12 + $0x7e0] sm:$0xff] }
 0x4fe   : > { %4115 = vmatpush.msra.mxu2 %v4098_v3  ;;  %4154 = vmatpush.msra.mxu3 %v4137_v56  ;;  %v4219_v20 = vld [vmem:[#allocation12 + $0x7d8] sm:$0xff]  ;;  %v4218_v12 = vld [vmem:[#allocation12 + $0x7d0] sm:$0xff]  ;;  %v4217_v29 = vld [vmem:[#allocation12 + $0x7c8] sm:$0xff] }
 0x4ff   : > { %4200 = vmatpush.msrb.mxu0 %v4169_v23  ;;  %4076 = vmatpush.msra.mxu1 %v4057_v1  ;;  %v4216_v49 = vld [vmem:[#allocation12 + $0x7c0] sm:$0xff]  ;;  %v4215_v16 = vld [vmem:[#allocation12 + $0x7b8] sm:$0xff]  ;;  %v4214_v0 = vld [vmem:[#allocation12 + $0x7b0] sm:$0xff] }
 0x500   : > { %4201 = vmatmul.f32.vlgmr.msrb.gmra.mxu0 %v4167_v42  ;;  %4116 = vmatpush.msra.mxu2 %v4097_v34  ;;  %v4213_v62 = vld [vmem:[#allocation12 + $0x7a8] sm:$0xff]  ;;  %v4212_v27 = vld [vmem:[#allocation12 + $0x7a0] sm:$0xff]  ;;  %v4211_v53 = vld [vmem:[#allocation12 + $0x798] sm:$0xff] }
 0x501   : > { %4155 = vmatpush.msra.mxu3 %v4136_v55  ;;  %4077 = vmatpush.msra.mxu1 %v4056_v30  ;;  %v4210_v17 = vld [vmem:[#allocation12 + $0x790] sm:$0xff]  ;;  %v4209_v63 = vld [vmem:[#allocation12 + $0x788] sm:$0xff]  ;;  %v4208_v37 = vld [vmem:[#allocation12 + $0x780] sm:$0xff] }
 0x502   : > { %4117 = vmatpush.msra.mxu2 %v4096_v25  ;;  %v4206_v24 = vld [vmem:[#allocation6 + $0xf] sm:$0x1]  ;;  %v4262_v28 = vld [vmem:[%s5772_s7 + $0x70] sm:$0xff]  ;;  %v4261_v59 = vld [vmem:[%s5772_s7 + $0x68] sm:$0xff] }
 0x503   : > { %4156 = vmatpush.msra.mxu3 %v4135_v41  ;;  %4078 = vmatpush.msra.mxu1 %v4055_v31  ;;  %v4263_v58 = vld [vmem:[%s5772_s7 + $0x78] sm:$0xff]  ;;  %v4260_v36 = vld [vmem:[%s5772_s7 + $0x60] sm:$0xff]  ;;  %v4258_v9 = vld [vmem:[%s5772_s7 + $0x50] sm:$0xff] }
 0x504   : > { %4118 = vmatpush.msra.mxu2 %v4095_v5  ;;  %v4259_v46 = vld [vmem:[%s5772_s7 + $0x58] sm:$0xff]  ;;  %v4257_v39 = vld [vmem:[%s5772_s7 + $0x48] sm:$0xff]  ;;  %v4256_v14 = vld [vmem:[%s5772_s7 + $0x40] sm:$0xff] }
 0x505   : > { %4157 = vmatpush.msra.mxu3 %v4134_v11  ;;  %4079 = vmatpush.msra.mxu1 %v4054_v51  ;;  %v4255_v47 = vld [vmem:[%s5772_s7 + $0x38] sm:$0xff]  ;;  %v4254_v54 = vld [vmem:[%s5772_s7 + $0x30] sm:$0xff]  ;;  %v4253_v60 = vld [vmem:[%s5772_s7 + $0x28] sm:$0xff] }
 0x506   : > { %4119 = vmatpush.msra.mxu2 %v4094_v35  ;;  %v4252_v3 = vld [vmem:[%s5772_s7 + $0x20] sm:$0xff]  ;;  %v4251_v23 = vld [vmem:[%s5772_s7 + $0x18] sm:$0xff]  ;;  %v4250_v34 = vld [vmem:[%s5772_s7 + $0x10] sm:$0xff] }
 0x507   : > { %4158 = vmatpush.msra.mxu3 %v4133_v19  ;;  %4080 = vmatpush.msra.mxu1 %v4053_v21  ;;  %v4249_v55 = vld [vmem:[%s5772_s7 + $0x8] sm:$0xff]  ;;  %v4248_v30 = vld [vmem:[%s5772_s7] sm:$0xff] }
 0x508   : > { %4120 = vmatpush.msra.mxu2 %v4093_v50 }
 0x509   : > { %4159 = vmatpush.msra.mxu3 %v4132_v48  ;;  %4081 = vmatpush.msra.mxu1 %v4052_v7 }
 0x50a   : > { %4121 = vmatpush.msra.mxu2 %v4092_v57 }
 0x50b   : > { %4160 = vmatpush.msra.mxu3 %v4131_v40  ;;  %4082 = vmatpush.msra.mxu1 %v4051_v45 }
 0x50c   : > { %4122 = vmatpush.msra.mxu2 %v4091_v44  ;;  %4083 = vmatmul.f32.vlgmr.msra.gmra.mxu1 %v4049_v18 }
 0x50d   : > { %4161 = vmatpush.msra.mxu3 %v4130_v2  ;;  %4123 = vmatmul.f32.vlgmr.msra.gmra.mxu2 %v4089_v52  ;;  %v4245_v52 = vld [vmem:[%s5771_s6] sm:$0x1] }
 0x50e   : > { %4162 = vmatmul.f32.vlgmr.msra.gmra.mxu3 %v4128_v15  ;;  %4224 = vmatpush.msrb.mxu1 %v4223_v6 }
 0x50f   : > { %4265 = vmatpush.msrb.mxu2 %v4263_v58 }
 0x510   : > { %4225 = vmatpush.msrb.mxu1 %v4222_v33 }
 0x511   : > { %4266 = vmatpush.msrb.mxu2 %v4262_v28 }
 0x512   : > { %4226 = vmatpush.msrb.mxu1 %v4221_v4 }
 0x513   : > { %4267 = vmatpush.msrb.mxu2 %v4261_v59 }
 0x514   : > { %4227 = vmatpush.msrb.mxu1 %v4220_v26  ;;  %v4264_v26 = vld [vmem:[%s5773_s8] sm:$0x1] }
 0x515   : > { %4268 = vmatpush.msrb.mxu2 %v4260_v36 }
 0x516   : > { %4228 = vmatpush.msrb.mxu1 %v4219_v20 }
 0x517   : > { %4269 = vmatpush.msrb.mxu2 %v4259_v46 }
 0x518   : > { %4229 = vmatpush.msrb.mxu1 %v4218_v12 }
 0x519   : > { %4270 = vmatpush.msrb.mxu2 %v4258_v9 }
 0x51a   : > { %4230 = vmatpush.msrb.mxu1 %v4217_v29 }
 0x51b   : > { %4271 = vmatpush.msrb.mxu2 %v4257_v39 }
 0x51c   : > { %4231 = vmatpush.msrb.mxu1 %v4216_v49 }
 0x51d   : > { %4272 = vmatpush.msrb.mxu2 %v4256_v14 }
 0x51e   : > { %4232 = vmatpush.msrb.mxu1 %v4215_v16 }
 0x51f   : > { %4273 = vmatpush.msrb.mxu2 %v4255_v47 }
 0x520   : > { %4233 = vmatpush.msrb.mxu1 %v4214_v0 }
 0x521   : > { %4274 = vmatpush.msrb.mxu2 %v4254_v54 }
 0x522   : > { %4234 = vmatpush.msrb.mxu1 %v4213_v62 }
 0x523   : > { %4275 = vmatpush.msrb.mxu2 %v4253_v60 }
 0x524   : > { %4235 = vmatpush.msrb.mxu1 %v4212_v27 }
 0x525   : > { %4276 = vmatpush.msrb.mxu2 %v4252_v3 }
 0x526   : > { %4236 = vmatpush.msrb.mxu1 %v4211_v53 }
 0x527   : > { %4277 = vmatpush.msrb.mxu2 %v4251_v23 }
 0x528   : > { %4237 = vmatpush.msrb.mxu1 %v4210_v17 }
 0x529   : > { %4278 = vmatpush.msrb.mxu2 %v4250_v34 }
 0x52a   : > { %4238 = vmatpush.msrb.mxu1 %v4209_v63 }
 0x52b   : > { %4279 = vmatpush.msrb.mxu2 %v4249_v55 }
 0x52c   : > { %4239 = vmatpush.msrb.mxu1 %v4208_v37 }
 0x52d   : > { %4240 = vmatmul.f32.vlgmr.msrb.gmra.mxu1 %v4206_v24  ;;  %4280 = vmatpush.msrb.mxu2 %v4248_v30 }
 0x547   : > { %v3673_v43 = vpop.f32.mrf.mxu1 }
 0x54c   : > { %v3693_v13 = vpop.f32.mrf.mxu2 }
 0x54d   : > { %v3694_v8 = vadd.f32 %v3693_v13, %v3673_v43 }
 0x54e   : > { %v3731_v38 = vpop.f32.mrf.mxu3 }
 0x54f   : > { %v3734_v32 = vadd.f32 %v3731_v38, %v3694_v8  ;;  %v3770_v61 = vpop.f32.mrf.mxu1 }
 0x551   : > { %v3773_v22 = vadd.f32 %v3770_v61, %v3734_v32 }
 0x558   : > { %v3888_v25 = vpop.f32.mrf.mxu0 }
 0x55c   : > { %v3810_v10 = vpop.f32.mrf.mxu2 }
 0x55d   : > { %v3813_v56 = vadd.f32 %v3810_v10, %v3773_v22 }
 0x55e   : > { %v3849_v42 = vpop.f32.mrf.mxu3 }
 0x55f   : > { %v3852_v1 = vadd.f32 %v3849_v42, %v3813_v56 }
 0x561   : > { %v3891_v31 = vadd.f32 %v3888_v25, %v3852_v1 }
 0x568   : > { %v3927_v41 = vpop.f32.mrf.mxu1 }
 0x569   : > { %v3930_v11 = vadd.f32 %v3927_v41, %v3891_v31 }
 0x56e   : > { %v4045_v21 = vpop.f32.mrf.mxu0 }
 0x571   : > { %v3967_v5 = vpop.f32.mrf.mxu2 }
 0x572   : > { %v3970_v51 = vadd.f32 %v3967_v5, %v3930_v11  ;;  %v4006_v35 = vpop.f32.mrf.mxu3 }
 0x574   : > { %v4009_v19 = vadd.f32 %v4006_v35, %v3970_v51 }
 0x576   : > { %v4048_v48 = vadd.f32 %v4045_v21, %v4009_v19 }
 0x57d   : > { %v4202_v2 = vpop.f32.mrf.mxu0 }
 0x589   : > { %v4084_v50 = vpop.f32.mrf.mxu1 }
 0x58a   : > { %v4087_v57 = vadd.f32 %v4084_v50, %v4048_v48 }
 0x590   : > { %v4124_v7 = vpop.f32.mrf.mxu2 }
 0x591   : > { %v4127_v40 = vadd.f32 %v4124_v7, %v4087_v57  ;;  %v4163_v45 = vpop.f32.mrf.mxu3 }
 0x593   : > { %v4166_v44 = vadd.f32 %v4163_v45, %v4127_v40 }
 0x595   : > { %v4205_v6 = vadd.f32 %v4202_v2, %v4166_v44 }
 0x5aa   : > { %v4241_v18 = vpop.f32.mrf.mxu1 }
 0x5ab   : > { %v4244_v15 = vadd.f32 %v4241_v18, %v4205_v6 }
 0x5ad   : > { %v4246_v33 = vadd.f32 %v4245_v52, %v4244_v15 }
 0x5af   : > { %v4247_v4 = vmax.f32 %v4246_v33, 0.0 }
 0x5b1   : > { %4281 = vmatmul.f32.vlgmr.msrb.gmra.mxu2 %v4247_v4 }
 0x634   : > { %v4282_v20 = vpop.f32.mrf.mxu2 }
 0x635   : > { %v4283_v12 = vadd.f32 %v4282_v20, %v4264_v26 }
 0x637   : > { %4285 = vst [vmem:[%s374_s28] sm:$0x1] %v4283_v12 }
 0x638   : > { %4602 = shalt.err (!%p4599_p8)
}
 0x639   : > { %4412 = dma.vmem_to_hbm [thread:$0]  (%p4741_p5), %s4298_s29, 16, %s4300_s14, %s4287_s16  }
 0x63a PF: > { %p4434_p9 = scmp.ge.s32.totalorder %s4645_s12, 2  ;;  %s4311_s1 = sand.u32 1, %s4633_s30  }
 0x63b   : > { %s4312_s18 = scalar_lea.sflag [#allocation9], %s4311_s1 }
 0x63c   : > { %p4425_p10 = pnand %p4434_p9, %p4745_p6 }
 0x63e   : > { %p4426_p11 = pneg %p4425_p10 }
 0x640   : > { %4628 = dma.done.wait (%p4426_p11), %s4312_s18, 16  }
 0x641   : > { %4630 = vsyncadd (%p4426_p11), %s4312_s18, 4294967280  ;;  %s5842_s21 = sld [smem:[#allocation17_spill]]  ;;  %p21_p12 = scmp.ge.s32.totalorder %s4728_s15, 4  }
 0x642   : > { %s5843_s30 = smov %s4637_s10  ;;  %s5844_s10 = smov %s4641_s11 }
 0x643   : > { %s5846_s12 = smov %s4728_s15  ;;  %23 = sbr.rel (!%p21_p12) target bundleno = 8 (0x8), region = 142 }
 0x647   : > { %s5845_s11 = smov %s5842_s21 }
 0x648   :  { %4317 = vsyncpa [#allocation8], 1 }
 0x649   :  { %4319 = vsyncpa [#allocation8 + $0x1], 1 }
 0x64a   :  { %4320 = vsyncpa [#allocation11], 1 }
 0x64b   :  { %4321 = vsyncpa [#allocation9], 1 }
 0x64c   :  { %4323 = vsyncpa [#allocation9 + $0x1], 1 }

</bundles_post_ra>
